<compile_context>
chip_gen: v5e
topology: v5e:2x2
jax: 0.10.0
libtpu: 0.0.40
codegen_flags: <defaults>
</compile_context>

<pallas_src>
import functools

import jax
import jax.numpy as jnp
from jax import lax
from jax.experimental import pallas as pl
from jax.experimental.pallas import tpu as pltpu

_BN_EPSILON = 1e-3
_LANES = 128


def _round_up(x, m):
    return (x + m - 1) // m * m


def _pad_to(a, shape):
    pads = [(0, s - d) for d, s in zip(a.shape, shape)]
    return jnp.pad(a, pads) if any(p[1] for p in pads) else a


def _sigmoid(x):
    # exp on the EUP, approximate reciprocal on the EUP -> no VPU divide sequence.
    return pl.reciprocal(1.0 + jnp.exp(-x), approx=True)


def _swish(x):
    return x * _sigmoid(x)


def _mbconv_kernel(x_ref, w1_ref, b1_ref, wd_ref, bd_ref,
                   wr_ref, br_ref, we_ref, be_ref, w2_ref, b2_ref,
                   o_ref, hpad_ref, *, H, W, K, P, apply_residual):
    """Processes a (Nb, H, W, Cin) block of images entirely in VMEM."""
    Nb = x_ref.shape[0]
    Cin = x_ref.shape[-1]
    C = w1_ref.shape[-1]          # expanded channels, padded to 128 lanes
    Cout = w2_ref.shape[-1]
    Hp = H + 2 * P
    Wp = W + 2 * P

    # ---- expand 1x1 conv (+folded BN) + swish : one (Nb*H*W, Cin) @ (Cin, C) MXU matmul ----
    # x is read (and cast) inline; the f32 copy is NOT kept live across the body.
    x_bf = x_ref[...].astype(jnp.bfloat16).reshape(Nb * H * W, Cin)
    h = jnp.dot(x_bf, w1_ref[...], preferred_element_type=jnp.float32) + b1_ref[...]
    h = _swish(h).reshape(Nb, H, W, C)

    # ---- depthwise KxK conv, stride 1, SAME (+folded BN) + swish ----
    # Zero only the thin halo ring of the staging buffer, then read the K*K taps unmasked:
    # no iota masks / selects on the VALU.  The ring is re-zeroed every grid step on purpose:
    # with the batch axis marked "parallel" each TensorCore runs its own subset of steps, so
    # a "zero once at step 0" scheme would be wrong on megacore parts.
    if P > 0:
        zrow = jnp.zeros((Nb, P, Wp, C), hpad_ref.dtype)
        zcol = jnp.zeros((Nb, Hp, P, C), hpad_ref.dtype)
        hpad_ref[:, 0:P, :, :] = zrow
        hpad_ref[:, H + P:Hp, :, :] = zrow
        hpad_ref[:, :, 0:P, :] = zcol
        hpad_ref[:, :, W + P:Wp, :] = zcol
    hpad_ref[:, P:P + H, P:P + W, :] = h.astype(hpad_ref.dtype)

    wd = wd_ref[...]                                        # (K*K, C) f32, hoisted once
    acc = jnp.zeros((Nb, H, W, C), jnp.float32)
    for dy in range(K):
        for dx in range(K):
            win = hpad_ref[:, dy:dy + H, dx:dx + W, :]      # bf16 tap, f32 accumulate
            acc = acc + win.astype(jnp.float32) * wd[dy * K + dx]
    d = _swish(acc + bd_ref[...])                           # (Nb, H, W, C)

    # ---- squeeze & excite ----
    se = jnp.mean(d.reshape(Nb, H * W, C), axis=1)          # (Nb, C)
    r = _swish(jnp.dot(se.astype(jnp.bfloat16), wr_ref[...],
                       preferred_element_type=jnp.float32) + br_ref[...])            # (Nb, Csq)
    gate = _sigmoid(jnp.dot(r.astype(jnp.bfloat16), we_ref[...],
                            preferred_element_type=jnp.float32) + be_ref[...])        # (Nb, C)

    # ---- project 1x1 conv (+folded BN), no activation ----
    # Gate multiply fused into the bf16 cast feeding the MXU (no extra f32 copy of d kept).
    proj_in = (d * gate[:, None, None, :]).astype(jnp.bfloat16).reshape(Nb * H * W, C)
    out = jnp.dot(proj_in, w2_ref[...], preferred_element_type=jnp.float32) + b2_ref[...]
    out = out.reshape(Nb, H, W, Cout)
    if apply_residual:
        out = out + x_ref[...].astype(jnp.float32)          # re-read resident block
    o_ref[...] = out.astype(o_ref.dtype)


def _block_vmem_bytes(nb, H, W, P, Cin, Cout, C_p, stage_bytes):
    io = 2 * nb * H * W * (Cin + Cout) * 4                  # double-buffered in/out blocks
    scratch = nb * (H + 2 * P) * (W + 2 * P) * C_p * stage_bytes   # halo staging buffer
    work = 6 * nb * H * W * C_p * 4                         # h / acc / d / gated / temporaries
    return io + scratch + work


def mbconv_forward(x_nhwc, params, *, K, stride, apply_residual,
                   images_per_step=None, halo_stage_dtype=jnp.bfloat16):
    """x_nhwc: (N, H, W, Cin) float32.  Returns (N, H, W, Cout) float32."""
    # TODO(synk): stride=2 path (_Conv2d asymmetric pad [p-1, p, p-1, p]) not implemented.
    assert stride == 1
    w1, b1, wd, bd, wr, br, we, be, w2, b2 = params
    N, H, W, Cin = x_nhwc.shape
    C = w1.shape[1]
    Csq = wr.shape[1]
    Cout = w2.shape[1]
    P = (K - 1) // 2
    if apply_residual:
        assert Cin == Cout

    # Pad only the internal channel axes to the 128-lane width.  Padded weight columns/rows
    # and bias entries are exactly zero, so padded activation channels stay zero through
    # expand/depthwise/SE/project (sigmoid(0)=0.5 only ever multiplies zero activations).
    C_p = _round_up(C, _LANES)
    Csq_p = _round_up(Csq, _LANES)
    w1p = _pad_to(w1, (Cin, C_p)).astype(jnp.bfloat16)       # bf16 weights -> MXU, f32 accum
    b1p = _pad_to(b1, (1, C_p))
    wdp = _pad_to(wd, (K * K, C_p))                          # depthwise weights stay f32 (VPU)
    bdp = _pad_to(bd, (1, C_p))
    wrp = _pad_to(wr, (C_p, Csq_p)).astype(jnp.bfloat16)
    brp = _pad_to(br, (1, Csq_p))
    wep = _pad_to(we, (Csq_p, C_p)).astype(jnp.bfloat16)
    bep = _pad_to(be, (1, C_p))
    w2p = _pad_to(w2, (C_p, Cout)).astype(jnp.bfloat16)
    b2p = b2                                                 # (1, Cout), no padding

    stage_bytes = jnp.dtype(halo_stage_dtype).itemsize

    # Per-generation sizing from the actual VMEM capacity (v7x 64 MiB, v5e/v6e 128 MiB).
    try:
        vmem_cap = int(pltpu.get_tpu_info().vmem_capacity_bytes)
    except Exception:
        vmem_cap = 64 * 2 ** 20                              # assume smallest per-core VMEM
    block_budget = vmem_cap // 4                             # ~16 MiB v7x, ~32 MiB v5e/v6e

    # Images per grid step: keep >=2 grid steps when possible so both TensorCores get work
    # (megacore); otherwise grow the block up to the budget to amortize step overhead.
    if images_per_step is None:
        images_per_step = 1
        min_steps = min(2, N)
        for nb in range(N, 0, -1):
            if (N % nb == 0 and N // nb >= min_steps
                    and _block_vmem_bytes(nb, H, W, P, Cin, Cout, C_p,
                                          stage_bytes) <= block_budget):
                images_per_step = nb
                break
    Nb = images_per_step
    assert N % Nb == 0

    weights = (w1p, b1p, wdp, bdp, wrp, brp, wep, bep, w2p, b2p)
    wbytes = sum(int(a.size) * a.dtype.itemsize for a in weights)
    est = _block_vmem_bytes(Nb, H, W, P, Cin, Cout, C_p, stage_bytes) + 2 * wbytes
    # Leave ~25% of physical VMEM as headroom for compiler scratch / regalloc (matters on v7x).
    vmem_limit = int(min(3 * vmem_cap // 4, max(32 * 2 ** 20, 2 * est)))

    flops = (2 * N * H * W * (Cin * C_p + K * K * C_p + C_p * Cout)
             + 4 * N * C_p * Csq_p)
    transcendentals = 3 * N * H * W * C_p
    bytes_accessed = int(x_nhwc.size) * 4 + N * H * W * Cout * 4 + wbytes
    cost = pl.CostEstimate(flops=flops, transcendentals=transcendentals,
                           bytes_accessed=bytes_accessed)

    kernel = functools.partial(_mbconv_kernel, H=H, W=W, K=K, P=P,
                               apply_residual=apply_residual)

    def run(weight_mode):
        def wspec(a):
            if weight_mode is None:
                return pl.BlockSpec(a.shape, lambda n, nd=a.ndim: (0,) * nd)
            return pl.BlockSpec(a.shape, lambda n, nd=a.ndim: (0,) * nd,
                                pipeline_mode=weight_mode)

        call = pl.pallas_call(
            kernel,
            out_shape=jax.ShapeDtypeStruct((N, H, W, Cout), x_nhwc.dtype),
            grid_spec=pltpu.PrefetchScalarGridSpec(
                num_scalar_prefetch=0,
                grid=(N // Nb,),
                in_specs=[pl.BlockSpec((Nb, H, W, Cin), lambda n: (n, 0, 0, 0))]
                         + [wspec(a) for a in weights],
                out_specs=pl.BlockSpec((Nb, H, W, Cout), lambda n: (n, 0, 0, 0)),
                scratch_shapes=[pltpu.VMEM((Nb, H + 2 * P, W + 2 * P, C_p),
                                           halo_stage_dtype)]),
            compiler_params=pltpu.CompilerParams(
                dimension_semantics=("parallel",),
                vmem_limit_bytes=vmem_limit),
            cost_estimate=cost,
        )
        return call(x_nhwc, *weights)

    # Constant-index weight/bias blocks never change between grid steps; request a single
    # pipeline buffer for them (saves 2x wbytes of VMEM on wide layers).  Fall back to the
    # default double-buffering if this Pallas build does not accept pipeline_mode here.
    try:
        return jax.block_until_ready(run(pl.Buffered(1)))
    except Exception:
        return jax.block_until_ready(run(None))


def init_params(key, Cin, Cout, K, expansion, se_ratio):
    """Random weights with eval-mode BatchNorm folded into the conv weights."""
    C = int(round(Cin * expansion))
    se_ratio_eff = se_ratio * Cin / C
    Csq = int(C * se_ratio_eff)

    ks = jax.random.split(key, 16)

    def bn_fold(kg, kb, km, kv, ch):
        gamma = 1.0 + 0.1 * jax.random.normal(kg, (ch,), jnp.float32)
        beta = 0.1 * jax.random.normal(kb, (ch,), jnp.float32)
        mean = 0.1 * jax.random.normal(km, (ch,), jnp.float32)
        var = 1.0 + 0.1 * jax.random.uniform(kv, (ch,), jnp.float32)
        scale = gamma / jnp.sqrt(var + _BN_EPSILON)
        shift = beta - mean * scale
        return scale, shift

    # expand 1x1 conv (no bias) + BN1  (module skips this when expansion == 1)
    w1 = 0.2 * jax.random.normal(ks[0], (Cin, C), jnp.float32)
    s1, sh1 = bn_fold(ks[1], ks[2], ks[3], ks[4], C)
    w1 = w1 * s1[None, :]
    b1 = sh1[None, :]

    # depthwise KxK conv (no bias) + BN2
    wd = 0.2 * jax.random.normal(ks[5], (K * K, C), jnp.float32)
    s2, sh2 = bn_fold(ks[6], ks[7], ks[8], ks[9], C)
    wd = wd * s2[None, :]
    bd = sh2[None, :]

    # SE reduce / expand 1x1 convs (with bias, no BN)
    wr = 0.2 * jax.random.normal(ks[10], (C, Csq), jnp.float32)
    br = 0.1 * jax.random.normal(ks[11], (1, Csq), jnp.float32)
    we = 0.2 * jax.random.normal(ks[12], (Csq, C), jnp.float32)
    be = 0.1 * jax.random.normal(ks[13], (1, C), jnp.float32)

    # project 1x1 conv (no bias) + BN3
    w2 = 0.2 * jax.random.normal(ks[14], (C, Cout), jnp.float32)
    kA, kB, kC, kD = jax.random.split(ks[15], 4)
    s3, sh3 = bn_fold(kA, kB, kC, kD, Cout)
    w2 = w2 * s3[None, :]
    b2 = sh3[None, :]

    return (w1, b1, wd, bd, wr, br, we, be, w2, b2)


def ref_forward(x, params, K, apply_residual):
    """Pure-JAX f32 reference (independent conv lowering) for correctness check."""
    w1, b1, wd, bd, wr, br, we, be, w2, b2 = params
    N, H, W, Cin = x.shape
    C = w1.shape[1]
    P = (K - 1) // 2
    h = jnp.einsum('nhwc,cd->nhwd', x, w1) + b1
    h = h * jax.nn.sigmoid(h)
    hp = jnp.pad(h, ((0, 0), (P, P), (P, P), (0, 0)))
    rhs = wd.reshape(K, K, C)[:, :, None, :]                    # HWIO, I=1, O=C
    d = lax.conv_general_dilated(hp, rhs, window_strides=(1, 1), padding='VALID',
                                 dimension_numbers=('NHWC', 'HWIO', 'NHWC'),
                                 feature_group_count=C)
    d = d + bd
    d = d * jax.nn.sigmoid(d)
    se = jnp.mean(d, axis=(1, 2), keepdims=True)                # (N,1,1,C)
    r = jnp.einsum('nijc,cd->nijd', se, wr) + br
    r = r * jax.nn.sigmoid(r)
    g = jax.nn.sigmoid(jnp.einsum('nijd,dc->nijc', r, we) + be)
    d = d * g
    out = jnp.einsum('nhwc,cd->nhwd', d, w2) + b2
    if apply_residual:
        out = out + x
    return out


if __name__ == "__main__":
    N, Cin, H, W = 2, 8, 16, 16
    Cout, K, stride, expansion, se_ratio = 8, 3, 1, 4, 0.25

    key = jax.random.PRNGKey(0)
    x_nchw = jax.random.normal(key, (N, Cin, H, W), jnp.float32)   # PyTorch-style NCHW input
    x = jnp.transpose(x_nchw, (0, 2, 3, 1))                        # -> NHWC for the kernel

    params = init_params(jax.random.PRNGKey(1), Cin, Cout, K, expansion, se_ratio)
    apply_residual = (stride == 1 and Cin == Cout)

    out = mbconv_forward(x, params, K=K, stride=stride, apply_residual=apply_residual)
    out = jax.block_until_ready(out)

    ref = ref_forward(x, params, K, apply_residual)
    err = jnp.abs(out - ref)
    max_err = float(jnp.max(err))
    mean_err = float(jnp.mean(err))
    # bf16 MXU matmuls / bf16 activation staging with f32 accumulation (plus approx-reciprocal
    # sigmoid) -> looser tolerance than the pure-f32 reference, but still tight enough to catch
    # any structural bug (wrong tap, halo, gate, residual...).
    assert max_err < 1e-1 and mean_err < 1e-2, (max_err, mean_err)
    print("KERNEL_OK")
</pallas_src>

<mosaic_0001>
module attributes {stable_mosaic.version = 11 : i64} {
  func.func @_mbconv_kernel(%arg0: i32, %arg1: memref<1x16x16x8xf32, #tpu.memory_space<vmem>>, %arg2: memref<8x128xbf16, #tpu.memory_space<vmem>>, %arg3: memref<1x128xf32, #tpu.memory_space<vmem>>, %arg4: memref<9x128xf32, #tpu.memory_space<vmem>>, %arg5: memref<1x128xf32, #tpu.memory_space<vmem>>, %arg6: memref<128x128xbf16, #tpu.memory_space<vmem>>, %arg7: memref<1x128xf32, #tpu.memory_space<vmem>>, %arg8: memref<128x128xbf16, #tpu.memory_space<vmem>>, %arg9: memref<1x128xf32, #tpu.memory_space<vmem>>, %arg10: memref<128x8xbf16, #tpu.memory_space<vmem>>, %arg11: memref<1x8xf32, #tpu.memory_space<vmem>>, %arg12: memref<1x16x16x8xf32, #tpu.memory_space<vmem>>, %arg13: memref<1x18x18x128xbf16, #tpu.memory_space<vmem>>) attributes {dimension_semantics = [#tpu.dimension_semantics<parallel>], iteration_bounds = array<i64: 2>, scalar_prefetch = 0 : i64, scratch_operands = 1 : i64, tpu.core_type = #tpu.core_type<tc>, window_params = [{transform_indices = @transform_0, window_bounds = array<i64: 1, 16, 16, 8>}, {pipeline_mode = #tpu.pipeline_mode<synchronous>, transform_indices = @transform_1, window_bounds = array<i64: 8, 128>}, {pipeline_mode = #tpu.pipeline_mode<synchronous>, transform_indices = @transform_2, window_bounds = array<i64: 1, 128>}, {pipeline_mode = #tpu.pipeline_mode<synchronous>, transform_indices = @transform_3, window_bounds = array<i64: 9, 128>}, {pipeline_mode = #tpu.pipeline_mode<synchronous>, transform_indices = @transform_4, window_bounds = array<i64: 1, 128>}, {pipeline_mode = #tpu.pipeline_mode<synchronous>, transform_indices = @transform_5, window_bounds = array<i64: 128, 128>}, {pipeline_mode = #tpu.pipeline_mode<synchronous>, transform_indices = @transform_6, window_bounds = array<i64: 1, 128>}, {pipeline_mode = #tpu.pipeline_mode<synchronous>, transform_indices = @transform_7, window_bounds = array<i64: 128, 128>}, {pipeline_mode = #tpu.pipeline_mode<synchronous>, transform_indices = @transform_8, window_bounds = array<i64: 1, 128>}, {pipeline_mode = #tpu.pipeline_mode<synchronous>, transform_indices = @transform_9, window_bounds = array<i64: 128, 8>}, {pipeline_mode = #tpu.pipeline_mode<synchronous>, transform_indices = @transform_10, window_bounds = array<i64: 1, 8>}, {transform_indices = @transform_11, window_bounds = array<i64: 1, 16, 16, 8>}]} {
    %c0 = arith.constant 0 : index
    %c0_0 = arith.constant 0 : index
    %c0_1 = arith.constant 0 : index
    %c0_2 = arith.constant 0 : index
    %0 = vector.load %arg1[%c0, %c0_0, %c0_1, %c0_2] : memref<1x16x16x8xf32, #tpu.memory_space<vmem>>, vector<1x16x16x8xf32>
    %1 = arith.truncf %0 : vector<1x16x16x8xf32> to vector<1x16x16x8xbf16>
    %2 = vector.shape_cast %1 : vector<1x16x16x8xbf16> to vector<256x8xbf16>
    %c0_3 = arith.constant 0 : index
    %c0_4 = arith.constant 0 : index
    %3 = vector.load %arg2[%c0_3, %c0_4] : memref<8x128xbf16, #tpu.memory_space<vmem>>, vector<8x128xbf16>
    %cst = arith.constant dense<0.000000e+00> : vector<256x128xf32>
    %4 = tpu.matmul %2, %3, %cst {dimension_numbers = #tpu.dot_dimension_numbers<[1], [0], [0], [1], [0, 0, 1, 1], [], []>} : vector<256x8xbf16>, vector<8x128xbf16>, vector<256x128xf32> -> vector<256x128xf32>
    %c0_5 = arith.constant 0 : index
    %c0_6 = arith.constant 0 : index
    %5 = vector.load %arg3[%c0_5, %c0_6] : memref<1x128xf32, #tpu.memory_space<vmem>>, vector<1x128xf32>
    %6 = vector.broadcast %5 : vector<1x128xf32> to vector<256x128xf32>
    %7 = arith.addf %4, %6 : vector<256x128xf32>
    %cst_7 = arith.constant 0.000000e+00 : f32
    %8 = vector.broadcast %cst_7 : f32 to vector<256x128xf32>
    %9 = arith.subf %8, %7 : vector<256x128xf32>
    %10 = math.exp %9 : vector<256x128xf32>
    %cst_8 = arith.constant 1.000000e+00 : f32
    %11 = vector.broadcast %cst_8 : f32 to vector<256x128xf32>
    %12 = arith.addf %11, %10 : vector<256x128xf32>
    %13 = tpu.reciprocal %12 {approx = true} : vector<256x128xf32> -> vector<256x128xf32>
    %14 = arith.mulf %7, %13 : vector<256x128xf32>
    %15 = vector.shape_cast %14 : vector<256x128xf32> to vector<1x16x16x128xf32>
    %cst_9 = arith.constant 0.000000e+00 : bf16
    %16 = vector.broadcast %cst_9 : bf16 to vector<1x1x18x128xbf16>
    %cst_10 = arith.constant 0.000000e+00 : bf16
    %17 = vector.broadcast %cst_10 : bf16 to vector<1x18x1x128xbf16>
    %c0_11 = arith.constant 0 : index
    %c0_12 = arith.constant 0 : index
    %c0_13 = arith.constant 0 : index
    %c0_14 = arith.constant 0 : index
    %18 = vector.load %arg13[%c0_11, %c0_12, %c0_13, %c0_14] : memref<1x18x18x128xbf16, #tpu.memory_space<vmem>>, vector<1x1x18x128xbf16>
    tpu.vector_store %arg13[%c0_11, %c0_12, %c0_13, %c0_14], %16 {strides = array<i32>} : memref<1x18x18x128xbf16, #tpu.memory_space<vmem>>, vector<1x1x18x128xbf16>,
    %c0_15 = arith.constant 0 : index
    %c17 = arith.constant 17 : index
    %c0_16 = arith.constant 0 : index
    %c0_17 = arith.constant 0 : index
    %19 = vector.load %arg13[%c0_15, %c17, %c0_16, %c0_17] : memref<1x18x18x128xbf16, #tpu.memory_space<vmem>>, vector<1x1x18x128xbf16>
    tpu.vector_store %arg13[%c0_15, %c17, %c0_16, %c0_17], %16 {strides = array<i32>} : memref<1x18x18x128xbf16, #tpu.memory_space<vmem>>, vector<1x1x18x128xbf16>,
    %c0_18 = arith.constant 0 : index
    %c0_19 = arith.constant 0 : index
    %c0_20 = arith.constant 0 : index
    %c0_21 = arith.constant 0 : index
    %20 = vector.load %arg13[%c0_18, %c0_19, %c0_20, %c0_21] : memref<1x18x18x128xbf16, #tpu.memory_space<vmem>>, vector<1x18x1x128xbf16>
    tpu.vector_store %arg13[%c0_18, %c0_19, %c0_20, %c0_21], %17 {strides = array<i32>} : memref<1x18x18x128xbf16, #tpu.memory_space<vmem>>, vector<1x18x1x128xbf16>,
    %c0_22 = arith.constant 0 : index
    %c0_23 = arith.constant 0 : index
    %c17_24 = arith.constant 17 : index
    %c0_25 = arith.constant 0 : index
    %21 = vector.load %arg13[%c0_22, %c0_23, %c17_24, %c0_25] : memref<1x18x18x128xbf16, #tpu.memory_space<vmem>>, vector<1x18x1x128xbf16>
    tpu.vector_store %arg13[%c0_22, %c0_23, %c17_24, %c0_25], %17 {strides = array<i32>} : memref<1x18x18x128xbf16, #tpu.memory_space<vmem>>, vector<1x18x1x128xbf16>,
    %22 = arith.truncf %15 : vector<1x16x16x128xf32> to vector<1x16x16x128xbf16>
    %c0_26 = arith.constant 0 : index
    %c1 = arith.constant 1 : index
    %c1_27 = arith.constant 1 : index
    %c0_28 = arith.constant 0 : index
    %23 = vector.load %arg13[%c0_26, %c1, %c1_27, %c0_28] : memref<1x18x18x128xbf16, #tpu.memory_space<vmem>>, vector<1x16x16x128xbf16>
    tpu.vector_store %arg13[%c0_26, %c1, %c1_27, %c0_28], %22 {strides = array<i32>} : memref<1x18x18x128xbf16, #tpu.memory_space<vmem>>, vector<1x16x16x128xbf16>,
    %c0_29 = arith.constant 0 : index
    %c0_30 = arith.constant 0 : index
    %24 = vector.load %arg4[%c0_29, %c0_30] : memref<9x128xf32, #tpu.memory_space<vmem>>, vector<9x128xf32>
    %cst_31 = arith.constant 0.000000e+00 : f32
    %25 = vector.broadcast %cst_31 : f32 to vector<1x16x16x128xf32>
    %c0_32 = arith.constant 0 : index
    %c0_33 = arith.constant 0 : index
    %c0_34 = arith.constant 0 : index
    %c0_35 = arith.constant 0 : index
    %26 = vector.load %arg13[%c0_32, %c0_33, %c0_34, %c0_35] : memref<1x18x18x128xbf16, #tpu.memory_space<vmem>>, vector<1x16x16x128xbf16>
    %27 = arith.extf %26 : vector<1x16x16x128xbf16> to vector<1x16x16x128xf32>
    %28 = vector.extract_strided_slice %24 {offsets = [0, 0], sizes = [1, 128], strides = [1, 1]} : vector<9x128xf32> to vector<1x128xf32>
    %29 = vector.shape_cast %28 : vector<1x128xf32> to vector<128xf32>
    %30 = vector.shape_cast %29 : vector<128xf32> to vector<1x1x1x128xf32>
    %31 = vector.broadcast %30 : vector<1x1x1x128xf32> to vector<1x16x16x128xf32>
    %32 = arith.mulf %27, %31 : vector<1x16x16x128xf32>
    %33 = arith.addf %25, %32 : vector<1x16x16x128xf32>
    %c0_36 = arith.constant 0 : index
    %c0_37 = arith.constant 0 : index
    %c1_38 = arith.constant 1 : index
    %c0_39 = arith.constant 0 : index
    %34 = vector.load %arg13[%c0_36, %c0_37, %c1_38, %c0_39] : memref<1x18x18x128xbf16, #tpu.memory_space<vmem>>, vector<1x16x16x128xbf16>
    %35 = arith.extf %34 : vector<1x16x16x128xbf16> to vector<1x16x16x128xf32>
    %36 = vector.extract_strided_slice %24 {offsets = [1, 0], sizes = [1, 128], strides = [1, 1]} : vector<9x128xf32> to vector<1x128xf32>
    %37 = vector.shape_cast %36 : vector<1x128xf32> to vector<128xf32>
    %38 = vector.shape_cast %37 : vector<128xf32> to vector<1x1x1x128xf32>
    %39 = vector.broadcast %38 : vector<1x1x1x128xf32> to vector<1x16x16x128xf32>
    %40 = arith.mulf %35, %39 : vector<1x16x16x128xf32>
    %41 = arith.addf %33, %40 : vector<1x16x16x128xf32>
    %c0_40 = arith.constant 0 : index
    %c0_41 = arith.constant 0 : index
    %c2 = arith.constant 2 : index
    %c0_42 = arith.constant 0 : index
    %42 = vector.load %arg13[%c0_40, %c0_41, %c2, %c0_42] : memref<1x18x18x128xbf16, #tpu.memory_space<vmem>>, vector<1x16x16x128xbf16>
    %43 = arith.extf %42 : vector<1x16x16x128xbf16> to vector<1x16x16x128xf32>
    %44 = vector.extract_strided_slice %24 {offsets = [2, 0], sizes = [1, 128], strides = [1, 1]} : vector<9x128xf32> to vector<1x128xf32>
    %45 = vector.shape_cast %44 : vector<1x128xf32> to vector<128xf32>
    %46 = vector.shape_cast %45 : vector<128xf32> to vector<1x1x1x128xf32>
    %47 = vector.broadcast %46 : vector<1x1x1x128xf32> to vector<1x16x16x128xf32>
    %48 = arith.mulf %43, %47 : vector<1x16x16x128xf32>
    %49 = arith.addf %41, %48 : vector<1x16x16x128xf32>
    %c0_43 = arith.constant 0 : index
    %c1_44 = arith.constant 1 : index
    %c0_45 = arith.constant 0 : index
    %c0_46 = arith.constant 0 : index
    %50 = vector.load %arg13[%c0_43, %c1_44, %c0_45, %c0_46] : memref<1x18x18x128xbf16, #tpu.memory_space<vmem>>, vector<1x16x16x128xbf16>
    %51 = arith.extf %50 : vector<1x16x16x128xbf16> to vector<1x16x16x128xf32>
    %52 = vector.extract_strided_slice %24 {offsets = [3, 0], sizes = [1, 128], strides = [1, 1]} : vector<9x128xf32> to vector<1x128xf32>
    %53 = vector.shape_cast %52 : vector<1x128xf32> to vector<128xf32>
    %54 = vector.shape_cast %53 : vector<128xf32> to vector<1x1x1x128xf32>
    %55 = vector.broadcast %54 : vector<1x1x1x128xf32> to vector<1x16x16x128xf32>
    %56 = arith.mulf %51, %55 : vector<1x16x16x128xf32>
    %57 = arith.addf %49, %56 : vector<1x16x16x128xf32>
    %c0_47 = arith.constant 0 : index
    %c1_48 = arith.constant 1 : index
    %c1_49 = arith.constant 1 : index
    %c0_50 = arith.constant 0 : index
    %58 = vector.load %arg13[%c0_47, %c1_48, %c1_49, %c0_50] : memref<1x18x18x128xbf16, #tpu.memory_space<vmem>>, vector<1x16x16x128xbf16>
    %59 = arith.extf %58 : vector<1x16x16x128xbf16> to vector<1x16x16x128xf32>
    %60 = vector.extract_strided_slice %24 {offsets = [4, 0], sizes = [1, 128], strides = [1, 1]} : vector<9x128xf32> to vector<1x128xf32>
    %61 = vector.shape_cast %60 : vector<1x128xf32> to vector<128xf32>
    %62 = vector.shape_cast %61 : vector<128xf32> to vector<1x1x1x128xf32>
    %63 = vector.broadcast %62 : vector<1x1x1x128xf32> to vector<1x16x16x128xf32>
    %64 = arith.mulf %59, %63 : vector<1x16x16x128xf32>
    %65 = arith.addf %57, %64 : vector<1x16x16x128xf32>
    %c0_51 = arith.constant 0 : index
    %c1_52 = arith.constant 1 : index
    %c2_53 = arith.constant 2 : index
    %c0_54 = arith.constant 0 : index
    %66 = vector.load %arg13[%c0_51, %c1_52, %c2_53, %c0_54] : memref<1x18x18x128xbf16, #tpu.memory_space<vmem>>, vector<1x16x16x128xbf16>
    %67 = arith.extf %66 : vector<1x16x16x128xbf16> to vector<1x16x16x128xf32>
    %68 = vector.extract_strided_slice %24 {offsets = [5, 0], sizes = [1, 128], strides = [1, 1]} : vector<9x128xf32> to vector<1x128xf32>
    %69 = vector.shape_cast %68 : vector<1x128xf32> to vector<128xf32>
    %70 = vector.shape_cast %69 : vector<128xf32> to vector<1x1x1x128xf32>
    %71 = vector.broadcast %70 : vector<1x1x1x128xf32> to vector<1x16x16x128xf32>
    %72 = arith.mulf %67, %71 : vector<1x16x16x128xf32>
    %73 = arith.addf %65, %72 : vector<1x16x16x128xf32>
    %c0_55 = arith.constant 0 : index
    %c2_56 = arith.constant 2 : index
    %c0_57 = arith.constant 0 : index
    %c0_58 = arith.constant 0 : index
    %74 = vector.load %arg13[%c0_55, %c2_56, %c0_57, %c0_58] : memref<1x18x18x128xbf16, #tpu.memory_space<vmem>>, vector<1x16x16x128xbf16>
    %75 = arith.extf %74 : vector<1x16x16x128xbf16> to vector<1x16x16x128xf32>
    %76 = vector.extract_strided_slice %24 {offsets = [6, 0], sizes = [1, 128], strides = [1, 1]} : vector<9x128xf32> to vector<1x128xf32>
    %77 = vector.shape_cast %76 : vector<1x128xf32> to vector<128xf32>
    %78 = vector.shape_cast %77 : vector<128xf32> to vector<1x1x1x128xf32>
    %79 = vector.broadcast %78 : vector<1x1x1x128xf32> to vector<1x16x16x128xf32>
    %80 = arith.mulf %75, %79 : vector<1x16x16x128xf32>
    %81 = arith.addf %73, %80 : vector<1x16x16x128xf32>
    %c0_59 = arith.constant 0 : index
    %c2_60 = arith.constant 2 : index
    %c1_61 = arith.constant 1 : index
    %c0_62 = arith.constant 0 : index
    %82 = vector.load %arg13[%c0_59, %c2_60, %c1_61, %c0_62] : memref<1x18x18x128xbf16, #tpu.memory_space<vmem>>, vector<1x16x16x128xbf16>
    %83 = arith.extf %82 : vector<1x16x16x128xbf16> to vector<1x16x16x128xf32>
    %84 = vector.extract_strided_slice %24 {offsets = [7, 0], sizes = [1, 128], strides = [1, 1]} : vector<9x128xf32> to vector<1x128xf32>
    %85 = vector.shape_cast %84 : vector<1x128xf32> to vector<128xf32>
    %86 = vector.shape_cast %85 : vector<128xf32> to vector<1x1x1x128xf32>
    %87 = vector.broadcast %86 : vector<1x1x1x128xf32> to vector<1x16x16x128xf32>
    %88 = arith.mulf %83, %87 : vector<1x16x16x128xf32>
    %89 = arith.addf %81, %88 : vector<1x16x16x128xf32>
    %c0_63 = arith.constant 0 : index
    %c2_64 = arith.constant 2 : index
    %c2_65 = arith.constant 2 : index
    %c0_66 = arith.constant 0 : index
    %90 = vector.load %arg13[%c0_63, %c2_64, %c2_65, %c0_66] : memref<1x18x18x128xbf16, #tpu.memory_space<vmem>>, vector<1x16x16x128xbf16>
    %91 = arith.extf %90 : vector<1x16x16x128xbf16> to vector<1x16x16x128xf32>
    %92 = vector.extract_strided_slice %24 {offsets = [8, 0], sizes = [1, 128], strides = [1, 1]} : vector<9x128xf32> to vector<1x128xf32>
    %93 = vector.shape_cast %92 : vector<1x128xf32> to vector<128xf32>
    %94 = vector.shape_cast %93 : vector<128xf32> to vector<1x1x1x128xf32>
    %95 = vector.broadcast %94 : vector<1x1x1x128xf32> to vector<1x16x16x128xf32>
    %96 = arith.mulf %91, %95 : vector<1x16x16x128xf32>
    %97 = arith.addf %89, %96 : vector<1x16x16x128xf32>
    %c0_67 = arith.constant 0 : index
    %c0_68 = arith.constant 0 : index
    %98 = vector.load %arg5[%c0_67, %c0_68] : memref<1x128xf32, #tpu.memory_space<vmem>>, vector<1x128xf32>
    %99 = vector.shape_cast %98 : vector<1x128xf32> to vector<1x1x1x128xf32>
    %100 = vector.broadcast %99 : vector<1x1x1x128xf32> to vector<1x16x16x128xf32>
    %101 = arith.addf %97, %100 : vector<1x16x16x128xf32>
    %cst_69 = arith.constant 0.000000e+00 : f32
    %102 = vector.broadcast %cst_69 : f32 to vector<1x16x16x128xf32>
    %103 = arith.subf %102, %101 : vector<1x16x16x128xf32>
    %104 = math.exp %103 : vector<1x16x16x128xf32>
    %cst_70 = arith.constant 1.000000e+00 : f32
    %105 = vector.broadcast %cst_70 : f32 to vector<1x16x16x128xf32>
    %106 = arith.addf %105, %104 : vector<1x16x16x128xf32>
    %107 = tpu.reciprocal %106 {approx = true} : vector<1x16x16x128xf32> -> vector<1x16x16x128xf32>
    %108 = arith.mulf %101, %107 : vector<1x16x16x128xf32>
    %109 = vector.shape_cast %108 : vector<1x16x16x128xf32> to vector<1x256x128xf32>
    %cst_71 = arith.constant dense<0.000000e+00> : vector<1x128xf32>
    %110 = vector.multi_reduction <add>, %109, %cst_71 [1] : vector<1x256x128xf32> to vector<1x128xf32>
    %cst_72 = arith.constant 2.560000e+02 : f32
    %111 = vector.broadcast %cst_72 : f32 to vector<1x128xf32>
    %112 = arith.divf %110, %111 : vector<1x128xf32>
    %113 = arith.truncf %112 : vector<1x128xf32> to vector<1x128xbf16>
    %c0_73 = arith.constant 0 : index
    %c0_74 = arith.constant 0 : index
    %114 = vector.load %arg6[%c0_73, %c0_74] : memref<128x128xbf16, #tpu.memory_space<vmem>>, vector<128x128xbf16>
    %cst_75 = arith.constant dense<0.000000e+00> : vector<1x128xf32>
    %115 = tpu.matmul %113, %114, %cst_75 {dimension_numbers = #tpu.dot_dimension_numbers<[1], [0], [0], [1], [0, 0, 1, 1], [], []>} : vector<1x128xbf16>, vector<128x128xbf16>, vector<1x128xf32> -> vector<1x128xf32>
    %c0_76 = arith.constant 0 : index
    %c0_77 = arith.constant 0 : index
    %116 = vector.load %arg7[%c0_76, %c0_77] : memref<1x128xf32, #tpu.memory_space<vmem>>, vector<1x128xf32>
    %117 = arith.addf %115, %116 : vector<1x128xf32>
    %cst_78 = arith.constant 0.000000e+00 : f32
    %118 = vector.broadcast %cst_78 : f32 to vector<1x128xf32>
    %119 = arith.subf %118, %117 : vector<1x128xf32>
    %120 = math.exp %119 : vector<1x128xf32>
    %cst_79 = arith.constant 1.000000e+00 : f32
    %121 = vector.broadcast %cst_79 : f32 to vector<1x128xf32>
    %122 = arith.addf %121, %120 : vector<1x128xf32>
    %123 = tpu.reciprocal %122 {approx = true} : vector<1x128xf32> -> vector<1x128xf32>
    %124 = arith.mulf %117, %123 : vector<1x128xf32>
    %125 = arith.truncf %124 : vector<1x128xf32> to vector<1x128xbf16>
    %c0_80 = arith.constant 0 : index
    %c0_81 = arith.constant 0 : index
    %126 = vector.load %arg8[%c0_80, %c0_81] : memref<128x128xbf16, #tpu.memory_space<vmem>>, vector<128x128xbf16>
    %cst_82 = arith.constant dense<0.000000e+00> : vector<1x128xf32>
    %127 = tpu.matmul %125, %126, %cst_82 {dimension_numbers = #tpu.dot_dimension_numbers<[1], [0], [0], [1], [0, 0, 1, 1], [], []>} : vector<1x128xbf16>, vector<128x128xbf16>, vector<1x128xf32> -> vector<1x128xf32>
    %c0_83 = arith.constant 0 : index
    %c0_84 = arith.constant 0 : index
    %128 = vector.load %arg9[%c0_83, %c0_84] : memref<1x128xf32, #tpu.memory_space<vmem>>, vector<1x128xf32>
    %129 = arith.addf %127, %128 : vector<1x128xf32>
    %cst_85 = arith.constant 0.000000e+00 : f32
    %130 = vector.broadcast %cst_85 : f32 to vector<1x128xf32>
    %131 = arith.subf %130, %129 : vector<1x128xf32>
    %132 = math.exp %131 : vector<1x128xf32>
    %cst_86 = arith.constant 1.000000e+00 : f32
    %133 = vector.broadcast %cst_86 : f32 to vector<1x128xf32>
    %134 = arith.addf %133, %132 : vector<1x128xf32>
    %135 = tpu.reciprocal %134 {approx = true} : vector<1x128xf32> -> vector<1x128xf32>
    %136 = vector.shape_cast %135 : vector<1x128xf32> to vector<1x1x1x128xf32>
    %137 = vector.broadcast %136 : vector<1x1x1x128xf32> to vector<1x16x16x128xf32>
    %138 = arith.mulf %108, %137 : vector<1x16x16x128xf32>
    %139 = arith.truncf %138 : vector<1x16x16x128xf32> to vector<1x16x16x128xbf16>
    %140 = vector.shape_cast %139 : vector<1x16x16x128xbf16> to vector<256x128xbf16>
    %c0_87 = arith.constant 0 : index
    %c0_88 = arith.constant 0 : index
    %141 = vector.load %arg10[%c0_87, %c0_88] : memref<128x8xbf16, #tpu.memory_space<vmem>>, vector<128x8xbf16>
    %cst_89 = arith.constant dense<0.000000e+00> : vector<256x8xf32>
    %142 = tpu.matmul %140, %141, %cst_89 {dimension_numbers = #tpu.dot_dimension_numbers<[1], [0], [0], [1], [0, 0, 1, 1], [], []>} : vector<256x128xbf16>, vector<128x8xbf16>, vector<256x8xf32> -> vector<256x8xf32>
    %c0_90 = arith.constant 0 : index
    %c0_91 = arith.constant 0 : index
    %143 = vector.load %arg11[%c0_90, %c0_91] : memref<1x8xf32, #tpu.memory_space<vmem>>, vector<1x8xf32>
    %144 = vector.broadcast %143 : vector<1x8xf32> to vector<256x8xf32>
    %145 = arith.addf %142, %144 : vector<256x8xf32>
    %146 = vector.shape_cast %145 : vector<256x8xf32> to vector<1x16x16x8xf32>
    %c0_92 = arith.constant 0 : index
    %c0_93 = arith.constant 0 : index
    %c0_94 = arith.constant 0 : index
    %c0_95 = arith.constant 0 : index
    %147 = vector.load %arg1[%c0_92, %c0_93, %c0_94, %c0_95] : memref<1x16x16x8xf32, #tpu.memory_space<vmem>>, vector<1x16x16x8xf32>
    %148 = arith.addf %146, %147 : vector<1x16x16x8xf32>
    %c0_96 = arith.constant 0 : index
    %c0_97 = arith.constant 0 : index
    %c0_98 = arith.constant 0 : index
    %c0_99 = arith.constant 0 : index
    %149 = vector.load %arg12[%c0_96, %c0_97, %c0_98, %c0_99] : memref<1x16x16x8xf32, #tpu.memory_space<vmem>>, vector<1x16x16x8xf32>
    tpu.vector_store %arg12[%c0_96, %c0_97, %c0_98, %c0_99], %148 {strides = array<i32>} : memref<1x16x16x8xf32, #tpu.memory_space<vmem>>, vector<1x16x16x8xf32>,
    return
  }
  func.func @transform_0(%arg0: i32) -> (i32, i32, i32, i32) {
    %c0_i32 = arith.constant 0 : i32
    %c0_i32_0 = arith.constant 0 : i32
    %c0_i32_1 = arith.constant 0 : i32
    %c0_i32_2 = arith.constant 0 : i32
    return %arg0, %c0_i32, %c0_i32_0, %c0_i32_1 : i32, i32, i32, i32
  }
  func.func @transform_1(%arg0: i32) -> (i32, i32) {
    %c0_i32 = arith.constant 0 : i32
    %c0_i32_0 = arith.constant 0 : i32
    %c0_i32_1 = arith.constant 0 : i32
    return %c0_i32, %c0_i32_0 : i32, i32
  }
  func.func @transform_2(%arg0: i32) -> (i32, i32) {
    %c0_i32 = arith.constant 0 : i32
    %c0_i32_0 = arith.constant 0 : i32
    %c0_i32_1 = arith.constant 0 : i32
    return %c0_i32, %c0_i32_0 : i32, i32
  }
  func.func @transform_3(%arg0: i32) -> (i32, i32) {
    %c0_i32 = arith.constant 0 : i32
    %c0_i32_0 = arith.constant 0 : i32
    %c0_i32_1 = arith.constant 0 : i32
    return %c0_i32, %c0_i32_0 : i32, i32
  }
  func.func @transform_4(%arg0: i32) -> (i32, i32) {
    %c0_i32 = arith.constant 0 : i32
    %c0_i32_0 = arith.constant 0 : i32
    %c0_i32_1 = arith.constant 0 : i32
    return %c0_i32, %c0_i32_0 : i32, i32
  }
  func.func @transform_5(%arg0: i32) -> (i32, i32) {
    %c0_i32 = arith.constant 0 : i32
    %c0_i32_0 = arith.constant 0 : i32
    %c0_i32_1 = arith.constant 0 : i32
    return %c0_i32, %c0_i32_0 : i32, i32
  }
  func.func @transform_6(%arg0: i32) -> (i32, i32) {
    %c0_i32 = arith.constant 0 : i32
    %c0_i32_0 = arith.constant 0 : i32
    %c0_i32_1 = arith.constant 0 : i32
    return %c0_i32, %c0_i32_0 : i32, i32
  }
  func.func @transform_7(%arg0: i32) -> (i32, i32) {
    %c0_i32 = arith.constant 0 : i32
    %c0_i32_0 = arith.constant 0 : i32
    %c0_i32_1 = arith.constant 0 : i32
    return %c0_i32, %c0_i32_0 : i32, i32
  }
  func.func @transform_8(%arg0: i32) -> (i32, i32) {
    %c0_i32 = arith.constant 0 : i32
    %c0_i32_0 = arith.constant 0 : i32
    %c0_i32_1 = arith.constant 0 : i32
    return %c0_i32, %c0_i32_0 : i32, i32
  }
  func.func @transform_9(%arg0: i32) -> (i32, i32) {
    %c0_i32 = arith.constant 0 : i32
    %c0_i32_0 = arith.constant 0 : i32
    %c0_i32_1 = arith.constant 0 : i32
    return %c0_i32, %c0_i32_0 : i32, i32
  }
  func.func @transform_10(%arg0: i32) -> (i32, i32) {
    %c0_i32 = arith.constant 0 : i32
    %c0_i32_0 = arith.constant 0 : i32
    %c0_i32_1 = arith.constant 0 : i32
    return %c0_i32, %c0_i32_0 : i32, i32
  }
  func.func @transform_11(%arg0: i32) -> (i32, i32, i32, i32) {
    %c0_i32 = arith.constant 0 : i32
    %c0_i32_0 = arith.constant 0 : i32
    %c0_i32_1 = arith.constant 0 : i32
    %c0_i32_2 = arith.constant 0 : i32
    return %arg0, %c0_i32, %c0_i32_0, %c0_i32_1 : i32, i32, i32, i32
  }
}

module attributes {stable_mosaic.version = 11 : i64} {
  func.func @_mbconv_kernel(%arg0: i32, %arg1: memref<1x16x16x8xf32, #tpu.memory_space<vmem>>, %arg2: memref<8x128xbf16, #tpu.memory_space<vmem>>, %arg3: memref<1x128xf32, #tpu.memory_space<vmem>>, %arg4: memref<9x128xf32, #tpu.memory_space<vmem>>, %arg5: memref<1x128xf32, #tpu.memory_space<vmem>>, %arg6: memref<128x128xbf16, #tpu.memory_space<vmem>>, %arg7: memref<1x128xf32, #tpu.memory_space<vmem>>, %arg8: memref<128x128xbf16, #tpu.memory_space<vmem>>, %arg9: memref<1x128xf32, #tpu.memory_space<vmem>>, %arg10: memref<128x8xbf16, #tpu.memory_space<vmem>>, %arg11: memref<1x8xf32, #tpu.memory_space<vmem>>, %arg12: memref<1x16x16x8xf32, #tpu.memory_space<vmem>>, %arg13: memref<1x18x18x128xbf16, #tpu.memory_space<vmem>>) attributes {dimension_semantics = [#tpu.dimension_semantics<parallel>], iteration_bounds = array<i64: 2>, scalar_prefetch = 0 : i64, scratch_operands = 1 : i64, tpu.core_type = #tpu.core_type<tc>, window_params = [{transform_indices = @transform_0, window_bounds = array<i64: 1, 16, 16, 8>}, {pipeline_mode = #tpu.pipeline_mode<synchronous>, transform_indices = @transform_1, window_bounds = array<i64: 8, 128>}, {pipeline_mode = #tpu.pipeline_mode<synchronous>, transform_indices = @transform_2, window_bounds = array<i64: 1, 128>}, {pipeline_mode = #tpu.pipeline_mode<synchronous>, transform_indices = @transform_3, window_bounds = array<i64: 9, 128>}, {pipeline_mode = #tpu.pipeline_mode<synchronous>, transform_indices = @transform_4, window_bounds = array<i64: 1, 128>}, {pipeline_mode = #tpu.pipeline_mode<synchronous>, transform_indices = @transform_5, window_bounds = array<i64: 128, 128>}, {pipeline_mode = #tpu.pipeline_mode<synchronous>, transform_indices = @transform_6, window_bounds = array<i64: 1, 128>}, {pipeline_mode = #tpu.pipeline_mode<synchronous>, transform_indices = @transform_7, window_bounds = array<i64: 128, 128>}, {pipeline_mode = #tpu.pipeline_mode<synchronous>, transform_indices = @transform_8, window_bounds = array<i64: 1, 128>}, {pipeline_mode = #tpu.pipeline_mode<synchronous>, transform_indices = @transform_9, window_bounds = array<i64: 128, 8>}, {pipeline_mode = #tpu.pipeline_mode<synchronous>, transform_indices = @transform_10, window_bounds = array<i64: 1, 8>}, {transform_indices = @transform_11, window_bounds = array<i64: 1, 16, 16, 8>}]} {
    %c0 = arith.constant 0 : index
    %c0_0 = arith.constant 0 : index
    %c0_1 = arith.constant 0 : index
    %c0_2 = arith.constant 0 : index
    %0 = vector.load %arg1[%c0, %c0_0, %c0_1, %c0_2] : memref<1x16x16x8xf32, #tpu.memory_space<vmem>>, vector<1x16x16x8xf32>
    %1 = arith.truncf %0 : vector<1x16x16x8xf32> to vector<1x16x16x8xbf16>
    %2 = vector.shape_cast %1 : vector<1x16x16x8xbf16> to vector<256x8xbf16>
    %c0_3 = arith.constant 0 : index
    %c0_4 = arith.constant 0 : index
    %3 = vector.load %arg2[%c0_3, %c0_4] : memref<8x128xbf16, #tpu.memory_space<vmem>>, vector<8x128xbf16>
    %cst = arith.constant dense<0.000000e+00> : vector<256x128xf32>
    %4 = tpu.matmul %2, %3, %cst {dimension_numbers = #tpu.dot_dimension_numbers<[1], [0], [0], [1], [0, 0, 1, 1], [], []>} : vector<256x8xbf16>, vector<8x128xbf16>, vector<256x128xf32> -> vector<256x128xf32>
    %c0_5 = arith.constant 0 : index
    %c0_6 = arith.constant 0 : index
    %5 = vector.load %arg3[%c0_5, %c0_6] : memref<1x128xf32, #tpu.memory_space<vmem>>, vector<1x128xf32>
    %6 = vector.broadcast %5 : vector<1x128xf32> to vector<256x128xf32>
    %7 = arith.addf %4, %6 : vector<256x128xf32>
    %cst_7 = arith.constant 0.000000e+00 : f32
    %8 = vector.broadcast %cst_7 : f32 to vector<256x128xf32>
    %9 = arith.subf %8, %7 : vector<256x128xf32>
    %10 = math.exp %9 : vector<256x128xf32>
    %cst_8 = arith.constant 1.000000e+00 : f32
    %11 = vector.broadcast %cst_8 : f32 to vector<256x128xf32>
    %12 = arith.addf %11, %10 : vector<256x128xf32>
    %13 = tpu.reciprocal %12 {approx = true} : vector<256x128xf32> -> vector<256x128xf32>
    %14 = arith.mulf %7, %13 : vector<256x128xf32>
    %15 = vector.shape_cast %14 : vector<256x128xf32> to vector<1x16x16x128xf32>
    %cst_9 = arith.constant 0.000000e+00 : bf16
    %16 = vector.broadcast %cst_9 : bf16 to vector<1x1x18x128xbf16>
    %cst_10 = arith.constant 0.000000e+00 : bf16
    %17 = vector.broadcast %cst_10 : bf16 to vector<1x18x1x128xbf16>
    %c0_11 = arith.constant 0 : index
    %c0_12 = arith.constant 0 : index
    %c0_13 = arith.constant 0 : index
    %c0_14 = arith.constant 0 : index
    %18 = vector.load %arg13[%c0_11, %c0_12, %c0_13, %c0_14] : memref<1x18x18x128xbf16, #tpu.memory_space<vmem>>, vector<1x1x18x128xbf16>
    tpu.vector_store %arg13[%c0_11, %c0_12, %c0_13, %c0_14], %16 {strides = array<i32>} : memref<1x18x18x128xbf16, #tpu.memory_space<vmem>>, vector<1x1x18x128xbf16>,
    %c0_15 = arith.constant 0 : index
    %c17 = arith.constant 17 : index
    %c0_16 = arith.constant 0 : index
    %c0_17 = arith.constant 0 : index
    %19 = vector.load %arg13[%c0_15, %c17, %c0_16, %c0_17] : memref<1x18x18x128xbf16, #tpu.memory_space<vmem>>, vector<1x1x18x128xbf16>
    tpu.vector_store %arg13[%c0_15, %c17, %c0_16, %c0_17], %16 {strides = array<i32>} : memref<1x18x18x128xbf16, #tpu.memory_space<vmem>>, vector<1x1x18x128xbf16>,
    %c0_18 = arith.constant 0 : index
    %c0_19 = arith.constant 0 : index
    %c0_20 = arith.constant 0 : index
    %c0_21 = arith.constant 0 : index
    %20 = vector.load %arg13[%c0_18, %c0_19, %c0_20, %c0_21] : memref<1x18x18x128xbf16, #tpu.memory_space<vmem>>, vector<1x18x1x128xbf16>
    tpu.vector_store %arg13[%c0_18, %c0_19, %c0_20, %c0_21], %17 {strides = array<i32>} : memref<1x18x18x128xbf16, #tpu.memory_space<vmem>>, vector<1x18x1x128xbf16>,
    %c0_22 = arith.constant 0 : index
    %c0_23 = arith.constant 0 : index
    %c17_24 = arith.constant 17 : index
    %c0_25 = arith.constant 0 : index
    %21 = vector.load %arg13[%c0_22, %c0_23, %c17_24, %c0_25] : memref<1x18x18x128xbf16, #tpu.memory_space<vmem>>, vector<1x18x1x128xbf16>
    tpu.vector_store %arg13[%c0_22, %c0_23, %c17_24, %c0_25], %17 {strides = array<i32>} : memref<1x18x18x128xbf16, #tpu.memory_space<vmem>>, vector<1x18x1x128xbf16>,
    %22 = arith.truncf %15 : vector<1x16x16x128xf32> to vector<1x16x16x128xbf16>
    %c0_26 = arith.constant 0 : index
    %c1 = arith.constant 1 : index
    %c1_27 = arith.constant 1 : index
    %c0_28 = arith.constant 0 : index
    %23 = vector.load %arg13[%c0_26, %c1, %c1_27, %c0_28] : memref<1x18x18x128xbf16, #tpu.memory_space<vmem>>, vector<1x16x16x128xbf16>
    tpu.vector_store %arg13[%c0_26, %c1, %c1_27, %c0_28], %22 {strides = array<i32>} : memref<1x18x18x128xbf16, #tpu.memory_space<vmem>>, vector<1x16x16x128xbf16>,
    %c0_29 = arith.constant 0 : index
    %c0_30 = arith.constant 0 : index
    %24 = vector.load %arg4[%c0_29, %c0_30] : memref<9x128xf32, #tpu.memory_space<vmem>>, vector<9x128xf32>
    %cst_31 = arith.constant 0.000000e+00 : f32
    %25 = vector.broadcast %cst_31 : f32 to vector<1x16x16x128xf32>
    %c0_32 = arith.constant 0 : index
    %c0_33 = arith.constant 0 : index
    %c0_34 = arith.constant 0 : index
    %c0_35 = arith.constant 0 : index
    %26 = vector.load %arg13[%c0_32, %c0_33, %c0_34, %c0_35] : memref<1x18x18x128xbf16, #tpu.memory_space<vmem>>, vector<1x16x16x128xbf16>
    %27 = arith.extf %26 : vector<1x16x16x128xbf16> to vector<1x16x16x128xf32>
    %28 = vector.extract_strided_slice %24 {offsets = [0, 0], sizes = [1, 128], strides = [1, 1]} : vector<9x128xf32> to vector<1x128xf32>
    %29 = vector.shape_cast %28 : vector<1x128xf32> to vector<128xf32>
    %30 = vector.shape_cast %29 : vector<128xf32> to vector<1x1x1x128xf32>
    %31 = vector.broadcast %30 : vector<1x1x1x128xf32> to vector<1x16x16x128xf32>
    %32 = arith.mulf %27, %31 : vector<1x16x16x128xf32>
    %33 = arith.addf %25, %32 : vector<1x16x16x128xf32>
    %c0_36 = arith.constant 0 : index
    %c0_37 = arith.constant 0 : index
    %c1_38 = arith.constant 1 : index
    %c0_39 = arith.constant 0 : index
    %34 = vector.load %arg13[%c0_36, %c0_37, %c1_38, %c0_39] : memref<1x18x18x128xbf16, #tpu.memory_space<vmem>>, vector<1x16x16x128xbf16>
    %35 = arith.extf %34 : vector<1x16x16x128xbf16> to vector<1x16x16x128xf32>
    %36 = vector.extract_strided_slice %24 {offsets = [1, 0], sizes = [1, 128], strides = [1, 1]} : vector<9x128xf32> to vector<1x128xf32>
    %37 = vector.shape_cast %36 : vector<1x128xf32> to vector<128xf32>
    %38 = vector.shape_cast %37 : vector<128xf32> to vector<1x1x1x128xf32>
    %39 = vector.broadcast %38 : vector<1x1x1x128xf32> to vector<1x16x16x128xf32>
    %40 = arith.mulf %35, %39 : vector<1x16x16x128xf32>
    %41 = arith.addf %33, %40 : vector<1x16x16x128xf32>
    %c0_40 = arith.constant 0 : index
    %c0_41 = arith.constant 0 : index
    %c2 = arith.constant 2 : index
    %c0_42 = arith.constant 0 : index
    %42 = vector.load %arg13[%c0_40, %c0_41, %c2, %c0_42] : memref<1x18x18x128xbf16, #tpu.memory_space<vmem>>, vector<1x16x16x128xbf16>
    %43 = arith.extf %42 : vector<1x16x16x128xbf16> to vector<1x16x16x128xf32>
    %44 = vector.extract_strided_slice %24 {offsets = [2, 0], sizes = [1, 128], strides = [1, 1]} : vector<9x128xf32> to vector<1x128xf32>
    %45 = vector.shape_cast %44 : vector<1x128xf32> to vector<128xf32>
    %46 = vector.shape_cast %45 : vector<128xf32> to vector<1x1x1x128xf32>
    %47 = vector.broadcast %46 : vector<1x1x1x128xf32> to vector<1x16x16x128xf32>
    %48 = arith.mulf %43, %47 : vector<1x16x16x128xf32>
    %49 = arith.addf %41, %48 : vector<1x16x16x128xf32>
    %c0_43 = arith.constant 0 : index
    %c1_44 = arith.constant 1 : index
    %c0_45 = arith.constant 0 : index
    %c0_46 = arith.constant 0 : index
    %50 = vector.load %arg13[%c0_43, %c1_44, %c0_45, %c0_46] : memref<1x18x18x128xbf16, #tpu.memory_space<vmem>>, vector<1x16x16x128xbf16>
    %51 = arith.extf %50 : vector<1x16x16x128xbf16> to vector<1x16x16x128xf32>
    %52 = vector.extract_strided_slice %24 {offsets = [3, 0], sizes = [1, 128], strides = [1, 1]} : vector<9x128xf32> to vector<1x128xf32>
    %53 = vector.shape_cast %52 : vector<1x128xf32> to vector<128xf32>
    %54 = vector.shape_cast %53 : vector<128xf32> to vector<1x1x1x128xf32>
    %55 = vector.broadcast %54 : vector<1x1x1x128xf32> to vector<1x16x16x128xf32>
    %56 = arith.mulf %51, %55 : vector<1x16x16x128xf32>
    %57 = arith.addf %49, %56 : vector<1x16x16x128xf32>
    %c0_47 = arith.constant 0 : index
    %c1_48 = arith.constant 1 : index
    %c1_49 = arith.constant 1 : index
    %c0_50 = arith.constant 0 : index
    %58 = vector.load %arg13[%c0_47, %c1_48, %c1_49, %c0_50] : memref<1x18x18x128xbf16, #tpu.memory_space<vmem>>, vector<1x16x16x128xbf16>
    %59 = arith.extf %58 : vector<1x16x16x128xbf16> to vector<1x16x16x128xf32>
    %60 = vector.extract_strided_slice %24 {offsets = [4, 0], sizes = [1, 128], strides = [1, 1]} : vector<9x128xf32> to vector<1x128xf32>
    %61 = vector.shape_cast %60 : vector<1x128xf32> to vector<128xf32>
    %62 = vector.shape_cast %61 : vector<128xf32> to vector<1x1x1x128xf32>
    %63 = vector.broadcast %62 : vector<1x1x1x128xf32> to vector<1x16x16x128xf32>
    %64 = arith.mulf %59, %63 : vector<1x16x16x128xf32>
    %65 = arith.addf %57, %64 : vector<1x16x16x128xf32>
    %c0_51 = arith.constant 0 : index
    %c1_52 = arith.constant 1 : index
    %c2_53 = arith.constant 2 : index
    %c0_54 = arith.constant 0 : index
    %66 = vector.load %arg13[%c0_51, %c1_52, %c2_53, %c0_54] : memref<1x18x18x128xbf16, #tpu.memory_space<vmem>>, vector<1x16x16x128xbf16>
    %67 = arith.extf %66 : vector<1x16x16x128xbf16> to vector<1x16x16x128xf32>
    %68 = vector.extract_strided_slice %24 {offsets = [5, 0], sizes = [1, 128], strides = [1, 1]} : vector<9x128xf32> to vector<1x128xf32>
    %69 = vector.shape_cast %68 : vector<1x128xf32> to vector<128xf32>
    %70 = vector.shape_cast %69 : vector<128xf32> to vector<1x1x1x128xf32>
    %71 = vector.broadcast %70 : vector<1x1x1x128xf32> to vector<1x16x16x128xf32>
    %72 = arith.mulf %67, %71 : vector<1x16x16x128xf32>
    %73 = arith.addf %65, %72 : vector<1x16x16x128xf32>
    %c0_55 = arith.constant 0 : index
    %c2_56 = arith.constant 2 : index
    %c0_57 = arith.constant 0 : index
    %c0_58 = arith.constant 0 : index
    %74 = vector.load %arg13[%c0_55, %c2_56, %c0_57, %c0_58] : memref<1x18x18x128xbf16, #tpu.memory_space<vmem>>, vector<1x16x16x128xbf16>
    %75 = arith.extf %74 : vector<1x16x16x128xbf16> to vector<1x16x16x128xf32>
    %76 = vector.extract_strided_slice %24 {offsets = [6, 0], sizes = [1, 128], strides = [1, 1]} : vector<9x128xf32> to vector<1x128xf32>
    %77 = vector.shape_cast %76 : vector<1x128xf32> to vector<128xf32>
    %78 = vector.shape_cast %77 : vector<128xf32> to vector<1x1x1x128xf32>
    %79 = vector.broadcast %78 : vector<1x1x1x128xf32> to vector<1x16x16x128xf32>
    %80 = arith.mulf %75, %79 : vector<1x16x16x128xf32>
    %81 = arith.addf %73, %80 : vector<1x16x16x128xf32>
    %c0_59 = arith.constant 0 : index
    %c2_60 = arith.constant 2 : index
    %c1_61 = arith.constant 1 : index
    %c0_62 = arith.constant 0 : index
    %82 = vector.load %arg13[%c0_59, %c2_60, %c1_61, %c0_62] : memref<1x18x18x128xbf16, #tpu.memory_space<vmem>>, vector<1x16x16x128xbf16>
    %83 = arith.extf %82 : vector<1x16x16x128xbf16> to vector<1x16x16x128xf32>
    %84 = vector.extract_strided_slice %24 {offsets = [7, 0], sizes = [1, 128], strides = [1, 1]} : vector<9x128xf32> to vector<1x128xf32>
    %85 = vector.shape_cast %84 : vector<1x128xf32> to vector<128xf32>
    %86 = vector.shape_cast %85 : vector<128xf32> to vector<1x1x1x128xf32>
    %87 = vector.broadcast %86 : vector<1x1x1x128xf32> to vector<1x16x16x128xf32>
    %88 = arith.mulf %83, %87 : vector<1x16x16x128xf32>
    %89 = arith.addf %81, %88 : vector<1x16x16x128xf32>
    %c0_63 = arith.constant 0 : index
    %c2_64 = arith.constant 2 : index
    %c2_65 = arith.constant 2 : index
    %c0_66 = arith.constant 0 : index
    %90 = vector.load %arg13[%c0_63, %c2_64, %c2_65, %c0_66] : memref<1x18x18x128xbf16, #tpu.memory_space<vmem>>, vector<1x16x16x128xbf16>
    %91 = arith.extf %90 : vector<1x16x16x128xbf16> to vector<1x16x16x128xf32>
    %92 = vector.extract_strided_slice %24 {offsets = [8, 0], sizes = [1, 128], strides = [1, 1]} : vector<9x128xf32> to vector<1x128xf32>
    %93 = vector.shape_cast %92 : vector<1x128xf32> to vector<128xf32>
    %94 = vector.shape_cast %93 : vector<128xf32> to vector<1x1x1x128xf32>
    %95 = vector.broadcast %94 : vector<1x1x1x128xf32> to vector<1x16x16x128xf32>
    %96 = arith.mulf %91, %95 : vector<1x16x16x128xf32>
    %97 = arith.addf %89, %96 : vector<1x16x16x128xf32>
    %c0_67 = arith.constant 0 : index
    %c0_68 = arith.constant 0 : index
    %98 = vector.load %arg5[%c0_67, %c0_68] : memref<1x128xf32, #tpu.memory_space<vmem>>, vector<1x128xf32>
    %99 = vector.shape_cast %98 : vector<1x128xf32> to vector<1x1x1x128xf32>
    %100 = vector.broadcast %99 : vector<1x1x1x128xf32> to vector<1x16x16x128xf32>
    %101 = arith.addf %97, %100 : vector<1x16x16x128xf32>
    %cst_69 = arith.constant 0.000000e+00 : f32
    %102 = vector.broadcast %cst_69 : f32 to vector<1x16x16x128xf32>
    %103 = arith.subf %102, %101 : vector<1x16x16x128xf32>
    %104 = math.exp %103 : vector<1x16x16x128xf32>
    %cst_70 = arith.constant 1.000000e+00 : f32
    %105 = vector.broadcast %cst_70 : f32 to vector<1x16x16x128xf32>
    %106 = arith.addf %105, %104 : vector<1x16x16x128xf32>
    %107 = tpu.reciprocal %106 {approx = true} : vector<1x16x16x128xf32> -> vector<1x16x16x128xf32>
    %108 = arith.mulf %101, %107 : vector<1x16x16x128xf32>
    %109 = vector.shape_cast %108 : vector<1x16x16x128xf32> to vector<1x256x128xf32>
    %cst_71 = arith.constant dense<0.000000e+00> : vector<1x128xf32>
    %110 = vector.multi_reduction <add>, %109, %cst_71 [1] : vector<1x256x128xf32> to vector<1x128xf32>
    %cst_72 = arith.constant 2.560000e+02 : f32
    %111 = vector.broadcast %cst_72 : f32 to vector<1x128xf32>
    %112 = arith.divf %110, %111 : vector<1x128xf32>
    %113 = arith.truncf %112 : vector<1x128xf32> to vector<1x128xbf16>
    %c0_73 = arith.constant 0 : index
    %c0_74 = arith.constant 0 : index
    %114 = vector.load %arg6[%c0_73, %c0_74] : memref<128x128xbf16, #tpu.memory_space<vmem>>, vector<128x128xbf16>
    %cst_75 = arith.constant dense<0.000000e+00> : vector<1x128xf32>
    %115 = tpu.matmul %113, %114, %cst_75 {dimension_numbers = #tpu.dot_dimension_numbers<[1], [0], [0], [1], [0, 0, 1, 1], [], []>} : vector<1x128xbf16>, vector<128x128xbf16>, vector<1x128xf32> -> vector<1x128xf32>
    %c0_76 = arith.constant 0 : index
    %c0_77 = arith.constant 0 : index
    %116 = vector.load %arg7[%c0_76, %c0_77] : memref<1x128xf32, #tpu.memory_space<vmem>>, vector<1x128xf32>
    %117 = arith.addf %115, %116 : vector<1x128xf32>
    %cst_78 = arith.constant 0.000000e+00 : f32
    %118 = vector.broadcast %cst_78 : f32 to vector<1x128xf32>
    %119 = arith.subf %118, %117 : vector<1x128xf32>
    %120 = math.exp %119 : vector<1x128xf32>
    %cst_79 = arith.constant 1.000000e+00 : f32
    %121 = vector.broadcast %cst_79 : f32 to vector<1x128xf32>
    %122 = arith.addf %121, %120 : vector<1x128xf32>
    %123 = tpu.reciprocal %122 {approx = true} : vector<1x128xf32> -> vector<1x128xf32>
    %124 = arith.mulf %117, %123 : vector<1x128xf32>
    %125 = arith.truncf %124 : vector<1x128xf32> to vector<1x128xbf16>
    %c0_80 = arith.constant 0 : index
    %c0_81 = arith.constant 0 : index
    %126 = vector.load %arg8[%c0_80, %c0_81] : memref<128x128xbf16, #tpu.memory_space<vmem>>, vector<128x128xbf16>
    %cst_82 = arith.constant dense<0.000000e+00> : vector<1x128xf32>
    %127 = tpu.matmul %125, %126, %cst_82 {dimension_numbers = #tpu.dot_dimension_numbers<[1], [0], [0], [1], [0, 0, 1, 1], [], []>} : vector<1x128xbf16>, vector<128x128xbf16>, vector<1x128xf32> -> vector<1x128xf32>
    %c0_83 = arith.constant 0 : index
    %c0_84 = arith.constant 0 : index
    %128 = vector.load %arg9[%c0_83, %c0_84] : memref<1x128xf32, #tpu.memory_space<vmem>>, vector<1x128xf32>
    %129 = arith.addf %127, %128 : vector<1x128xf32>
    %cst_85 = arith.constant 0.000000e+00 : f32
    %130 = vector.broadcast %cst_85 : f32 to vector<1x128xf32>
    %131 = arith.subf %130, %129 : vector<1x128xf32>
    %132 = math.exp %131 : vector<1x128xf32>
    %cst_86 = arith.constant 1.000000e+00 : f32
    %133 = vector.broadcast %cst_86 : f32 to vector<1x128xf32>
    %134 = arith.addf %133, %132 : vector<1x128xf32>
    %135 = tpu.reciprocal %134 {approx = true} : vector<1x128xf32> -> vector<1x128xf32>
    %136 = vector.shape_cast %135 : vector<1x128xf32> to vector<1x1x1x128xf32>
    %137 = vector.broadcast %136 : vector<1x1x1x128xf32> to vector<1x16x16x128xf32>
    %138 = arith.mulf %108, %137 : vector<1x16x16x128xf32>
    %139 = arith.truncf %138 : vector<1x16x16x128xf32> to vector<1x16x16x128xbf16>
    %140 = vector.shape_cast %139 : vector<1x16x16x128xbf16> to vector<256x128xbf16>
    %c0_87 = arith.constant 0 : index
    %c0_88 = arith.constant 0 : index
    %141 = vector.load %arg10[%c0_87, %c0_88] : memref<128x8xbf16, #tpu.memory_space<vmem>>, vector<128x8xbf16>
    %cst_89 = arith.constant dense<0.000000e+00> : vector<256x8xf32>
    %142 = tpu.matmul %140, %141, %cst_89 {dimension_numbers = #tpu.dot_dimension_numbers<[1], [0], [0], [1], [0, 0, 1, 1], [], []>} : vector<256x128xbf16>, vector<128x8xbf16>, vector<256x8xf32> -> vector<256x8xf32>
    %c0_90 = arith.constant 0 : index
    %c0_91 = arith.constant 0 : index
    %143 = vector.load %arg11[%c0_90, %c0_91] : memref<1x8xf32, #tpu.memory_space<vmem>>, vector<1x8xf32>
    %144 = vector.broadcast %143 : vector<1x8xf32> to vector<256x8xf32>
    %145 = arith.addf %142, %144 : vector<256x8xf32>
    %146 = vector.shape_cast %145 : vector<256x8xf32> to vector<1x16x16x8xf32>
    %c0_92 = arith.constant 0 : index
    %c0_93 = arith.constant 0 : index
    %c0_94 = arith.constant 0 : index
    %c0_95 = arith.constant 0 : index
    %147 = vector.load %arg1[%c0_92, %c0_93, %c0_94, %c0_95] : memref<1x16x16x8xf32, #tpu.memory_space<vmem>>, vector<1x16x16x8xf32>
    %148 = arith.addf %146, %147 : vector<1x16x16x8xf32>
    %c0_96 = arith.constant 0 : index
    %c0_97 = arith.constant 0 : index
    %c0_98 = arith.constant 0 : index
    %c0_99 = arith.constant 0 : index
    %149 = vector.load %arg12[%c0_96, %c0_97, %c0_98, %c0_99] : memref<1x16x16x8xf32, #tpu.memory_space<vmem>>, vector<1x16x16x8xf32>
    tpu.vector_store %arg12[%c0_96, %c0_97, %c0_98, %c0_99], %148 {strides = array<i32>} : memref<1x16x16x8xf32, #tpu.memory_space<vmem>>, vector<1x16x16x8xf32>,
    return
  }
  func.func @transform_0(%arg0: i32) -> (i32, i32, i32, i32) {
    %c0_i32 = arith.constant 0 : i32
    %c0_i32_0 = arith.constant 0 : i32
    %c0_i32_1 = arith.constant 0 : i32
    %c0_i32_2 = arith.constant 0 : i32
    return %arg0, %c0_i32, %c0_i32_0, %c0_i32_1 : i32, i32, i32, i32
  }
  func.func @transform_1(%arg0: i32) -> (i32, i32) {
    %c0_i32 = arith.constant 0 : i32
    %c0_i32_0 = arith.constant 0 : i32
    %c0_i32_1 = arith.constant 0 : i32
    return %c0_i32, %c0_i32_0 : i32, i32
  }
  func.func @transform_2(%arg0: i32) -> (i32, i32) {
    %c0_i32 = arith.constant 0 : i32
    %c0_i32_0 = arith.constant 0 : i32
    %c0_i32_1 = arith.constant 0 : i32
    return %c0_i32, %c0_i32_0 : i32, i32
  }
  func.func @transform_3(%arg0: i32) -> (i32, i32) {
    %c0_i32 = arith.constant 0 : i32
    %c0_i32_0 = arith.constant 0 : i32
    %c0_i32_1 = arith.constant 0 : i32
    return %c0_i32, %c0_i32_0 : i32, i32
  }
  func.func @transform_4(%arg0: i32) -> (i32, i32) {
    %c0_i32 = arith.constant 0 : i32
    %c0_i32_0 = arith.constant 0 : i32
    %c0_i32_1 = arith.constant 0 : i32
    return %c0_i32, %c0_i32_0 : i32, i32
  }
  func.func @transform_5(%arg0: i32) -> (i32, i32) {
    %c0_i32 = arith.constant 0 : i32
    %c0_i32_0 = arith.constant 0 : i32
    %c0_i32_1 = arith.constant 0 : i32
    return %c0_i32, %c0_i32_0 : i32, i32
  }
  func.func @transform_6(%arg0: i32) -> (i32, i32) {
    %c0_i32 = arith.constant 0 : i32
    %c0_i32_0 = arith.constant 0 : i32
    %c0_i32_1 = arith.constant 0 : i32
    return %c0_i32, %c0_i32_0 : i32, i32
  }
  func.func @transform_7(%arg0: i32) -> (i32, i32) {
    %c0_i32 = arith.constant 0 : i32
    %c0_i32_0 = arith.constant 0 : i32
    %c0_i32_1 = arith.constant 0 : i32
    return %c0_i32, %c0_i32_0 : i32, i32
  }
  func.func @transform_8(%arg0: i32) -> (i32, i32) {
    %c0_i32 = arith.constant 0 : i32
    %c0_i32_0 = arith.constant 0 : i32
    %c0_i32_1 = arith.constant 0 : i32
    return %c0_i32, %c0_i32_0 : i32, i32
  }
  func.func @transform_9(%arg0: i32) -> (i32, i32) {
    %c0_i32 = arith.constant 0 : i32
    %c0_i32_0 = arith.constant 0 : i32
    %c0_i32_1 = arith.constant 0 : i32
    return %c0_i32, %c0_i32_0 : i32, i32
  }
  func.func @transform_10(%arg0: i32) -> (i32, i32) {
    %c0_i32 = arith.constant 0 : i32
    %c0_i32_0 = arith.constant 0 : i32
    %c0_i32_1 = arith.constant 0 : i32
    return %c0_i32, %c0_i32_0 : i32, i32
  }
  func.func @transform_11(%arg0: i32) -> (i32, i32, i32, i32) {
    %c0_i32 = arith.constant 0 : i32
    %c0_i32_0 = arith.constant 0 : i32
    %c0_i32_1 = arith.constant 0 : i32
    %c0_i32_2 = arith.constant 0 : i32
    return %arg0, %c0_i32, %c0_i32_0, %c0_i32_1 : i32, i32, i32, i32
  }
}

</mosaic_0001>

<bundles_post_ra>
// kernel: tpu_custom_call.1
= control target key start
LH: loop header
LB: loop body
LE: loop exit
PB: predicated region body
PF: predicated region fallthrough
CT: control target
= control target key end

     0   :  { %s5034_s17 = smov 0   ;;  %s8088_s0 = inlined_call_operand.vmem [shape: f32[2,16,16,8], index: 0, kind: input, shape index: {}]   ;;  %s8089_s1 = inlined_call_operand.vmem [shape: bf16[8,128], index: 1, kind: input, shape index: {}]   ;;  %s8090_s2 = inlined_call_operand.vmem [shape: f32[1,128], index: 2, kind: input, shape index: {}]   ;;  %s8091_s3 = inlined_call_operand.vmem [shape: f32[9,128], index: 3, kind: input, shape index: {}]   ;;  %s8092_s4 = inlined_call_operand.vmem [shape: f32[1,128], index: 4, kind: input, shape index: {}]   ;;  %s8093_s5 = inlined_call_operand.vmem [shape: bf16[128,128], index: 5, kind: input, shape index: {}]   ;;  %s8094_s6 = inlined_call_operand.vmem [shape: f32[1,128], index: 6, kind: input, shape index: {}]   ;;  %s8095_s7 = inlined_call_operand.vmem [shape: bf16[128,128], index: 7, kind: input, shape index: {}]   ;;  %s8096_s8 = inlined_call_operand.vmem [shape: f32[1,128], index: 8, kind: input, shape index: {}]   ;;  %s8097_s9 = inlined_call_operand.vmem [shape: bf16[128,8], index: 9, kind: input, shape index: {}]   ;;  %s8098_s10 = inlined_call_operand.vmem [shape: f32[1,8], index: 10, kind: input, shape index: {}]   ;;  %s8099_s11 = inlined_call_operand.vmem [shape: f32[2,16,16,8], index: 11, kind: output, shape index: {}]  }
   0x1 LB: > { %s4401_s18 = sadd.s32 4294967295, %s4970_s17   ;;  %p4405_p0 = scmp.ge.s32.totalorder %s4970_s17, 1  ;;  %s4970_s17 = sphi %s5034_s17, %s21_s17  }
   0x2   : > { %p337_p1 = scmp.lt.s32.totalorder %s4970_s17, 3 }
   0x4   : > { %p338_p2 = pnand %p4405_p0, %p337_p1 }
   0x6   : > { %341 = sbr.rel (%p338_p2) target bundleno = 1318 (0x526), region = 64 }
   0xb   : > { %v452_v0 = vld [vmem:[%s8089_s1] sm:$0xf]  ;;  %vm586_vm0 = vcmask 1043456   ;;  %p377_p3 = scmp.lt.s32.totalorder %s4401_s18, 1  ;;  %vm537_vm1 = vcmask 64512   ;;  %vm878_vm2 = vcmask 1040384  }
   0xc   : > { %v588_v1 = vsel %vm586_vm0, %v452_v0, 0  ;;  %vm879_vm3 = vsmask.f32 256  ;;  %vm935_vm5 = vsmask.f32 7938  ;;  %vm1720_vm10 = vcmask 1046528  }
   0xd   : > { %597 = vmatpush.bf16.msra.mxu0 %v588_v1  ;;  %4668 = vmatpush.bf16.msra.mxu2 %v588_v1  ;;  %s8528_s18 = smov (!%p377_p3, %s4401_s18), 1  ;;  %vm5102_vm4 = vmand %vm878_vm2, %vm879_vm3  ;;  %vm1023_vm8 = vsmask.f32 4368  ;;  %vm1994_vm11 = vcmask 1045504  }
   0xe   : > { %s4524_s21 = sshll.u32 %s8528_s18, 8  ;;  %vm5117_vm6 = vmand %vm878_vm2, %vm935_vm5 }
   0xf   : > { %s5054_s24 = scalar_lea.vmem %s8088_s0, %s4524_s21  ;;  %vm5146_vm7 = vmand %vm586_vm0, %vm935_vm5  ;;  %s7957_s28 = scalar_lea.vmem %s8099_s11, %s4524_s21 }
  0x10   : > { %v388_v2 = vld [vmem:[%s5054_s24] sm:$0xff]  ;;  %v389_v3 = vld [vmem:[%s5054_s24 + $0x8] sm:$0xff]  ;;  %v390_v16 = vld [vmem:[%s5054_s24 + $0x10] sm:$0xff] }
  0x11   : > { %v408_v4 = vld [vmem:[%s5054_s24 + $0xa0] sm:$0xff]  ;;  %v420_v5 = vpack.c.bf16 %v388_v2, %v388_v2  ;;  %v421_v6 = vpack.c.bf16 %v389_v3, %v389_v3  ;;  %v409_v7 = vld [vmem:[%s5054_s24 + $0xa8] sm:$0xff]  ;;  %v391_v17 = vld [vmem:[%s5054_s24 + $0x18] sm:$0xff]  ;;  %v422_v20 = vpack.c.bf16 %v390_v16, %v390_v16 }
  0x12   : > { %v440_v8 = vpack.c.bf16 %v408_v4, %v408_v4  ;;  %v441_v9 = vpack.c.bf16 %v409_v7, %v409_v7  ;;  %v410_v18 = vld [vmem:[%s5054_s24 + $0xb0] sm:$0xff]  ;;  %v411_v19 = vld [vmem:[%s5054_s24 + $0xb8] sm:$0xff]  ;;  %v423_v21 = vpack.c.bf16 %v391_v17, %v391_v17  ;;  %v392_v30 = vld [vmem:[%s5054_s24 + $0x20] sm:$0xff] }
  0x13   : > { %v489_v10 = vunpack.c.l.b16 %v420_v5  ;;  %v490_v11 = vunpack.c.l.b16 %v421_v6  ;;  %v442_v22 = vpack.c.bf16 %v410_v18, %v410_v18  ;;  %v443_v23 = vpack.c.bf16 %v411_v19, %v411_v19  ;;  %v393_v31 = vld [vmem:[%s5054_s24 + $0x28] sm:$0xff]  ;;  %v412_v32 = vld [vmem:[%s5054_s24 + $0xc0] sm:$0xff]  ;;  %v394_v44 = vld [vmem:[%s5054_s24 + $0x30] sm:$0xff] }
  0x14   : > { %v509_v12 = vunpack.c.l.b16 %v440_v8  ;;  %v510_v13 = vunpack.c.l.b16 %v441_v9  ;;  %v491_v24 = vunpack.c.l.b16 %v422_v20  ;;  %v492_v25 = vunpack.c.l.b16 %v423_v21  ;;  %v413_v33 = vld [vmem:[%s5054_s24 + $0xc8] sm:$0xff]  ;;  %v395_v45 = vld [vmem:[%s5054_s24 + $0x38] sm:$0xff]  ;;  %v414_v46 = vld [vmem:[%s5054_s24 + $0xd0] sm:$0xff] }
  0x15   : > { %v521_v14 = vpack.c.b16 %v490_v11, %v489_v10  ;;  %v511_v26 = vunpack.c.l.b16 %v442_v22  ;;  %v512_v27 = vunpack.c.l.b16 %v443_v23  ;;  %v424_v34 = vpack.c.bf16 %v392_v30, %v392_v30  ;;  %v415_v47 = vld [vmem:[%s5054_s24 + $0xd8] sm:$0xff]  ;;  %v396_v58 = vld [vmem:[%s5054_s24 + $0x40] sm:$0xff]  ;;  %v397_v59 = vld [vmem:[%s5054_s24 + $0x48] sm:$0xff] }
  0x16   : > { %v531_v15 = vpack.c.b16 %v510_v13, %v509_v12  ;;  %v522_v28 = vpack.c.b16 %v492_v25, %v491_v24  ;;  %v425_v35 = vpack.c.bf16 %v393_v31, %v393_v31  ;;  %v444_v36 = vpack.c.bf16 %v412_v32, %v412_v32  ;;  %v416_v60 = vld [vmem:[%s5054_s24 + $0xe0] sm:$0xff]  ;;  %v417_v61 = vld [vmem:[%s5054_s24 + $0xe8] sm:$0xff]  ;;  %v398_v8 = vld [vmem:[%s5054_s24 + $0x50] sm:$0xff] }
  0x17   : > { %4410 = vmatmul.msk.bf16.vlgmr.msra.gmra.mxu0 %vm537_vm1, %v521_v14  ;;  %v532_v29 = vpack.c.b16 %v512_v27, %v511_v26  ;;  %v445_v37 = vpack.c.bf16 %v413_v33, %v413_v33  ;;  %v493_v38 = vunpack.c.l.b16 %v424_v34  ;;  %v426_v48 = vpack.c.bf16 %v394_v44, %v394_v44  ;;  %v399_v9 = vld [vmem:[%s5054_s24 + $0x58] sm:$0xff]  ;;  %v418_v10 = vld [vmem:[%s5054_s24 + $0xf0] sm:$0xff]  ;;  %v400_v22 = vld [vmem:[%s5054_s24 + $0x60] sm:$0xff] }
  0x18   : > { %4420 = vmatmul.msk.bf16.vlgmr.msra.gmra.mxu2 %vm537_vm1, %v531_v15  ;;  %v494_v39 = vunpack.c.l.b16 %v425_v35  ;;  %v513_v40 = vunpack.c.l.b16 %v444_v36  ;;  %v427_v49 = vpack.c.bf16 %v395_v45, %v395_v45  ;;  %v446_v50 = vpack.c.bf16 %v414_v46, %v414_v46  ;;  %v419_v11 = vld [vmem:[%s5054_s24 + $0xf8] sm:$0xff]  ;;  %v401_v23 = vld [vmem:[%s5054_s24 + $0x68] sm:$0xff]  ;;  %vm5156_vm9 = vmor %vm879_vm3, %vm1023_vm8 }
  0x19   : > { %v514_v41 = vunpack.c.l.b16 %v445_v37  ;;  %v447_v51 = vpack.c.bf16 %v415_v47, %v415_v47  ;;  %v495_v52 = vunpack.c.l.b16 %v426_v48  ;;  %v428_v62 = vpack.c.bf16 %v396_v58, %v396_v58  ;;  %v403_v30 = vld [vmem:[%s5054_s24 + $0x78] sm:$0xff]  ;;  %v404_v37 = vld [vmem:[%s5054_s24 + $0x80] sm:$0xff]  ;;  %v406_v58 = vld [vmem:[%s5054_s24 + $0x90] sm:$0xff] }
  0x1a   : > { %v523_v42 = vpack.c.b16 %v494_v39, %v493_v38  ;;  %v496_v53 = vunpack.c.l.b16 %v427_v49  ;;  %v515_v54 = vunpack.c.l.b16 %v446_v50  ;;  %v429_v63 = vpack.c.bf16 %v397_v59, %v397_v59  ;;  %v405_v38 = vld [vmem:[%s5054_s24 + $0x88] sm:$0xff]  ;;  %v5113_v48 = vld [vmem:[%s8090_s2] ss:$0 sm:$0xff]  ;;  %v407_v59 = vld [vmem:[%s5054_s24 + $0x98] sm:$0xff] }
  0x1b   : > { %v533_v43 = vpack.c.b16 %v514_v41, %v513_v40  ;;  %v516_v55 = vunpack.c.l.b16 %v447_v51  ;;  %v448_v0 = vpack.c.bf16 %v416_v60, %v416_v60  ;;  %v449_v1 = vpack.c.bf16 %v417_v61, %v417_v61  ;;  %v884_v40 = vld [vmem:[#allocation2 + $0xc] sm:$0x1] }
  0x1c   : > { %v524_v56 = vpack.c.b16 %v496_v53, %v495_v52  ;;  %v497_v2 = vunpack.c.l.b16 %v428_v62  ;;  %v498_v3 = vunpack.c.l.b16 %v429_v63  ;;  %v430_v12 = vpack.c.bf16 %v398_v8, %v398_v8  ;;  %v940_v52 = vld [vmem:[#allocation2 + $0x14] sm:$0x1] }
  0x1d   : > { %v534_v57 = vpack.c.b16 %v516_v55, %v515_v54  ;;  %v517_v4 = vunpack.c.l.b16 %v448_v0  ;;  %v518_v5 = vunpack.c.l.b16 %v449_v1  ;;  %v431_v13 = vpack.c.bf16 %v399_v9, %v399_v9 }
  0x1e   : > { %v525_v6 = vpack.c.b16 %v498_v3, %v497_v2  ;;  %v450_v14 = vpack.c.bf16 %v418_v10, %v418_v10  ;;  %v451_v15 = vpack.c.bf16 %v419_v11, %v419_v11  ;;  %v499_v16 = vunpack.c.l.b16 %v430_v12  ;;  %v887_v2 = vld [vmem:[#allocation2 + $0x18] sm:$0x1] }
  0x1f   : > { %v535_v7 = vpack.c.b16 %v518_v5, %v517_v4  ;;  %v500_v17 = vunpack.c.l.b16 %v431_v13  ;;  %v432_v24 = vpack.c.bf16 %v400_v22, %v400_v22  ;;  %v433_v25 = vpack.c.bf16 %v401_v23, %v401_v23 }
  0x20   : > { %v519_v18 = vunpack.c.l.b16 %v450_v14  ;;  %v520_v19 = vunpack.c.l.b16 %v451_v15  ;;  %v435_v32 = vpack.c.bf16 %v403_v30, %v403_v30  ;;  %v4972_v36 = vmov 0   ;;  %v943_v15 = vld [vmem:[#allocation2 + $0x20] sm:$0x1] }
  0x21   : > { %v526_v20 = vpack.c.b16 %v500_v17, %v499_v16  ;;  %v501_v26 = vunpack.c.l.b16 %v432_v24  ;;  %v502_v27 = vunpack.c.l.b16 %v433_v25  ;;  %871 = vst [vmem:[#allocation2] sm:$0xf] %v4972_v36  ;;  %v436_v41 = vpack.c.bf16 %v404_v37, %v404_v37 }
  0x22   : > { %v536_v21 = vpack.c.b16 %v520_v19, %v519_v18  ;;  %v504_v34 = vunpack.c.l.b16 %v435_v32  ;;  %872 = vst [vmem:[#allocation2 + $0x4] sm:$0xf] %v4972_v36  ;;  %v941_v54 = vsel %vm5117_vm6, 0, %v940_v52  ;;  %v438_v61 = vpack.c.bf16 %v406_v58, %v406_v58 }
  0x23   : > { %873 = vst [vmem:[#allocation2 + $0x8] sm:$0x1] %v4972_v36  ;;  %v505_v46 = vunpack.c.l.b16 %v436_v41  ;;  %v439_v62 = vpack.c.bf16 %v407_v59, %v407_v59  ;;  %v888_v5 = vsel %vm5102_vm4, 0, %v887_v2  ;;  %v944_v17 = vsel %vm5117_vm6, 0, %v943_v15  ;;  %v914_v41 = vld [vmem:[#allocation2 + $0x84] sm:$0x1] }
  0x24   : > { %875 = vst [vmem:[#allocation2 + $0xcc] sm:$0xf] %v4972_v36  ;;  %v507_v3 = vunpack.c.l.b16 %v438_v61 }
  0x25   : > { %876 = vst [vmem:[#allocation2 + $0xd0] sm:$0xf] %v4972_v36  ;;  %v508_v4 = vunpack.c.l.b16 %v439_v62 }
  0x26   : > { %877 = vst [vmem:[#allocation2 + $0xd4] sm:$0x1] %v4972_v36 }
  0x27   : > { %4411 = vmatmul.msk.bf16.gmra.mxu0 %vm537_vm1, %v522_v28  ;;  %v527_v28 = vpack.c.b16 %v502_v27, %v501_v26  ;;  %942 = vst [vmem:[#allocation2 + $0x14] sm:$0x1] %v941_v54  ;;  %v530_v9 = vpack.c.b16 %v508_v4, %v507_v3 }
  0x28   : > { %4421 = vmatmul.msk.bf16.gmra.mxu2 %vm537_vm1, %v532_v29  ;;  %v402_v29 = vld [vmem:[%s5054_s24 + $0x70] sm:$0xff]  ;;  %v881_v44 = vld [vmem:[#allocation2] sm:$0x1]  ;;  %889 = vst [vmem:[#allocation2 + $0x18] sm:$0x1] %v888_v5 }
  0x29   : > { %v434_v31 = vpack.c.bf16 %v402_v29, %v402_v29  ;;  %v882_v45 = vsel %vm5102_vm4, 0, %v881_v44  ;;  %945 = vst [vmem:[#allocation2 + $0x20] sm:$0x1] %v944_v17 }
  0x2a   : > { %883 = vst [vmem:[#allocation2] sm:$0x1] %v882_v45  ;;  %v937_v55 = vld [vmem:[#allocation2 + $0x8] sm:$0x1] }
  0x2b   : > { %v503_v33 = vunpack.c.l.b16 %v434_v31 }
  0x2d   : > { %v528_v35 = vpack.c.b16 %v504_v34, %v503_v33 }
  0x37   : > { %4412 = vmatmul.msk.bf16.gmra.mxu0 %vm537_vm1, %v523_v42  ;;  %v437_v42 = vpack.c.bf16 %v405_v38, %v405_v38 }
  0x38   : > { %4422 = vmatmul.msk.bf16.gmra.mxu2 %vm537_vm1, %v533_v43  ;;  %v885_v43 = vsel %vm5102_vm4, 0, %v884_v40 }
  0x39   : > { %886 = vst [vmem:[#allocation2 + $0xc] sm:$0x1] %v885_v43  ;;  %v506_v47 = vunpack.c.l.b16 %v437_v42  ;;  %v915_v43 = vsel %vm5102_vm4, 0, %v914_v41 }
  0x3a   : > { %916 = vst [vmem:[#allocation2 + $0x84] sm:$0x1] %v915_v43 }
  0x3b   : > { %v529_v50 = vpack.c.b16 %v506_v47, %v505_v46 }
  0x47   : > { %4413 = vmatmul.msk.bf16.gmra.mxu0 %vm537_vm1, %v524_v56 }
  0x48   : > { %4423 = vmatmul.msk.bf16.gmra.mxu2 %vm537_vm1, %v534_v57  ;;  %v938_v57 = vsel %vm5117_vm6, 0, %v937_v55 }
  0x49   : > { %939 = vst [vmem:[#allocation2 + $0x8] sm:$0x1] %v938_v57  ;;  %v1352_v57 = vld [vmem:[#allocation2 + $0x14] sm:$0x1] }
  0x57   : > { %4414 = vmatmul.msk.bf16.gmra.mxu0 %vm537_vm1, %v525_v6 }
  0x58   : > { %4424 = vmatmul.msk.bf16.gmra.mxu2 %vm537_vm1, %v535_v7 }
  0x67   : > { %4415 = vmatmul.msk.bf16.gmra.mxu0 %vm537_vm1, %v526_v20 }
  0x68   : > { %4425 = vmatmul.msk.bf16.gmra.mxu2 %vm537_vm1, %v536_v21 }
  0x77   : > { %4416 = vmatmul.msk.bf16.gmra.mxu0 %vm537_vm1, %v527_v28 }
  0x87   : > { %4417 = vmatmul.msk.bf16.gmra.mxu0 %vm537_vm1, %v528_v35  ;;  %v1348_v35 = vld [vmem:[#allocation2 + $0xc] sm:$0xf] }
  0x94   : > { %v599_v51 = vpop.f32.mrf.mxu0 }
  0x95   : > { %v600_v53 = vadd.f32 %v5113_v48, %v599_v51 }
  0x97   : > { %v679_v56 = vsub.f32 0.0, %v600_v53  ;;  %4418 = vmatmul.msk.bf16.gmra.mxu0 %vm537_vm1, %v529_v50 }
  0x99   : > { %v711_v60 = vmul.f32 1.442695, %v679_v56 }
  0x9b   : > { %4691 = vpow2.f32 %v711_v60  ;;  %v649_v12 = vpop.f32.mrf.mxu2 }
  0x9c   : > { %v601_v63 = vpop.f32.mrf.mxu0  ;;  %v5134_v13 = vadd.f32 %v5113_v48, %v649_v12  ;;  %v1355_v12 = vld [vmem:[#allocation2 + $0x18] sm:$0xf] }
  0x9d   : > { %v602_v0 = vadd.f32 %v5113_v48, %v601_v63 }
  0x9e   : > { %v699_v16 = vsub.f32 0.0, %v5134_v13 }
  0x9f   : > { %v680_v1 = vsub.f32 0.0, %v602_v0 }
  0xa0   : > { %v751_v22 = vmul.f32 1.442695, %v699_v16 }
  0xa1   : > { %v4692_v6 = vpop.eup %4691  ;;  %v713_v7 = vmul.f32 1.442695, %v680_v1 }
  0xa2   : > { %v775_v8 = vadd.f32 1.0, %v4692_v6 }
  0xa3   : > { %4693 = vpow2.f32 %v713_v7  ;;  %v651_v46 = vpop.f32.mrf.mxu2 }
  0xa4   : > { %4695 = vrcp.f32 %v775_v8  ;;  %v604_v10 = vpop.f32.mrf.mxu0  ;;  %v652_v47 = vadd.f32 %v5113_v48, %v651_v46 }
  0xa5   : > { %v605_v11 = vadd.f32 %v5113_v48, %v604_v10  ;;  %v890_v10 = vld [vmem:[#allocation2 + $0x24] sm:$0x1] }
  0xa6   : > { %v700_v51 = vsub.f32 0.0, %v652_v47 }
  0xa7   : > { %v681_v14 = vsub.f32 0.0, %v605_v11  ;;  %4419 = vmatmul.msk.bf16.gmra.mxu0 %vm537_vm1, %v530_v9 }
  0xa8   : > { %v753_v59 = vmul.f32 1.442695, %v700_v51 }
  0xa9   : > { %v4694_v18 = vpop.eup %4693  ;;  %v715_v19 = vmul.f32 1.442695, %v681_v14 }
  0xaa   : > { %v4696_v20 = vpop.eup %4695  ;;  %v776_v21 = vadd.f32 1.0, %v4694_v18  ;;  %v891_v18 = vsel %vm5102_vm4, 0, %v890_v10 }
  0xab   : > { %v839_v23 = vmul.f32 %v4696_v20, %v600_v53  ;;  %4697 = vpow2.f32 %v715_v19  ;;  %892 = vst [vmem:[#allocation2 + $0x24] sm:$0x1] %v891_v18 }
  0xac   : > { %4699 = vrcp.f32 %v776_v21  ;;  %v606_v24 = vpop.f32.mrf.mxu0 }
  0xad   : > { %v991_v25 = vpack.c.bf16 %v839_v23, %v839_v23  ;;  %4701 = vpow2.f32 %v751_v22  ;;  %v5141_v26 = vadd.f32 %v5113_v48, %v606_v24  ;;  %v1418_v23 = vld [vmem:[#allocation2 + $0x84] sm:$0xf] }
  0xaf   : > { %v1026_v27 = vshrl.u32 %v991_v25, 16  ;;  %v682_v28 = vsub.f32 0.0, %v5141_v26  ;;  %v1029_v31 = vshll.u32 %v991_v25, 16 }
  0xb1   : > { %v4698_v29 = vpop.eup %4697  ;;  %v1028_v30 = vrot.slane %v1026_v27, 7  ;;  %v717_v32 = vmul.f32 1.442695, %v682_v28 }
  0xb2   : > { %v4700_v33 = vpop.eup %4699  ;;  %v777_v36 = vadd.f32 1.0, %v4698_v29 }
  0xb3   : > { %v4702_v37 = vpop.eup %4701  ;;  %v1031_v38 = vor.u32 %v1029_v31, %v1028_v30  ;;  %v840_v40 = vmul.f32 %v4700_v33, %v602_v0  ;;  %4703 = vpow2.f32 %v717_v32  ;;  %v1032_v60 = vrot.slane %v1028_v30, 4 }
  0xb4   : > { %4705 = vrcp.f32 %v777_v36  ;;  %v795_v42 = vadd.f32 1.0, %v4702_v37  ;;  %v609_v19 = vpop.f32.mrf.mxu0 }
  0xb5   : > { %v1349_v44 = vsel %vm5146_vm7, %v1031_v38, %v1348_v35  ;;  %v992_v45 = vpack.c.bf16 %v840_v40, %v840_v40  ;;  %v610_v24 = vadd.f32 %v5113_v48, %v609_v19  ;;  %v1359_v35 = vld [vmem:[#allocation2 + $0x20] sm:$0x1]  ;;  %v970_v38 = vld [vmem:[#allocation2 + $0x8c] sm:$0x1] }
  0xb6   : > { %1350 = vst [vmem:[#allocation2 + $0xc] sm:$0xf] %v1349_v44  ;;  %4707 = vrcp.f32 %v795_v42  ;;  %v971_v43 = vsel %vm5117_vm6, 0, %v970_v38 }
  0xb7   : > { %v1034_v50 = vshrl.u32 %v992_v45, 16  ;;  %v1037_v54 = vshll.u32 %v992_v45, 16  ;;  %v683_v28 = vsub.f32 0.0, %v610_v24  ;;  %972 = vst [vmem:[#allocation2 + $0x8c] sm:$0x1] %v971_v43 }
  0xb9   : > { %v4704_v52 = vpop.eup %4703  ;;  %v1036_v53 = vrot.slane %v1034_v50, 7  ;;  %v719_v33 = vmul.f32 1.442695, %v683_v28 }
  0xba   : > { %v4706_v55 = vpop.eup %4705  ;;  %v778_v58 = vadd.f32 1.0, %v4704_v52 }
  0xbb   : > { %v1039_v61 = vor.u32 %v1037_v54, %v1036_v53  ;;  %v1041_v62 = vrot.slane %v1036_v53, 4  ;;  %v841_v63 = vmul.f32 %v4706_v55, %v605_v11  ;;  %v654_v55 = vpop.f32.mrf.mxu2 }
  0xbc   : > { %v4708_v0 = vpop.eup %4707  ;;  %4709 = vrcp.f32 %v778_v58 }
  0xbd   : > { %v1040_v1 = vsel %vm5156_vm9, %v1032_v60, %v1039_v61  ;;  %v1353_v2 = vsel %vm5102_vm4, %v1041_v62, %v1352_v57  ;;  %v993_v3 = vpack.c.bf16 %v841_v63, %v841_v63  ;;  %v859_v4 = vmul.f32 %v4708_v0, %v5134_v13  ;;  %v5188_v61 = vld [vmem:[%s8091_s3] sm:$0xff] }
  0xbe   : > { %1351 = vst [vmem:[#allocation2 + $0x10] sm:$0xf] %v1040_v1  ;;  %4711 = vpow2.f32 %v753_v59  ;;  %v5182_v57 = vadd.f32 %v5113_v48, %v654_v55  ;;  %v4551_v62 = vld [vmem:[#allocation2] sm:$0xff]   ;;  %v1422_v63 = vld [vmem:[#allocation2 + $0x8c] sm:$0x1] }
  0xbf   : > { %1354 = vst [vmem:[#allocation2 + $0x14] sm:$0x1] %v1353_v2  ;;  %v1043_v5 = vshrl.u32 %v993_v3, 16  ;;  %v1011_v6 = vpack.c.bf16 %v859_v4, %v859_v4  ;;  %v1046_v8 = vshll.u32 %v993_v3, 16  ;;  %v611_v2 = vpop.f32.mrf.mxu0  ;;  %v4552_v3 = vunpack.c.l.bf16 %v4551_v62 }
  0xc0   : > { %v701_v58 = vsub.f32 0.0, %v5182_v57  ;;  %v5191_v4 = vperm.slane %v5188_v61, 1  ;;  %v5204_v19 = vadd.f32 %v5113_v48, %v611_v2 }
  0xc1   : > { %v1045_v7 = vrot.slane %v1043_v5, 7  ;;  %v1196_v9 = vshrl.u32 %v1011_v6, 16  ;;  %v1199_v17 = vshll.u32 %v1011_v6, 16  ;;  %v4553_v6 = vunpack.c.h.bf16 %v4551_v62 }
  0xc2   : > { %v4710_v11 = vpop.eup %4709  ;;  %v755_v1 = vmul.f32 1.442695, %v701_v58  ;;  %v1624_v10 = vmul.f32 %v4552_v3, %v5191_v4 }
  0xc3   : > { %v1048_v14 = vor.u32 %v1046_v8, %v1045_v7  ;;  %v1198_v16 = vrot.slane %v1196_v9, 7  ;;  %v842_v20 = vmul.f32 %v4710_v11, %v5141_v26  ;;  %v1049_v26 = vrot.slane %v1045_v7, 4  ;;  %v1865_v7 = vld [vmem:[#allocation2] sm:$0xe]  ;;  %v1591_v8 = vld [vmem:[#allocation2 + $0x8] sm:$0x1] }
  0xc4   : > { %v4712_v15 = vpop.eup %4711  ;;  %v1625_v11 = vmul.f32 %v4553_v6, %v5191_v4 }
  0xc5   : > { %v1356_v13 = vsel %vm5146_vm7, %v1048_v14, %v1355_v12  ;;  %v796_v21 = vadd.f32 1.0, %v4712_v15  ;;  %v1201_v22 = vor.u32 %v1199_v17, %v1198_v16  ;;  %v994_v25 = vpack.c.bf16 %v842_v20, %v842_v20  ;;  %v917_v17 = vld [vmem:[#allocation2 + $0x90] sm:$0x1] }
  0xc6   : > { %1357 = vst [vmem:[#allocation2 + $0x18] sm:$0xf] %v1356_v13  ;;  %v1202_v51 = vrot.slane %v1198_v16, 4  ;;  %v1881_v12 = vunpack.c.l.bf16 %v1865_v7  ;;  %v5198_v14 = vperm.slane %v5188_v61, 2  ;;  %v1607_v15 = vunpack.c.l.bf16 %v1591_v8  ;;  %v1465_v58 = vld [vmem:[#allocation2 + $0x10] sm:$0xf] }
  0xc7   : > { %4713 = vrcp.f32 %v796_v21  ;;  %v1419_v27 = vsel %vm5146_vm7, %v1201_v22, %v1418_v23  ;;  %v1051_v29 = vshrl.u32 %v994_v25, 16  ;;  %v1054_v32 = vshll.u32 %v994_v25, 16  ;;  %v614_v20 = vpop.f32.mrf.mxu0  ;;  %v1592_v2 = vld [vmem:[#allocation2 + $0x14] sm:$0x1] }
  0xc8   : > { %1420 = vst [vmem:[#allocation2 + $0x84] sm:$0xf] %v1419_v27  ;;  %4715 = vpow2.f32 %v719_v33  ;;  %v5201_v13 = vperm.slane %v5188_v61, 0  ;;  %v1721_v21 = vrot.slane %v1624_v10, 1  ;;  %v1722_v22 = vrot.slane %v1625_v11, 1 }
  0xc9   : > { %v1053_v31 = vrot.slane %v1051_v29, 7  ;;  %v1898_v23 = vmul.f32 %v5198_v14, %v1881_v12  ;;  %v1899_v25 = vmul.f32 %v4553_v6, %v5198_v14  ;;  %v918_v29 = vsel %vm5102_vm4, 0, %v917_v17 }
  0xca   : > { %919 = vst [vmem:[#allocation2 + $0x90] sm:$0x1] %v918_v29  ;;  %v1527_v38 = vmul.f32 %v4552_v3, %v5201_v13  ;;  %v1723_v43 = vsel %vm1720_vm10, %v1721_v21, %v1722_v22  ;;  %v5239_v7 = vperm.slane %v5188_v61, 4  ;;  %v5242_v8 = vperm.slane %v5188_v61, 5 }
  0xcb   : > { %v1056_v36 = vor.u32 %v1054_v32, %v1053_v31  ;;  %v1058_v37 = vrot.slane %v1053_v31, 4  ;;  %v1362_v31 = vld [vmem:[#allocation2 + $0x24] sm:$0xf]  ;;  %v1497_v11 = vunpack.c.l.bf16 %v1465_v58 }
  0xcd   : > { %v4714_v30 = vpop.eup %4713  ;;  %v1057_v41 = vsel %vm5156_vm9, %v1049_v26, %v1056_v36  ;;  %v1360_v42 = vsel %vm5102_vm4, %v1058_v37, %v1359_v35  ;;  %v5217_v35 = vadd.f32 %v5113_v48, %v614_v20  ;;  %v684_v36 = vsub.f32 0.0, %v5204_v19  ;;  %v946_v37 = vld [vmem:[#allocation2 + $0x2c] sm:$0x1] }
  0xce   : > { %v860_v40 = vmul.f32 %v4714_v30, %v652_v47  ;;  %1358 = vst [vmem:[#allocation2 + $0x1c] sm:$0xf] %v1057_v41  ;;  %v4716_v46 = vpop.eup %4715  ;;  %v656_v30 = vpop.f32.mrf.mxu2  ;;  %v1900_v41 = vmul.f32 %v5198_v14, %v1607_v15 }
  0xcf   : > { %1361 = vst [vmem:[#allocation2 + $0x20] sm:$0x1] %v1360_v42  ;;  %v779_v53 = vadd.f32 1.0, %v4716_v46  ;;  %v5214_v33 = vadd.f32 %v5113_v48, %v656_v30  ;;  %v5223_v42 = vld [vmem:[#allocation2 + $0xc] sm:$0xf]  ;;  %v5260_v30 = vmul.f32 %v5191_v4, %v1497_v11 }
  0xd0   : > { %v1012_v44 = vpack.c.bf16 %v860_v40, %v860_v40  ;;  %v2139_v46 = vld [vmem:[#allocation2 + $0xc] sm:$0xf]  ;;  %v721_v55 = vmul.f32 1.442695, %v684_v36  ;;  %v5267_v36 = vperm.slane %v5188_v61, 7 }
  0xd1   : > { %4717 = vrcp.f32 %v779_v53  ;;  %v2541_v53 = vld [vmem:[#allocation2 + $0xc] sm:$0xe] }
  0xd2   : > { %v1204_v45 = vshrl.u32 %v1012_v44, 16  ;;  %v1207_v50 = vshll.u32 %v1012_v44, 16  ;;  %4719 = vpow2.f32 %v755_v1  ;;  %v1995_v44 = vrot.slane %v1898_v23, 2  ;;  %v5252_v23 = vld [vmem:[#allocation2 + $0xc] sm:$0xe]  ;;  %8210 = vst [vmem:[#allocation4_spill] sm:$0xff] %v5267_v36 }
  0xd3   : > { %v5236_v1 = vperm.slane %v5188_v61, 3 }
  0xd4   : > { %v1206_v52 = vrot.slane %v1204_v45, 7  ;;  %v1996_v45 = vrot.slane %v1899_v25, 2 }
  0xd6   : > { %v1209_v47 = vor.u32 %v1207_v50, %v1206_v52  ;;  %v1211_v60 = vrot.slane %v1206_v52, 4  ;;  %v702_v52 = vsub.f32 0.0, %v5214_v33  ;;  %v1997_v10 = vsel %vm1994_vm11, %v1995_v44, %v1996_v45 }
  0xd7   : > { %v4718_v59 = vpop.eup %4717 }
  0xd8   : > { %v1210_v54 = vsel %vm5156_vm9, %v1202_v51, %v1209_v47  ;;  %v843_v0 = vmul.f32 %v4718_v59, %v610_v24  ;;  %v1423_v5 = vsel %vm5102_vm4, %v1211_v60, %v1422_v63  ;;  %v4720_v18 = vpop.eup %4719  ;;  %v1626_v24 = vmul.f32 %v5191_v4, %v1607_v15 }
  0xd9   : > { %1421 = vst [vmem:[#allocation2 + $0x88] sm:$0xf] %v1210_v54  ;;  %v797_v32 = vadd.f32 1.0, %v4720_v18  ;;  %v947_v51 = vsel %vm5117_vm6, 0, %v946_v37  ;;  %v685_v47 = vsub.f32 0.0, %v5217_v35  ;;  %v1528_v54 = vmul.f32 %v4553_v6, %v5201_v13 }
  0xda   : > { %1424 = vst [vmem:[#allocation2 + $0x8c] sm:$0x1] %v1423_v5  ;;  %v995_v9 = vpack.c.bf16 %v843_v0, %v843_v0  ;;  %v1724_v40 = vrot.slane %v1626_v24, 1  ;;  %v1998_v60 = vrot.slane %v1900_v41, 2  ;;  %v757_v62 = vmul.f32 1.442695, %v702_v52 }
  0xdb   : > { %4721 = vrcp.f32 %v797_v32  ;;  %948 = vst [vmem:[#allocation2 + $0x2c] sm:$0x1] %v947_v51  ;;  %v1496_v63 = vunpack.c.l.bf16 %v5223_v42  ;;  %v1833_v0 = vadd.f32 %v1723_v43, %v1527_v38  ;;  %v723_v3 = vmul.f32 1.442695, %v685_v47  ;;  %v2268_v18 = vld [vmem:[#allocation2 + $0x14] sm:$0x1]  ;;  %v659_v38 = vpop.f32.mrf.mxu2 }
  0xdc   : > { %v1060_v16 = vshrl.u32 %v995_v9, 16  ;;  %v1063_v28 = vshll.u32 %v995_v9, 16  ;;  %v1725_v59 = vsel %vm1720_vm10, %v1722_v22, %v1724_v40  ;;  %v2171_v5 = vunpack.c.l.bf16 %v2139_v46  ;;  %v2140_v9 = vld [vmem:[#allocation2 + $0x10] sm:$0xf] }
  0xdd   : > { %v2557_v6 = vunpack.c.l.bf16 %v2541_v53  ;;  %v1834_v12 = vadd.f32 %v1725_v59, %v1528_v54  ;;  %4723 = vpow2.f32 %v721_v55  ;;  %v1999_v17 = vsel %vm1994_vm11, %v1996_v45, %v1998_v60  ;;  %v973_v59 = vld [vmem:[#allocation2 + $0x98] sm:$0x1]  ;;  %v893_v60 = vld [vmem:[#allocation2 + $0x30] sm:$0x1] }
  0xde   : > { %v5209_v27 = vrot.slane %v1060_v16, 7  ;;  %v1608_v16 = vunpack.c.l.bf16 %v1592_v2  ;;  %4725 = vpow2.f32 %v757_v62  ;;  %v5249_v20 = vmul.f32 %v5191_v4, %v1496_v63 }
  0xdf   : > { %v2172_v21 = vunpack.c.l.bf16 %v2140_v9  ;;  %4727 = vpow2.f32 %v723_v3  ;;  %v2107_v24 = vadd.f32 %v1997_v10, %v1833_v0  ;;  %v2204_v25 = vmul.f32 %v5236_v1, %v2171_v5 }
  0xe0   : > { %v1065_v26 = vor.u32 %v1063_v28, %v5209_v27  ;;  %v2301_v28 = vmul.f32 %v5239_v7, %v2171_v5  ;;  %v5257_v29 = vmul.f32 %v5242_v8, %v2557_v6  ;;  %v2284_v32 = vunpack.c.l.bf16 %v2268_v18 }
  0xe1   : > { %v4722_v15 = vpop.eup %4721  ;;  %v1726_v41 = vrot.slane %v5249_v20, 1  ;;  %v1882_v43 = vunpack.c.l.bf16 %v5252_v23  ;;  %v2302_v44 = vmul.f32 %v5239_v7, %v2172_v21  ;;  %v5273_v45 = vadd.f32 %v5113_v48, %v659_v38  ;;  %v920_v38 = vld [vmem:[#allocation2 + $0x9c] sm:$0x1] }
  0xe2   : > { %v1363_v50 = vsel %vm5146_vm7, %v1065_v26, %v1362_v31  ;;  %v861_v22 = vmul.f32 %v4722_v15, %v5182_v57  ;;  %v2108_v31 = vadd.f32 %v1999_v17, %v1834_v12  ;;  %v1629_v26 = vmul.f32 %v5191_v4, %v1608_v16 }
  0xe3   : > { %1364 = vst [vmem:[#allocation2 + $0x24] sm:$0xf] %v1363_v50  ;;  %v5264_v57 = vperm.slane %v5188_v61, 6  ;;  %v4724_v40 = vpop.eup %4723  ;;  %v2236_v50 = vadd.f32 %v2204_v25, %v2107_v24  ;;  %v2397_v51 = vrot.slane %v2301_v28, 1  ;;  %v2670_v52 = vrot.slane %v5257_v29, 2  ;;  %v4646_v25 = vld [vmem:[#allocation2 + $0x18] sm:$0xff]  }
  0xe4   : > { %v1013_v37 = vpack.c.bf16 %v861_v22, %v861_v22  ;;  %v4726_v46 = vpop.eup %4725  ;;  %v5277_v61 = vmul.f32 %v5198_v14, %v1497_v11  ;;  %v1727_v53 = vrot.slane %v5260_v30, 1  ;;  %v5281_v54 = vmul.f32 %v5198_v14, %v1608_v16  ;;  %v1425_v22 = vld [vmem:[#allocation2 + $0x90] sm:$0xf]  ;;  %v616_v30 = vpop.f32.mrf.mxu0 }
  0xe5   : > { %8209 = vst [vmem:[#allocation3_spill] sm:$0xff] %v5264_v57  ;;  %v4728_v47 = vpop.eup %4727  ;;  %v2205_v55 = vmul.f32 %v5236_v1, %v2172_v21  ;;  %v2303_v58 = vmul.f32 %v5239_v7, %v2284_v32  ;;  %v1729_v62 = vrot.slane %v1629_v26, 1  ;;  %v5286_v0 = vmul.f32 %v5242_v8, %v2172_v21 }
  0xe6   : > { %v1213_v2 = vshrl.u32 %v1013_v37, 16  ;;  %v1216_v3 = vshll.u32 %v1013_v37, 16  ;;  %v2398_v5 = vrot.slane %v2302_v44, 1  ;;  %v780_v6 = vadd.f32 1.0, %v4724_v40  ;;  %v5303_v44 = vld [vmem:[#allocation2 + $0x18] sm:$0xe] }
  0xe7   : > { %v798_v9 = vadd.f32 1.0, %v4726_v46  ;;  %v703_v10 = vsub.f32 0.0, %v5273_v45  ;;  %v974_v15 = vsel %vm5117_vm6, 0, %v973_v59  ;;  %v781_v16 = vadd.f32 1.0, %v4728_v47 }
  0xe8   : > { %v5289_v12 = vrot.slane %v1213_v2, 7  ;;  %v894_v17 = vsel %vm5102_vm4, 0, %v893_v60  ;;  %v1530_v18 = vmul.f32 %v5201_v13, %v1497_v11  ;;  %v2400_v20 = vrot.slane %v2303_v58, 1  ;;  %975 = vst [vmem:[#allocation2 + $0x98] sm:$0x1] %v974_v15 }
  0xe9   : > { %v2576_v21 = vmul.f32 %v5242_v8, %v2284_v32  ;;  %4729 = vrcp.f32 %v780_v6  ;;  %v2001_v23 = vrot.slane %v5277_v61, 2  ;;  %v2237_v24 = vadd.f32 %v2205_v55, %v2108_v31  ;;  %895 = vst [vmem:[#allocation2 + $0x30] sm:$0x1] %v894_v17  ;;  %v5310_v58 = vld [vmem:[#allocation2 + $0x18] sm:$0xe] }
  0xea   : > { %v1218_v28 = vor.u32 %v1216_v3, %v5289_v12  ;;  %4731 = vrcp.f32 %v798_v9  ;;  %v1730_v26 = vsel %vm1720_vm10, %v1727_v53, %v1729_v62  ;;  %v2003_v37 = vrot.slane %v5281_v54, 2  ;;  %v5325_v2 = vld [vmem:[#allocation2 + $0x20] sm:$0x1]  ;;  %v949_v3 = vld [vmem:[#allocation2 + $0x38] sm:$0x1] }
  0xeb   : > { %4733 = vrcp.f32 %v781_v16  ;;  %v759_v11 = vmul.f32 1.442695, %v703_v10  ;;  %v2399_v32 = vsel %vm1720_vm10, %v2397_v51, %v2398_v5  ;;  %v2671_v40 = vrot.slane %v5286_v0, 2  ;;  %v5327_v6 = vld [vmem:[#allocation2 + $0x18] sm:$0xe] }
  0xec   : > { %v1426_v31 = vsel %vm5146_vm7, %v1218_v28, %v1425_v22  ;;  %v921_v46 = vsel %vm5102_vm4, 0, %v920_v38  ;;  %v2401_v47 = vsel %vm1720_vm10, %v2398_v5, %v2400_v20  ;;  %v2673_v55 = vrot.slane %v2576_v21, 2  ;;  %v5417_v61 = vld [vmem:[%s8092_s4] ss:$0 sm:$0xff] }
  0xed   : > { %v5312_v59 = vunpack.c.l.bf16 %v4646_v25  ;;  %1427 = vst [vmem:[#allocation2 + $0x90] sm:$0xf] %v1426_v31  ;;  %v5315_v51 = vadd.f32 %v5113_v48, %v616_v30  ;;  %v5318_v60 = vmul.f32 %v5198_v14, %v1882_v43  ;;  %v5321_v62 = vsel %vm1720_vm10, %v1726_v41, %v1727_v53 }
  0xee   : > { %v5323_v0 = vadd.f32 %v1730_v26, %v1530_v18  ;;  %922 = vst [vmem:[#allocation2 + $0x9c] sm:$0x1] %v921_v46  ;;  %v5329_v9 = vunpack.c.h.bf16 %v4646_v25  ;;  %v2509_v10 = vadd.f32 %v2399_v32, %v2236_v50  ;;  %4735 = vpow2.f32 %v759_v11  ;;  %v661_v32 = vpop.f32.mrf.mxu2 }
  0xef   : > { %v4730_v5 = vpop.eup %4729  ;;  %v950_v43 = vsel %vm5117_vm6, 0, %v949_v3  ;;  %v2510_v16 = vadd.f32 %v2401_v47, %v2237_v24  ;;  %v1883_v41 = vunpack.c.l.bf16 %v5303_v44  ;;  %v2558_v53 = vunpack.c.l.bf16 %v5310_v58  ;;  %v976_v44 = vld [vmem:[#allocation2 + $0xa4] sm:$0x1] }
  0xf0   : > { %v4732_v15 = vpop.eup %4731  ;;  %v844_v17 = vmul.f32 %v4730_v5, %v5204_v19  ;;  %951 = vst [vmem:[#allocation2 + $0x38] sm:$0x1] %v950_v43  ;;  %v2960_v20 = vunpack.c.l.bf16 %v5325_v2  ;;  %v2977_v21 = vmul.f32 %v5312_v59, %v5267_v36  ;;  %v686_v22 = vsub.f32 0.0, %v5315_v51 }
  0xf1   : > { %v4734_v18 = vpop.eup %4733  ;;  %v862_v50 = vmul.f32 %v4732_v15, %v5214_v33  ;;  %v3233_v25 = vunpack.c.l.bf16 %v5327_v6  ;;  %v2672_v24 = vsel %vm1994_vm11, %v2670_v52, %v2671_v40  ;;  %v2674_v30 = vsel %vm1994_vm11, %v2671_v40, %v2673_v55 }
  0xf2   : > { %v996_v28 = vpack.c.bf16 %v844_v17, %v844_v17  ;;  %v845_v19 = vmul.f32 %v4734_v18, %v5217_v35  ;;  %v2782_v26 = vadd.f32 %v2672_v24, %v2509_v10  ;;  %v2978_v11 = vmul.f32 %v5329_v9, %v5267_v36  ;;  %v1366_v17 = vld [vmem:[#allocation2 + $0x2c] sm:$0x1] }
  0xf3   : > { %v1014_v38 = vpack.c.bf16 %v862_v50, %v862_v50  ;;  %v2783_v33 = vadd.f32 %v2674_v30, %v2510_v16  ;;  %v2880_v31 = vmul.f32 %v5312_v59, %v5264_v57  ;;  %v2881_v29 = vmul.f32 %v5329_v9, %v5264_v57 }
  0xf4   : > { %v997_v46 = vpack.c.bf16 %v845_v19, %v845_v19  ;;  %v4736_v52 = vpop.eup %4735  ;;  %v2979_v47 = vmul.f32 %v5267_v36, %v2960_v20  ;;  %v3073_v35 = vrot.slane %v2977_v21, 1  ;;  %v1068_v2 = vshrl.u32 %v996_v28, 16  ;;  %v5363_v21 = vld [vmem:[%s8091_s3 + $0x8] ss:$0 sm:$0xff] }
  0xf5   : > { %v725_v40 = vmul.f32 1.442695, %v686_v22  ;;  %v1221_v55 = vshrl.u32 %v1014_v38, 16  ;;  %v1224_v3 = vshll.u32 %v1014_v38, 16  ;;  %v5355_v6 = vadd.f32 %v5113_v48, %v661_v32 }
  0xf6   : > { %v1077_v5 = vshrl.u32 %v997_v46, 16  ;;  %v3074_v10 = vrot.slane %v2978_v11, 1  ;;  %v1219_v43 = vrot.slane %v5289_v12, 4  ;;  %v1070_v15 = vrot.slane %v1068_v2, 7  ;;  %v1429_v11 = vld [vmem:[#allocation2 + $0x98] sm:$0x1] }
  0xf7   : > { %v1071_v16 = vshll.u32 %v996_v28, 16  ;;  %v1223_v18 = vrot.slane %v1221_v55, 7  ;;  %v1080_v24 = vshll.u32 %v997_v46, 16  ;;  %v799_v19 = vadd.f32 1.0, %v4736_v52  ;;  %v1369_v2 = vld [vmem:[#allocation2 + $0x30] sm:$0xf] }
  0xf8   : > { %v5358_v50 = vrot.slane %v1077_v5, 7  ;;  %v1066_v22 = vrot.slane %v5209_v27, 4  ;;  %v1075_v38 = vrot.slane %v1070_v15, 4  ;;  %4737 = vpow2.f32 %v725_v40 }
  0xf9   : > { %v1073_v30 = vor.u32 %v1071_v16, %v1070_v15  ;;  %v1226_v12 = vor.u32 %v1224_v3, %v1223_v18  ;;  %v1228_v32 = vrot.slane %v1223_v18, 4  ;;  %v704_v55 = vsub.f32 0.0, %v5355_v6  ;;  %v1484_v16 = vld [vmem:[#allocation2 + $0x84] sm:$0xf] }
  0xfa   : > { %v1082_v28 = vor.u32 %v1080_v24, %v5358_v50  ;;  %v3076_v46 = vrot.slane %v2979_v47, 1  ;;  %v3251_v52 = vmul.f32 %v5363_v21, %v5329_v9  ;;  %v1367_v27 = vsel %vm5102_vm4, %v1075_v38, %v1366_v17 }
  0xfb   : > { %v1074_v5 = vsel %vm5156_vm9, %v1066_v22, %v1073_v30  ;;  %v2912_v15 = vadd.f32 %v2880_v31, %v2782_v26  ;;  %v1227_v40 = vsel %vm5156_vm9, %v1219_v43, %v1226_v12  ;;  %v1430_v3 = vsel %vm5102_vm4, %v1228_v32, %v1429_v11  ;;  %1368 = vst [vmem:[#allocation2 + $0x2c] sm:$0x1] %v1367_v27  ;;  %v2833_v11 = vld [vmem:[#allocation2 + $0x84] sm:$0xf] }
  0xfc   : > { %1365 = vst [vmem:[#allocation2 + $0x28] sm:$0xf] %v1074_v5  ;;  %4739 = vrcp.f32 %v799_v19  ;;  %v3250_v47 = vmul.f32 %v5363_v21, %v3233_v25  ;;  %v3075_v18 = vsel %vm1720_vm10, %v3073_v35, %v3074_v10  ;;  %v3252_v24 = vmul.f32 %v5363_v21, %v2960_v20  ;;  %v1876_v25 = vld [vmem:[#allocation2 + $0x84] sm:$0xe] }
  0xfd   : > { %v1370_v17 = vsel %vm5146_vm7, %v1082_v28, %v1369_v2  ;;  %v1529_v26 = vmul.f32 %v5201_v13, %v1496_v63  ;;  %v2004_v31 = vsel %vm1994_vm11, %v2001_v23, %v2003_v37  ;;  %v2913_v43 = vadd.f32 %v2881_v29, %v2783_v33  ;;  %1428 = vst [vmem:[#allocation2 + $0x94] sm:$0xf] %v1227_v40  ;;  %v2159_v37 = vld [vmem:[#allocation2 + $0x84] sm:$0xf] }
  0xfe   : > { %v761_v35 = vmul.f32 1.442695, %v704_v55  ;;  %v4738_v19 = vpop.eup %4737  ;;  %v2000_v20 = vrot.slane %v5318_v60, 2  ;;  %v5393_v22 = vadd.f32 %v2004_v31, %v5323_v0  ;;  %v3077_v42 = vsel %vm1720_vm10, %v3074_v10, %v3076_v46  ;;  %1431 = vst [vmem:[#allocation2 + $0x98] sm:$0x1] %v1430_v3 }
  0xff   : > { %v3347_v30 = vrot.slane %v3251_v52, 2  ;;  %v5399_v63 = vmul.f32 %v5198_v14, %v1883_v41  ;;  %v5404_v54 = vmul.f32 %v5242_v8, %v2558_v53  ;;  %v2551_v33 = vld [vmem:[#allocation2 + $0x84] sm:$0xe]  ;;  %v1835_v60 = vadd.f32 %v5321_v62, %v1529_v26  ;;  %1371 = vst [vmem:[#allocation2 + $0x30] sm:$0xf] %v1370_v17 }
 0x100   : > { %v3185_v0 = vadd.f32 %v3075_v18, %v2912_v15  ;;  %v3346_v29 = vrot.slane %v3250_v47, 2  ;;  %v1516_v10 = vunpack.c.l.bf16 %v1484_v16  ;;  %v1892_v38 = vunpack.c.l.bf16 %v1876_v25  ;;  %v3226_v2 = vld [vmem:[#allocation2 + $0x84] sm:$0xe]  ;;  %v1593_v3 = vld [vmem:[#allocation2 + $0x20] sm:$0x1] }
 0x101   : > { %v3349_v12 = vrot.slane %v3252_v24, 2  ;;  %v2002_v58 = vsel %vm1994_vm11, %v2000_v20, %v2001_v23  ;;  %v3186_v41 = vadd.f32 %v3077_v42, %v2913_v43  ;;  %4741 = vpow2.f32 %v761_v35  ;;  %v5440_v35 = vld [vmem:[#allocation2 + $0x20] sm:$0x1] }
 0x102   : > { %v4740_v32 = vpop.eup %4739  ;;  %v977_v53 = vsel %vm5117_vm6, 0, %v976_v44  ;;  %v2191_v28 = vunpack.c.l.bf16 %v2159_v37  ;;  %v2567_v62 = vunpack.c.l.bf16 %v2551_v33  ;;  %v3348_v55 = vsel %vm1994_vm11, %v3346_v29, %v3347_v30 }
 0x103   : > { %v782_v46 = vadd.f32 1.0, %v4738_v19  ;;  %v2865_v5 = vunpack.c.l.bf16 %v2833_v11  ;;  %v2109_v27 = vadd.f32 %v2002_v58, %v1835_v60  ;;  %v3458_v15 = vadd.f32 %v3348_v55, %v3185_v0  ;;  %978 = vst [vmem:[#allocation2 + $0xa4] sm:$0x1] %v977_v53 }
 0x104   : > { %v5420_v23 = vmul.f32 %v5191_v4, %v1516_v10  ;;  %v5423_v40 = vmul.f32 %v5198_v14, %v1892_v38  ;;  %v3350_v47 = vsel %vm1994_vm11, %v3347_v30, %v3349_v12  ;;  %v863_v16 = vmul.f32 %v4740_v32, %v5273_v45 }
 0x105   : > { %v5429_v24 = vmul.f32 %v5201_v13, %v1516_v10  ;;  %v3242_v17 = vunpack.c.l.bf16 %v3226_v2  ;;  %v3459_v26 = vadd.f32 %v3350_v47, %v3186_v41  ;;  %v5432_v31 = vmul.f32 %v5236_v1, %v2191_v28  ;;  %v619_v41 = vpop.f32.mrf.mxu0 }
 0x106   : > { %8211 = vst [vmem:[#allocation5_spill] sm:$0xff] %v5420_v23  ;;  %v5435_v25 = vmul.f32 %v5239_v7, %v2191_v28  ;;  %v5438_v43 = vmul.f32 %v5242_v8, %v2567_v62  ;;  %4743 = vrcp.f32 %v782_v46  ;;  %v5443_v19 = vmul.f32 %v5264_v57, %v2865_v5 }
 0x107   : > { %8212 = vst [vmem:[#allocation6_spill] sm:$0xff] %v5423_v40  ;;  %v4742_v45 = vpop.eup %4741  ;;  %v5446_v20 = vmul.f32 %v5267_v36, %v2865_v5  ;;  %v1609_v42 = vunpack.c.l.bf16 %v1593_v3  ;;  %v5449_v30 = vadd.f32 %v5417_v61, %v3458_v15  ;;  %v1630_v60 = vmul.f32 %v5312_v59, %v5191_v4 }
 0x108   : > { %8213 = vst [vmem:[#allocation7_spill] sm:$0xff] %v5429_v24  ;;  %v1015_v0 = vpack.c.bf16 %v863_v16, %v863_v16  ;;  %v5456_v29 = vmul.f32 %v5363_v21, %v3242_v17  ;;  %v1631_v10 = vmul.f32 %v5329_v9, %v5191_v4  ;;  %v2285_v38 = vunpack.c.l.bf16 %v5440_v35  ;;  %v979_v24 = vld [vmem:[#allocation2 + $0xb0] sm:$0x1] }
 0x109   : > { %8214 = vst [vmem:[#allocation8_spill] sm:$0xff] %v5432_v31  ;;  %v5462_v11 = vadd.f32 %v5417_v61, %v3459_v26  ;;  %v2304_v44 = vmul.f32 %v5312_v59, %v5239_v7  ;;  %v2305_v32 = vmul.f32 %v5329_v9, %v5239_v7  ;;  %v800_v58 = vadd.f32 1.0, %v4742_v45 }
 0x10a   : > { %8215 = vst [vmem:[#allocation9_spill] sm:$0xff] %v5435_v25  ;;  %v1632_v62 = vmul.f32 %v5191_v4, %v1609_v42  ;;  %v3526_v2 = vsub.f32 0.0, %v5449_v30  ;;  %v1531_v46 = vmul.f32 %v5312_v59, %v5201_v13  ;;  %v1731_v5 = vrot.slane %v1630_v60, 1  ;;  %v5676_v25 = vld [vmem:[#allocation2 + $0x2c] sm:$0x1] }
 0x10b   : > { %8216 = vst [vmem:[#allocation10_spill] sm:$0xff] %v5438_v43  ;;  %v2206_v15 = vmul.f32 %v5312_v59, %v5236_v1  ;;  %v1230_v3 = vshrl.u32 %v1015_v0, 16  ;;  %v1732_v47 = vrot.slane %v1631_v10, 1  ;;  %v2306_v16 = vmul.f32 %v5239_v7, %v2285_v38 }
 0x10c   : > { %8217 = vst [vmem:[#allocation11_spill] sm:$0xff] %v5443_v19  ;;  %v4744_v55 = vpop.eup %4743  ;;  %v3527_v17 = vsub.f32 0.0, %v5462_v11  ;;  %v5480_v26 = vadd.f32 %v5113_v48, %v619_v41  ;;  %v5484_v35 = vmul.f32 %v5329_v9, %v5198_v14  ;;  %v2402_v45 = vrot.slane %v2304_v44, 1 }
 0x10d   : > { %8218 = vst [vmem:[#allocation12_spill] sm:$0xff] %v5446_v20  ;;  %v2403_v28 = vrot.slane %v2305_v32, 1  ;;  %4745 = vrcp.f32 %v800_v58  ;;  %v1734_v60 = vrot.slane %v1632_v62, 1  ;;  %v2207_v59 = vmul.f32 %v5329_v9, %v5236_v1 }
 0x10e   : > { %8219 = vst [vmem:[#allocation13_spill] sm:$0xff] %v5456_v29  ;;  %v3558_v53 = vmul.f32 1.442695, %v3526_v2  ;;  %v846_v10 = vmul.f32 %v4744_v55, %v5315_v51  ;;  %v2238_v12 = vadd.f32 %v2206_v15, %v2109_v27  ;;  %v5491_v33 = vmul.f32 %v5329_v9, %v5242_v8  ;;  %v2160_v15 = vld [vmem:[#allocation2 + $0x88] sm:$0xf]  ;;  %v664_v29 = vpop.f32.mrf.mxu2 }
 0x10f   : > { %v5493_v48 = vrot.slane %v1230_v3, 7  ;;  %v1233_v41 = vshll.u32 %v1015_v0, 16  ;;  %v1733_v37 = vsel %vm1720_vm10, %v1731_v5, %v1732_v47  ;;  %v2405_v44 = vrot.slane %v2306_v16, 1  ;;  %v1485_v5 = vld [vmem:[#allocation2 + $0x88] sm:$0xf] }
 0x110   : > { %v3560_v32 = vmul.f32 1.442695, %v3527_v17  ;;  %v687_v58 = vsub.f32 0.0, %v5480_v26  ;;  %v1532_v62 = vmul.f32 %v5329_v9, %v5201_v13  ;;  %v5500_v2 = vmul.f32 %v5198_v14, %v1609_v42  ;;  %v1432_v3 = vld [vmem:[#allocation2 + $0x9c] sm:$0xf] }
 0x111   : > { %v2404_v27 = vsel %vm1720_vm10, %v2402_v45, %v2403_v28  ;;  %v1735_v55 = vsel %vm1720_vm10, %v1732_v47, %v1734_v60  ;;  %v2239_v0 = vadd.f32 %v2207_v59, %v5393_v22  ;;  %4747 = vpow2.f32 %v3558_v53  ;;  %v2817_v22 = vld [vmem:[#allocation2 + $0x24] sm:$0xf] }
 0x112   : > { %v998_v16 = vpack.c.bf16 %v846_v10, %v846_v10  ;;  %v1837_v18 = vadd.f32 %v1733_v37, %v1531_v46  ;;  %v5507_v9 = vmul.f32 %v5242_v8, %v2285_v38  ;;  %v8100_v42 = vrot.slane %v5491_v33, 2 }
 0x113   : > { %v4746_v17 = vpop.eup %4745  ;;  %v1235_v52 = vor.u32 %v1233_v41, %v5493_v48  ;;  %v2406_v45 = vsel %vm1720_vm10, %v2403_v28, %v2405_v44  ;;  %v2511_v51 = vadd.f32 %v2404_v27, %v2238_v12  ;;  %4749 = vpow2.f32 %v3560_v32  ;;  %v2834_v41 = vld [vmem:[#allocation2 + $0x88] sm:$0xf] }
 0x114   : > { %v727_v47 = vmul.f32 1.442695, %v687_v58  ;;  %v1517_v53 = vunpack.c.l.bf16 %v1485_v5  ;;  %v2192_v60 = vunpack.c.l.bf16 %v2160_v15  ;;  %v5515_v37 = vadd.f32 %v1735_v55, %v1532_v62  ;;  %v1602_v55 = vld [vmem:[#allocation2 + $0x8c] sm:$0x1] }
 0x115   : > { %v1433_v59 = vsel %vm5146_vm7, %v1235_v52, %v1432_v3  ;;  %v8220_v38 = vrot.slane %v5484_v35, 2  ;;  %v8221_v46 = vrot.slane %v5399_v63, 2  ;;  %v1085_v12 = vshrl.u32 %v998_v16, 16 }
 0x116   : > { %1434 = vst [vmem:[#allocation2 + $0x9c] sm:$0xf] %v1433_v59  ;;  %v864_v28 = vmul.f32 %v4746_v17, %v5355_v6  ;;  %v5525_v32 = vadd.f32 %v2406_v45, %v2239_v0  ;;  %v8222_v52 = vrot.slane %v5404_v54, 2  ;;  %v1088_v15 = vshll.u32 %v998_v16, 16  ;;  %v896_v6 = vld [vmem:[#allocation2 + $0x3c] sm:$0x1] }
 0x117   : > { %v2007_v10 = vsel %vm1994_vm11, %v8221_v46, %v8220_v38  ;;  %v4748_v63 = vpop.eup %4747  ;;  %v1087_v5 = vrot.slane %v1085_v12, 7  ;;  %4751 = vpow2.f32 %v727_v47  ;;  %v5539_v0 = vmul.f32 %v5198_v14, %v1517_v53  ;;  %v1373_v17 = vld [vmem:[#allocation2 + $0x38] sm:$0x1] }
 0x118   : > { %v5523_v44 = vadd.f32 %v2007_v10, %v1837_v18  ;;  %v2677_v58 = vsel %vm1994_vm11, %v8222_v52, %v8100_v42  ;;  %v5536_v18 = vmul.f32 %v5191_v4, %v1517_v53  ;;  %v5542_v54 = vmul.f32 %v5239_v7, %v2192_v60 }
 0x119   : > { %v5533_v27 = vadd.f32 %v2677_v58, %v2511_v51  ;;  %8224 = vst [vmem:[#allocation15_spill] sm:$0xff] %v5539_v0  ;;  %v5544_v3 = vunpack.c.l.bf16 %v2834_v41  ;;  %v4750_v45 = vpop.eup %4749  ;;  %v2278_v51 = vld [vmem:[#allocation2 + $0x8c] sm:$0x1]  ;;  %v1083_v59 = vrot.slane %v5358_v50, 4  ;;  %v1090_v38 = vor.u32 %v1088_v15, %v1087_v5 }
 0x11a   : > { %8223 = vst [vmem:[#allocation14_spill] sm:$0xff] %v5536_v18  ;;  %v1092_v16 = vrot.slane %v1087_v5, 4  ;;  %v1016_v47 = vpack.c.bf16 %v864_v28, %v864_v28  ;;  %v3622_v46 = vadd.f32 1.0, %v4748_v63  ;;  %v5548_v10 = vmul.f32 %v5201_v13, %v1517_v53  ;;  %v5552_v58 = vld [vmem:[#allocation2 + $0x8c] sm:$0x1] }
 0x11b   : > { %8225 = vst [vmem:[#allocation16_spill] sm:$0xff] %v5542_v54  ;;  %v1618_v12 = vunpack.c.l.bf16 %v1602_v55  ;;  %v897_v52 = vsel %vm5102_vm4, 0, %v896_v6  ;;  %v1091_v41 = vsel %vm5156_vm9, %v1083_v59, %v1090_v38  ;;  %v3623_v28 = vadd.f32 1.0, %v4750_v45  ;;  %v923_v6 = vld [vmem:[#allocation2 + $0xa8] sm:$0x1] }
 0x11c   : > { %8226 = vst [vmem:[#allocation17_spill] sm:$0xff] %v5544_v3  ;;  %v1374_v42 = vsel %vm5102_vm4, %v1092_v16, %v1373_v17  ;;  %v1238_v50 = vshrl.u32 %v1016_v47, 16  ;;  %v1241_v15 = vshll.u32 %v1016_v47, 16  ;;  %v5560_v53 = vmul.f32 %v5236_v1, %v2192_v60  ;;  %v1468_v47 = vld [vmem:[#allocation2 + $0x24] sm:$0xf] }
 0x11d   : > { %8227 = vst [vmem:[#allocation18_spill] sm:$0xff] %v5548_v10  ;;  %v2294_v55 = vunpack.c.l.bf16 %v2278_v51  ;;  %v4752_v5 = vpop.eup %4751  ;;  %v1236_v59 = vrot.slane %v5493_v48, 4  ;;  %v5566_v38 = vmul.f32 %v5191_v4, %v1618_v12  ;;  %v5569_v45 = vmul.f32 %v5242_v8, %v2192_v60  ;;  %v2543_v63 = vld [vmem:[#allocation2 + $0x24] sm:$0xe] }
 0x11e   : > { %8228 = vst [vmem:[#allocation19_spill] sm:$0xff] %v5552_v58  ;;  %v1240_v17 = vrot.slane %v1238_v50, 7  ;;  %v5574_v51 = vmul.f32 %v5267_v36, %v5544_v3  ;;  %4753 = vrcp.f32 %v3622_v46  ;;  %v5577_v48 = vmul.f32 %v5198_v14, %v1618_v12  ;;  %v3218_v46 = vld [vmem:[#allocation2 + $0x24] sm:$0xe] }
 0x11f   : > { %898 = vst [vmem:[#allocation2 + $0x3c] sm:$0x1] %v897_v52  ;;  %v1868_v52 = vld [vmem:[#allocation2 + $0x24] sm:$0xe]  ;;  %4755 = vrcp.f32 %v3623_v28  ;;  %v5580_v60 = vmul.f32 %v5239_v7, %v2294_v55  ;;  %v783_v16 = vadd.f32 1.0, %v4752_v5  ;;  %v924_v20 = vsel %vm5102_vm4, 0, %v923_v6 }
 0x120   : > { %8229 = vst [vmem:[#allocation20_spill] sm:$0xff] %v5560_v53  ;;  %v1243_v50 = vor.u32 %v1241_v15, %v1240_v17  ;;  %v1245_v62 = vrot.slane %v1240_v17, 4  ;;  %v1500_v19 = vunpack.c.l.bf16 %v1468_v47  ;;  %v5591_v28 = vld [vmem:[%s8090_s2] ss:$0 sm:$0xff]  ;;  %v1884_v47 = vunpack.c.l.bf16 %v1868_v52  ;;  %v5608_v52 = vld [vmem:[#allocation2 + $0x2c] sm:$0x1] }
 0x121   : > { %1372 = vst [vmem:[#allocation2 + $0x34] sm:$0xf] %v1091_v41  ;;  %v1436_v41 = vld [vmem:[#allocation2 + $0xa4] sm:$0x1]  ;;  %v5594_v17 = vadd.f32 %v5591_v28, %v664_v29  ;;  %v2849_v43 = vunpack.c.l.bf16 %v2817_v22  ;;  %v2818_v29 = vld [vmem:[#allocation2 + $0x28] sm:$0xf]  ;;  %v3234_v6 = vunpack.c.l.bf16 %v3218_v46  ;;  %4757 = vrcp.f32 %v783_v16 }
 0x122   : > { %1375 = vst [vmem:[#allocation2 + $0x38] sm:$0x1] %v1374_v42  ;;  %v2143_v42 = vld [vmem:[#allocation2 + $0x24] sm:$0xf]  ;;  %v1244_v12 = vsel %vm5156_vm9, %v1236_v59, %v1243_v50  ;;  %v1437_v15 = vsel %vm5102_vm4, %v1245_v62, %v1436_v41  ;;  %v5599_v59 = vmul.f32 %v5242_v8, %v2294_v55  ;;  %v8236_v62 = vunpack.c.l.bf16 %v5552_v58 }
 0x123   : > { %8230 = vst [vmem:[#allocation21_spill] sm:$0xff] %v5566_v38  ;;  %v2175_v3 = vunpack.c.l.bf16 %v2143_v42  ;;  %v2559_v50 = vunpack.c.l.bf16 %v2543_v63  ;;  %v8239_v22 = vrot.slane %v5484_v35, 2  ;;  %v5621_v46 = vmul.f32 %v5198_v14, %v1884_v47 }
 0x124   : > { %8231 = vst [vmem:[#allocation22_spill] sm:$0xff] %v5569_v45  ;;  %v5604_v41 = vmul.f32 %v5267_v36, %v8236_v62  ;;  %v4754_v42 = vpop.eup %4753  ;;  %v8238_v62 = vrot.slane %v5500_v2, 2  ;;  %v2850_v55 = vunpack.c.l.bf16 %v2818_v29  ;;  %v2882_v2 = vmul.f32 %v5264_v57, %v2849_v43 }
 0x125   : > { %8232 = vst [vmem:[#allocation23_spill] sm:$0xff] %v5574_v51  ;;  %v2208_v16 = vmul.f32 %v5236_v1, %v2175_v3  ;;  %v5625_v5 = vmul.f32 %v5239_v7, %v2175_v3  ;;  %v5628_v58 = vmul.f32 %v5242_v8, %v2559_v50  ;;  %v2980_v47 = vmul.f32 %v5267_v36, %v2849_v43 }
 0x126   : > { %8233 = vst [vmem:[#allocation24_spill] sm:$0xff] %v5577_v48  ;;  %v2009_v63 = vsel %vm1994_vm11, %v8239_v22, %v8238_v62  ;;  %v2961_v62 = vunpack.c.l.bf16 %v5608_v52  ;;  %v5636_v22 = vmul.f32 %v5201_v13, %v1500_v19  ;;  %v5640_v51 = vmul.f32 %v5363_v21, %v3234_v6  ;;  %v666_v6 = vpop.f32.mrf.mxu2 }
 0x127   : > { %8234 = vst [vmem:[#allocation25_spill] sm:$0xff] %v5580_v60  ;;  %v5632_v35 = vadd.f32 %v2009_v63, %v5515_v37  ;;  %v8240_v3 = vrot.slane %v5507_v9, 2  ;;  %v8241_v50 = vrot.slane %v5491_v33, 2  ;;  %v5648_v37 = vmul.f32 %v4754_v42, %v5449_v30  ;;  %v1877_v63 = vld [vmem:[#allocation2 + $0x90] sm:$0xe] }
 0x128   : > { %925 = vst [vmem:[#allocation2 + $0xa8] sm:$0x1] %v924_v20  ;;  %v4756_v20 = vpop.eup %4755  ;;  %v5656_v9 = vadd.f32 %v2208_v16, %v5523_v44  ;;  %v2982_v42 = vmul.f32 %v5267_v36, %v2961_v62  ;;  %v3351_v44 = vrot.slane %v5640_v51, 2  ;;  %v1893_v16 = vunpack.c.l.bf16 %v1877_v63  ;;  %v1594_v33 = vld [vmem:[#allocation2 + $0x2c] sm:$0x1] }
 0x129   : > { %1435 = vst [vmem:[#allocation2 + $0xa0] sm:$0xf] %v1244_v12  ;;  %v5612_v12 = vmul.f32 %v5191_v4, %v1500_v19  ;;  %v2679_v29 = vsel %vm1994_vm11, %v8241_v50, %v8240_v3  ;;  %v5651_v52 = vmul.f32 %v4756_v20, %v5462_v11  ;;  %v4758_v45 = vpop.eup %4757  ;;  %v1469_v3 = vld [vmem:[#allocation2 + $0x28] sm:$0xf]  ;;  %v2981_v50 = vmul.f32 %v5267_v36, %v2850_v55  ;;  %v5662_v20 = vld [vmem:[#allocation2 + $0x90] sm:$0xe] }
 0x12a   : > { %8235 = vst [vmem:[#allocation26_spill] sm:$0xff] %v5599_v59  ;;  %v2914_v11 = vadd.f32 %v2882_v2, %v5533_v27  ;;  %v3078_v19 = vrot.slane %v2980_v47, 1  ;;  %v2144_v59 = vld [vmem:[#allocation2 + $0x28] sm:$0xf]  ;;  %v2785_v60 = vadd.f32 %v2679_v29, %v5525_v32  ;;  %v5674_v27 = vld [vmem:[#allocation2 + $0x90] sm:$0xe]  ;;  %v1501_v2 = vunpack.c.l.bf16 %v1469_v3 }
 0x12b   : > { %8237 = vst [vmem:[#allocation27_spill] sm:$0xff] %v5604_v41  ;;  %v621_v41 = vpop.f32.mrf.mxu0  ;;  %v5672_v30 = vadd.f32 %v5651_v52, %v5648_v37  ;;  %v2883_v51 = vmul.f32 %v5264_v57, %v2850_v55  ;;  %v3079_v63 = vrot.slane %v2981_v50, 1  ;;  %v5682_v54 = vadd.f32 %v5591_v28, %v666_v6 }
 0x12c   : > { %1438 = vst [vmem:[#allocation2 + $0xa4] sm:$0x1] %v1437_v15  ;;  %v705_v15 = vsub.f32 0.0, %v5594_v17  ;;  %v1610_v32 = vunpack.c.l.bf16 %v1594_v33  ;;  %v2176_v29 = vunpack.c.l.bf16 %v2144_v59  ;;  %v5686_v3 = vmul.f32 %v5198_v14, %v1893_v16 }
 0x12d   : > { %8242 = vst [vmem:[#allocation28_spill] sm:$0xff] %v5648_v37  ;;  %v1634_v6 = vmul.f32 %v5191_v4, %v1501_v2  ;;  %v3255_v33 = vmul.f32 %v5363_v21, %v2961_v62  ;;  %v5697_v50 = vmul.f32 %v5198_v14, %v1501_v2  ;;  %v3080_v16 = vsel %vm1720_vm10, %v3078_v19, %v3079_v63  ;;  %v952_v19 = vld [vmem:[#allocation2 + $0x44] sm:$0x1] }
 0x12e   : > { %8243 = vst [vmem:[#allocation29_spill] sm:$0xff] %v5651_v52  ;;  %v763_v43 = vmul.f32 1.442695, %v705_v15  ;;  %v5666_v15 = vadd.f32 %v5591_v28, %v621_v41  ;;  %v847_v41 = vmul.f32 %v4758_v45, %v5480_v26  ;;  %v3081_v52 = vrot.slane %v2982_v42, 1 }
 0x12f   : > { %8244 = vst [vmem:[#allocation30_spill] sm:$0xff] %v5662_v20  ;;  %v2286_v26 = vunpack.c.l.bf16 %v5676_v25  ;;  %v3254_v45 = vmul.f32 %v5363_v21, %v2850_v55  ;;  %v2915_v42 = vadd.f32 %v2883_v51, %v2785_v60  ;;  %v706_v53 = vsub.f32 0.0, %v5682_v54 }
 0x130   : > { %8245 = vst [vmem:[#allocation31_spill] sm:$0xff] %v5674_v27  ;;  %4759 = vpow2.f32 %v763_v43  ;;  %v688_v37 = vsub.f32 0.0, %v5666_v15  ;;  %v5692_v43 = vmul.f32 %v5201_v13, %v1501_v2  ;;  %v999_v59 = vpack.c.bf16 %v847_v41, %v847_v41 }
 0x131   : > { %8246 = vst [vmem:[#allocation32_spill] sm:$0xff] %v5686_v3  ;;  %v1635_v25 = vmul.f32 %v5191_v4, %v1610_v32  ;;  %v2209_v55 = vmul.f32 %v5236_v1, %v2176_v29  ;;  %v3082_v27 = vsel %vm1720_vm10, %v3079_v63, %v3081_v52  ;;  %v5705_v31 = vmul.f32 %v5198_v14, %v1610_v32 }
 0x132   : > { %v729_v20 = vmul.f32 1.442695, %v688_v37  ;;  %v5708_v62 = vmul.f32 %v5239_v7, %v2176_v29  ;;  %v2309_v60 = vmul.f32 %v5239_v7, %v2286_v26  ;;  %v3352_v2 = vrot.slane %v3254_v45, 2 }
 0x133   : > { %v1737_v41 = vrot.slane %v1634_v6, 1  ;;  %v3187_v51 = vadd.f32 %v3080_v16, %v2914_v11  ;;  %v3354_v48 = vrot.slane %v3255_v33, 2  ;;  %v1094_v40 = vshrl.u32 %v999_v59, 16  ;;  %v624_v38 = vpop.f32.mrf.mxu0  ;;  %v1376_v33 = vld [vmem:[#allocation2 + $0x3c] sm:$0xf] }
 0x134   : > { %v8124_v0 = vrot.slane %v5697_v50, 2  ;;  %v3188_v3 = vadd.f32 %v3082_v27, %v2915_v42  ;;  %v765_v52 = vmul.f32 1.442695, %v706_v53  ;;  %v1097_v63 = vshll.u32 %v999_v59, 16 }
 0x135   : > { %v5712_v37 = vrot.slane %v1094_v40, 7  ;;  %4761 = vpow2.f32 %v729_v20  ;;  %v953_v32 = vsel %vm5117_vm6, 0, %v952_v19  ;;  %v1739_v45 = vrot.slane %v1635_v25, 1 }
 0x136   : > { %v4760_v47 = vpop.eup %4759  ;;  %v2241_v6 = vadd.f32 %v2209_v55, %v5632_v35  ;;  %v3353_v11 = vsel %vm1994_vm11, %v3351_v44, %v3352_v2  ;;  %954 = vst [vmem:[#allocation2 + $0x44] sm:$0x1] %v953_v32  ;;  %v5719_v27 = vmul.f32 %v5242_v8, %v2176_v29  ;;  %v3355_v40 = vsel %vm1994_vm11, %v3352_v2, %v3354_v48  ;;  %v669_v44 = vpop.f32.mrf.mxu2  ;;  %v899_v48 = vld [vmem:[#allocation2 + $0x48] sm:$0x1] }
 0x137   : > { %v801_v10 = vadd.f32 1.0, %v4760_v47  ;;  %v3460_v53 = vadd.f32 %v3353_v11, %v3187_v51  ;;  %v1099_v20 = vor.u32 %v1097_v63, %v5712_v37  ;;  %v3461_v47 = vadd.f32 %v3355_v40, %v3188_v3 }
 0x138   : > { %v980_v59 = vsel %vm5117_vm6, 0, %v979_v24  ;;  %v5726_v35 = vadd.f32 %v5591_v28, %v624_v38  ;;  %v2410_v42 = vrot.slane %v2309_v60, 1  ;;  %v5732_v16 = vadd.f32 %v5591_v28, %v669_v44  ;;  %v4651_v24 = vld [vmem:[#allocation2 + $0x90] sm:$0xff]  }
 0x139   : > { %4763 = vrcp.f32 %v801_v10  ;;  %v2408_v10 = vrot.slane %v5708_v62, 1  ;;  %v1377_v29 = vsel %vm5146_vm7, %v1099_v20, %v1376_v33  ;;  %981 = vst [vmem:[#allocation2 + $0xb0] sm:$0x1] %v980_v59  ;;  %v1740_v3 = vsel %vm1720_vm10, %v1737_v41, %v1739_v45 }
 0x13a   : > { %4765 = vpow2.f32 %v765_v52  ;;  %v2582_v25 = vmul.f32 %v5242_v8, %v2286_v26  ;;  %1378 = vst [vmem:[#allocation2 + $0x3c] sm:$0xf] %v1377_v29  ;;  %v689_v38 = vsub.f32 0.0, %v5726_v35  ;;  %v900_v55 = vsel %vm5102_vm4, 0, %v899_v48  ;;  %v5748_v52 = vld [vmem:[#allocation2 + $0x98] sm:$0x1] }
 0x13b   : > { %v4762_v62 = vpop.eup %4761  ;;  %v8247_v60 = vrot.slane %v5612_v12, 1  ;;  %v2013_v19 = vrot.slane %v5705_v31, 2  ;;  %v5746_v51 = vadd.f32 %v5417_v61, %v3460_v53  ;;  %8248 = vst [vmem:[#allocation33_spill] sm:$0xff] %v5748_v52  ;;  %v707_v26 = vsub.f32 0.0, %v5732_v16  ;;  %v3219_v48 = vld [vmem:[#allocation2 + $0x30] sm:$0xe] }
 0x13c   : > { %901 = vst [vmem:[#allocation2 + $0x48] sm:$0x1] %v900_v55  ;;  %v2681_v32 = vrot.slane %v5719_v27, 2  ;;  %v5753_v45 = vadd.f32 %v5417_v61, %v3461_v47  ;;  %v784_v12 = vadd.f32 1.0, %v4762_v62  ;;  %v731_v11 = vmul.f32 1.442695, %v689_v38 }
 0x13d   : > { %v5742_v2 = vsel %vm1720_vm10, %v8247_v60, %v1737_v41  ;;  %v1840_v41 = vadd.f32 %v1740_v3, %v5692_v43  ;;  %v2411_v31 = vsel %vm1720_vm10, %v2408_v10, %v2410_v42  ;;  %v5757_v33 = vunpack.c.l.bf16 %v4651_v24 }
 0x13e   : > { %v2683_v20 = vrot.slane %v2582_v25, 2  ;;  %v5760_v59 = vunpack.c.h.bf16 %v4651_v24  ;;  %v8123_v44 = vunpack.c.l.bf16 %v5748_v52  ;;  %v767_v27 = vmul.f32 1.442695, %v707_v26  ;;  %v5782_v26 = vld [vmem:[#allocation2 + $0x98] sm:$0x1] }
 0x13f   : > { %v4764_v63 = vpop.eup %4763  ;;  %8249 = vst [vmem:[#allocation34_spill] sm:$0xff] %v5757_v33  ;;  %v3528_v47 = vsub.f32 0.0, %v5746_v51  ;;  %v5766_v29 = vmul.f32 %v5757_v33, %v5191_v4  ;;  %4767 = vrcp.f32 %v784_v12  ;;  %v3529_v42 = vsub.f32 0.0, %v5753_v45  ;;  %v5788_v12 = vld [vmem:[#allocation2 + $0x30] sm:$0xe] }
 0x140   : > { %v865_v40 = vmul.f32 %v4764_v63, %v5594_v17  ;;  %v4766_v53 = vpop.eup %4765  ;;  %8250 = vst [vmem:[#allocation35_spill] sm:$0xff] %v5760_v59  ;;  %v5771_v17 = vmul.f32 %v5760_v59, %v5191_v4  ;;  %4769 = vpow2.f32 %v731_v11  ;;  %v2014_v25 = vsel %vm1994_vm11, %v8124_v0, %v2013_v19 }
 0x141   : > { %8251 = vst [vmem:[#allocation36_spill] sm:$0xff] %v5766_v29  ;;  %v802_v43 = vadd.f32 1.0, %v4766_v53  ;;  %v8253_v24 = vrot.slane %v5625_v5, 1  ;;  %v2514_v55 = vadd.f32 %v2411_v31, %v2241_v6  ;;  %v5779_v62 = vadd.f32 %v2014_v25, %v1840_v41  ;;  %v4647_v41 = vld [vmem:[#allocation2 + $0x30] sm:$0xff]  }
 0x142   : > { %8252 = vst [vmem:[#allocation37_spill] sm:$0xff] %v5771_v17  ;;  %v1017_v3 = vpack.c.bf16 %v865_v40, %v865_v40  ;;  %v2684_v60 = vsel %vm1994_vm11, %v2681_v32, %v2683_v20  ;;  %v5786_v63 = vmul.f32 %v5757_v33, %v5239_v7  ;;  %v3562_v19 = vmul.f32 1.442695, %v3528_v47  ;;  %v1380_v17 = vld [vmem:[#allocation2 + $0x44] sm:$0x1] }
 0x143   : > { %v2409_v38 = vsel %vm1720_vm10, %v8253_v24, %v2408_v10  ;;  %4771 = vrcp.f32 %v802_v43  ;;  %8254 = vst [vmem:[#allocation38_spill] sm:$0xff] %v5782_v26  ;;  %v5792_v5 = vmul.f32 %v5757_v33, %v5201_v13  ;;  %v5797_v6 = vmul.f32 %v5191_v4, %v8123_v44  ;;  %v5799_v10 = vld [vmem:[#allocation2 + $0x30] sm:$0xe]  ;;  %v626_v24 = vpop.f32.mrf.mxu0 }
 0x144   : > { %8255 = vst [vmem:[#allocation39_spill] sm:$0xff] %v5786_v63  ;;  %4773 = vpow2.f32 %v767_v27  ;;  %v3235_v11 = vunpack.c.l.bf16 %v3219_v48  ;;  %v3564_v31 = vmul.f32 1.442695, %v3529_v42  ;;  %v1247_v20 = vshrl.u32 %v1017_v3, 16 }
 0x145   : > { %8256 = vst [vmem:[#allocation40_spill] sm:$0xff] %v5792_v5  ;;  %v4768_v27 = vpop.eup %4767  ;;  %v5805_v47 = vmul.f32 %v5757_v33, %v5236_v1  ;;  %v5810_v25 = vmul.f32 %v5757_v33, %v5267_v36  ;;  %v5815_v53 = vunpack.c.l.bf16 %v4647_v41  ;;  %v5817_v0 = vunpack.c.h.bf16 %v4647_v41 }
 0x146   : > { %8257 = vst [vmem:[#allocation41_spill] sm:$0xff] %v5797_v6  ;;  %v4770_v42 = vpop.eup %4769  ;;  %4775 = vpow2.f32 %v3562_v19  ;;  %v5820_v43 = vmul.f32 %v5363_v21, %v3235_v11  ;;  %v2513_v33 = vadd.f32 %v2409_v38, %v5656_v9  ;;  %v8260_v26 = vrot.slane %v5628_v58, 2  ;;  %v926_v9 = vld [vmem:[#allocation2 + $0xb4] sm:$0x1] }
 0x147   : > { %8258 = vst [vmem:[#allocation42_spill] sm:$0xff] %v5805_v47  ;;  %v2946_v47 = vld [vmem:[#allocation2 + $0x38] sm:$0x1]  ;;  %4777 = vpow2.f32 %v3564_v31  ;;  %v5826_v44 = vadd.f32 %v2684_v60, %v2514_v55  ;;  %v1249_v40 = vrot.slane %v1247_v20, 7  ;;  %v5829_v41 = vadd.f32 %v5591_v28, %v626_v24  ;;  %v1439_v55 = vld [vmem:[#allocation2 + $0xa8] sm:$0xf] }
 0x148   : > { %8259 = vst [vmem:[#allocation43_spill] sm:$0xff] %v5810_v25  ;;  %v2682_v48 = vsel %vm1994_vm11, %v8260_v26, %v2681_v32  ;;  %v1250_v63 = vshll.u32 %v1017_v3, 16  ;;  %v848_v19 = vmul.f32 %v4768_v27, %v5666_v15  ;;  %v785_v29 = vadd.f32 1.0, %v4770_v42  ;;  %v955_v3 = vld [vmem:[#allocation2 + $0x50] sm:$0x1] }
 0x149   : > { %v4772_v52 = vpop.eup %4771  ;;  %v2962_v38 = vunpack.c.l.bf16 %v2946_v47  ;;  %v2983_v58 = vmul.f32 %v5815_v53, %v5267_v36  ;;  %v5837_v32 = vmul.f32 %v5817_v0, %v5267_v36  ;;  %v927_v15 = vsel %vm5102_vm4, 0, %v926_v9 }
 0x14a   : > { %v4774_v5 = vpop.eup %4773  ;;  %v866_v11 = vmul.f32 %v4772_v52, %v5682_v54  ;;  %v1252_v26 = vor.u32 %v1250_v63, %v1249_v40  ;;  %v1000_v31 = vpack.c.bf16 %v848_v19, %v848_v19  ;;  %4779 = vrcp.f32 %v785_v29  ;;  %928 = vst [vmem:[#allocation2 + $0xb4] sm:$0x1] %v927_v15 }
 0x14b   : > { %v803_v60 = vadd.f32 1.0, %v4774_v5  ;;  %v2884_v54 = vmul.f32 %v5815_v53, %v5264_v57  ;;  %v956_v52 = vsel %vm5117_vm6, 0, %v955_v3  ;;  %v2786_v47 = vadd.f32 %v2682_v48, %v2513_v33 }
 0x14c   : > { %v1018_v20 = vpack.c.bf16 %v866_v11, %v866_v11  ;;  %v4776_v27 = vpop.eup %4775  ;;  %v1440_v5 = vsel %vm5146_vm7, %v1252_v26, %v1439_v55  ;;  %v1102_v63 = vshrl.u32 %v1000_v31, 16  ;;  %v690_v29 = vsub.f32 0.0, %v5829_v41  ;;  %957 = vst [vmem:[#allocation2 + $0x50] sm:$0x1] %v956_v52  ;;  %v671_v52 = vpop.f32.mrf.mxu2 }
 0x14d   : > { %4781 = vrcp.f32 %v803_v60  ;;  %v5848_v24 = vpop.eup %4777  ;;  %v2885_v42 = vmul.f32 %v5817_v0, %v5264_v57  ;;  %v2985_v19 = vmul.f32 %v5267_v36, %v2962_v38  ;;  %1441 = vst [vmem:[#allocation2 + $0xa8] sm:$0xf] %v1440_v5  ;;  %v3083_v60 = vrot.slane %v2983_v58, 1 }
 0x14e   : > { %v1255_v11 = vshrl.u32 %v1018_v20, 16  ;;  %v1258_v9 = vshll.u32 %v1018_v20, 16  ;;  %v3084_v33 = vrot.slane %v5837_v32, 1  ;;  %v1104_v48 = vrot.slane %v1102_v63, 7  ;;  %v1443_v20 = vld [vmem:[#allocation2 + $0xb0] sm:$0x1] }
 0x14f   : > { %v1105_v3 = vshll.u32 %v1000_v31, 16  ;;  %v2916_v55 = vadd.f32 %v2884_v54, %v2786_v47  ;;  %v5856_v26 = vmul.f32 %v5363_v21, %v5817_v0  ;;  %v1253_v15 = vrot.slane %v1249_v40, 4 }
 0x150   : > { %v1257_v59 = vrot.slane %v1255_v11, 7  ;;  %v4780_v6 = vpop.eup %4779  ;;  %v1100_v23 = vrot.slane %v5712_v37, 4  ;;  %v1109_v18 = vrot.slane %v1104_v48, 4  ;;  %v733_v58 = vmul.f32 1.442695, %v690_v29 }
 0x151   : > { %v1107_v5 = vor.u32 %v1105_v3, %v1104_v48  ;;  %v3086_v32 = vrot.slane %v2985_v19, 1  ;;  %v849_v54 = vmul.f32 %v4780_v6, %v5726_v35  ;;  %v3085_v47 = vsel %vm1720_vm10, %v3083_v60, %v3084_v33 }
 0x152   : > { %v1260_v63 = vor.u32 %v1258_v9, %v1257_v59  ;;  %v1262_v31 = vrot.slane %v1257_v59, 4  ;;  %v3258_v40 = vmul.f32 %v5363_v21, %v2962_v38  ;;  %v1381_v37 = vsel %vm5102_vm4, %v1109_v18, %v1380_v17 }
 0x153   : > { %v4782_v57 = vpop.eup %4781  ;;  %v1108_v11 = vsel %vm5156_vm9, %v1100_v23, %v1107_v5  ;;  %v1001_v19 = vpack.c.bf16 %v849_v54, %v849_v54  ;;  %v2917_v6 = vadd.f32 %v2885_v42, %v5826_v44  ;;  %v3357_v21 = vrot.slane %v5856_v26, 2  ;;  %1382 = vst [vmem:[#allocation2 + $0x44] sm:$0x1] %v1381_v37 }
 0x154   : > { %1379 = vst [vmem:[#allocation2 + $0x40] sm:$0xf] %v1108_v11  ;;  %v1261_v29 = vsel %vm5156_vm9, %v1253_v15, %v1260_v63  ;;  %v1444_v59 = vsel %vm5102_vm4, %v1262_v31, %v1443_v20  ;;  %v867_v35 = vmul.f32 %v4782_v57, %v5732_v16  ;;  %4783 = vpow2.f32 %v733_v58  ;;  %v1595_v15 = vld [vmem:[#allocation2 + $0x38] sm:$0x1] }
 0x155   : > { %v5874_v23 = vadd.f32 %v5591_v28, %v671_v52  ;;  %v8261_v18 = vunpack.c.l.bf16 %v5788_v12  ;;  %v3087_v38 = vsel %vm1720_vm10, %v3084_v33, %v3086_v32  ;;  %v3189_v9 = vadd.f32 %v3085_v47, %v2916_v55  ;;  %1442 = vst [vmem:[#allocation2 + $0xac] sm:$0xf] %v1261_v29  ;;  %v982_v55 = vld [vmem:[#allocation2 + $0xbc] sm:$0x1] }
 0x156   : > { %v1111_v60 = vshrl.u32 %v1001_v19, 16  ;;  %v3624_v57 = vadd.f32 1.0, %v4776_v27  ;;  %v8262_v16 = vunpack.c.l.bf16 %v5799_v10  ;;  %v3356_v42 = vrot.slane %v5820_v43, 2  ;;  %1445 = vst [vmem:[#allocation2 + $0xb0] sm:$0x1] %v1444_v59 }
 0x157   : > { %v5879_v17 = vmul.f32 %v5198_v14, %v8261_v18  ;;  %v1839_v48 = vadd.f32 %v5742_v2, %v5636_v22  ;;  %v3359_v12 = vrot.slane %v3258_v40, 2  ;;  %v1114_v26 = vshll.u32 %v1001_v19, 16  ;;  %v1383_v10 = vld [vmem:[#allocation2 + $0x48] sm:$0xf]  ;;  %v2271_v2 = vld [vmem:[#allocation2 + $0x38] sm:$0x1]  ;;  %v629_v19 = vpop.f32.mrf.mxu0 }
 0x158   : > { %v5885_v44 = vmul.f32 %v5242_v8, %v8262_v16  ;;  %v5890_v3 = vrot.slane %v1111_v60, 7  ;;  %v1019_v33 = vpack.c.bf16 %v867_v35, %v867_v35  ;;  %v3190_v5 = vadd.f32 %v3087_v38, %v2917_v6 }
 0x159   : > { %v3358_v27 = vsel %vm1994_vm11, %v3356_v42, %v3357_v21  ;;  %v708_v20 = vsub.f32 0.0, %v5874_v23  ;;  %v983_v43 = vsel %vm5117_vm6, 0, %v982_v55  ;;  %v3625_v58 = vadd.f32 1.0, %v5848_v24 }
 0x15a   : > { %v3462_v32 = vadd.f32 %v3358_v27, %v3189_v9  ;;  %v1116_v63 = vor.u32 %v1114_v26, %v5890_v3  ;;  %984 = vst [vmem:[#allocation2 + $0xbc] sm:$0x1] %v983_v43  ;;  %v4784_v31 = vpop.eup %4783  ;;  %4785 = vrcp.f32 %v3624_v57  ;;  %v2015_v54 = vrot.slane %v5879_v17, 2 }
 0x15b   : > { %v2685_v52 = vrot.slane %v5885_v44, 2  ;;  %v8263_v47 = vrot.slane %v5697_v50, 2  ;;  %v8264_v40 = vrot.slane %v5621_v46, 2  ;;  %v1611_v24 = vunpack.c.l.bf16 %v1595_v15  ;;  %v5989_v44 = vld [vmem:[#allocation2 + $0x3c] sm:$0xf] }
 0x15c   : > { %v3360_v37 = vsel %vm1994_vm11, %v3357_v21, %v3359_v12  ;;  %v1384_v29 = vsel %vm5146_vm7, %v1116_v63, %v1383_v10  ;;  %v1264_v59 = vshrl.u32 %v1019_v33, 16  ;;  %v2287_v6 = vunpack.c.l.bf16 %v2271_v2 }
 0x15d   : > { %v2012_v11 = vsel %vm1994_vm11, %v8264_v40, %v8263_v47  ;;  %v3463_v18 = vadd.f32 %v3360_v37, %v3190_v5  ;;  %1385 = vst [vmem:[#allocation2 + $0x48] sm:$0xf] %v1384_v29  ;;  %v769_v38 = vmul.f32 1.442695, %v708_v20  ;;  %4787 = vrcp.f32 %v3625_v58 }
 0x15e   : > { %v2113_v35 = vadd.f32 %v2012_v11, %v1839_v48  ;;  %v1636_v50 = vmul.f32 %v5815_v53, %v5191_v4  ;;  %v5912_v46 = vadd.f32 %v5417_v61, %v3462_v32  ;;  %v786_v9 = vadd.f32 1.0, %v4784_v31 }
 0x15f   : > { %v1637_v21 = vmul.f32 %v5817_v0, %v5191_v4  ;;  %v2310_v60 = vmul.f32 %v5815_v53, %v5239_v7  ;;  %v2311_v57 = vmul.f32 %v5817_v0, %v5239_v7  ;;  %v5921_v16 = vadd.f32 %v5591_v28, %v629_v19 }
 0x160   : > { %v1535_v42 = vmul.f32 %v5815_v53, %v5201_v13  ;;  %v1638_v48 = vmul.f32 %v5191_v4, %v1611_v24  ;;  %v5926_v12 = vrot.slane %v1264_v59, 7  ;;  %v1267_v26 = vshll.u32 %v1019_v33, 16  ;;  %v4786_v55 = vpop.eup %4785  ;;  %v1446_v59 = vld [vmem:[#allocation2 + $0xb4] sm:$0xf] }
 0x161   : > { %v5930_v15 = vmul.f32 %v5817_v0, %v5198_v14  ;;  %v2312_v5 = vmul.f32 %v5239_v7, %v2287_v6  ;;  %v5934_v27 = vadd.f32 %v5417_v61, %v3463_v18  ;;  %4789 = vpow2.f32 %v769_v38 }
 0x162   : > { %v1741_v10 = vrot.slane %v1636_v50, 1  ;;  %v2210_v20 = vmul.f32 %v5815_v53, %v5236_v1  ;;  %v3530_v43 = vsub.f32 0.0, %v5912_v46  ;;  %4791 = vrcp.f32 %v786_v9 }
 0x163   : > { %v1742_v58 = vrot.slane %v1637_v21, 1  ;;  %v2412_v33 = vrot.slane %v2310_v60, 1  ;;  %v2413_v2 = vrot.slane %v2311_v57, 1  ;;  %v691_v32 = vsub.f32 0.0, %v5921_v16  ;;  %v4788_v63 = vpop.eup %4787 }
 0x164   : > { %v5941_v31 = vmul.f32 %v4786_v55, %v5746_v51  ;;  %v1912_v61 = vmul.f32 %v5198_v14, %v1611_v24  ;;  %v2211_v47 = vmul.f32 %v5817_v0, %v5236_v1  ;;  %v1269_v40 = vor.u32 %v1267_v26, %v5926_v12  ;;  %v5958_v26 = vld [vmem:[#allocation2 + $0x9c] sm:$0xe] }
 0x165   : > { %v1744_v53 = vrot.slane %v1638_v48, 1  ;;  %v2415_v11 = vrot.slane %v2312_v5, 1  ;;  %v2584_v37 = vmul.f32 %v5817_v0, %v5242_v8  ;;  %v3531_v29 = vsub.f32 0.0, %v5934_v27  ;;  %8266 = vst [vmem:[#allocation45_spill] sm:$0xff] %v5958_v26 }
 0x166   : > { %8265 = vst [vmem:[#allocation44_spill] sm:$0xff] %v5941_v31  ;;  %v1536_v19 = vmul.f32 %v5817_v0, %v5201_v13  ;;  %v2016_v51 = vrot.slane %v5930_v15, 2  ;;  %v2242_v18 = vadd.f32 %v2210_v20, %v2113_v35  ;;  %v3566_v24 = vmul.f32 1.442695, %v3530_v43 }
 0x167   : > { %v4790_v38 = vpop.eup %4789  ;;  %v1743_v50 = vsel %vm1720_vm10, %v1741_v10, %v1742_v58  ;;  %v2414_v9 = vsel %vm1720_vm10, %v2412_v33, %v2413_v2  ;;  %v2585_v21 = vmul.f32 %v5242_v8, %v2287_v6  ;;  %v735_v60 = vmul.f32 1.442695, %v691_v32 }
 0x168   : > { %v4792_v57 = vpop.eup %4791  ;;  %v3719_v48 = vadd.f32 %v5672_v30, %v5941_v31  ;;  %v2018_v55 = vrot.slane %v1912_v61, 2  ;;  %v2243_v0 = vadd.f32 %v2211_v47, %v5779_v62  ;;  %v1447_v35 = vsel %vm5146_vm7, %v1269_v40, %v1446_v59  ;;  %v1489_v61 = vld [vmem:[#allocation2 + $0xa0] sm:$0xf] }
 0x169   : > { %v1745_v15 = vsel %vm1720_vm10, %v1742_v58, %v1744_v53  ;;  %v2416_v5 = vsel %vm1720_vm10, %v2413_v2, %v2415_v11  ;;  %v2686_v10 = vrot.slane %v2584_v37, 2  ;;  %v3568_v20 = vmul.f32 1.442695, %v3531_v29  ;;  %1448 = vst [vmem:[#allocation2 + $0xb4] sm:$0xf] %v1447_v35 }
 0x16a   : > { %v1841_v6 = vadd.f32 %v1743_v50, %v1535_v42  ;;  %v2515_v43 = vadd.f32 %v2414_v9, %v2242_v18  ;;  %4793 = vpow2.f32 %v3566_v24  ;;  %v804_v33 = vadd.f32 1.0, %v4790_v38  ;;  %v902_v42 = vld [vmem:[#allocation2 + $0x54] sm:$0x1]  ;;  %v1472_v11 = vld [vmem:[#allocation2 + $0x3c] sm:$0xf] }
 0x16b   : > { %v5966_v30 = vmul.f32 %v4788_v63, %v5753_v45  ;;  %v2688_v32 = vrot.slane %v2585_v21, 2  ;;  %v850_v62 = vmul.f32 %v4792_v57, %v5829_v41  ;;  %4795 = vpow2.f32 %v735_v60  ;;  %v2164_v63 = vld [vmem:[#allocation2 + $0xa0] sm:$0xf]  ;;  %v5987_v24 = vld [vmem:[#allocation2 + $0x3c] sm:$0xe] }
 0x16c   : > { %v1842_v58 = vadd.f32 %v1745_v15, %v1536_v19  ;;  %v2017_v2 = vsel %vm1994_vm11, %v2015_v54, %v2016_v51  ;;  %v2516_v40 = vadd.f32 %v2416_v5, %v2243_v0  ;;  %v2687_v45 = vsel %vm1994_vm11, %v2685_v52, %v2686_v10  ;;  %v2838_v41 = vld [vmem:[#allocation2 + $0xa0] sm:$0xf]  ;;  %v1870_v54 = vld [vmem:[#allocation2 + $0x3c] sm:$0xe]  ;;  %v6005_v5 = vld [vmem:[#allocation2 + $0x44] sm:$0x1] }
 0x16d   : > { %8267 = vst [vmem:[#allocation46_spill] sm:$0xff] %v5966_v30  ;;  %v5974_v53 = vadd.f32 %v3719_v48, %v5966_v30  ;;  %4797 = vpow2.f32 %v3568_v20  ;;  %v1002_v37 = vpack.c.bf16 %v850_v62, %v850_v62  ;;  %v5979_v29 = vadd.f32 %v2017_v2, %v1841_v6  ;;  %v5985_v19 = vld [vmem:[#allocation2 + $0x3c] sm:$0xf]  ;;  %v2822_v18 = vld [vmem:[#allocation2 + $0x40] sm:$0xf]  ;;  %v674_v62 = vpop.f32.mrf.mxu2 }
 0x16e   : > { %v5981_v59 = vadd.f32 %v2687_v45, %v2515_v43  ;;  %v5983_v17 = vunpack.c.l.bf16 %v1489_v61  ;;  %4799 = vrcp.f32 %v804_v33  ;;  %v2019_v52 = vsel %vm1994_vm11, %v2016_v51, %v2018_v55  ;;  %v5999_v48 = vld [vmem:[#allocation2 + $0x3c] sm:$0xe]  ;;  %v1387_v61 = vld [vmem:[#allocation2 + $0x50] sm:$0x1]  ;;  %v2148_v47 = vld [vmem:[#allocation2 + $0x40] sm:$0xf] }
 0x16f   : > { %v2689_v38 = vsel %vm1994_vm11, %v2686_v10, %v2688_v32  ;;  %v1119_v50 = vshrl.u32 %v1002_v37, 16  ;;  %v903_v9 = vsel %vm5102_vm4, 0, %v902_v42  ;;  %v5995_v60 = vunpack.c.l.bf16 %v2164_v63  ;;  %v631_v63 = vpop.f32.mrf.mxu0  ;;  %v2272_v30 = vld [vmem:[#allocation2 + $0x44] sm:$0x1] }
 0x170   : > { %8268 = vst [vmem:[#allocation47_spill] sm:$0xff] %v5983_v17  ;;  %v4794_v21 = vpop.eup %4793  ;;  %v5997_v57 = vunpack.c.l.bf16 %v2838_v41  ;;  %v6001_v0 = vadd.f32 %v2019_v52, %v1842_v58  ;;  %v6003_v35 = vadd.f32 %v2689_v38, %v2516_v40  ;;  %v1504_v51 = vunpack.c.l.bf16 %v1472_v11 }
 0x171   : > { %8269 = vst [vmem:[#allocation48_spill] sm:$0xff] %v5995_v60  ;;  %v4796_v15 = vpop.eup %4795  ;;  %v2854_v55 = vunpack.c.l.bf16 %v2822_v18  ;;  %v1121_v10 = vrot.slane %v1119_v50, 7  ;;  %v1122_v20 = vshll.u32 %v1002_v37, 16  ;;  %v1886_v6 = vunpack.c.l.bf16 %v1870_v54  ;;  %v929_v18 = vld [vmem:[#allocation2 + $0xc0] sm:$0x1] }
 0x172   : > { %8270 = vst [vmem:[#allocation49_spill] sm:$0xff] %v5997_v57  ;;  %v2179_v43 = vunpack.c.l.bf16 %v5985_v19  ;;  %v2561_v33 = vunpack.c.l.bf16 %v5987_v24  ;;  %v2853_v32 = vunpack.c.l.bf16 %v5989_v44  ;;  %v3236_v2 = vunpack.c.l.bf16 %v5999_v48  ;;  %v2546_v60 = vld [vmem:[#allocation2 + $0x48] sm:$0xe] }
 0x173   : > { %904 = vst [vmem:[#allocation2 + $0x54] sm:$0x1] %v903_v9  ;;  %v4798_v58 = vpop.eup %4797  ;;  %v1117_v40 = vrot.slane %v5890_v3, 4  ;;  %v1124_v42 = vor.u32 %v1122_v20, %v1121_v10  ;;  %v1126_v45 = vrot.slane %v1121_v10, 4  ;;  %v3626_v11 = vadd.f32 1.0, %v4794_v21 }
 0x174   : > { %v4800_v41 = vpop.eup %4799  ;;  %v2963_v37 = vunpack.c.l.bf16 %v6005_v5  ;;  %v787_v54 = vadd.f32 1.0, %v4796_v15  ;;  %v6014_v19 = vadd.f32 %v5591_v28, %v674_v62  ;;  %v2987_v24 = vmul.f32 %v5267_v36, %v2854_v55  ;;  %v958_v10 = vld [vmem:[#allocation2 + $0x5c] sm:$0x1] }
 0x175   : > { %v1125_v44 = vsel %vm5156_vm9, %v1117_v40, %v1124_v42  ;;  %v1388_v3 = vsel %vm5102_vm4, %v1126_v45, %v1387_v61  ;;  %v868_v52 = vmul.f32 %v4800_v41, %v5874_v23  ;;  %v6023_v38 = vmul.f32 %v5201_v13, %v1504_v51  ;;  %v8271_v41 = vld [vmem:[#allocation3_spill] sm:$0xff] }
 0x176   : > { %v6026_v50 = vmul.f32 %v5191_v4, %v1504_v51  ;;  %v2986_v9 = vmul.f32 %v5267_v36, %v2853_v32  ;;  %1386 = vst [vmem:[#allocation2 + $0x4c] sm:$0xf] %v1125_v44  ;;  %v930_v21 = vsel %vm5102_vm4, 0, %v929_v18  ;;  %v3627_v48 = vadd.f32 1.0, %v4798_v58 }
 0x177   : > { %v6032_v15 = vmul.f32 %v5198_v14, %v1886_v6  ;;  %v2212_v5 = vmul.f32 %v5236_v1, %v2179_v43  ;;  %1389 = vst [vmem:[#allocation2 + $0x50] sm:$0x1] %v1388_v3  ;;  %v1020_v23 = vpack.c.bf16 %v868_v52, %v868_v52  ;;  %v2988_v20 = vmul.f32 %v5267_v36, %v2963_v37  ;;  %v634_v22 = vpop.f32.mrf.mxu0 }
 0x178   : > { %4801 = vrcp.f32 %v787_v54  ;;  %v709_v51 = vsub.f32 0.0, %v6014_v19  ;;  %931 = vst [vmem:[#allocation2 + $0xc0] sm:$0x1] %v930_v21  ;;  %v959_v61 = vsel %vm5117_vm6, 0, %v958_v10  ;;  %v3089_v62 = vrot.slane %v2987_v24, 1 }
 0x179   : > { %v1272_v40 = vshrl.u32 %v1020_v23, 16  ;;  %v1275_v58 = vshll.u32 %v1020_v23, 16  ;;  %v6040_v6 = vadd.f32 %v5591_v28, %v631_v63  ;;  %960 = vst [vmem:[#allocation2 + $0x5c] sm:$0x1] %v959_v61  ;;  %v6043_v42 = vmul.f32 %v5239_v7, %v2179_v43  ;;  %v6053_v24 = vld [vmem:[%s8091_s3 + $0x8] ss:$0 sm:$0xff] }
 0x17a   : > { %v6046_v45 = vmul.f32 %v5242_v8, %v2561_v33  ;;  %v2886_v54 = vmul.f32 %v8271_v41, %v2853_v32  ;;  %v3088_v18 = vrot.slane %v2986_v9, 1  ;;  %v2887_v44 = vmul.f32 %v8271_v41, %v2854_v55  ;;  %v676_v32 = vpop.f32.mrf.mxu2 }
 0x17b   : > { %v3260_v63 = vmul.f32 %v6053_v24, %v2854_v55  ;;  %v1270_v3 = vrot.slane %v5926_v12, 4  ;;  %v6057_v52 = vrot.slane %v1272_v40, 7  ;;  %4803 = vrcp.f32 %v3626_v11  ;;  %v1473_v40 = vld [vmem:[#allocation2 + $0x40] sm:$0xf] }
 0x17c   : > { %v3091_v33 = vrot.slane %v2988_v20, 1  ;;  %v771_v21 = vmul.f32 1.442695, %v709_v51  ;;  %v3259_v9 = vmul.f32 %v6053_v24, %v3236_v2  ;;  %v3090_v23 = vsel %vm1720_vm10, %v3088_v18, %v3089_v62  ;;  %v1596_v51 = vld [vmem:[#allocation2 + $0x44] sm:$0x1] }
 0x17d   : > { %v1277_v10 = vor.u32 %v1275_v58, %v6057_v52  ;;  %v692_v61 = vsub.f32 0.0, %v6040_v6  ;;  %4805 = vrcp.f32 %v3627_v48  ;;  %v2918_v11 = vadd.f32 %v2886_v54, %v5981_v59 }
 0x17e   : > { %v4802_v55 = vpop.eup %4801  ;;  %v3261_v20 = vmul.f32 %v6053_v24, %v2963_v37  ;;  %v2919_v2 = vadd.f32 %v2887_v44, %v6003_v35  ;;  %v3362_v43 = vrot.slane %v3260_v63, 2  ;;  %v6071_v18 = vadd.f32 %v5591_v28, %v676_v32 }
 0x17f   : > { %v1278_v58 = vsel %vm5156_vm9, %v1270_v3, %v1277_v10  ;;  %v3092_v48 = vsel %vm1720_vm10, %v3089_v62, %v3091_v33  ;;  %v3191_v12 = vadd.f32 %v3090_v23, %v2918_v11  ;;  %4807 = vpow2.f32 %v771_v21 }
 0x180   : > { %1449 = vst [vmem:[#allocation2 + $0xb8] sm:$0xf] %v1278_v58  ;;  %v6075_v59 = vadd.f32 %v5591_v28, %v634_v22  ;;  %v3361_v37 = vrot.slane %v3259_v9, 2  ;;  %v6077_v54 = vunpack.c.l.bf16 %v1473_v40  ;;  %v851_v35 = vmul.f32 %v4802_v55, %v5921_v16 }
 0x181   : > { %v737_v44 = vmul.f32 1.442695, %v692_v61  ;;  %v4804_v63 = vpop.eup %4803  ;;  %v6081_v3 = vadd.f32 %v2212_v5, %v5979_v29  ;;  %v1612_v32 = vunpack.c.l.bf16 %v1596_v51  ;;  %v2180_v10 = vunpack.c.l.bf16 %v2148_v47 }
 0x182   : > { %v3364_v31 = vrot.slane %v3261_v20, 2  ;;  %v2288_v62 = vunpack.c.l.bf16 %v2272_v30  ;;  %v3192_v33 = vadd.f32 %v3092_v48, %v2919_v2  ;;  %v3363_v21 = vsel %vm1994_vm11, %v3361_v37, %v3362_v43  ;;  %v6111_v37 = vld [vmem:[%s8092_s4] ss:$0 sm:$0xff] }
 0x183   : > { %v710_v28 = vsub.f32 0.0, %v6071_v18  ;;  %v4806_v22 = vpop.eup %4805  ;;  %v3464_v16 = vadd.f32 %v3363_v21, %v3191_v12  ;;  %v693_v61 = vsub.f32 0.0, %v6075_v59  ;;  %v6089_v29 = vmul.f32 %v4804_v63, %v5912_v46 }
 0x184   : > { %v1640_v47 = vmul.f32 %v5191_v4, %v6077_v54  ;;  %v1003_v30 = vpack.c.bf16 %v851_v35, %v851_v35  ;;  %4809 = vpow2.f32 %v737_v44  ;;  %v1641_v55 = vmul.f32 %v5191_v4, %v1612_v32 }
 0x185   : > { %8272 = vst [vmem:[#allocation50_spill] sm:$0xff] %v6089_v29  ;;  %v4808_v5 = vpop.eup %4807  ;;  %v6096_v11 = vmul.f32 %v5198_v14, %v6077_v54  ;;  %v6099_v40 = vmul.f32 %v5198_v14, %v1612_v32  ;;  %v3365_v12 = vsel %vm1994_vm11, %v3362_v43, %v3364_v31  ;;  %v2314_v46 = vmul.f32 %v5239_v7, %v2180_v10 }
 0x186   : > { %v2315_v20 = vmul.f32 %v5239_v7, %v2288_v62  ;;  %v3465_v51 = vadd.f32 %v3365_v12, %v3192_v33  ;;  %v773_v2 = vmul.f32 1.442695, %v710_v28  ;;  %v6105_v58 = vmul.f32 %v5242_v8, %v2180_v10  ;;  %v1450_v12 = vld [vmem:[#allocation2 + $0xbc] sm:$0x1]  ;;  %v636_v28 = vpop.f32.mrf.mxu0 }
 0x187   : > { %v2588_v48 = vmul.f32 %v5242_v8, %v2288_v62  ;;  %v6114_v35 = vadd.f32 %v6111_v37, %v3464_v16  ;;  %v739_v31 = vmul.f32 1.442695, %v693_v61  ;;  %v2213_v43 = vmul.f32 %v5236_v1, %v2180_v10 }
 0x188   : > { %v1279_v44 = vrot.slane %v6057_v52, 4  ;;  %v1128_v63 = vshrl.u32 %v1003_v30, 16  ;;  %v805_v32 = vadd.f32 1.0, %v4808_v5  ;;  %v1747_v33 = vrot.slane %v1640_v47, 1 }
 0x189   : > { %v1749_v21 = vrot.slane %v1641_v55, 1  ;;  %v2418_v9 = vrot.slane %v2314_v46, 1  ;;  %v2420_v25 = vrot.slane %v2315_v20, 1  ;;  %v6121_v16 = vadd.f32 %v6111_v37, %v3465_v51 }
 0x18a   : > { %v4810_v23 = vpop.eup %4809  ;;  %4811 = vpow2.f32 %v773_v2  ;;  %v2693_v61 = vrot.slane %v2588_v48, 2  ;;  %v3532_v52 = vsub.f32 0.0, %v6114_v35  ;;  %v1451_v47 = vsel %vm5102_vm4, %v1279_v44, %v1450_v12  ;;  %v4648_v2 = vld [vmem:[#allocation2 + $0x48] sm:$0xff]   ;;  %v1390_v48 = vld [vmem:[#allocation2 + $0x54] sm:$0xf] }
 0x18b   : > { %4813 = vpow2.f32 %v739_v31  ;;  %v6127_v5 = vrot.slane %v1128_v63, 7  ;;  %v1131_v55 = vshll.u32 %v1003_v30, 16  ;;  %v6130_v46 = vmul.f32 %v4806_v22, %v5934_v27  ;;  %1452 = vst [vmem:[#allocation2 + $0xbc] sm:$0x1] %v1451_v47 }
 0x18c   : > { %4815 = vrcp.f32 %v805_v32  ;;  %v6134_v20 = vadd.f32 %v5974_v53, %v6089_v29  ;;  %v2245_v51 = vadd.f32 %v2213_v43, %v6001_v0  ;;  %v788_v31 = vadd.f32 1.0, %v4810_v23  ;;  %v6148_v0 = vld [vmem:[#allocation2 + $0x50] sm:$0x1]  ;;  %v985_v23 = vld [vmem:[#allocation2 + $0xc8] sm:$0x1] }
 0x18d   : > { %8273 = vst [vmem:[#allocation51_spill] sm:$0xff] %v6130_v46  ;;  %v1750_v44 = vsel %vm1720_vm10, %v1747_v33, %v1749_v21  ;;  %v2421_v63 = vsel %vm1720_vm10, %v2418_v9, %v2420_v25  ;;  %v3533_v30 = vsub.f32 0.0, %v6121_v16  ;;  %v1133_v32 = vor.u32 %v1131_v55, %v6127_v5  ;;  %v905_v43 = vld [vmem:[#allocation2 + $0x60] sm:$0x1] }
 0x18e   : > { %v1538_v27 = vmul.f32 %v5201_v13, %v6077_v54  ;;  %v8274_v53 = vrot.slane %v6026_v50, 1  ;;  %4817 = vrcp.f32 %v788_v31  ;;  %v6153_v25 = vld [vmem:[%s8090_s2] ss:$0 sm:$0xff]  ;;  %v8275_v54 = vrot.slane %v6043_v42, 1 }
 0x18f   : > { %v6156_v21 = vadd.f32 %v6153_v25, %v636_v28  ;;  %v6161_v47 = vunpack.c.l.bf16 %v4648_v2  ;;  %v6163_v55 = vunpack.c.h.bf16 %v4648_v2  ;;  %v1391_v31 = vsel %vm5146_vm7, %v1133_v32, %v1390_v48 }
 0x190   : > { %v6146_v22 = vsel %vm1720_vm10, %v8274_v53, %v1747_v33  ;;  %v4812_v12 = vpop.eup %4811  ;;  %v2419_v50 = vsel %vm1720_vm10, %v8275_v54, %v2418_v9  ;;  %v1871_v33 = vld [vmem:[#allocation2 + $0x48] sm:$0xe]  ;;  %v1844_v62 = vadd.f32 %v1750_v44, %v1538_v27  ;;  %v2518_v10 = vadd.f32 %v2421_v63, %v2245_v51  ;;  %1392 = vst [vmem:[#allocation2 + $0x54] sm:$0xf] %v1391_v31 }
 0x191   : > { %v4814_v53 = vpop.eup %4813  ;;  %v8276_v29 = vrot.slane %v6105_v58, 2  ;;  %v3570_v57 = vmul.f32 1.442695, %v3532_v52  ;;  %v3572_v9 = vmul.f32 1.442695, %v3533_v30  ;;  %v2964_v26 = vunpack.c.l.bf16 %v6148_v0 }
 0x192   : > { %v4816_v42 = vpop.eup %4815  ;;  %v3221_v54 = vld [vmem:[#allocation2 + $0x48] sm:$0xe]  ;;  %v986_v2 = vsel %vm5117_vm6, 0, %v985_v23  ;;  %v906_v48 = vsel %vm5102_vm4, 0, %v905_v43  ;;  %v1887_v44 = vunpack.c.l.bf16 %v1871_v33  ;;  %v806_v63 = vadd.f32 1.0, %v4812_v12 }
 0x193   : > { %v2694_v28 = vsel %vm1994_vm11, %v8276_v29, %v2693_v61  ;;  %v869_v51 = vmul.f32 %v4816_v42, %v6014_v19  ;;  %987 = vst [vmem:[#allocation2 + $0xc8] sm:$0x1] %v986_v2  ;;  %v694_v29 = vsub.f32 0.0, %v6156_v21  ;;  %v961_v61 = vld [vmem:[#allocation2 + $0x68] sm:$0x1]  ;;  %v2989_v52 = vmul.f32 %v6161_v47, %v5267_v36 }
 0x194   : > { %v2990_v30 = vmul.f32 %v6163_v55, %v5267_v36  ;;  %v789_v32 = vadd.f32 1.0, %v4814_v53  ;;  %907 = vst [vmem:[#allocation2 + $0x60] sm:$0x1] %v906_v48  ;;  %v962_v27 = vsel %vm5117_vm6, 0, %v961_v61  ;;  %v4818_v0 = vpop.eup %4817  ;;  %4819 = vpow2.f32 %v3570_v57 }
 0x195   : > { %v2517_v19 = vadd.f32 %v2419_v50, %v6081_v3  ;;  %v1021_v23 = vpack.c.bf16 %v869_v51, %v869_v51  ;;  %v741_v43 = vmul.f32 1.442695, %v694_v29  ;;  %963 = vst [vmem:[#allocation2 + $0x68] sm:$0x1] %v962_v27  ;;  %4821 = vpow2.f32 %v3572_v9 }
 0x196   : > { %v2562_v12 = vunpack.c.l.bf16 %v2546_v60  ;;  %v3237_v33 = vunpack.c.l.bf16 %v3221_v54  ;;  %v2991_v31 = vmul.f32 %v5267_v36, %v2964_v26  ;;  %v8277_v42 = vrot.slane %v6105_v58, 2 }
 0x197   : > { %v8278_v53 = vrot.slane %v6046_v45, 2  ;;  %v2888_v48 = vmul.f32 %v6161_v47, %v8271_v41  ;;  %v1281_v57 = vshrl.u32 %v1021_v23, 16  ;;  %4823 = vrcp.f32 %v806_v63 }
 0x198   : > { %v3093_v3 = vrot.slane %v2989_v52, 1  ;;  %v3094_v50 = vrot.slane %v2990_v30, 1  ;;  %v852_v51 = vmul.f32 %v4818_v0, %v6040_v6  ;;  %4825 = vrcp.f32 %v789_v32 }
 0x199   : > { %v2692_v2 = vsel %vm1994_vm11, %v8278_v53, %v8277_v42  ;;  %v2889_v9 = vmul.f32 %v6163_v55, %v8271_v41  ;;  %v3263_v58 = vmul.f32 %v6053_v24, %v6163_v55  ;;  %4827 = vpow2.f32 %v741_v43 }
 0x19a   : > { %v2790_v60 = vadd.f32 %v2692_v2, %v2517_v19  ;;  %v6198_v45 = vmul.f32 %v5198_v14, %v1887_v44  ;;  %v3262_v54 = vmul.f32 %v6053_v24, %v3237_v33  ;;  %v2791_v29 = vadd.f32 %v2694_v28, %v2518_v10  ;;  %v4820_v61 = vpop.eup %4819 }
 0x19b   : > { %v3096_v63 = vrot.slane %v2991_v31, 1  ;;  %v3264_v6 = vmul.f32 %v6053_v24, %v2964_v26  ;;  %v6202_v30 = vrot.slane %v1281_v57, 7  ;;  %v1284_v32 = vshll.u32 %v1021_v23, 16  ;;  %v4822_v27 = vpop.eup %4821 }
 0x19c   : > { %v2920_v52 = vadd.f32 %v2888_v48, %v2790_v60  ;;  %v6206_v0 = vadd.f32 %v6134_v20, %v6130_v46  ;;  %v8279_v19 = vrot.slane %v6099_v40, 2  ;;  %v8280_v44 = vrot.slane %v6096_v11, 2  ;;  %v1597_v11 = vld [vmem:[#allocation2 + $0x50] sm:$0x1] }
 0x19d   : > { %v3095_v10 = vsel %vm1720_vm10, %v3093_v3, %v3094_v50  ;;  %v1004_v28 = vpack.c.bf16 %v852_v51, %v852_v51  ;;  %v4824_v33 = vpop.eup %4823  ;;  %v6217_v26 = vmul.f32 %v5242_v8, %v2562_v12  ;;  %v2921_v23 = vadd.f32 %v2889_v9, %v2791_v29  ;;  %v1453_v12 = vld [vmem:[#allocation2 + $0xc0] sm:$0xf] }
 0x19e   : > { %v2024_v43 = vsel %vm1994_vm11, %v8280_v44, %v8279_v19  ;;  %v3367_v42 = vrot.slane %v3263_v58, 2  ;;  %v4826_v53 = vpop.eup %4825  ;;  %v2025_v20 = vrot.slane %v6198_v45, 2  ;;  %v6222_v40 = vadd.f32 %v6146_v22, %v6023_v38 }
 0x19f   : > { %v6214_v31 = vadd.f32 %v2024_v43, %v1844_v62  ;;  %v8281_v2 = vmov %v8280_v44  ;;  %v8282_v48 = vrot.slane %v6032_v15, 2  ;;  %v3097_v62 = vsel %vm1720_vm10, %v3094_v50, %v3096_v63  ;;  %v4828_v3 = vpop.eup %4827 }
 0x1a0   : > { %v3366_v51 = vrot.slane %v3262_v54, 2  ;;  %v3193_v60 = vadd.f32 %v3095_v10, %v2920_v52  ;;  %v3369_v9 = vrot.slane %v3264_v6, 2  ;;  %v1286_v58 = vor.u32 %v1284_v32, %v6202_v30 }
 0x1a1   : > { %v6229_v57 = vsel %vm1994_vm11, %v8282_v48, %v8281_v2  ;;  %v3628_v29 = vadd.f32 1.0, %v4820_v61  ;;  %v3629_v19 = vadd.f32 1.0, %v4822_v27  ;;  %v1136_v38 = vshrl.u32 %v1004_v28, 16 }
 0x1a2   : > { %v870_v22 = vmul.f32 %v4824_v33, %v6071_v18  ;;  %v3194_v44 = vadd.f32 %v3097_v62, %v2921_v23  ;;  %v3368_v15 = vsel %vm1994_vm11, %v3366_v51, %v3367_v42  ;;  %v1454_v43 = vsel %vm5146_vm7, %v1286_v58, %v1453_v12  ;;  %v1394_v18 = vld [vmem:[#allocation2 + $0x5c] sm:$0x1]  ;;  %v6240_v12 = vld [vmem:[#allocation2 + $0x50] sm:$0x1] }
 0x1a3   : > { %v853_v50 = vmul.f32 %v4826_v53, %v6075_v59  ;;  %1455 = vst [vmem:[#allocation2 + $0xc0] sm:$0xf] %v1454_v43  ;;  %v1138_v54 = vrot.slane %v1136_v38, 7  ;;  %v1139_v63 = vshll.u32 %v1004_v28, 16  ;;  %v790_v6 = vadd.f32 1.0, %v4828_v3 }
 0x1a4   : > { %v1022_v52 = vpack.c.bf16 %v870_v22, %v870_v22  ;;  %v3370_v61 = vsel %vm1994_vm11, %v3367_v42, %v3369_v9  ;;  %v3466_v32 = vadd.f32 %v3368_v15, %v3193_v60  ;;  %v1134_v27 = vrot.slane %v6127_v5, 4  ;;  %v1457_v60 = vld [vmem:[#allocation2 + $0xc8] sm:$0x1] }
 0x1a5   : > { %v1005_v10 = vpack.c.bf16 %v853_v50, %v853_v50  ;;  %v1141_v33 = vor.u32 %v1139_v63, %v1138_v54  ;;  %v1143_v23 = vrot.slane %v1138_v54, 4  ;;  %v1613_v62 = vunpack.c.l.bf16 %v1597_v11 }
 0x1a6   : > { %v1289_v2 = vshrl.u32 %v1022_v52, 16  ;;  %v1292_v48 = vshll.u32 %v1022_v52, 16  ;;  %v3467_v59 = vadd.f32 %v3370_v61, %v3194_v44  ;;  %v1287_v53 = vrot.slane %v6202_v30, 4  ;;  %v1397_v44 = vld [vmem:[#allocation2 + $0x60] sm:$0xf] }
 0x1a7   : > { %v1145_v28 = vshrl.u32 %v1005_v10, 16  ;;  %v1142_v3 = vsel %vm5156_vm9, %v1134_v27, %v1141_v33  ;;  %v1395_v42 = vsel %vm5102_vm4, %v1143_v23, %v1394_v18  ;;  %4829 = vrcp.f32 %v790_v6  ;;  %v908_v18 = vld [vmem:[#allocation2 + $0x6c] sm:$0x1] }
 0x1a8   : > { %v1291_v5 = vrot.slane %v1289_v2, 7  ;;  %4831 = vrcp.f32 %v3628_v29  ;;  %v6248_v51 = vadd.f32 %v6111_v37, %v3466_v32  ;;  %1393 = vst [vmem:[#allocation2 + $0x58] sm:$0xf] %v1142_v3  ;;  %v1148_v58 = vshll.u32 %v1005_v10, 16 }
 0x1a9   : > { %v6250_v9 = vrot.slane %v1145_v28, 7  ;;  %v1642_v30 = vmul.f32 %v6161_v47, %v5191_v4  ;;  %v2289_v38 = vunpack.c.l.bf16 %v6240_v12  ;;  %1396 = vst [vmem:[#allocation2 + $0x5c] sm:$0x1] %v1395_v42  ;;  %v1643_v29 = vmul.f32 %v6163_v55, %v5191_v4 }
 0x1aa   : > { %v1294_v22 = vor.u32 %v1292_v48, %v1291_v5  ;;  %v1296_v11 = vrot.slane %v1291_v5, 4  ;;  %v2316_v15 = vmul.f32 %v6161_v47, %v5239_v7  ;;  %v2317_v43 = vmul.f32 %v6163_v55, %v5239_v7 }
 0x1ab   : > { %v1150_v50 = vor.u32 %v1148_v58, %v6250_v9  ;;  %v1644_v54 = vmul.f32 %v5191_v4, %v1613_v62  ;;  %v6264_v63 = vadd.f32 %v6111_v37, %v3467_v59  ;;  %4833 = vrcp.f32 %v3629_v19 }
 0x1ac   : > { %v1295_v52 = vsel %vm5156_vm9, %v1287_v53, %v1294_v22  ;;  %v1458_v6 = vsel %vm5102_vm4, %v1296_v11, %v1457_v60  ;;  %v6272_v61 = vmul.f32 %v6163_v55, %v5198_v14  ;;  %v3534_v32 = vsub.f32 0.0, %v6248_v51  ;;  %v639_v11 = vpop.f32.mrf.mxu0 }
 0x1ad   : > { %8283 = vst [vmem:[#allocation52_spill] sm:$0xff] %v6264_v63  ;;  %v1398_v27 = vsel %vm5146_vm7, %v1150_v50, %v1397_v44  ;;  %v4830_v10 = vpop.eup %4829  ;;  %v1751_v33 = vrot.slane %v1642_v30, 1  ;;  %v6278_v23 = vmul.f32 %v5198_v14, %v1613_v62  ;;  %v2214_v2 = vmul.f32 %v6161_v47, %v5236_v1 }
 0x1ae   : > { %1456 = vst [vmem:[#allocation2 + $0xc4] sm:$0xf] %v1295_v52  ;;  %v2318_v19 = vmul.f32 %v5239_v7, %v2289_v38  ;;  %v4832_v48 = vpop.eup %4831  ;;  %v1752_v12 = vrot.slane %v1643_v29, 1  ;;  %v2422_v59 = vrot.slane %v2316_v15, 1  ;;  %v2423_v53 = vrot.slane %v2317_v43, 1 }
 0x1af   : > { %1459 = vst [vmem:[#allocation2 + $0xc8] sm:$0x1] %v1458_v6  ;;  %v909_v28 = vsel %vm5102_vm4, 0, %v908_v18  ;;  %v2695_v3 = vrot.slane %v6217_v26, 2  ;;  %v1754_v42 = vrot.slane %v1644_v54, 1  ;;  %v2117_v62 = vadd.f32 %v6229_v57, %v6222_v40 }
 0x1b0   : > { %1399 = vst [vmem:[#allocation2 + $0x60] sm:$0xf] %v1398_v27  ;;  %v3535_v5 = vsub.f32 0.0, %v6264_v63  ;;  %v2215_v60 = vmul.f32 %v6163_v55, %v5236_v1  ;;  %v2590_v58 = vmul.f32 %v6163_v55, %v5242_v8  ;;  %v3574_v30 = vmul.f32 1.442695, %v3534_v32 }
 0x1b1   : > { %v854_v22 = vmul.f32 %v4830_v10, %v6156_v21  ;;  %v1539_v44 = vmul.f32 %v6161_v47, %v5201_v13  ;;  %v1540_v26 = vmul.f32 %v6163_v55, %v5201_v13  ;;  %v2246_v29 = vadd.f32 %v2214_v2, %v2117_v62  ;;  %910 = vst [vmem:[#allocation2 + $0x6c] sm:$0x1] %v909_v28  ;;  %v4834_v57 = vpop.eup %4833  ;;  %v6304_v6 = vld [vmem:[#allocation2 + $0x54] sm:$0xf]  ;;  %v2826_v62 = vld [vmem:[#allocation2 + $0x58] sm:$0xf] }
 0x1b2   : > { %v2425_v40 = vrot.slane %v2318_v19, 1  ;;  %v1753_v15 = vsel %vm1720_vm10, %v1751_v33, %v1752_v12  ;;  %v2026_v43 = vrot.slane %v6272_v61, 2  ;;  %v2028_v50 = vrot.slane %v6278_v23, 2  ;;  %v1872_v18 = vld [vmem:[#allocation2 + $0x54] sm:$0xe] }
 0x1b3   : > { %v2424_v54 = vsel %vm1720_vm10, %v2422_v59, %v2423_v53  ;;  %v1755_v21 = vsel %vm1720_vm10, %v1752_v12, %v1754_v42  ;;  %v2591_v52 = vmul.f32 %v5242_v8, %v2289_v38  ;;  %v3576_v47 = vmul.f32 1.442695, %v3535_v5  ;;  %v2151_v2 = vld [vmem:[#allocation2 + $0x54] sm:$0xf] }
 0x1b4   : > { %v6307_v55 = vadd.f32 %v6153_v25, %v639_v11  ;;  %v2247_v32 = vadd.f32 %v2215_v60, %v6214_v31  ;;  %v2696_v27 = vrot.slane %v2590_v58, 2  ;;  %4835 = vpow2.f32 %v3574_v30  ;;  %v2547_v28 = vld [vmem:[#allocation2 + $0x54] sm:$0xe] }
 0x1b5   : > { %v6310_v61 = vpack.c.bf16 %v854_v22, %v854_v22  ;;  %v6313_v10 = vmul.f32 %v4832_v48, %v6114_v35  ;;  %v1845_v33 = vadd.f32 %v1753_v15, %v1539_v44  ;;  %v2426_v23 = vsel %vm1720_vm10, %v2423_v53, %v2425_v40  ;;  %v2825_v48 = vld [vmem:[#allocation2 + $0x54] sm:$0xf] }
 0x1b6   : > { %v2519_v38 = vadd.f32 %v2424_v54, %v2246_v29  ;;  %v6317_v19 = vmul.f32 %v4834_v57, %v6121_v16  ;;  %v1846_v12 = vadd.f32 %v1755_v21, %v1540_v26  ;;  %v2027_v31 = vsel %vm1994_vm11, %v2025_v20, %v2026_v43  ;;  %v3222_v22 = vld [vmem:[#allocation2 + $0x54] sm:$0xe] }
 0x1b7   : > { %8284 = vst [vmem:[#allocation53_spill] sm:$0xff] %v6313_v10  ;;  %v1508_v59 = vunpack.c.l.bf16 %v6304_v6  ;;  %v2698_v42 = vrot.slane %v2591_v52, 2  ;;  %4837 = vpow2.f32 %v3576_v47  ;;  %v1888_v35 = vunpack.c.l.bf16 %v1872_v18  ;;  %v641_v47 = vpop.f32.mrf.mxu0 }
 0x1b8   : > { %8285 = vst [vmem:[#allocation54_spill] sm:$0xff] %v6317_v19  ;;  %v695_v53 = vsub.f32 0.0, %v6307_v55  ;;  %v2520_v5 = vadd.f32 %v2426_v23, %v2247_v32  ;;  %v2697_v60 = vsel %vm1994_vm11, %v2695_v3, %v2696_v27  ;;  %v2183_v16 = vunpack.c.l.bf16 %v2151_v2 }
 0x1b9   : > { %v1153_v58 = vshrl.u32 %v6310_v61, 16  ;;  %v6328_v45 = vadd.f32 %v6206_v0, %v6313_v10  ;;  %v2119_v20 = vadd.f32 %v2027_v31, %v1845_v33  ;;  %v2792_v30 = vadd.f32 %v2697_v60, %v2519_v38  ;;  %v8287_v33 = vld [vmem:[#allocation14_spill] sm:$0xff]  ;;  %v8289_v38 = vld [vmem:[#allocation5_spill] sm:$0xff]  ;;  %v8301_v60 = vld [vmem:[#allocation36_spill] sm:$0xff] }
 0x1ba   : > { %v2029_v11 = vsel %vm1994_vm11, %v2026_v43, %v2028_v50  ;;  %v4836_v44 = vpop.eup %4835  ;;  %v6332_v26 = vmul.f32 %v5191_v4, %v1508_v59  ;;  %v2563_v29 = vunpack.c.l.bf16 %v2547_v28  ;;  %v2857_v40 = vunpack.c.l.bf16 %v2825_v48  ;;  %v8305_v10 = vld [vmem:[#allocation18_spill] sm:$0xff] }
 0x1bb   : > { %8286 = vst [vmem:[#allocation55_spill] sm:$0xff] %v6328_v45  ;;  %v6334_v57 = vunpack.c.l.bf16 %v2826_v62  ;;  %v6337_v3 = vmul.f32 %v5198_v14, %v1888_v35  ;;  %v6339_v15 = vadd.f32 %v2029_v11, %v1846_v12  ;;  %v2699_v0 = vsel %vm1994_vm11, %v2696_v27, %v2698_v42  ;;  %v8291_v27 = vld [vmem:[#allocation21_spill] sm:$0xff] }
 0x1bc   : > { %v743_v54 = vmul.f32 1.442695, %v695_v53  ;;  %v6343_v21 = vmul.f32 %v5239_v7, %v2183_v16  ;;  %v3238_v43 = vunpack.c.l.bf16 %v3222_v22  ;;  %v6345_v50 = vadd.f32 %v2699_v0, %v2520_v5  ;;  %v1401_v5 = vld [vmem:[#allocation2 + $0x68] sm:$0x1]  ;;  %v1477_v0 = vld [vmem:[#allocation2 + $0x58] sm:$0xf] }
 0x1bd   : > { %v1155_v52 = vrot.slane %v1153_v58, 7  ;;  %v4838_v6 = vpop.eup %4837  ;;  %v3630_v32 = vadd.f32 1.0, %v4836_v44  ;;  %v2216_v18 = vmul.f32 %v5236_v1, %v2183_v16  ;;  %v8288_v23 = vrot.slane %v8287_v33, 1  ;;  %v6374_v33 = vld [vmem:[#allocation2 + $0x5c] sm:$0x1] }
 0x1be   : > { %v8290_v2 = vrot.slane %v8289_v38, 1  ;;  %v8292_v31 = vrot.slane %v8291_v27, 1  ;;  %v6360_v48 = vmul.f32 %v5242_v8, %v2563_v29  ;;  %v2992_v62 = vmul.f32 %v5267_v36, %v2857_v40 }
 0x1bf   : > { %v8293_v28 = vmov %v8288_v23  ;;  %v6365_v53 = vmul.f32 %v5267_v36, %v6334_v57  ;;  %v1156_v16 = vshll.u32 %v6310_v61, 16  ;;  %v1160_v58 = vrot.slane %v1155_v52, 4 }
 0x1c0   : > { %v1778_v12 = vsel %vm1720_vm10, %v8290_v2, %v8288_v23  ;;  %v1780_v42 = vsel %vm1720_vm10, %v8293_v28, %v8292_v31  ;;  %4839 = vpow2.f32 %v743_v54  ;;  %v3631_v22 = vadd.f32 1.0, %v4838_v6  ;;  %v6385_v2 = vld [vmem:[#allocation2 + $0x5c] sm:$0x1]  ;;  %v964_v28 = vld [vmem:[#allocation2 + $0x74] sm:$0x1] }
 0x1c1   : > { %v2890_v44 = vmul.f32 %v8271_v41, %v2857_v40  ;;  %v6372_v29 = vmul.f32 %v6053_v24, %v3238_v43  ;;  %4841 = vrcp.f32 %v3630_v32  ;;  %v1151_v23 = vrot.slane %v6250_v9, 4 }
 0x1c2   : > { %v1158_v38 = vor.u32 %v1156_v16, %v1155_v52  ;;  %v1402_v61 = vsel %vm5102_vm4, %v1160_v58, %v1401_v5  ;;  %v6380_v54 = vmul.f32 %v5201_v13, %v1508_v59  ;;  %v6382_v6 = vadd.f32 %v2216_v18, %v2119_v20  ;;  %v2152_v52 = vld [vmem:[#allocation2 + $0x58] sm:$0xf]  ;;  %v2274_v5 = vld [vmem:[#allocation2 + $0x5c] sm:$0x1]  ;;  %v8294_v16 = vld [vmem:[#allocation41_spill] sm:$0xff] }
 0x1c3   : > { %v8147_v43 = vrot.slane %v6365_v53, 1  ;;  %1403 = vst [vmem:[#allocation2 + $0x68] sm:$0x1] %v1402_v61  ;;  %v3098_v27 = vrot.slane %v2992_v62, 1  ;;  %v1509_v32 = vunpack.c.l.bf16 %v1477_v0  ;;  %v1614_v9 = vunpack.c.l.bf16 %v6374_v33  ;;  %v8295_v61 = vld [vmem:[#allocation35_spill] sm:$0xff] }
 0x1c4   : > { %v1159_v31 = vsel %vm5156_vm9, %v1151_v23, %v1158_v38  ;;  %v2922_v59 = vadd.f32 %v2890_v44, %v2792_v30  ;;  %v6393_v20 = vmul.f32 %v6053_v24, %v6334_v57  ;;  %v965_v18 = vsel %vm5117_vm6, 0, %v964_v28  ;;  %v644_v38 = vpop.f32.mrf.mxu0  ;;  %v8297_v28 = vld [vmem:[#allocation7_spill] sm:$0xff] }
 0x1c5   : > { %1400 = vst [vmem:[#allocation2 + $0x64] sm:$0xf] %v1159_v31  ;;  %v1784_v62 = vrot.slane %v8294_v16, 1  ;;  %4843 = vrcp.f32 %v3631_v22  ;;  %v3371_v0 = vrot.slane %v6372_v29, 2  ;;  %v2965_v33 = vunpack.c.l.bf16 %v6385_v2 }
 0x1c6   : > { %v4840_v58 = vpop.eup %4839  ;;  %v6401_v23 = vadd.f32 %v6153_v25, %v641_v47  ;;  %966 = vst [vmem:[#allocation2 + $0x74] sm:$0x1] %v965_v18  ;;  %v2184_v30 = vunpack.c.l.bf16 %v2152_v52  ;;  %v3100_v44 = vsel %vm1720_vm10, %v3098_v27, %v8147_v43  ;;  %v6408_v31 = vmul.f32 %v8295_v61, %v5201_v13  ;;  %v6415_v18 = vld [vmem:[#allocation2 + $0xa8] sm:$0xff]  }
 0x1c7   : > { %v6411_v22 = vadd.f32 %v1778_v12, %v8297_v28  ;;  %v4842_v29 = vpop.eup %4841  ;;  %v1646_v2 = vmul.f32 %v5191_v4, %v1509_v32  ;;  %v1647_v47 = vmul.f32 %v5191_v4, %v1614_v9  ;;  %v2290_v16 = vunpack.c.l.bf16 %v2274_v5  ;;  %v8299_v52 = vld [vmem:[#allocation37_spill] sm:$0xff] }
 0x1c8   : > { %8296 = vst [vmem:[#allocation14_spill] sm:$0xff] %v6408_v31  ;;  %v8300_v40 = vrot.slane %v8299_v52, 1  ;;  %v8302_v27 = vrot.slane %v8301_v60, 1  ;;  %v8153_v35 = vrot.slane %v6393_v20, 2  ;;  %v791_v43 = vadd.f32 1.0, %v4840_v58 }
 0x1c9   : > { %8298 = vst [vmem:[#allocation5_spill] sm:$0xff] %v6411_v22  ;;  %v6431_v46 = vadd.f32 %v1780_v42, %v8305_v10  ;;  %v2994_v5 = vmul.f32 %v5267_v36, %v2965_v33  ;;  %v3195_v63 = vadd.f32 %v3100_v44, %v2922_v59  ;;  %v696_v45 = vsub.f32 0.0, %v6401_v23 }
 0x1ca   : > { %v6422_v11 = vsel %vm1720_vm10, %v8302_v27, %v8300_v40  ;;  %v8303_v12 = vmov %v8300_v40  ;;  %v6436_v60 = vadd.f32 %v6153_v25, %v644_v38  ;;  %v6439_v40 = vmul.f32 %v4842_v29, %v6248_v51 }
 0x1cb   : > { %v6428_v28 = vsel %vm1720_vm10, %v8303_v12, %v1784_v62  ;;  %8306 = vst [vmem:[#allocation41_spill] sm:$0xff] %v6431_v46  ;;  %v6442_v58 = vmul.f32 %v5198_v14, %v1509_v32  ;;  %v2320_v62 = vmul.f32 %v5239_v7, %v2184_v30  ;;  %v6446_v52 = vunpack.c.l.bf16 %v6415_v18  ;;  %v6448_v10 = vpop.eup %4843  ;;  %v1873_v12 = vld [vmem:[#allocation2 + $0x60] sm:$0xe] }
 0x1cc   : > { %8304 = vst [vmem:[#allocation21_spill] sm:$0xff] %v6428_v28  ;;  %v1542_v42 = vmul.f32 %v5201_v13, %v1509_v32  ;;  %v1757_v59 = vrot.slane %v1646_v2, 1  ;;  %v1759_v44 = vrot.slane %v1647_v47, 1  ;;  %v2321_v38 = vmul.f32 %v5239_v7, %v2290_v16  ;;  %v3223_v46 = vld [vmem:[#allocation2 + $0x60] sm:$0xe] }
 0x1cd   : > { %8307 = vst [vmem:[#allocation7_spill] sm:$0xff] %v6439_v40  ;;  %v2217_v27 = vmul.f32 %v5236_v1, %v2184_v30  ;;  %v2891_v51 = vmul.f32 %v8271_v41, %v6334_v57  ;;  %v3373_v29 = vsel %vm1994_vm11, %v3371_v0, %v8153_v35  ;;  %v2548_v40 = vld [vmem:[#allocation2 + $0x60] sm:$0xe]  ;;  %4845 = vrcp.f32 %v791_v43 }
 0x1ce   : > { %8308 = vst [vmem:[#allocation37_spill] sm:$0xff] %v6446_v52  ;;  %v3101_v19 = vrot.slane %v2994_v5, 1  ;;  %v745_v32 = vmul.f32 1.442695, %v696_v45  ;;  %v697_v2 = vsub.f32 0.0, %v6436_v60  ;;  %v1921_v47 = vmul.f32 %v5198_v14, %v1614_v9 }
 0x1cf   : > { %8309 = vst [vmem:[#allocation36_spill] sm:$0xff] %v6448_v10  ;;  %v3468_v10 = vadd.f32 %v3373_v29, %v3195_v63  ;;  %v2031_v22 = vrot.slane %v6442_v58, 2  ;;  %v2428_v61 = vrot.slane %v2320_v62, 1  ;;  %v2593_v57 = vmul.f32 %v5242_v8, %v2184_v30 }
 0x1d0   : > { %v1760_v28 = vsel %vm1720_vm10, %v1757_v59, %v1759_v44  ;;  %v2430_v31 = vrot.slane %v2321_v38, 1  ;;  %v2594_v0 = vmul.f32 %v5242_v8, %v2290_v16  ;;  %v3267_v43 = vmul.f32 %v6053_v24, %v2965_v33 }
 0x1d1   : > { %v2923_v63 = vadd.f32 %v2891_v51, %v6345_v50  ;;  %v1889_v5 = vunpack.c.l.bf16 %v1873_v12  ;;  %v2564_v45 = vunpack.c.l.bf16 %v2548_v40  ;;  %v3239_v29 = vunpack.c.l.bf16 %v3223_v46 }
 0x1d2   : > { %v8310_v35 = vrot.slane %v6365_v53, 1  ;;  %v6470_v58 = vadd.f32 %v6111_v37, %v3468_v10  ;;  %4847 = vpow2.f32 %v745_v32  ;;  %v747_v30 = vmul.f32 1.442695, %v697_v2 }
 0x1d3   : > { %v4846_v62 = vpop.eup %4845  ;;  %v8312_v44 = vrot.slane %v6332_v26, 1  ;;  %v2033_v33 = vrot.slane %v1921_v47, 2  ;;  %v2249_v50 = vadd.f32 %v2217_v27, %v6339_v15  ;;  %v2701_v38 = vrot.slane %v2593_v57, 2 }
 0x1d4   : > { %v3102_v9 = vsel %vm1720_vm10, %v8310_v35, %v3101_v19  ;;  %8311 = vst [vmem:[#allocation18_spill] sm:$0xff] %v6470_v58  ;;  %v1848_v40 = vadd.f32 %v1760_v28, %v1542_v42  ;;  %v8313_v46 = vrot.slane %v6343_v21, 1  ;;  %v2431_v19 = vsel %vm1720_vm10, %v2428_v61, %v2430_v31  ;;  %v646_v35 = vpop.f32.mrf.mxu0 }
 0x1d5   : > { %v1758_v16 = vsel %vm1720_vm10, %v8312_v44, %v1757_v59  ;;  %v3374_v37 = vrot.slane %v3267_v43, 2  ;;  %v2703_v10 = vrot.slane %v2594_v0, 2  ;;  %v3196_v51 = vadd.f32 %v3102_v9, %v2923_v63 }
 0x1d6   : > { %v2429_v53 = vsel %vm1720_vm10, %v8313_v46, %v2428_v61  ;;  %v6481_v12 = vmul.f32 %v5198_v14, %v1889_v5  ;;  %v6484_v26 = vmul.f32 %v5242_v8, %v2564_v45  ;;  %v3536_v15 = vsub.f32 0.0, %v6470_v58  ;;  %v911_v46 = vld [vmem:[#allocation2 + $0x78] sm:$0x1] }
 0x1d7   : > { %v6488_v28 = vmul.f32 %v6053_v24, %v3239_v29  ;;  %v855_v21 = vmul.f32 %v4846_v62, %v6307_v55  ;;  %4849 = vpow2.f32 %v747_v30  ;;  %v2034_v61 = vsel %vm1994_vm11, %v2031_v22, %v2033_v33  ;;  %v6514_v29 = vld [vmem:[#allocation2 + $0xa4] sm:$0x1] }
 0x1d8   : > { %v1847_v31 = vadd.f32 %v1758_v16, %v6380_v54  ;;  %v6494_v42 = vadd.f32 %v6153_v25, %v646_v35  ;;  %v6497_v59 = vunpack.c.h.bf16 %v6415_v18  ;;  %v4848_v27 = vpop.eup %4847  ;;  %v6499_v32 = vadd.f32 %v2034_v61, %v1848_v40  ;;  %v1488_v18 = vld [vmem:[#allocation2 + $0x9c] sm:$0xf]  ;;  %8318 = vst [vmem:[#allocation58_spill] sm:$0xff] %v6514_v29  ;;  %v6522_v16 = vld [vmem:[#allocation2 + $0xb0] sm:$0x1] }
 0x1d9   : > { %v2522_v2 = vadd.f32 %v2431_v19, %v2249_v50  ;;  %v8315_v24 = vrot.slane %v6393_v20, 2  ;;  %v2521_v55 = vadd.f32 %v2429_v53, %v6382_v6  ;;  %v2704_v57 = vsel %vm1994_vm11, %v2701_v38, %v2703_v10  ;;  %8320 = vst [vmem:[#allocation59_spill] sm:$0xff] %v6522_v16  ;;  %v6524_v50 = vld [vmem:[#allocation2 + $0x68] sm:$0x1]  ;;  %v4649_v19 = vld [vmem:[#allocation2 + $0x60] sm:$0xff]  }
 0x1da   : > { %8314 = vst [vmem:[#allocation56_spill] sm:$0xff] %v6497_v59  ;;  %v3578_v43 = vmul.f32 1.442695, %v3536_v15  ;;  %v8317_v5 = vrot.slane %v6337_v3, 2  ;;  %v1007_v45 = vpack.c.bf16 %v855_v21, %v855_v21  ;;  %v8319_v9 = vrot.slane %v6360_v48, 2 }
 0x1db   : > { %v3375_v47 = vsel %vm1994_vm11, %v8315_v24, %v3374_v37  ;;  %v792_v62 = vadd.f32 1.0, %v4848_v27  ;;  %v698_v44 = vsub.f32 0.0, %v6494_v42  ;;  %v1520_v53 = vunpack.c.l.bf16 %v1488_v18  ;;  %v932_v48 = vld [vmem:[#allocation2 + $0xcc] sm:$0x1]  ;;  %v988_v21 = vld [vmem:[#allocation2 + $0xd4] sm:$0x1] }
 0x1dc   : > { %v6506_v0 = vadd.f32 %v3375_v47, %v3196_v51  ;;  %v2032_v20 = vsel %vm1994_vm11, %v8317_v5, %v2031_v22  ;;  %v2702_v30 = vsel %vm1994_vm11, %v8319_v9, %v2701_v38  ;;  %v6528_v22 = vadd.f32 %v2704_v57, %v2522_v2  ;;  %v1404_v15 = vld [vmem:[#allocation2 + $0x6c] sm:$0xf]  ;;  %v2275_v27 = vld [vmem:[#allocation2 + $0x68] sm:$0x1] }
 0x1dd   : > { %v6516_v6 = vadd.f32 %v2032_v20, %v1847_v31  ;;  %v4850_v33 = vpop.eup %4849  ;;  %v6526_v3 = vadd.f32 %v2702_v30, %v2521_v55  ;;  %v1162_v40 = vshrl.u32 %v1007_v45, 16  ;;  %4851 = vrcp.f32 %v792_v62  ;;  %v2950_v30 = vld [vmem:[#allocation2 + $0x68] sm:$0x1] }
 0x1de   : > { %8316 = vst [vmem:[#allocation57_spill] sm:$0xff] %v6506_v0  ;;  %v6532_v38 = vmul.f32 %v5201_v13, %v5983_v17  ;;  %v6536_v37 = vmul.f32 %v6446_v52, %v5201_v13  ;;  %v8155_v35 = vunpack.c.l.bf16 %v6514_v29  ;;  %4853 = vpow2.f32 %v3578_v43  ;;  %v967_v43 = vld [vmem:[#allocation2 + $0x80] sm:$0x1] }
 0x1df   : > { %v6539_v10 = vrot.slane %v1162_v40, 7  ;;  %v1165_v51 = vshll.u32 %v1007_v45, 16  ;;  %v8154_v61 = vunpack.c.l.bf16 %v6522_v16  ;;  %v1615_v31 = vunpack.c.l.bf16 %v6524_v50 }
 0x1e0   : > { %v793_v2 = vadd.f32 1.0, %v4850_v33  ;;  %v912_v24 = vsel %vm5102_vm4, 0, %v911_v46  ;;  %v749_v47 = vmul.f32 1.442695, %v698_v44  ;;  %v6545_v55 = vunpack.c.l.bf16 %v4649_v19 }
 0x1e1   : > { %v6547_v57 = vunpack.c.h.bf16 %v4649_v19  ;;  %v1167_v18 = vor.u32 %v1165_v51, %v6539_v10  ;;  %913 = vst [vmem:[#allocation2 + $0x78] sm:$0x1] %v912_v24  ;;  %v933_v5 = vsel %vm5102_vm4, 0, %v932_v48  ;;  %v968_v20 = vsel %vm5117_vm6, 0, %v967_v43 }
 0x1e2   : > { %4855 = vrcp.f32 %v793_v2  ;;  %934 = vst [vmem:[#allocation2 + $0xcc] sm:$0x1] %v933_v5  ;;  %v989_v45 = vsel %vm5117_vm6, 0, %v988_v21  ;;  %v6557_v9 = vmul.f32 %v5191_v4, %v1520_v53  ;;  %v6563_v44 = vmul.f32 %v5191_v4, %v5983_v17 }
 0x1e3   : > { %v1405_v62 = vsel %vm5146_vm7, %v1167_v18, %v1404_v15  ;;  %4857 = vpow2.f32 %v749_v47  ;;  %969 = vst [vmem:[#allocation2 + $0x80] sm:$0x1] %v968_v20  ;;  %v6568_v33 = vmul.f32 %v5191_v4, %v8155_v35  ;;  %v4852_v49 = vpop.eup %4851  ;;  %v2291_v50 = vunpack.c.l.bf16 %v2275_v27  ;;  %v8322_v47 = vld [vmem:[#allocation40_spill] sm:$0xff] }
 0x1e4   : > { %1406 = vst [vmem:[#allocation2 + $0x6c] sm:$0xf] %v1405_v62  ;;  %v6571_v40 = vmul.f32 %v5201_v13, %v1520_v53  ;;  %v6575_v46 = vmul.f32 %v6497_v59, %v5201_v13  ;;  %v6579_v19 = vmul.f32 %v6446_v52, %v5191_v4  ;;  %v4854_v48 = vpop.eup %4853  ;;  %v1648_v51 = vmul.f32 %v6545_v55, %v5191_v4 }
 0x1e5   : > { %v1649_v15 = vmul.f32 %v6547_v57, %v5191_v4  ;;  %v1650_v21 = vmul.f32 %v5191_v4, %v1615_v31  ;;  %v856_v53 = vmul.f32 %v4852_v49, %v6401_v23  ;;  %990 = vst [vmem:[#allocation2 + $0xd4] sm:$0x1] %v989_v45  ;;  %v2966_v27 = vunpack.c.l.bf16 %v2950_v30 }
 0x1e6   : > { %8321 = vst [vmem:[#allocation60_spill] sm:$0xff] %v6575_v46  ;;  %v6589_v2 = vmul.f32 %v6497_v59, %v5191_v4  ;;  %v6594_v24 = vmul.f32 %v5191_v4, %v8154_v61  ;;  %v6598_v18 = vadd.f32 %v6422_v11, %v8322_v47  ;;  %v6605_v30 = vmul.f32 %v6547_v57, %v5198_v14 }
 0x1e7   : > { %v1008_v43 = vpack.c.bf16 %v856_v53, %v856_v53  ;;  %v6608_v62 = vmul.f32 %v5198_v14, %v1615_v31  ;;  %v2324_v49 = vmul.f32 %v5239_v7, %v2291_v50  ;;  %v6612_v11 = vmul.f32 %v5242_v8, %v2291_v50 }
 0x1e8   : > { %8323 = vst [vmem:[#allocation40_spill] sm:$0xff] %v6598_v18  ;;  %v4856_v45 = vpop.eup %4855  ;;  %v3632_v47 = vadd.f32 1.0, %v4854_v48  ;;  %v1761_v61 = vrot.slane %v1648_v51, 1  ;;  %v1762_v35 = vrot.slane %v1649_v15, 1  ;;  %v1764_v5 = vrot.slane %v1650_v21, 1 }
 0x1e9   : > { %v4858_v53 = vpop.eup %4857  ;;  %v2218_v20 = vmul.f32 %v6545_v55, %v5236_v1  ;;  %v1170_v23 = vshrl.u32 %v1008_v43, 16  ;;  %v857_v63 = vmul.f32 %v4856_v45, %v6436_v60  ;;  %v2219_v31 = vmul.f32 %v6547_v57, %v5236_v1  ;;  %v6632_v60 = vld [vmem:[%s8091_s3 + $0x8] ss:$0 sm:$0xff] }
 0x1ea   : > { %v794_v54 = vadd.f32 1.0, %v4858_v53  ;;  %v2322_v25 = vmul.f32 %v6545_v55, %v5239_v7  ;;  %v2323_v50 = vmul.f32 %v6547_v57, %v5239_v7  ;;  %v6624_v48 = vmul.f32 %v5267_v36, %v2966_v27 }
 0x1eb   : > { %v1543_v51 = vmul.f32 %v6545_v55, %v5201_v13  ;;  %v6635_v21 = vmul.f32 %v6632_v60, %v2966_v27  ;;  %v1544_v45 = vmul.f32 %v6547_v57, %v5201_v13  ;;  %v1763_v53 = vsel %vm1720_vm10, %v1761_v61, %v1762_v35  ;;  %v3224_v39 = vld [vmem:[#allocation2 + $0x6c] sm:$0xe] }
 0x1ec   : > { %4859 = vrcp.f32 %v794_v54  ;;  %v1765_v58 = vsel %vm1720_vm10, %v1762_v35, %v1764_v5  ;;  %v2038_v0 = vrot.slane %v6608_v62, 2  ;;  %v2250_v15 = vadd.f32 %v2218_v20, %v6516_v6  ;;  %v2549_v62 = vld [vmem:[#allocation2 + $0x6c] sm:$0xe] }
 0x1ed   : > { %4861 = vrcp.f32 %v3632_v47  ;;  %v1172_v52 = vrot.slane %v1170_v23, 7  ;;  %v1009_v18 = vpack.c.bf16 %v857_v63, %v857_v63  ;;  %v2251_v16 = vadd.f32 %v2219_v31, %v6499_v32 }
 0x1ee   : > { %v2432_v59 = vrot.slane %v2322_v25, 1  ;;  %v2433_v27 = vrot.slane %v2323_v50, 1  ;;  %v2435_v29 = vrot.slane %v2324_v49, 1  ;;  %v1849_v54 = vadd.f32 %v1763_v53, %v1543_v51  ;;  %v1408_v25 = vld [vmem:[#allocation2 + $0x74] sm:$0x1] }
 0x1ef   : > { %v6644_v17 = vadd.f32 %v1765_v58, %v1544_v45  ;;  %v8324_v46 = vrot.slane %v6605_v30, 2  ;;  %v8325_v61 = vrot.slane %v6481_v12, 2  ;;  %v1173_v5 = vshll.u32 %v1008_v43, 16 }
 0x1f0   : > { %v6653_v6 = vmul.f32 %v6547_v57, %v5242_v8  ;;  %v2708_v63 = vrot.slane %v6612_v11, 2  ;;  %v2995_v32 = vmul.f32 %v6545_v55, %v5267_v36  ;;  %v2996_v58 = vmul.f32 %v6547_v57, %v5267_v36 }
 0x1f1   : > { %v2037_v35 = vsel %vm1994_vm11, %v8325_v61, %v8324_v46  ;;  %v1168_v20 = vrot.slane %v6539_v10, 4  ;;  %v1175_v12 = vor.u32 %v1173_v5, %v1172_v52  ;;  %v1177_v49 = vrot.slane %v1172_v52, 4  ;;  %v6672_v61 = vld [vmem:[#allocation2 + $0xb4] sm:$0xff]  }
 0x1f2   : > { %v4860_v23 = vpop.eup %4859  ;;  %v1179_v46 = vshrl.u32 %v1009_v18, 16  ;;  %v2434_v43 = vsel %vm1720_vm10, %v2432_v59, %v2433_v27  ;;  %v2436_v47 = vsel %vm1720_vm10, %v2433_v27, %v2435_v29  ;;  %v2892_v31 = vmul.f32 %v6545_v55, %v8271_v41  ;;  %v1411_v55 = vld [vmem:[#allocation2 + $0x78] sm:$0xf] }
 0x1f3   : > { %v858_v50 = vmul.f32 %v4860_v23, %v6494_v42  ;;  %v6666_v51 = vpop.eup %4861  ;;  %v1176_v45 = vsel %vm5156_vm9, %v1168_v20, %v1175_v12  ;;  %v1409_v10 = vsel %vm5102_vm4, %v1177_v49, %v1408_v25  ;;  %v1182_v52 = vshll.u32 %v1009_v18, 16 }
 0x1f4   : > { %8326 = vst [vmem:[#allocation61_spill] sm:$0xff] %v6666_v51  ;;  %v1181_v53 = vrot.slane %v1179_v46, 7  ;;  %v2893_v59 = vmul.f32 %v6547_v57, %v8271_v41  ;;  %v3103_v29 = vrot.slane %v2995_v32, 1  ;;  %v3104_v27 = vrot.slane %v2996_v58, 1  ;;  %v8358_v51 = vld [vmem:[#allocation24_spill] sm:$0xff] }
 0x1f5   : > { %1407 = vst [vmem:[#allocation2 + $0x70] sm:$0xf] %v1176_v45  ;;  %v1010_v42 = vpack.c.bf16 %v858_v50, %v858_v50  ;;  %v2706_v5 = vrot.slane %v6653_v6, 2  ;;  %v3106_v23 = vrot.slane %v6624_v48, 1  ;;  %v3269_v20 = vmul.f32 %v6632_v60, %v6547_v57  ;;  %v6689_v48 = vld [vmem:[#allocation2 + $0xbc] sm:$0x1] }
 0x1f6   : > { %1410 = vst [vmem:[#allocation2 + $0x74] sm:$0x1] %v1409_v10  ;;  %v1184_v25 = vor.u32 %v1182_v52, %v1181_v53  ;;  %v6680_v18 = vadd.f32 %v2037_v35, %v1849_v54  ;;  %v2523_v12 = vadd.f32 %v2434_v43, %v2250_v15  ;;  %v2524_v49 = vadd.f32 %v2436_v47, %v2251_v16  ;;  %v1415_v52 = vld [vmem:[#allocation2 + $0x80] sm:$0x1] }
 0x1f7   : > { %v1187_v46 = vshrl.u32 %v1010_v42, 16  ;;  %v2924_v32 = vadd.f32 %v2892_v31, %v6526_v3  ;;  %v1524_v50 = vunpack.c.l.bf16 %v6672_v61  ;;  %v6687_v6 = vunpack.c.h.bf16 %v6672_v61  ;;  %v4533_v3 = vld [vmem:[%s8093_s5 + $0x38] sm:$0xff] }
 0x1f8   : > { %v1412_v58 = vsel %vm5146_vm7, %v1184_v25, %v1411_v55  ;;  %v2925_v57 = vadd.f32 %v2893_v59, %v6528_v22  ;;  %v3105_v54 = vsel %vm1720_vm10, %v3103_v29, %v3104_v27  ;;  %v1190_v16 = vshll.u32 %v1010_v42, 16  ;;  %3829 = vmatpush.bf16.msrb.mxu2 %v4533_v3 }
 0x1f9   : > { %1413 = vst [vmem:[#allocation2 + $0x78] sm:$0xf] %v1412_v58  ;;  %v1189_v15 = vrot.slane %v1187_v46, 7  ;;  %v8327_v34 = vrot.slane %v6484_v26, 2  ;;  %v3107_v43 = vsel %vm1720_vm10, %v3104_v27, %v3106_v23  ;;  %v3377_v47 = vrot.slane %v3269_v20, 2  ;;  %v4532_v26 = vld [vmem:[%s8093_s5 + $0x30] sm:$0xff] }
 0x1fa   : > { %v3379_v31 = vrot.slane %v6635_v21, 2  ;;  %v1185_v45 = vrot.slane %v1181_v53, 4  ;;  %v8164_v61 = vunpack.c.l.bf16 %v6689_v48  ;;  %v3197_v29 = vadd.f32 %v3105_v54, %v2924_v32  ;;  %v6710_v21 = vld [vmem:[#allocation2 + $0x6c] sm:$0xf] }
 0x1fb   : > { %v2707_v35 = vsel %vm1994_vm11, %v8327_v34, %v2706_v5  ;;  %v1192_v22 = vor.u32 %v1190_v16, %v1189_v15  ;;  %v1194_v10 = vrot.slane %v1189_v15, 4  ;;  %v1669_v55 = vmul.f32 %v5191_v4, %v1524_v50  ;;  %v1874_v46 = vld [vmem:[#allocation2 + $0x6c] sm:$0xe] }
 0x1fc   : > { %v6702_v59 = vadd.f32 %v2707_v35, %v2523_v12  ;;  %v1670_v27 = vmul.f32 %v5191_v4, %v6687_v6  ;;  %v8328_v53 = vrot.slane %v6605_v30, 2  ;;  %v1791_v20 = vrot.slane %v6579_v19, 1  ;;  %v2155_v32 = vld [vmem:[#allocation2 + $0x6c] sm:$0xf]  ;;  %3830 = vmatpush.bf16.msrb.mxu2 %v4532_v26 }
 0x1fd   : > { %v1193_v23 = vsel %vm5156_vm9, %v1185_v45, %v1192_v22  ;;  %v1792_v25 = vrot.slane %v6589_v2, 1  ;;  %v6721_v12 = vadd.f32 %v3107_v43, %v2925_v57  ;;  %v2709_v30 = vsel %vm1994_vm11, %v2706_v5, %v2708_v63  ;;  %v2829_v57 = vld [vmem:[#allocation2 + $0x6c] sm:$0xf] }
 0x1fe   : > { %v2039_v42 = vsel %vm1994_vm11, %v8328_v53, %v2038_v0  ;;  %1414 = vst [vmem:[#allocation2 + $0x7c] sm:$0xf] %v1193_v23  ;;  %v1416_v56 = vsel %vm5102_vm4, %v1194_v10, %v1415_v52  ;;  %v8330_v0 = vrot.slane %v6488_v28, 2  ;;  %v6735_v2 = vsel %vm1994_vm11, %v3377_v47, %v3379_v31  ;;  %v4531_v28 = vld [vmem:[%s8093_s5 + $0x28] sm:$0xff] }
 0x1ff   : > { %8329 = vst [vmem:[#allocation62_spill] sm:$0xff] %v6721_v12  ;;  %v6724_v58 = vadd.f32 %v2039_v42, %v6644_v17  ;;  %v6737_v54 = vadd.f32 %v2709_v30, %v2524_v49  ;;  %v1671_v17 = vmul.f32 %v5191_v4, %v8164_v61  ;;  %v1794_v63 = vrot.slane %v6594_v24, 1  ;;  %v1879_v30 = vld [vmem:[#allocation2 + $0xa8] sm:$0xe] }
 0x200   : > { %v3378_v19 = vsel %vm1994_vm11, %v8330_v0, %v3377_v47  ;;  %8331 = vst [vmem:[#allocation63_spill] sm:$0xff] %v6735_v2  ;;  %v1796_v5 = vrot.slane %v1669_v55, 1  ;;  %v1797_v15 = vrot.slane %v1670_v27, 1  ;;  %v1512_v49 = vunpack.c.l.bf16 %v6710_v21  ;;  %v8337_v55 = vld [vmem:[#allocation14_spill] sm:$0xff]  ;;  %3831 = vmatpush.bf16.msrb.mxu2 %v4531_v28 }
 0x201   : > { %1417 = vst [vmem:[#allocation2 + $0x80] sm:$0x1] %v1416_v56  ;;  %v6742_v11 = vadd.f32 %v3378_v19, %v3197_v29  ;;  %v1890_v16 = vunpack.c.l.bf16 %v1874_v46  ;;  %v2187_v3 = vunpack.c.l.bf16 %v2155_v32  ;;  %v8333_v34 = vrot.slane %v6563_v44, 1  ;;  %v1600_v28 = vld [vmem:[#allocation2 + $0x74] sm:$0x1] }
 0x202   : > { %v8334_v35 = vrot.slane %v6557_v9, 1  ;;  %v2565_v47 = vunpack.c.l.bf16 %v2549_v62  ;;  %v2861_v31 = vunpack.c.l.bf16 %v2829_v57  ;;  %v6755_v45 = vmul.f32 %v5201_v13, %v1524_v50  ;;  %v8338_v9 = vld [vmem:[#allocation21_spill] sm:$0xff]  ;;  %v4530_v50 = vld [vmem:[%s8093_s5 + $0x20] sm:$0xff] }
 0x203   : > { %8332 = vst [vmem:[#allocation64_spill] sm:$0xff] %v6742_v11  ;;  %v8335_v22 = vrot.slane %v6568_v33, 1  ;;  %v8336_v24 = vmov %v8333_v34  ;;  %v3240_v52 = vunpack.c.l.bf16 %v3224_v39  ;;  %v1558_v29 = vmul.f32 %v5201_v13, %v6687_v6  ;;  %v8340_v62 = vld [vmem:[#allocation60_spill] sm:$0xff]  ;;  %v1481_v39 = vld [vmem:[#allocation2 + $0x70] sm:$0xf] }
 0x204   : > { %v1788_v43 = vsel %vm1720_vm10, %v8334_v35, %v8333_v34  ;;  %v1799_v26 = vrot.slane %v1671_v17, 1  ;;  %v6766_v27 = vadd.f32 %v8338_v9, %v8337_v55  ;;  %v1793_v33 = vsel %vm1720_vm10, %v1791_v20, %v1792_v25  ;;  %v1880_v17 = vld [vmem:[#allocation2 + $0xb4] sm:$0xe]  ;;  %3832 = vmatpush.bf16.msrb.mxu2 %v4530_v50  ;;  %v8342_v34 = vld [vmem:[#allocation33_spill] sm:$0xff]  ;;  %v8353_v50 = vld [vmem:[#allocation32_spill] sm:$0xff] }
 0x205   : > { %v1790_v10 = vsel %vm1720_vm10, %v8336_v24, %v8335_v22  ;;  %v1795_v44 = vsel %vm1720_vm10, %v1792_v25, %v1794_v63  ;;  %v1798_v21 = vsel %vm1720_vm10, %v1796_v5, %v1797_v15  ;;  %v6775_v53 = vadd.f32 %v1788_v43, %v6571_v40  ;;  %v4529_v63 = vld [vmem:[%s8093_s5 + $0x18] sm:$0xff]  ;;  %v8344_v35 = vld [vmem:[#allocation45_spill] sm:$0xff] }
 0x206   : > { %v6778_v42 = vmul.f32 %v5191_v4, %v1512_v49  ;;  %v6781_v23 = vmul.f32 %v5198_v14, %v1890_v16  ;;  %v2220_v46 = vmul.f32 %v5236_v1, %v2187_v3  ;;  %v6785_v32 = vadd.f32 %v1790_v10, %v6532_v38  ;;  %v8341_v16 = vld [vmem:[#allocation35_spill] sm:$0xff] }
 0x207   : > { %v6788_v20 = vmul.f32 %v5239_v7, %v2187_v3  ;;  %v6791_v25 = vmul.f32 %v5242_v8, %v2565_v47  ;;  %v2894_v40 = vmul.f32 %v8271_v41, %v2861_v31  ;;  %v6795_v56 = vmul.f32 %v5267_v36, %v2861_v31  ;;  %v8354_v9 = vld [vmem:[#allocation15_spill] sm:$0xff] }
 0x208   : > { %v6798_v0 = vmul.f32 %v6632_v60, %v3240_v52  ;;  %v1800_v19 = vsel %vm1720_vm10, %v1797_v15, %v1799_v26  ;;  %v6802_v38 = vadd.f32 %v1793_v33, %v6536_v37  ;;  %v6805_v57 = vadd.f32 %v1795_v44, %v8340_v62  ;;  %v2156_v44 = vld [vmem:[#allocation2 + $0x70] sm:$0xf]  ;;  %3833 = vmatpush.bf16.msrb.mxu2 %v4529_v63  ;;  %v8351_v63 = vld [vmem:[#allocation59_spill] sm:$0xff] }
 0x209   : > { %v1895_v5 = vunpack.c.l.bf16 %v1879_v30  ;;  %v1935_v3 = vmul.f32 %v8341_v16, %v5198_v14  ;;  %v8343_v15 = vunpack.c.l.bf16 %v8342_v34  ;;  %v8345_v43 = vunpack.c.l.bf16 %v8344_v35  ;;  %v6833_v30 = vld [vmem:[#allocation2 + $0x74] sm:$0x1] }
 0x20a   : > { %8339 = vst [vmem:[#allocation14_spill] sm:$0xff] %v6798_v0  ;;  %v6819_v31 = vmul.f32 %v5201_v13, %v1512_v49  ;;  %v6824_v10 = vadd.f32 %v2220_v46, %v6680_v18  ;;  %v6829_v55 = vadd.f32 %v2894_v40, %v6702_v59  ;;  %v1513_v49 = vunpack.c.l.bf16 %v1481_v39  ;;  %v4528_v18 = vld [vmem:[%s8093_s5 + $0x10] sm:$0xff]  ;;  %v8347_v46 = vld [vmem:[#allocation47_spill] sm:$0xff]  ;;  %v8364_v0 = vld [vmem:[#allocation5_spill] sm:$0xff] }
 0x20b   : > { %v1936_v37 = vmul.f32 %v5198_v14, %v8343_v15  ;;  %v1937_v47 = vmul.f32 %v5198_v14, %v8345_v43  ;;  %v1616_v33 = vunpack.c.l.bf16 %v1600_v28  ;;  %v1896_v62 = vunpack.c.l.bf16 %v1880_v17  ;;  %v8348_v59 = vld [vmem:[#allocation58_spill] sm:$0xff]  ;;  %v8350_v28 = vld [vmem:[#allocation56_spill] sm:$0xff] }
 0x20c   : > { %8346 = vst [vmem:[#allocation21_spill] sm:$0xff] %v6829_v55  ;;  %v6840_v34 = vmul.f32 %v5198_v14, %v8347_v46  ;;  %v8349_v40 = vunpack.c.l.bf16 %v8348_v59  ;;  %v6848_v39 = vmul.f32 %v5198_v14, %v1895_v5  ;;  %v6852_v17 = vmul.f32 %v8350_v28, %v5198_v14  ;;  %v8356_v5 = vld [vmem:[#allocation6_spill] sm:$0xff]  ;;  %3834 = vmatpush.bf16.msrb.mxu2 %v4528_v18  ;;  %v4650_v18 = vld [vmem:[#allocation2 + $0x78] sm:$0xff]   ;;  %v1601_v55 = vld [vmem:[#allocation2 + $0x80] sm:$0x1] }
 0x20d   : > { %v8352_v35 = vunpack.c.l.bf16 %v8351_v63  ;;  %v2055_v46 = vrot.slane %v8353_v50, 2  ;;  %v2056_v26 = vrot.slane %v1935_v3, 2  ;;  %v2058_v24 = vrot.slane %v1936_v37, 2  ;;  %v8368_v28 = vld [vmem:[#allocation40_spill] sm:$0xff] }
 0x20e   : > { %v6845_v15 = vmul.f32 %v5198_v14, %v8349_v40  ;;  %v2188_v59 = vunpack.c.l.bf16 %v2156_v44  ;;  %v2292_v40 = vunpack.c.l.bf16 %v6833_v30  ;;  %v8355_v52 = vrot.slane %v8354_v9, 2  ;;  %v2830_v44 = vld [vmem:[#allocation2 + $0x70] sm:$0xf]  ;;  %v4526_v30 = vld [vmem:[%s8093_s5] sm:$0xff] }
 0x20f   : > { %v6857_v43 = vmul.f32 %v5198_v14, %v8352_v35  ;;  %v8357_v22 = vrot.slane %v8356_v5, 2  ;;  %v8359_v11 = vrot.slane %v8358_v51, 2  ;;  %v1652_v2 = vmul.f32 %v5191_v4, %v1513_v49 }
 0x210   : > { %v8360_v63 = vmov %v8355_v52  ;;  %v1653_v3 = vmul.f32 %v5191_v4, %v1616_v33  ;;  %v6874_v37 = vadd.f32 %v1798_v21, %v6755_v45  ;;  %v6876_v50 = vadd.f32 %v1800_v19, %v1558_v29 }
 0x211   : > { %v2052_v61 = vsel %vm1994_vm11, %v8357_v22, %v8355_v52  ;;  %v2054_v35 = vsel %vm1994_vm11, %v8360_v63, %v8359_v11  ;;  %v4527_v22 = vld [vmem:[%s8093_s5 + $0x8] sm:$0xff]  ;;  %v6882_v51 = vmul.f32 %v5198_v14, %v1896_v62  ;;  %v6886_v11 = vmul.f32 %v5198_v14, %v6687_v6 }
 0x212   : > { %8361 = vst [vmem:[#allocation60_spill] sm:$0xff] %v6874_v37  ;;  %v2060_v52 = vrot.slane %v1937_v47, 2  ;;  %v8166_v9 = vrot.slane %v6840_v34, 2  ;;  %v8363_v45 = vunpack.c.l.bf16 %v6689_v48  ;;  %v2057_v21 = vsel %vm1994_vm11, %v2055_v46, %v2056_v26  ;;  %3835 = vmatpush.bf16.msrb.mxu2 %v4527_v22 }
 0x213   : > { %8362 = vst [vmem:[#allocation33_spill] sm:$0xff] %v6876_v50  ;;  %v6896_v19 = vsel %vm1994_vm11, %v2056_v26, %v2058_v24  ;;  %v6900_v62 = vmul.f32 %v5198_v14, %v1513_v49  ;;  %v2326_v6 = vmul.f32 %v5239_v7, %v2188_v59  ;;  %v2327_v47 = vmul.f32 %v5239_v7, %v2292_v40  ;;  %v2951_v24 = vld [vmem:[#allocation2 + $0x74] sm:$0x1] }
 0x214   : > { %v6892_v29 = vmul.f32 %v5198_v14, %v8363_v45  ;;  %v1767_v5 = vrot.slane %v1652_v2, 1  ;;  %v1769_v63 = vrot.slane %v1653_v3, 1  ;;  %v1927_v45 = vmul.f32 %v5198_v14, %v1616_v33  ;;  %v8366_v2 = vld [vmem:[#allocation41_spill] sm:$0xff] }
 0x215   : > { %v2221_v46 = vmul.f32 %v5236_v1, %v2188_v59  ;;  %v2862_v26 = vunpack.c.l.bf16 %v2830_v44  ;;  %v6913_v12 = vsel %vm1994_vm11, %v2060_v52, %v8166_v9  ;;  %v6916_v48 = vadd.f32 %v2052_v61, %v8364_v0  ;;  %v1875_v0 = vld [vmem:[#allocation2 + $0x78] sm:$0xe] }
 0x216   : > { %v6919_v3 = vadd.f32 %v2054_v35, %v8366_v2  ;;  %v6922_v33 = vmul.f32 %v5242_v8, %v2188_v59  ;;  %v6924_v44 = vunpack.c.l.bf16 %v4650_v18  ;;  %v6926_v22 = vunpack.c.h.bf16 %v4650_v18  ;;  %3836 = vmatpush.bf16.msrb.mxu2 %v4526_v30 }
 0x217   : > { %8365 = vst [vmem:[#allocation45_spill] sm:$0xff] %v6916_v48  ;;  %v6929_v50 = vadd.f32 %v2057_v21, %v8368_v28  ;;  %v1546_v52 = vmul.f32 %v5201_v13, %v1513_v49  ;;  %v2438_v9 = vrot.slane %v2326_v6, 1  ;;  %v2440_v16 = vrot.slane %v2327_v47, 1  ;;  %v2550_v48 = vld [vmem:[#allocation2 + $0x78] sm:$0xe] }
 0x218   : > { %8367 = vst [vmem:[#allocation47_spill] sm:$0xff] %v6919_v3  ;;  %v2967_v61 = vunpack.c.l.bf16 %v2951_v24  ;;  %v1770_v35 = vsel %vm1720_vm10, %v1767_v5, %v1769_v63  ;;  %v2041_v2 = vrot.slane %v6900_v62, 2  ;;  %v2043_v59 = vrot.slane %v1927_v45, 2  ;;  %v3225_v21 = vld [vmem:[#allocation2 + $0x78] sm:$0xe] }
 0x219   : > { %8369 = vst [vmem:[#allocation58_spill] sm:$0xff] %v6929_v50  ;;  %v2253_v3 = vadd.f32 %v2221_v46, %v6724_v58  ;;  %v8370_v18 = vrot.slane %v6778_v42, 1  ;;  %v6939_v28 = vmul.f32 %v5242_v8, %v2292_v40  ;;  %v6942_v49 = vmul.f32 %v5267_v36, %v2862_v26 }
 0x21a   : > { %v1617_v6 = vunpack.c.l.bf16 %v1601_v55  ;;  %v1891_v62 = vunpack.c.l.bf16 %v1875_v0  ;;  %v1654_v58 = vmul.f32 %v6924_v44, %v5191_v4  ;;  %v1655_v42 = vmul.f32 %v6926_v22, %v5191_v4 }
 0x21b   : > { %v1768_v37 = vsel %vm1720_vm10, %v8370_v18, %v1767_v5  ;;  %8371 = vst [vmem:[#allocation59_spill] sm:$0xff] %v6942_v49  ;;  %v1852_v63 = vadd.f32 %v1770_v35, %v1546_v52  ;;  %v2441_v5 = vsel %vm1720_vm10, %v2438_v9, %v2440_v16  ;;  %v2895_v40 = vmul.f32 %v8271_v41, %v2862_v26 }
 0x21c   : > { %v2566_v45 = vunpack.c.l.bf16 %v2550_v48  ;;  %v2044_v46 = vsel %vm1994_vm11, %v2041_v2, %v2043_v59  ;;  %v6953_v55 = vmul.f32 %v5267_v36, %v2967_v61  ;;  %v6956_v30 = vmul.f32 %v6632_v60, %v2862_v26 }
 0x21d   : > { %v3241_v24 = vunpack.c.l.bf16 %v3225_v21  ;;  %v8374_v0 = vrot.slane %v6788_v20, 1  ;;  %v8167_v52 = vrot.slane %v6942_v49, 1  ;;  %v6963_v16 = vmul.f32 %v6632_v60, %v2967_v61 }
 0x21e   : > { %8372 = vst [vmem:[#allocation32_spill] sm:$0xff] %v6953_v55  ;;  %v1656_v48 = vmul.f32 %v5191_v4, %v1617_v6  ;;  %v6966_v35 = vadd.f32 %v2441_v5, %v2253_v3  ;;  %v1928_v59 = vmul.f32 %v5198_v14, %v1891_v62  ;;  %v1771_v47 = vrot.slane %v1654_v58, 1 }
 0x21f   : > { %8373 = vst [vmem:[#allocation15_spill] sm:$0xff] %v6956_v30  ;;  %v2439_v18 = vsel %vm1720_vm10, %v8374_v0, %v2438_v9  ;;  %v1772_v50 = vrot.slane %v1655_v42, 1  ;;  %v2126_v26 = vadd.f32 %v2044_v46, %v1852_v63  ;;  %v6971_v20 = vadd.f32 %v2895_v40, %v6737_v54  ;;  %v2277_v0 = vld [vmem:[#allocation2 + $0x80] sm:$0x1] }
 0x220   : > { %8375 = vst [vmem:[#allocation6_spill] sm:$0xff] %v6963_v16  ;;  %v6974_v9 = vmul.f32 %v5242_v8, %v2566_v45  ;;  %v6979_v3 = vmul.f32 %v6632_v60, %v3241_v24  ;;  %v6983_v62 = vmul.f32 %v6926_v22, %v5198_v14  ;;  %v8379_v54 = vrot.slane %v6795_v56, 1 }
 0x221   : > { %8376 = vst [vmem:[#allocation24_spill] sm:$0xff] %v6966_v35  ;;  %v1774_v63 = vrot.slane %v1656_v48, 1  ;;  %v1851_v5 = vadd.f32 %v1768_v37, %v6819_v31  ;;  %v2045_v40 = vrot.slane %v1928_v59, 2  ;;  %v1773_v45 = vsel %vm1720_vm10, %v1771_v47, %v1772_v50  ;;  %v2952_v47 = vld [vmem:[#allocation2 + $0x80] sm:$0x1] }
 0x222   : > { %8377 = vst [vmem:[#allocation5_spill] sm:$0xff] %v6971_v20  ;;  %v6990_v58 = vsel %vm1720_vm10, %v8379_v54, %v8167_v52  ;;  %v1930_v46 = vmul.f32 %v5198_v14, %v1617_v6  ;;  %v2293_v24 = vunpack.c.l.bf16 %v2277_v0  ;;  %v1547_v61 = vmul.f32 %v6924_v44, %v5201_v13 }
 0x223   : > { %8378 = vst [vmem:[#allocation41_spill] sm:$0xff] %v6979_v3  ;;  %v2328_v56 = vmul.f32 %v6924_v44, %v5239_v7  ;;  %v7003_v54 = vmul.f32 %v6926_v22, %v5239_v7  ;;  %v2046_v37 = vrot.slane %v6983_v62, 2  ;;  %v2222_v14 = vmul.f32 %v6924_v44, %v5236_v1 }
 0x224   : > { %8380 = vst [vmem:[#allocation40_spill] sm:$0xff] %v6990_v58  ;;  %v2223_v6 = vmul.f32 %v6926_v22, %v5236_v1  ;;  %v1548_v48 = vmul.f32 %v6926_v22, %v5201_v13  ;;  %v1775_v59 = vsel %vm1720_vm10, %v1772_v50, %v1774_v63  ;;  %v1853_v0 = vadd.f32 %v1773_v45, %v1547_v61  ;;  %v8408_v58 = vld [vmem:[#allocation58_spill] sm:$0xff] }
 0x225   : > { %v8381_v42 = vrot.slane %v6781_v23, 2  ;;  %v2048_v31 = vrot.slane %v1930_v46, 2  ;;  %v7018_v62 = vmul.f32 %v5239_v7, %v2293_v24  ;;  %v2525_v21 = vadd.f32 %v2439_v18, %v6824_v10  ;;  %v8406_v46 = vld [vmem:[#allocation42_spill] sm:$0xff] }
 0x226   : > { %v2442_v3 = vrot.slane %v2328_v56, 1  ;;  %v8170_v16 = vrot.slane %v7003_v54, 1  ;;  %v7024_v13 = vmul.f32 %v6926_v22, %v5242_v8  ;;  %v2968_v50 = vunpack.c.l.bf16 %v2952_v47 }
 0x227   : > { %v2042_v52 = vsel %vm1994_vm11, %v8381_v42, %v2041_v2  ;;  %v1854_v61 = vadd.f32 %v1775_v59, %v1548_v48  ;;  %v2047_v23 = vsel %vm1994_vm11, %v2045_v40, %v2046_v37  ;;  %v7027_v2 = vadd.f32 %v2223_v6, %v2126_v26  ;;  %v8404_v48 = vld [vmem:[#allocation20_spill] sm:$0xff] }
 0x228   : > { %v2125_v4 = vadd.f32 %v2042_v52, %v1851_v5  ;;  %v2127_v52 = vadd.f32 %v2047_v23, %v1853_v0  ;;  %v7030_v42 = vmul.f32 %v5242_v8, %v2293_v24  ;;  %v8382_v10 = vrot.slane %v6922_v33, 2  ;;  %v2163_v23 = vld [vmem:[#allocation2 + $0x9c] sm:$0xf] }
 0x229   : > { %v8383_v18 = vrot.slane %v6791_v25, 2  ;;  %v2896_v45 = vmul.f32 %v6924_v44, %v8271_v41  ;;  %v7042_v26 = vmul.f32 %v6924_v44, %v5267_v36  ;;  %v2444_v25 = vsel %vm1720_vm10, %v2442_v3, %v8170_v16  ;;  %v8405_v16 = vld [vmem:[#allocation45_spill] sm:$0xff] }
 0x22a   : > { %v2254_v63 = vadd.f32 %v2222_v14, %v2125_v4  ;;  %v7046_v4 = vmul.f32 %v6926_v22, %v5267_v36  ;;  %v7053_v24 = vmul.f32 %v5267_v36, %v2968_v50  ;;  %v2066_v44 = vrot.slane %v6852_v17, 2  ;;  %v4660_v17 = vld [vmem:[#allocation2 + $0xc0] sm:$0xff]  }
 0x22b   : > { %v2712_v5 = vsel %vm1994_vm11, %v8383_v18, %v8382_v10  ;;  %8384 = vst [vmem:[#allocation65_spill] sm:$0xff] %v7042_v26  ;;  %v2068_v14 = vrot.slane %v6857_v43, 2  ;;  %v2070_v6 = vrot.slane %v6882_v51, 2  ;;  %v2071_v47 = vrot.slane %v6886_v11, 2  ;;  %v2167_v11 = vld [vmem:[#allocation2 + $0xb4] sm:$0xff]  }
 0x22c   : > { %v2798_v56 = vadd.f32 %v2712_v5, %v2525_v21  ;;  %8385 = vst [vmem:[#allocation66_spill] sm:$0xff] %v7046_v4  ;;  %v7057_v21 = vmul.f32 %v6632_v60, %v6926_v22  ;;  %v7066_v3 = vmul.f32 %v6926_v22, %v8271_v41  ;;  %v7071_v0 = vmul.f32 %v6632_v60, %v2968_v50  ;;  %v7131_v22 = vld [vmem:[#allocation2 + $0xc8] sm:$0x1] }
 0x22d   : > { %8386 = vst [vmem:[#allocation67_spill] sm:$0xff] %v7053_v24  ;;  %v7073_v10 = vadd.f32 %v2444_v25, %v2254_v63  ;;  %v2073_v51 = vrot.slane %v6892_v29, 2  ;;  %v2049_v5 = vsel %vm1994_vm11, %v2046_v37, %v2048_v31  ;;  %v8393_v60 = vrot.slane %v6840_v34, 2 }
 0x22e   : > { %8387 = vst [vmem:[#allocation68_spill] sm:$0xff] %v7057_v21  ;;  %v7068_v59 = vadd.f32 %v2896_v45, %v2798_v56  ;;  %v8392_v45 = vrot.slane %v6845_v15, 2  ;;  %v8394_v63 = vrot.slane %v6848_v39, 2  ;;  %v2069_v25 = vsel %vm1994_vm11, %v2066_v44, %v2068_v14 }
 0x22f   : > { %8388 = vst [vmem:[#allocation69_spill] sm:$0xff] %v7066_v3  ;;  %v2072_v29 = vsel %vm1994_vm11, %v2070_v6, %v2071_v47  ;;  %v2195_v18 = vunpack.c.l.bf16 %v2163_v23  ;;  %v2128_v43 = vadd.f32 %v2049_v5, %v1854_v61  ;;  %v2132_v15 = vadd.f32 %v6896_v19, %v6766_v27  ;;  %v8395_v6 = vld [vmem:[#allocation60_spill] sm:$0xff]  ;;  %v8398_v27 = vld [vmem:[#allocation35_spill] sm:$0xff] }
 0x230   : > { %8389 = vst [vmem:[#allocation70_spill] sm:$0xff] %v7068_v59  ;;  %v2064_v50 = vsel %vm1994_vm11, %v8393_v60, %v8392_v45  ;;  %v2067_v56 = vsel %vm1994_vm11, %v8394_v63, %v2066_v44  ;;  %v2199_v31 = vunpack.c.l.bf16 %v2167_v11  ;;  %v2074_v34 = vsel %vm1994_vm11, %v2071_v47, %v2073_v51  ;;  %v7114_v51 = vld [vmem:[#allocation2 + $0xb0] sm:$0x1]  ;;  %v8407_v59 = vld [vmem:[#allocation47_spill] sm:$0xff] }
 0x231   : > { %8390 = vst [vmem:[#allocation71_spill] sm:$0xff] %v7071_v0  ;;  %v2133_v39 = vadd.f32 %v6913_v12, %v6775_v53  ;;  %v2134_v37 = vadd.f32 %v2064_v50, %v6785_v32  ;;  %v7098_v45 = vunpack.c.h.bf16 %v2167_v11  ;;  %v2135_v44 = vadd.f32 %v2067_v56, %v6802_v38  ;;  %v8399_v12 = vld [vmem:[#allocation48_spill] sm:$0xff]  ;;  %v8400_v38 = vld [vmem:[#allocation33_spill] sm:$0xff]  ;;  %v7122_v56 = vld [vmem:[#allocation2 + $0xbc] sm:$0x1] }
 0x232   : > { %8391 = vst [vmem:[#allocation72_spill] sm:$0xff] %v7073_v10  ;;  %v2136_v14 = vadd.f32 %v2069_v25, %v6805_v57  ;;  %v2137_v23 = vadd.f32 %v2072_v29, %v8395_v6  ;;  %v7103_v61 = vunpack.c.l.bf16 %v4660_v17  ;;  %v7105_v5 = vunpack.c.h.bf16 %v4660_v17  ;;  %v7112_v32 = vld [vmem:[#allocation2 + $0xa4] sm:$0x1]  ;;  %v8401_v11 = vld [vmem:[#allocation37_spill] sm:$0xff] }
 0x233   : > { %v2227_v19 = vmul.f32 %v8398_v27, %v5236_v1  ;;  %v2228_v47 = vmul.f32 %v5236_v1, %v2195_v18  ;;  %v2229_v53 = vmul.f32 %v5236_v1, %v8399_v12  ;;  %v2138_v57 = vadd.f32 %v2074_v34, %v8400_v38  ;;  %v8402_v17 = vld [vmem:[#allocation56_spill] sm:$0xff] }
 0x234   : > { %8396 = vst [vmem:[#allocation60_spill] sm:$0xff] %v7103_v61  ;;  %v2230_v60 = vmul.f32 %v8401_v11, %v5236_v1  ;;  %v2231_v50 = vmul.f32 %v8402_v17, %v5236_v1  ;;  %v2232_v63 = vmul.f32 %v5236_v1, %v2199_v31  ;;  %v2233_v25 = vmul.f32 %v5236_v1, %v7098_v45  ;;  %v8403_v34 = vld [vmem:[#allocation8_spill] sm:$0xff] }
 0x235   : > { %8397 = vst [vmem:[#allocation73_spill] sm:$0xff] %v7105_v5  ;;  %v2234_v29 = vmul.f32 %v7103_v61, %v5236_v1  ;;  %v2235_v6 = vmul.f32 %v7105_v5, %v5236_v1  ;;  %v2256_v38 = vadd.f32 %v8403_v34, %v2127_v52  ;;  %v2257_v40 = vadd.f32 %v8404_v48, %v2128_v43 }
 0x236   : > { %v2258_v0 = vadd.f32 %v8406_v46, %v8405_v16  ;;  %v8181_v21 = vunpack.c.l.bf16 %v7112_v32  ;;  %v2259_v20 = vadd.f32 %v2227_v19, %v8407_v59  ;;  %v2260_v24 = vadd.f32 %v2228_v47, %v8408_v58  ;;  %v8409_v16 = vld [vmem:[#allocation38_spill] sm:$0xff] }
 0x237   : > { %v2261_v26 = vadd.f32 %v2229_v53, %v2132_v15  ;;  %v8185_v1 = vunpack.c.l.bf16 %v7122_v56  ;;  %v2262_v4 = vadd.f32 %v2230_v60, %v2133_v39  ;;  %v2263_v52 = vadd.f32 %v2231_v50, %v2134_v37 }
 0x238   : > { %v2264_v34 = vadd.f32 %v2232_v63, %v2135_v44  ;;  %v2299_v49 = vunpack.c.l.bf16 %v7131_v22  ;;  %v2335_v48 = vmul.f32 %v8398_v27, %v5239_v7  ;;  %v8410_v46 = vunpack.c.l.bf16 %v8409_v16 }
 0x239   : > { %v2337_v30 = vmul.f32 %v5239_v7, %v2195_v18  ;;  %v2338_v58 = vmul.f32 %v5239_v7, %v8399_v12  ;;  %v2339_v59 = vmul.f32 %v5239_v7, %v8181_v21  ;;  %v2340_v15 = vmul.f32 %v8401_v11, %v5239_v7 }
 0x23a   : > { %v2336_v43 = vmul.f32 %v5239_v7, %v8410_v46  ;;  %v2341_v39 = vmul.f32 %v8402_v17, %v5239_v7  ;;  %v8411_v37 = vunpack.c.l.bf16 %v7114_v51  ;;  %v2265_v19 = vadd.f32 %v2233_v25, %v2136_v14 }
 0x23b   : > { %v2343_v18 = vmul.f32 %v5239_v7, %v2199_v31  ;;  %v2344_v47 = vmul.f32 %v5239_v7, %v7098_v45  ;;  %v2345_v53 = vmul.f32 %v5239_v7, %v8185_v1  ;;  %v2266_v60 = vadd.f32 %v2234_v29, %v2137_v23 }
 0x23c   : > { %v2342_v44 = vmul.f32 %v5239_v7, %v8411_v37  ;;  %v2346_v50 = vmul.f32 %v7103_v61, %v5239_v7  ;;  %v2347_v63 = vmul.f32 %v7105_v5, %v5239_v7  ;;  %v2348_v14 = vmul.f32 %v5239_v7, %v2299_v49 }
 0x23d   : > { %v2453_v25 = vrot.slane %v2335_v48, 1  ;;  %v2455_v31 = vrot.slane %v2336_v43, 1  ;;  %v2457_v46 = vrot.slane %v2337_v30, 1  ;;  %v2458_v37 = vrot.slane %v2338_v58, 1  ;;  %v8414_v43 = vld [vmem:[#allocation16_spill] sm:$0xff]  ;;  %v8416_v58 = vld [vmem:[#allocation9_spill] sm:$0xff] }
 0x23e   : > { %v2460_v21 = vrot.slane %v2339_v59, 1  ;;  %v2462_v55 = vrot.slane %v2340_v15, 1  ;;  %v2463_v36 = vrot.slane %v2341_v39, 1  ;;  %v2465_v3 = vrot.slane %v2342_v44, 1  ;;  %v8418_v39 = vld [vmem:[#allocation25_spill] sm:$0xff] }
 0x23f   : > { %v2267_v1 = vadd.f32 %v2235_v6, %v2138_v57  ;;  %v2467_v23 = vrot.slane %v2343_v18, 1  ;;  %v2468_v29 = vrot.slane %v2344_v47, 1  ;;  %v2470_v11 = vrot.slane %v2345_v53, 1 }
 0x240   : > { %v8412_v61 = vrot.slane %v7018_v62, 1  ;;  %v8413_v41 = vrot.slane %v7003_v54, 1  ;;  %v2472_v35 = vrot.slane %v2346_v50, 1  ;;  %v2473_v7 = vrot.slane %v2347_v63, 1  ;;  %v8421_v62 = vld [vmem:[#allocation39_spill] sm:$0xff] }
 0x241   : > { %v2475_v48 = vrot.slane %v2348_v14, 1  ;;  %v8415_v30 = vrot.slane %v8414_v43, 1  ;;  %v8417_v59 = vrot.slane %v8416_v58, 1  ;;  %v8419_v57 = vrot.slane %v8418_v39, 1  ;;  %v2553_v63 = vld [vmem:[#allocation2 + $0x9c] sm:$0xe] }
 0x242   : > { %v2446_v10 = vsel %vm1720_vm10, %v8413_v41, %v8412_v61  ;;  %v8422_v18 = vrot.slane %v8421_v62, 1  ;;  %v2456_v41 = vsel %vm1720_vm10, %v2453_v25, %v2455_v31  ;;  %v2459_v61 = vsel %vm1720_vm10, %v2457_v46, %v2458_v37  ;;  %v2554_v14 = vld [vmem:[#allocation2 + $0xa8] sm:$0xe] }
 0x243   : > { %v2449_v15 = vsel %vm1720_vm10, %v8417_v59, %v8415_v30  ;;  %v8420_v6 = vmov %v8415_v30  ;;  %v2461_v47 = vsel %vm1720_vm10, %v2458_v37, %v2460_v21  ;;  %v2464_v53 = vsel %vm1720_vm10, %v2462_v55, %v2463_v36 }
 0x244   : > { %v2451_v44 = vsel %vm1720_vm10, %v8420_v6, %v8419_v57  ;;  %v2454_v54 = vsel %vm1720_vm10, %v8422_v18, %v2453_v25  ;;  %v2466_v50 = vsel %vm1720_vm10, %v2463_v36, %v2465_v3  ;;  %v2469_v43 = vsel %vm1720_vm10, %v2467_v23, %v2468_v29  ;;  %v2555_v25 = vld [vmem:[#allocation2 + $0xb4] sm:$0xe]  ;;  %v2556_v36 = vld [vmem:[#allocation2 + $0xc0] sm:$0xe] }
 0x245   : > { %v2471_v30 = vsel %vm1720_vm10, %v2468_v29, %v2470_v11  ;;  %v7199_v58 = vadd.f32 %v2446_v10, %v7027_v2  ;;  %v7201_v59 = vadd.f32 %v2449_v15, %v2256_v38  ;;  %v2474_v31 = vsel %vm1720_vm10, %v2472_v35, %v2473_v7 }
 0x246   : > { %v2476_v21 = vsel %vm1720_vm10, %v2473_v7, %v2475_v48  ;;  %v7205_v46 = vadd.f32 %v2451_v44, %v2257_v40  ;;  %v7207_v55 = vadd.f32 %v2454_v54, %v2258_v0  ;;  %v7209_v3 = vadd.f32 %v2456_v41, %v2259_v20  ;;  %v8429_v41 = vld [vmem:[#allocation26_spill] sm:$0xff] }
 0x247   : > { %v7211_v37 = vadd.f32 %v2459_v61, %v2260_v24  ;;  %v2569_v11 = vunpack.c.l.bf16 %v2553_v63  ;;  %v2570_v23 = vunpack.c.l.bf16 %v2554_v14  ;;  %v7213_v2 = vadd.f32 %v2461_v47, %v2261_v26  ;;  %v8423_v24 = vld [vmem:[#allocation30_spill] sm:$0xff] }
 0x248   : > { %v7215_v10 = vadd.f32 %v2464_v53, %v2262_v4  ;;  %v7217_v38 = vadd.f32 %v2466_v50, %v2263_v52  ;;  %v2571_v35 = vunpack.c.l.bf16 %v2555_v25  ;;  %v7219_v29 = vadd.f32 %v2469_v43, %v2264_v34 }
 0x249   : > { %v7221_v40 = vadd.f32 %v2471_v30, %v2265_v19  ;;  %v7223_v0 = vadd.f32 %v2474_v31, %v2266_v60  ;;  %v2572_v7 = vunpack.c.l.bf16 %v2556_v36  ;;  %v7225_v20 = vadd.f32 %v2476_v21, %v2267_v1 }
 0x24a   : > { %v8424_v48 = vunpack.c.l.bf16 %v8423_v24  ;;  %v2608_v26 = vmul.f32 %v8398_v27, %v5242_v8  ;;  %v8425_v4 = vunpack.c.l.bf16 %v8409_v16  ;;  %v2610_v34 = vmul.f32 %v5242_v8, %v2569_v11 }
 0x24b   : > { %v2611_v19 = vmul.f32 %v5242_v8, %v8399_v12  ;;  %v8426_v60 = vunpack.c.l.bf16 %v7112_v32  ;;  %v2613_v39 = vmul.f32 %v5242_v8, %v2570_v23  ;;  %v2614_v57 = vmul.f32 %v8402_v17, %v5242_v8 }
 0x24c   : > { %v2607_v15 = vmul.f32 %v5242_v8, %v8424_v48  ;;  %v2609_v52 = vmul.f32 %v5242_v8, %v8425_v4  ;;  %v8427_v6 = vunpack.c.l.bf16 %v7114_v51  ;;  %v2616_v44 = vmul.f32 %v5242_v8, %v2571_v35  ;;  %v8436_v48 = vld [vmem:[#allocation22_spill] sm:$0xff] }
 0x24d   : > { %v2612_v1 = vmul.f32 %v5242_v8, %v8426_v60  ;;  %v2617_v62 = vmul.f32 %v5242_v8, %v7098_v45  ;;  %v8428_v12 = vunpack.c.l.bf16 %v7122_v56  ;;  %v2619_v18 = vmul.f32 %v5242_v8, %v2572_v7 }
 0x24e   : > { %v2615_v16 = vmul.f32 %v5242_v8, %v8427_v6  ;;  %v2620_v54 = vmul.f32 %v7105_v5, %v5242_v8  ;;  %v2621_v51 = vmul.f32 %v5242_v8, %v2299_v49  ;;  %v2723_v61 = vrot.slane %v8429_v41, 2 }
 0x24f   : > { %v2618_v32 = vmul.f32 %v5242_v8, %v8428_v12  ;;  %v2725_v47 = vrot.slane %v2607_v15, 2  ;;  %v2726_v53 = vrot.slane %v2608_v26, 2  ;;  %v2728_v50 = vrot.slane %v2609_v52, 2 }
 0x250   : > { %v2730_v63 = vrot.slane %v2610_v34, 2  ;;  %v2731_v45 = vrot.slane %v2611_v19, 2  ;;  %v2733_v14 = vrot.slane %v2612_v1, 2  ;;  %v2735_v56 = vrot.slane %v2613_v39, 2 }
 0x251   : > { %v2736_v43 = vrot.slane %v2614_v57, 2  ;;  %v2738_v30 = vrot.slane %v2615_v16, 2  ;;  %v2740_v25 = vrot.slane %v2616_v44, 2  ;;  %v2741_v31 = vrot.slane %v2617_v62, 2  ;;  %v7290_v16 = vld [vmem:[#allocation2 + $0x9c] sm:$0xf] }
 0x252   : > { %v8430_v21 = vrot.slane %v6939_v28, 2  ;;  %v8431_v36 = vrot.slane %v6922_v33, 2  ;;  %v8432_v8 = vrot.slane %v7024_v13, 2  ;;  %v8433_v49 = vrot.slane %v6974_v9, 2  ;;  %v8438_v28 = vld [vmem:[#allocation10_spill] sm:$0xff]  ;;  %v8441_v62 = vld [vmem:[#allocation24_spill] sm:$0xff] }
 0x253   : > { %v8434_v23 = vrot.slane %v7030_v42, 2  ;;  %v2743_v24 = vrot.slane %v2618_v32, 2  ;;  %v8437_v15 = vrot.slane %v8436_v48, 2  ;;  %v8439_v26 = vrot.slane %v8438_v28, 2  ;;  %v8442_v32 = vld [vmem:[#allocation72_spill] sm:$0xff] }
 0x254   : > { %v2714_v22 = vsel %vm1994_vm11, %v8431_v36, %v8430_v21  ;;  %v2717_v11 = vsel %vm1994_vm11, %v8433_v49, %v8432_v8  ;;  %v8435_v35 = vmov %v8432_v8  ;;  %v2745_v4 = vrot.slane %v2619_v18, 2  ;;  %v8445_v21 = vld [vmem:[#allocation3_spill] sm:$0xff]  ;;  %v8447_v49 = vld [vmem:[#allocation49_spill] sm:$0xff] }
 0x255   : > { %v2719_v7 = vsel %vm1994_vm11, %v8435_v35, %v8434_v23  ;;  %v2722_v33 = vsel %vm1994_vm11, %v8439_v26, %v8437_v15  ;;  %v2746_v52 = vrot.slane %v2620_v54, 2  ;;  %v2748_v34 = vrot.slane %v2621_v51, 2  ;;  %v7296_v51 = vld [vmem:[#allocation2 + $0xb4] sm:$0xff]  }
 0x256   : > { %v8440_v9 = vmov %v8437_v15  ;;  %v2727_v42 = vsel %vm1994_vm11, %v2725_v47, %v2726_v53  ;;  %v2729_v13 = vsel %vm1994_vm11, %v2726_v53, %v2728_v50  ;;  %v2732_v60 = vsel %vm1994_vm11, %v2730_v63, %v2731_v45  ;;  %v7302_v50 = vld [vmem:[#allocation2 + $0xcc] sm:$0xff]  }
 0x257   : > { %v2724_v19 = vsel %vm1994_vm11, %v8440_v9, %v2723_v61  ;;  %v2734_v1 = vsel %vm1994_vm11, %v2731_v45, %v2733_v14  ;;  %v2737_v39 = vsel %vm1994_vm11, %v2735_v56, %v2736_v43  ;;  %v2739_v57 = vsel %vm1994_vm11, %v2736_v43, %v2738_v30 }
 0x258   : > { %v2742_v6 = vsel %vm1994_vm11, %v2740_v25, %v2741_v31  ;;  %v2744_v44 = vsel %vm1994_vm11, %v2741_v31, %v2743_v24  ;;  %v2799_v12 = vadd.f32 %v2714_v22, %v8441_v62  ;;  %v2800_v18 = vadd.f32 %v2717_v11, %v8442_v32  ;;  %v8444_v31 = vld [vmem:[#allocation17_spill] sm:$0xff]  ;;  %v8446_v22 = vld [vmem:[#allocation34_spill] sm:$0xff]  ;;  %v8449_v24 = vld [vmem:[#allocation60_spill] sm:$0xff] }
 0x259   : > { %v2801_v54 = vadd.f32 %v2719_v7, %v7199_v58  ;;  %v2747_v41 = vsel %vm1994_vm11, %v2745_v4, %v2746_v52  ;;  %v2749_v61 = vsel %vm1994_vm11, %v2746_v52, %v2748_v34  ;;  %v2802_v47 = vadd.f32 %v2722_v33, %v7201_v59  ;;  %v7339_v7 = vld [vmem:[#allocation2 + $0x98] sm:$0x1]  ;;  %v7348_v33 = vld [vmem:[#allocation2 + $0xa4] sm:$0x1]  ;;  %v8450_v4 = vld [vmem:[#allocation69_spill] sm:$0xff] }
 0x25a   : > { %v2803_v53 = vadd.f32 %v2724_v19, %v7205_v46  ;;  %v2804_v63 = vadd.f32 %v2727_v42, %v7207_v55  ;;  %v2805_v45 = vadd.f32 %v2729_v13, %v7209_v3  ;;  %v2806_v14 = vadd.f32 %v2732_v60, %v7211_v37  ;;  %v8451_v34 = vld [vmem:[#allocation11_spill] sm:$0xff]  ;;  %v7360_v13 = vld [vmem:[#allocation2 + $0xb0] sm:$0x1]  ;;  %v7379_v32 = vld [vmem:[#allocation2 + $0xd4] sm:$0x1] }
 0x25b   : > { %v2869_v58 = vunpack.c.l.bf16 %v7290_v16  ;;  %v2807_v56 = vadd.f32 %v2734_v1, %v7213_v2  ;;  %v2808_v43 = vadd.f32 %v2737_v39, %v7215_v10  ;;  %v2873_v30 = vunpack.c.l.bf16 %v7296_v51  ;;  %v7362_v60 = vld [vmem:[#allocation2 + $0xbc] sm:$0x1]  ;;  %8454 = vst [vmem:[#allocation56_spill] sm:$0xff] %v7379_v32 }
 0x25c   : > { %v7312_v59 = vunpack.c.h.bf16 %v7296_v51  ;;  %v2809_v46 = vadd.f32 %v2739_v57, %v7217_v38  ;;  %v2810_v25 = vadd.f32 %v2742_v6, %v7219_v29  ;;  %v2877_v55 = vunpack.c.l.bf16 %v7302_v50  ;;  %8452 = vst [vmem:[#allocation48_spill] sm:$0xff] %v7362_v60  ;;  %v7370_v6 = vld [vmem:[#allocation2 + $0xc8] sm:$0x1] }
 0x25d   : > { %v7318_v3 = vunpack.c.h.bf16 %v7302_v50  ;;  %v2811_v37 = vadd.f32 %v2744_v44, %v7221_v40  ;;  %v2812_v2 = vadd.f32 %v2747_v41, %v7223_v0  ;;  %v2813_v10 = vadd.f32 %v2749_v61, %v7225_v20  ;;  %v8448_v40 = vld [vmem:[#allocation37_spill] sm:$0xff]  ;;  %8453 = vst [vmem:[#allocation33_spill] sm:$0xff] %v7370_v6 }
 0x25e   : > { %v2899_v36 = vmul.f32 %v8445_v21, %v8444_v31  ;;  %v2900_v8 = vmul.f32 %v8446_v22, %v8445_v21  ;;  %v2901_v38 = vmul.f32 %v8398_v27, %v8445_v21  ;;  %v2902_v29 = vmul.f32 %v8445_v21, %v2869_v58 }
 0x25f   : > { %8443 = vst [vmem:[#allocation35_spill] sm:$0xff] %v7318_v3  ;;  %v2903_v11 = vmul.f32 %v8445_v21, %v8447_v49  ;;  %v2904_v23 = vmul.f32 %v8448_v40, %v8445_v21  ;;  %v2905_v0 = vmul.f32 %v8402_v17, %v8445_v21  ;;  %v2906_v20 = vmul.f32 %v8445_v21, %v2873_v30 }
 0x260   : > { %v2907_v35 = vmul.f32 %v8445_v21, %v7312_v59  ;;  %v2908_v48 = vmul.f32 %v8449_v24, %v8445_v21  ;;  %v2909_v15 = vmul.f32 %v7105_v5, %v8445_v21  ;;  %v2910_v28 = vmul.f32 %v8445_v21, %v2877_v55 }
 0x261   : > { %v2911_v26 = vmul.f32 %v8445_v21, %v7318_v3  ;;  %v7351_v52 = vadd.f32 %v8450_v4, %v2799_v12  ;;  %v7354_v9 = vadd.f32 %v8451_v34, %v2800_v18  ;;  %v7356_v19 = vadd.f32 %v2899_v36, %v2801_v54 }
 0x262   : > { %v7358_v42 = vadd.f32 %v2900_v8, %v2802_v47  ;;  %v7364_v1 = vadd.f32 %v2901_v38, %v2803_v53  ;;  %v7366_v39 = vadd.f32 %v2902_v29, %v2804_v63  ;;  %v7368_v57 = vadd.f32 %v2903_v11, %v2805_v45 }
 0x263   : > { %v8195_v16 = vunpack.c.l.bf16 %v7339_v7  ;;  %v7373_v44 = vadd.f32 %v2904_v23, %v2806_v14  ;;  %v7375_v62 = vadd.f32 %v2905_v0, %v2807_v56  ;;  %v7377_v12 = vadd.f32 %v2906_v20, %v2808_v43  ;;  %v8455_v14 = vld [vmem:[#allocation4_spill] sm:$0xff]  ;;  %v8458_v20 = vld [vmem:[#allocation59_spill] sm:$0xff] }
 0x264   : > { %v8194_v18 = vunpack.c.l.bf16 %v7348_v33  ;;  %v7382_v54 = vadd.f32 %v2907_v35, %v2809_v46  ;;  %v7384_v51 = vadd.f32 %v2908_v48, %v2810_v25  ;;  %v8192_v41 = vunpack.c.l.bf16 %v7360_v13  ;;  %v8456_v23 = vld [vmem:[#allocation32_spill] sm:$0xff]  ;;  %v8460_v48 = vld [vmem:[#allocation66_spill] sm:$0xff] }
 0x265   : > { %v8191_v61 = vunpack.c.l.bf16 %v7362_v60  ;;  %v7388_v47 = vadd.f32 %v2909_v15, %v2811_v37  ;;  %v7390_v53 = vadd.f32 %v2910_v28, %v2812_v2  ;;  %v7392_v50 = vadd.f32 %v2911_v26, %v2813_v10  ;;  %v8462_v28 = vld [vmem:[#allocation65_spill] sm:$0xff]  ;;  %v8470_v60 = vld [vmem:[#allocation12_spill] sm:$0xff] }
 0x266   : > { %v8190_v63 = vunpack.c.l.bf16 %v7370_v6  ;;  %v8193_v45 = vunpack.c.l.bf16 %v7379_v32  ;;  %v3008_v56 = vmul.f32 %v8398_v27, %v8455_v14  ;;  %v3009_v43 = vmul.f32 %v8455_v14, %v8195_v16 }
 0x267   : > { %v3010_v46 = vmul.f32 %v8455_v14, %v2869_v58  ;;  %v3011_v25 = vmul.f32 %v8455_v14, %v8447_v49  ;;  %v3012_v37 = vmul.f32 %v8455_v14, %v8194_v18  ;;  %v3013_v2 = vmul.f32 %v8448_v40, %v8455_v14 }
 0x268   : > { %v3014_v10 = vmul.f32 %v8402_v17, %v8455_v14  ;;  %v3015_v21 = vmul.f32 %v8455_v14, %v8192_v41  ;;  %v3016_v36 = vmul.f32 %v8455_v14, %v2873_v30  ;;  %v3017_v58 = vmul.f32 %v8455_v14, %v7312_v59  ;;  %v8467_v41 = vld [vmem:[#allocation27_spill] sm:$0xff] }
 0x269   : > { %v3018_v22 = vmul.f32 %v8455_v14, %v8191_v61  ;;  %v3019_v8 = vmul.f32 %v8449_v24, %v8455_v14  ;;  %v3020_v38 = vmul.f32 %v7105_v5, %v8455_v14  ;;  %v3021_v29 = vmul.f32 %v8455_v14, %v8190_v63  ;;  %v8468_v5 = vld [vmem:[#allocation23_spill] sm:$0xff] }
 0x26a   : > { %v3022_v11 = vmul.f32 %v8455_v14, %v2877_v55  ;;  %v3023_v30 = vmul.f32 %v8455_v14, %v7318_v3  ;;  %v3024_v40 = vmul.f32 %v8455_v14, %v8193_v45  ;;  %v8457_v0 = vrot.slane %v8456_v23, 1  ;;  %v8464_v55 = vld [vmem:[#allocation67_spill] sm:$0xff] }
 0x26b   : > { %v8459_v35 = vrot.slane %v8458_v20, 1  ;;  %v8461_v15 = vrot.slane %v8460_v48, 1  ;;  %v8463_v26 = vrot.slane %v8462_v28, 1  ;;  %v8465_v34 = vrot.slane %v8464_v55, 1 }
 0x26c   : > { %v3121_v14 = vrot.slane %v8467_v41, 1  ;;  %v3124_v45 = vrot.slane %v3008_v56, 1  ;;  %v3126_v23 = vrot.slane %v3009_v43, 1  ;;  %v3128_v18 = vrot.slane %v3010_v46, 1 }
 0x26d   : > { %v3112_v24 = vsel %vm1720_vm10, %v8459_v35, %v8457_v0  ;;  %v3115_v4 = vsel %vm1720_vm10, %v8463_v26, %v8461_v15  ;;  %v8466_v63 = vmov %v8461_v15  ;;  %v3129_v20 = vrot.slane %v3011_v25, 1 }
 0x26e   : > { %v3117_v61 = vsel %vm1720_vm10, %v8466_v63, %v8465_v34  ;;  %v3131_v16 = vrot.slane %v3012_v37, 1  ;;  %v3133_v0 = vrot.slane %v3013_v2, 1  ;;  %v3134_v35 = vrot.slane %v3014_v10, 1  ;;  %v8473_v2 = vld [vmem:[#allocation43_spill] sm:$0xff] }
 0x26f   : > { %v3136_v32 = vrot.slane %v3015_v21, 1  ;;  %v3138_v3 = vrot.slane %v3016_v36, 1  ;;  %v3139_v28 = vrot.slane %v3017_v58, 1  ;;  %v3141_v6 = vrot.slane %v3018_v22, 1 }
 0x270   : > { %v3143_v15 = vrot.slane %v3019_v8, 1  ;;  %v3144_v26 = vrot.slane %v3020_v38, 1  ;;  %v3146_v55 = vrot.slane %v3021_v29, 1  ;;  %v8469_v48 = vrot.slane %v8468_v5, 1 }
 0x271   : > { %v8471_v63 = vrot.slane %v8470_v60, 1  ;;  %v3148_v56 = vrot.slane %v3022_v11, 1  ;;  %v3149_v43 = vrot.slane %v3023_v30, 1  ;;  %v3151_v46 = vrot.slane %v3024_v40, 1  ;;  %v8475_v30 = vld [vmem:[#allocation21_spill] sm:$0xff]  ;;  %v8476_v40 = vld [vmem:[#allocation40_spill] sm:$0xff] }
 0x272   : > { %v8472_v25 = vmov %v8469_v48  ;;  %v8474_v10 = vrot.slane %v8473_v2, 1  ;;  %v3127_v36 = vsel %vm1720_vm10, %v3124_v45, %v3126_v23  ;;  %v3130_v58 = vsel %vm1720_vm10, %v3128_v18, %v3129_v20  ;;  %v8478_v23 = vld [vmem:[#allocation70_spill] sm:$0xff] }
 0x273   : > { %v3120_v41 = vsel %vm1720_vm10, %v8471_v63, %v8469_v48  ;;  %v3122_v37 = vsel %vm1720_vm10, %v8472_v25, %v3121_v14  ;;  %v3132_v22 = vsel %vm1720_vm10, %v3129_v20, %v3131_v16  ;;  %v3135_v60 = vsel %vm1720_vm10, %v3133_v0, %v3134_v35  ;;  %v8477_v16 = vld [vmem:[#allocation5_spill] sm:$0xff] }
 0x274   : > { %v3125_v21 = vsel %vm1720_vm10, %v8474_v10, %v3124_v45  ;;  %v3137_v8 = vsel %vm1720_vm10, %v3134_v35, %v3136_v32  ;;  %v3140_v38 = vsel %vm1720_vm10, %v3138_v3, %v3139_v28  ;;  %v3142_v5 = vsel %vm1720_vm10, %v3139_v28, %v3141_v6  ;;  %v3228_v3 = vld [vmem:[#allocation2 + $0x9c] sm:$0xe]  ;;  %v3229_v28 = vld [vmem:[#allocation2 + $0xa8] sm:$0xe] }
 0x275   : > { %v3145_v29 = vsel %vm1720_vm10, %v3143_v15, %v3144_v26  ;;  %v3147_v11 = vsel %vm1720_vm10, %v3144_v26, %v3146_v55  ;;  %v3199_v34 = vadd.f32 %v8476_v40, %v8475_v30  ;;  %v3150_v45 = vsel %vm1720_vm10, %v3148_v56, %v3149_v43  ;;  %v3230_v15 = vld [vmem:[#allocation2 + $0xb4] sm:$0xe]  ;;  %v8479_v56 = vld [vmem:[#allocation19_spill] sm:$0xff] }
 0x276   : > { %v3152_v18 = vsel %vm1720_vm10, %v3149_v43, %v3151_v46  ;;  %v7474_v14 = vadd.f32 %v3112_v24, %v8477_v16  ;;  %v7477_v32 = vadd.f32 %v3115_v4, %v8478_v23  ;;  %v7480_v6 = vadd.f32 %v3117_v61, %v7351_v52  ;;  %v3231_v61 = vld [vmem:[#allocation2 + $0xc0] sm:$0xe]  ;;  %v8481_v46 = vld [vmem:[#allocation31_spill] sm:$0xff]  ;;  %v8494_v23 = vld [vmem:[#allocation14_spill] sm:$0xff] }
 0x277   : > { %v7483_v20 = vadd.f32 %v3120_v41, %v7354_v9  ;;  %v7486_v0 = vadd.f32 %v3122_v37, %v7356_v19  ;;  %v7489_v35 = vadd.f32 %v3125_v21, %v7358_v42  ;;  %v7492_v24 = vadd.f32 %v3127_v36, %v7364_v1  ;;  %v3232_v19 = vld [vmem:[#allocation2 + $0xcc] sm:$0xe] }
 0x278   : > { %v7495_v4 = vadd.f32 %v3130_v58, %v7366_v39  ;;  %v7498_v52 = vadd.f32 %v3132_v22, %v7368_v57  ;;  %v7501_v9 = vadd.f32 %v3135_v60, %v7373_v44  ;;  %v7504_v26 = vadd.f32 %v3137_v8, %v7375_v62 }
 0x279   : > { %v7507_v42 = vadd.f32 %v3140_v38, %v7377_v12  ;;  %v7510_v1 = vadd.f32 %v3142_v5, %v7382_v54  ;;  %v3244_v55 = vunpack.c.l.bf16 %v3228_v3  ;;  %v7513_v39 = vadd.f32 %v3145_v29, %v7384_v51  ;;  %v4962_v54 = vld [vmem:[%s8091_s3 + $0x8] ss:$0 sm:$0xff] }
 0x27a   : > { %v7516_v57 = vadd.f32 %v3147_v11, %v7388_v47  ;;  %v3245_v44 = vunpack.c.l.bf16 %v3229_v28  ;;  %v3246_v48 = vunpack.c.l.bf16 %v3230_v15  ;;  %v7519_v63 = vadd.f32 %v3150_v45, %v7390_v53  ;;  %v8491_v45 = vld [vmem:[#allocation35_spill] sm:$0xff]  ;;  %v8496_v15 = vld [vmem:[#allocation6_spill] sm:$0xff] }
 0x27b   : > { %v7522_v62 = vadd.f32 %v3152_v18, %v7392_v50  ;;  %v3247_v12 = vunpack.c.l.bf16 %v3231_v61  ;;  %v3248_v41 = vunpack.c.l.bf16 %v3232_v19  ;;  %v3278_v51 = vmul.f32 %v4962_v54, %v8444_v31 }
 0x27c   : > { %v8480_v43 = vunpack.c.l.bf16 %v8479_v56  ;;  %v8482_v25 = vunpack.c.l.bf16 %v8481_v46  ;;  %v3281_v53 = vmul.f32 %v4962_v54, %v8398_v27  ;;  %v8483_v2 = vunpack.c.l.bf16 %v7339_v7  ;;  %v8486_v7 = vld [vmem:[#allocation48_spill] sm:$0xff]  ;;  %v8501_v56 = vld [vmem:[#allocation63_spill] sm:$0xff] }
 0x27d   : > { %v3283_v10 = vmul.f32 %v4962_v54, %v3244_v55  ;;  %v3284_v21 = vmul.f32 %v4962_v54, %v8447_v49  ;;  %v8484_v36 = vunpack.c.l.bf16 %v7348_v33  ;;  %v3286_v22 = vmul.f32 %v4962_v54, %v3245_v44  ;;  %v8488_v33 = vld [vmem:[#allocation73_spill] sm:$0xff] }
 0x27e   : > { %v3279_v47 = vmul.f32 %v4962_v54, %v8480_v43  ;;  %v3280_v37 = vmul.f32 %v4962_v54, %v8482_v25  ;;  %v3282_v50 = vmul.f32 %v4962_v54, %v8483_v2  ;;  %v7539_v31 = vmul.f32 %v4962_v54, %v8402_v17  ;;  %v8489_v17 = vld [vmem:[#allocation33_spill] sm:$0xff] }
 0x27f   : > { %v3285_v58 = vmul.f32 %v4962_v54, %v8484_v36  ;;  %v8485_v60 = vunpack.c.l.bf16 %v7360_v13  ;;  %v7545_v38 = vmul.f32 %v4962_v54, %v3246_v48  ;;  %v7548_v27 = vmul.f32 %v4962_v54, %v7312_v59  ;;  %v8492_v59 = vld [vmem:[#allocation15_spill] sm:$0xff]  ;;  %v8499_v44 = vld [vmem:[#allocation13_spill] sm:$0xff] }
 0x280   : > { %v8487_v5 = vunpack.c.l.bf16 %v8486_v7  ;;  %v7554_v49 = vmul.f32 %v4962_v54, %v3247_v12  ;;  %v7557_v11 = vmul.f32 %v4962_v54, %v8488_v33  ;;  %v8490_v30 = vunpack.c.l.bf16 %v8489_v17  ;;  %v7584_v33 = vld [vmem:[%s8092_s4] ss:$0 sm:$0xff]  ;;  %v8502_v17 = vld [vmem:[#allocation57_spill] sm:$0xff] }
 0x281   : > { %v7543_v8 = vmul.f32 %v4962_v54, %v8485_v60  ;;  %v7563_v13 = vmul.f32 %v4962_v54, %v3248_v41  ;;  %v7566_v18 = vmul.f32 %v4962_v54, %v8491_v45  ;;  %v8493_v16 = vrot.slane %v8492_v59, 2  ;;  %v8500_v41 = vld [vmem:[#allocation62_spill] sm:$0xff] }
 0x282   : > { %v7552_v29 = vmul.f32 %v4962_v54, %v8487_v5  ;;  %v7561_v40 = vmul.f32 %v4962_v54, %v8490_v30  ;;  %v8495_v3 = vrot.slane %v8494_v23, 2  ;;  %v8497_v61 = vrot.slane %v8496_v15, 2  ;;  %v8510_v23 = vld [vmem:[#allocation71_spill] sm:$0xff] }
 0x283   : > { %v8498_v19 = vmov %v8493_v16  ;;  %v3391_v48 = vrot.slane %v8499_v44, 2  ;;  %v3392_v12 = vrot.slane %v3278_v51, 2  ;;  %v3471_v43 = vadd.f32 %v8501_v56, %v8500_v41  ;;  %v8503_v51 = vld [vmem:[#allocation56_spill] sm:$0xff] }
 0x284   : > { %v3383_v28 = vsel %vm1994_vm11, %v8495_v3, %v8493_v16  ;;  %v3385_v55 = vsel %vm1994_vm11, %v8498_v19, %v8497_v61  ;;  %v3394_v46 = vrot.slane %v3279_v47, 2  ;;  %v3396_v25 = vrot.slane %v3280_v37, 2  ;;  %v8505_v47 = vld [vmem:[#allocation68_spill] sm:$0xff] }
 0x285   : > { %v3397_v2 = vrot.slane %v3281_v53, 2  ;;  %v3472_v36 = vadd.f32 %v3383_v28, %v3199_v34  ;;  %v3399_v60 = vrot.slane %v3282_v50, 2  ;;  %v3401_v7 = vrot.slane %v3283_v10, 2  ;;  %v8507_v53 = vld [vmem:[#allocation41_spill] sm:$0xff] }
 0x286   : > { %v3402_v5 = vrot.slane %v3284_v21, 2  ;;  %v7588_v30 = vadd.f32 %v7584_v33, %v8502_v17  ;;  %v8504_v45 = vunpack.c.l.bf16 %v8503_v51  ;;  %v8506_v37 = vrot.slane %v8505_v47, 2  ;;  %v8509_v21 = vld [vmem:[#allocation64_spill] sm:$0xff] }
 0x287   : > { %v8508_v34 = vrot.slane %v8507_v53, 2  ;;  %v3473_v10 = vadd.f32 %v3385_v55, %v7474_v14  ;;  %v7602_v16 = vadd.f32 %v7584_v33, %v8509_v21  ;;  %v8511_v3 = vrot.slane %v8510_v23, 2 }
 0x288   : > { %v7592_v59 = vmul.f32 %v4962_v54, %v8504_v45  ;;  %v8512_v28 = vmov %v8506_v37  ;;  %v3404_v54 = vrot.slane %v3285_v58, 2  ;;  %v7611_v19 = vadd.f32 %v7584_v33, %v3471_v43 }
 0x289   : > { %v3388_v50 = vsel %vm1994_vm11, %v8508_v34, %v8506_v37  ;;  %v3390_v15 = vsel %vm1994_vm11, %v8512_v28, %v8511_v3  ;;  %v3393_v44 = vsel %vm1994_vm11, %v3391_v48, %v3392_v12  ;;  %v3395_v14 = vsel %vm1994_vm11, %v3392_v12, %v3394_v46 }
 0x28a   : > { %v3474_v61 = vadd.f32 %v3388_v50, %v7477_v32  ;;  %v3398_v55 = vsel %vm1994_vm11, %v3396_v25, %v3397_v2  ;;  %v7617_v41 = vadd.f32 %v7584_v33, %v3472_v36  ;;  %v3400_v56 = vsel %vm1994_vm11, %v3397_v2, %v3399_v60 }
 0x28b   : > { %v3403_v17 = vsel %vm1994_vm11, %v3401_v7, %v3402_v5  ;;  %v3406_v51 = vrot.slane %v3286_v22, 2  ;;  %v3537_v58 = vsub.f32 0.0, %v7588_v30  ;;  %v3407_v32 = vrot.slane %v7539_v31, 2 }
 0x28c   : > { %v3475_v43 = vadd.f32 %v3390_v15, %v7480_v6  ;;  %v7625_v48 = vadd.f32 %v7584_v33, %v3473_v10  ;;  %v3538_v12 = vsub.f32 0.0, %v7602_v16  ;;  %v3405_v46 = vsel %vm1994_vm11, %v3402_v5, %v3404_v54 }
 0x28d   : > { %v3476_v25 = vadd.f32 %v3393_v44, %v7483_v20  ;;  %v7631_v2 = vadd.f32 %v7584_v33, %v3474_v61  ;;  %v3539_v22 = vsub.f32 0.0, %v7611_v19  ;;  %v3409_v36 = vrot.slane %v7543_v8, 2 }
 0x28e   : > { %v3411_v31 = vrot.slane %v7545_v38, 2  ;;  %v3477_v6 = vadd.f32 %v3395_v14, %v7486_v0  ;;  %v3540_v60 = vsub.f32 0.0, %v7617_v41  ;;  %v3412_v7 = vrot.slane %v7548_v27, 2 }
 0x28f   : > { %v3414_v45 = vrot.slane %v7552_v29, 2  ;;  %v3478_v5 = vadd.f32 %v3398_v55, %v7489_v35  ;;  %v3580_v20 = vmul.f32 1.442695, %v3537_v58  ;;  %v3408_v47 = vsel %vm1994_vm11, %v3406_v51, %v3407_v32 }
 0x290   : > { %v7643_v37 = vadd.f32 %v7584_v33, %v3475_v43  ;;  %v3541_v8 = vsub.f32 0.0, %v7625_v48  ;;  %v3582_v53 = vmul.f32 1.442695, %v3538_v12  ;;  %v3416_v38 = vrot.slane %v7554_v49, 2 }
 0x291   : > { %v7648_v0 = vadd.f32 %v7584_v33, %v3476_v25  ;;  %v3542_v27 = vsub.f32 0.0, %v7631_v2  ;;  %v3584_v34 = vmul.f32 1.442695, %v3539_v22  ;;  %v3417_v29 = vrot.slane %v7557_v11, 2 }
 0x292   : > { %v3419_v35 = vrot.slane %v7561_v40, 2  ;;  %v7654_v50 = vadd.f32 %v7584_v33, %v3477_v6  ;;  %v3586_v10 = vmul.f32 1.442695, %v3540_v60  ;;  %v3410_v21 = vsel %vm1994_vm11, %v3407_v32, %v3409_v36 }
 0x293   : > { %v3421_v23 = vrot.slane %v7563_v13, 2  ;;  %v7659_v49 = vadd.f32 %v7584_v33, %v3478_v5  ;;  %4863 = vpow2.f32 %v3580_v20  ;;  %v3479_v3 = vadd.f32 %v3400_v56, %v7492_v24 }
 0x294   : > { %v3543_v28 = vsub.f32 0.0, %v7643_v37  ;;  %4865 = vpow2.f32 %v3582_v53  ;;  %v3588_v11 = vmul.f32 1.442695, %v3541_v8  ;;  %v3422_v40 = vrot.slane %v7566_v18, 2 }
 0x295   : > { %v3544_v15 = vsub.f32 0.0, %v7648_v0  ;;  %4867 = vpow2.f32 %v3584_v34  ;;  %v3590_v54 = vmul.f32 1.442695, %v3542_v27  ;;  %v3413_v61 = vsel %vm1994_vm11, %v3411_v31, %v3412_v7 }
 0x296   : > { %v3424_v13 = vrot.slane %v7592_v59, 2  ;;  %v3545_v44 = vsub.f32 0.0, %v7654_v50  ;;  %4869 = vpow2.f32 %v3586_v10  ;;  %v3415_v14 = vsel %vm1994_vm11, %v3412_v7, %v3414_v45  ;;  %v8515_v10 = vld [vmem:[#allocation7_spill] sm:$0xff] }
 0x297   : > { %v3418_v24 = vsel %vm1994_vm11, %v3416_v38, %v3417_v29  ;;  %v3480_v55 = vadd.f32 %v3403_v17, %v7495_v4  ;;  %v3546_v56 = vsub.f32 0.0, %v7659_v49  ;;  %v3481_v18 = vadd.f32 %v3405_v46, %v7498_v52 }
 0x298   : > { %v7674_v51 = vadd.f32 %v7584_v33, %v3479_v3  ;;  %4871 = vpow2.f32 %v3588_v11  ;;  %v3592_v58 = vmul.f32 1.442695, %v3543_v28  ;;  %v3420_v59 = vsel %vm1994_vm11, %v3417_v29, %v3419_v35  ;;  %v8516_v28 = vld [vmem:[#allocation52_spill] sm:$0xff] }
 0x299   : > { %v4864_v32 = vpop.eup %4863  ;;  %v3423_v43 = vsel %vm1994_vm11, %v3421_v23, %v3422_v40  ;;  %4873 = vpow2.f32 %v3590_v54  ;;  %v3594_v12 = vmul.f32 1.442695, %v3544_v15  ;;  %v3425_v22 = vsel %vm1994_vm11, %v3422_v40, %v3424_v13  ;;  %v8517_v11 = vld [vmem:[#allocation36_spill] sm:$0xff]  ;;  %v8518_v15 = vld [vmem:[#allocation18_spill] sm:$0xff]  ;;  %v8519_v54 = vld [vmem:[#allocation61_spill] sm:$0xff] }
 0x29a   : > { %v4866_v25 = vpop.eup %4865  ;;  %v3482_v4 = vadd.f32 %v3408_v47, %v7501_v9  ;;  %v3483_v17 = vadd.f32 %v3410_v21, %v7504_v26  ;;  %v3596_v52 = vmul.f32 1.442695, %v3545_v44  ;;  %v3484_v36 = vadd.f32 %v3413_v61, %v7507_v42  ;;  %v8513_v47 = vld [vmem:[#allocation54_spill] sm:$0xff]  ;;  %v8514_v42 = vld [vmem:[#allocation55_spill] sm:$0xff] }
 0x29b   : > { %v4868_v46 = vpop.eup %4867  ;;  %v3485_v31 = vadd.f32 %v3415_v14, %v7510_v1  ;;  %v7684_v6 = vadd.f32 %v7584_v33, %v3480_v55  ;;  %v3598_v60 = vmul.f32 1.442695, %v3546_v56  ;;  %v7687_v45 = vadd.f32 %v7584_v33, %v3481_v18 }
 0x29c   : > { %v4870_v7 = vpop.eup %4869  ;;  %v3547_v5 = vsub.f32 0.0, %v7674_v51  ;;  %4875 = vpow2.f32 %v3592_v58  ;;  %v3633_v9 = vadd.f32 1.0, %v4864_v32  ;;  %v3486_v26 = vadd.f32 %v3418_v24, %v7513_v39 }
 0x29d   : > { %4877 = vpow2.f32 %v3594_v12  ;;  %v3634_v20 = vadd.f32 1.0, %v4866_v25  ;;  %v3724_v8 = vadd.f32 %v8514_v42, %v8513_v47  ;;  %v3487_v53 = vadd.f32 %v3420_v59, %v7516_v57 }
 0x29e   : > { %v4872_v1 = vpop.eup %4871  ;;  %v7695_v38 = vadd.f32 %v7584_v33, %v3482_v4  ;;  %4879 = vpow2.f32 %v3596_v52  ;;  %v3635_v27 = vadd.f32 1.0, %v4868_v46  ;;  %v3548_v29 = vsub.f32 0.0, %v7684_v6 }
 0x29f   : > { %v4874_v34 = vpop.eup %4873  ;;  %4881 = vpow2.f32 %v3598_v60  ;;  %v3636_v35 = vadd.f32 1.0, %v4870_v7  ;;  %v3725_v39 = vadd.f32 %v3724_v8, %v8515_v10  ;;  %v7700_v21 = vadd.f32 %v7584_v33, %v3483_v17 }
 0x2a0   : > { %v3549_v23 = vsub.f32 0.0, %v7687_v45  ;;  %v3600_v3 = vmul.f32 1.442695, %v3547_v5  ;;  %4883 = vrcp.f32 %v3633_v9  ;;  %v3637_v57 = vadd.f32 1.0, %v4872_v1 }
 0x2a1   : > { %4885 = vrcp.f32 %v3634_v20  ;;  %v7705_v40 = vmul.f32 %v8517_v11, %v8516_v28  ;;  %v7709_v61 = vmul.f32 %v8519_v54, %v8518_v15  ;;  %v3488_v44 = vadd.f32 %v3423_v43, %v7519_v63 }
 0x2a2   : > { %v4876_v13 = vpop.eup %4875  ;;  %v7713_v14 = vadd.f32 %v7584_v33, %v3484_v36  ;;  %v3638_v24 = vadd.f32 1.0, %v4874_v34  ;;  %4887 = vrcp.f32 %v3635_v27  ;;  %v3550_v56 = vsub.f32 0.0, %v7695_v38 }
 0x2a3   : > { %v4878_v55 = vpop.eup %4877  ;;  %v3602_v18 = vmul.f32 1.442695, %v3548_v29  ;;  %4889 = vrcp.f32 %v3636_v35  ;;  %v3726_v58 = vadd.f32 %v3725_v39, %v7705_v40  ;;  %v3489_v59 = vadd.f32 %v3425_v22, %v7522_v62 }
 0x2a4   : > { %v4880_v32 = vpop.eup %4879  ;;  %v3551_v12 = vsub.f32 0.0, %v7700_v21  ;;  %4891 = vpow2.f32 %v3600_v3  ;;  %v3604_v25 = vmul.f32 1.442695, %v3549_v23  ;;  %v7720_v43 = vadd.f32 %v7584_v33, %v3485_v31 }
 0x2a5   : > { %v4882_v63 = vpop.eup %4881  ;;  %v3639_v4 = vadd.f32 1.0, %v4876_v13  ;;  %4893 = vrcp.f32 %v3637_v57  ;;  %v3727_v17 = vadd.f32 %v3726_v58, %v7709_v61  ;;  %v7724_v46 = vadd.f32 %v7584_v33, %v3486_v26 }
 0x2a6   : > { %v4884_v52 = vpop.eup %4883  ;;  %v3552_v36 = vsub.f32 0.0, %v7713_v14  ;;  %v3640_v60 = vadd.f32 1.0, %v4878_v55  ;;  %4895 = vrcp.f32 %v3638_v24  ;;  %v7728_v22 = vadd.f32 %v7584_v33, %v3487_v53 }
 0x2a7   : > { %v4886_v62 = vpop.eup %4885  ;;  %4897 = vpow2.f32 %v3602_v18  ;;  %v3606_v7 = vmul.f32 1.442695, %v3550_v56  ;;  %v7731_v31 = vmul.f32 %v4884_v52, %v7588_v30  ;;  %v7734_v9 = vadd.f32 %v7584_v33, %v3488_v44 }
 0x2a8   : > { %v4888_v5 = vpop.eup %4887  ;;  %4899 = vpow2.f32 %v3604_v25  ;;  %v3608_v26 = vmul.f32 1.442695, %v3551_v12  ;;  %v7737_v20 = vmul.f32 %v4886_v62, %v7602_v16  ;;  %v3553_v8 = vsub.f32 0.0, %v7720_v43 }
 0x2a9   : > { %v4890_v42 = vpop.eup %4889  ;;  %v3641_v1 = vadd.f32 1.0, %v4880_v32  ;;  %4901 = vrcp.f32 %v3639_v4  ;;  %v3728_v53 = vadd.f32 %v3727_v17, %v7731_v31  ;;  %v3554_v30 = vsub.f32 0.0, %v7724_v46 }
 0x2aa   : > { %v4892_v27 = vpop.eup %4891  ;;  %v3610_v34 = vmul.f32 1.442695, %v3552_v36  ;;  %v3642_v29 = vadd.f32 1.0, %v4882_v63  ;;  %4903 = vrcp.f32 %v3640_v60  ;;  %v7743_v39 = vmul.f32 %v4888_v5, %v7611_v19 }
 0x2ab   : > { %v4894_v35 = vpop.eup %4893  ;;  %4905 = vpow2.f32 %v3606_v7  ;;  %v7746_v16 = vmul.f32 %v4890_v42, %v7617_v41  ;;  %v3729_v23 = vadd.f32 %v3728_v53, %v7737_v20  ;;  %v7750_v57 = vadd.f32 %v7584_v33, %v3489_v59 }
 0x2ac   : > { %v4896_v3 = vpop.eup %4895  ;;  %4907 = vpow2.f32 %v3608_v26  ;;  %v3555_v11 = vsub.f32 0.0, %v7728_v22  ;;  %v3612_v15 = vmul.f32 1.442695, %v3553_v8  ;;  %v3556_v19 = vsub.f32 0.0, %v7734_v9 }
 0x2ad   : > { %v4898_v28 = vpop.eup %4897  ;;  %4909 = vrcp.f32 %v3641_v1  ;;  %v3730_v54 = vadd.f32 %v3729_v23, %v7743_v39  ;;  %v3614_v44 = vmul.f32 1.442695, %v3554_v30  ;;  %v3643_v41 = vadd.f32 1.0, %v4892_v27 }
 0x2ae   : > { %v4900_v13 = vpop.eup %4899  ;;  %4911 = vrcp.f32 %v3642_v29  ;;  %v7756_v55 = vmul.f32 %v4894_v35, %v7625_v48  ;;  %v7759_v33 = vmul.f32 %v4896_v3, %v7631_v2  ;;  %v3644_v58 = vadd.f32 1.0, %v4898_v28 }
 0x2af   : > { %v4902_v24 = vpop.eup %4901  ;;  %4913 = vpow2.f32 %v3610_v34  ;;  %v3731_v56 = vadd.f32 %v3730_v54, %v7746_v16  ;;  %v3557_v59 = vsub.f32 0.0, %v7750_v57  ;;  %v3616_v12 = vmul.f32 1.442695, %v3555_v11 }
 0x2b0   : > { %v4904_v18 = vpop.eup %4903  ;;  %4915 = vpow2.f32 %v3612_v15  ;;  %v3618_v4 = vmul.f32 1.442695, %v3556_v19  ;;  %v3645_v17 = vadd.f32 1.0, %v4900_v13  ;;  %v7765_v2 = vmul.f32 %v4902_v24, %v7643_v37 }
 0x2b1   : > { %v4906_v32 = vpop.eup %4905  ;;  %v3732_v25 = vadd.f32 %v3731_v56, %v7756_v55  ;;  %4917 = vrcp.f32 %v3643_v41  ;;  %v7768_v52 = vmul.f32 %v4904_v18, %v7648_v0  ;;  %v3620_v5 = vmul.f32 1.442695, %v3557_v59 }
 0x2b2   : > { %v4908_v63 = vpop.eup %4907  ;;  %4919 = vpow2.f32 %v3614_v44  ;;  %v3646_v62 = vadd.f32 1.0, %v4906_v32 }
 0x2b3   : > { %v4910_v48 = vpop.eup %4909  ;;  %v3733_v36 = vadd.f32 %v3732_v25, %v7759_v33  ;;  %4921 = vrcp.f32 %v3644_v58  ;;  %v3647_v42 = vadd.f32 1.0, %v4908_v63  ;;  %v4541_v25 = vld [vmem:[%s8095_s7 + $0x38] sm:$0xff] }
 0x2b4   : > { %v4912_v60 = vpop.eup %4911  ;;  %4923 = vpow2.f32 %v3616_v12  ;;  %v7773_v37 = vmul.f32 %v4910_v48, %v7654_v50  ;;  %3914 = vmatpush.bf16.msra.mxu2 %v4541_v25 }
 0x2b5   : > { %v4914_v7 = vpop.eup %4913  ;;  %v3734_v26 = vadd.f32 %v3733_v36, %v7765_v2  ;;  %4925 = vrcp.f32 %v3645_v17  ;;  %v7776_v0 = vmul.f32 %v4912_v60, %v7659_v49 }
 0x2b6   : > { %v4916_v8 = vpop.eup %4915  ;;  %4927 = vpow2.f32 %v3618_v4  ;;  %v3648_v27 = vadd.f32 1.0, %v4914_v7 }
 0x2b7   : > { %v3735_v1 = vadd.f32 %v3734_v26, %v7768_v52  ;;  %v4918_v53 = vpop.eup %4917  ;;  %4929 = vrcp.f32 %v3646_v62  ;;  %v3649_v35 = vadd.f32 1.0, %v4916_v8 }
 0x2b8   : > { %v4920_v30 = vpop.eup %4919  ;;  %4931 = vpow2.f32 %v3620_v5  ;;  %v7781_v3 = vmul.f32 %v4918_v53, %v7674_v51 }
 0x2b9   : > { %v3736_v34 = vadd.f32 %v3735_v1, %v7773_v37  ;;  %v4922_v29 = vpop.eup %4921  ;;  %4933 = vrcp.f32 %v3647_v42  ;;  %v3650_v28 = vadd.f32 1.0, %v4920_v30 }
 0x2ba   : > { %v4924_v23 = vpop.eup %4923  ;;  %4935 = vrcp.f32 %v3648_v27  ;;  %v7785_v15 = vmul.f32 %v4922_v29, %v7684_v6 }
 0x2bb   : > { %v3737_v50 = vadd.f32 %v3736_v34, %v7776_v0  ;;  %v4926_v49 = vpop.eup %4925  ;;  %v3651_v19 = vadd.f32 1.0, %v4924_v23  ;;  %4937 = vrcp.f32 %v3649_v35 }
 0x2bc   : > { %v4928_v11 = vpop.eup %4927  ;;  %v7789_v41 = vmul.f32 %v4926_v49, %v7687_v45  ;;  %4939 = vrcp.f32 %v3650_v28  ;;  %v4973_v45 = vmov 256.0  }
 0x2bd   : > { %v3738_v54 = vadd.f32 %v3737_v50, %v7781_v3  ;;  %v4930_v13 = vpop.eup %4929  ;;  %v3652_v56 = vadd.f32 1.0, %v4928_v11  ;;  %4941 = vrcp.f32 %v3651_v19  ;;  %v3780_v19 = vld [vmem:[%s8094_s6] sm:$0x1] }
 0x2be   : > { %v4932_v44 = vpop.eup %4931  ;;  %v7793_v18 = vmul.f32 %v4930_v13, %v7695_v38  ;;  %4943 = vrcp.f32 %v4973_v45  ;;  %v4539_v13 = vld [vmem:[%s8095_s7 + $0x28] sm:$0xff] }
 0x2bf   : > { %v3739_v51 = vadd.f32 %v3738_v54, %v7785_v15  ;;  %v4934_v24 = vpop.eup %4933  ;;  %v3653_v32 = vadd.f32 1.0, %v4932_v44  ;;  %4945 = vrcp.f32 %v3652_v56  ;;  %v4538_v44 = vld [vmem:[%s8095_s7 + $0x20] sm:$0xff]  ;;  %v4535_v45 = vld [vmem:[%s8095_s7 + $0x8] sm:$0xff] }
 0x2c0   : > { %v4936_v58 = vpop.eup %4935  ;;  %v7797_v59 = vmul.f32 %v4934_v24, %v7700_v21 }
 0x2c1   : > { %v3740_v6 = vadd.f32 %v3739_v51, %v7789_v41  ;;  %v4938_v63 = vpop.eup %4937  ;;  %v7804_v38 = vmul.f32 %v4936_v58, %v7713_v14  ;;  %4947 = vrcp.f32 %v3653_v32  ;;  %v4536_v32 = vld [vmem:[%s8095_s7 + $0x10] sm:$0xff] }
 0x2c2   : > { %v4940_v17 = vpop.eup %4939  ;;  %v7808_v21 = vmul.f32 %v4938_v63, %v7720_v43 }
 0x2c3   : > { %v3741_v12 = vadd.f32 %v3740_v6, %v7793_v18  ;;  %v4942_v36 = vpop.eup %4941  ;;  %v7812_v62 = vmul.f32 %v4940_v17, %v7724_v46  ;;  %v4537_v6 = vld [vmem:[%s8095_s7 + $0x18] sm:$0xff] }
 0x2c4   : > { %v4944_v60 = vpop.eup %4943  ;;  %v7816_v14 = vmul.f32 %v4942_v36, %v7728_v22 }
 0x2c5   : > { %v3742_v4 = vadd.f32 %v3741_v12, %v7797_v59  ;;  %v4946_v5 = vpop.eup %4945  ;;  %v3756_v8 = vmul.f32 256.0, %v4944_v60  ;;  %vm3760_vm12 = vweird.f32 %v4944_v60 }
 0x2c6   : > { %v7820_v43 = vmul.f32 %v4946_v5, %v7734_v9  ;;  %v4547_v5 = vld [vmem:[%s8097_s9 + $0x28] sm:$0xff] }
 0x2c7   : > { %v3743_v48 = vadd.f32 %v3742_v4, %v7804_v38  ;;  %v4948_v42 = vpop.eup %4947  ;;  %v3757_v27 = vsub.f32 1.0, %v3756_v8  ;;  %v4534_v4 = vld [vmem:[%s8095_s7] sm:$0xff] }
 0x2c8   : > { %v7824_v53 = vmul.f32 %v4948_v42, %v7750_v57  ;;  %v4540_v57 = vld [vmem:[%s8095_s7 + $0x30] sm:$0xff] }
 0x2c9   : > { %v3744_v7 = vadd.f32 %v3743_v48, %v7808_v21  ;;  %v3758_v22 = vmul.f32 %v4944_v60, %v3757_v27  ;;  %3915 = vmatpush.bf16.msra.mxu2 %v4540_v57 }
 0x2cb   : > { %v3745_v26 = vadd.f32 %v3744_v7, %v7812_v62  ;;  %v3759_v23 = vadd.f32 %v4944_v60, %v3758_v22  ;;  %v4548_v7 = vld [vmem:[%s8097_s9 + $0x30] sm:$0xff] }
 0x2cc   : > { %v4544_v22 = vld [vmem:[%s8097_s9 + $0x10] sm:$0xff] }
 0x2cd   : > { %v3746_v1 = vadd.f32 %v3745_v26, %v7816_v14  ;;  %v3761_v9 = vsel %vm3760_vm12, %v4944_v60, %v3759_v23  ;;  %3916 = vmatpush.bf16.msra.mxu2 %v4539_v13  ;;  %v4549_v60 = vld [vmem:[%s8097_s9 + $0x38] sm:$0xff]  ;;  %v3865_v26 = vld [vmem:[%s8096_s8] sm:$0x1] }
 0x2ce   : > { %4161 = vmatpush.bf16.msra.mxu1 %v4549_v60  ;;  %4669 = vmatpush.bf16.msra.mxu3 %v4549_v60 }
 0x2cf   : > { %v3747_v46 = vadd.f32 %v3746_v1, %v7820_v43  ;;  %v4546_v1 = vld [vmem:[%s8097_s9 + $0x20] sm:$0xff] }
 0x2d1   : > { %v3748_v30 = vadd.f32 %v3747_v46, %v7824_v53  ;;  %3917 = vmatpush.bf16.msra.mxu2 %v4538_v44 }
 0x2d2   : > { %4162 = vmatpush.bf16.msra.mxu1 %v4548_v7  ;;  %4670 = vmatpush.bf16.msra.mxu3 %v4548_v7 }
 0x2d3   : > { %v3749_v34 = vrot.slane %v3748_v30, 4 }
 0x2d5   : > { %v3750_v29 = vadd.f32 %v3749_v34, %v3748_v30  ;;  %3918 = vmatpush.bf16.msra.mxu2 %v4537_v6  ;;  %v4545_v30 = vld [vmem:[%s8097_s9 + $0x18] sm:$0xff] }
 0x2d6   : > { %4163 = vmatpush.bf16.msra.mxu1 %v4547_v5  ;;  %4671 = vmatpush.bf16.msra.mxu3 %v4547_v5 }
 0x2d7   : > { %v3751_v35 = vrot.slane %v3750_v29, 2 }
 0x2d9   : > { %v3752_v50 = vadd.f32 %v3751_v35, %v3750_v29  ;;  %3919 = vmatpush.bf16.msra.mxu2 %v4536_v32  ;;  %v4543_v35 = vld [vmem:[%s8097_s9 + $0x8] sm:$0xff] }
 0x2da   : > { %4164 = vmatpush.bf16.msra.mxu1 %v4546_v1  ;;  %4672 = vmatpush.bf16.msra.mxu3 %v4546_v1 }
 0x2db   : > { %v3753_v49 = vrot.slane %v3752_v50, 1 }
 0x2dd   : > { %v3754_v28 = vadd.f32 %v3753_v49, %v3752_v50  ;;  %3920 = vmatpush.bf16.msra.mxu2 %v4535_v45  ;;  %v4542_v50 = vld [vmem:[%s8097_s9] sm:$0xff] }
 0x2de   : > { %4165 = vmatpush.bf16.msra.mxu1 %v4545_v30  ;;  %4673 = vmatpush.bf16.msra.mxu3 %v4545_v30  ;;  %v8524_v30 = vld [vmem:[#allocation50_spill] sm:$0xff] }
 0x2df   : > { %v3762_v11 = vmul.f32 %v3761_v9, %v3754_v28  ;;  %v8520_v28 = vld [vmem:[#allocation28_spill] sm:$0xff] }
 0x2e1   : > { %v3763_v54 = vpack.c.bf16 %v3762_v11, %v3762_v11  ;;  %3921 = vmatpush.bf16.msra.mxu2 %v4534_v4 }
 0x2e2   : > { %4166 = vmatpush.bf16.msra.mxu1 %v4544_v22  ;;  %4674 = vmatpush.bf16.msra.mxu3 %v4544_v22  ;;  %v8525_v22 = vld [vmem:[#allocation51_spill] sm:$0xff] }
 0x2e3   : > { %3837 = vmatmul.bf16.vlgmr.msrb.gmra.mxu2 %v3763_v54  ;;  %v8521_v54 = vld [vmem:[#allocation29_spill] sm:$0xff] }
 0x2e6   : > { %4167 = vmatpush.bf16.msra.mxu1 %v4543_v35  ;;  %4675 = vmatpush.bf16.msra.mxu3 %v4543_v35 }
 0x2ea   : > { %4168 = vmatpush.bf16.msra.mxu1 %v4542_v50  ;;  %4676 = vmatpush.bf16.msra.mxu3 %v4542_v50 }
 0x366   : > { %v3838_v51 = vpop.f32.mrf.mxu2 }
 0x367   : > { %v3839_v24 = vadd.f32 %v3838_v51, %v3780_v19 }
 0x369   : > { %v3842_v56 = vsub.f32 0.0, %v3839_v24 }
 0x36b   : > { %v3843_v58 = vmul.f32 1.442695, %v3842_v56 }
 0x36d   : > { %4949 = vpow2.f32 %v3843_v58 }
 0x36e   : > { %v3840_v12 = vpop.f32.mrf.mxu2 }
 0x373   : > { %v4950_v25 = vpop.eup %4949 }
 0x374   : > { %v3845_v63 = vadd.f32 1.0, %v4950_v25 }
 0x376   : > { %4951 = vrcp.f32 %v3845_v63  ;;  %v8522_v63 = vld [vmem:[#allocation44_spill] sm:$0xff] }
 0x37c   : > { %v4952_v17 = vpop.eup %4951 }
 0x37d   : > { %v3847_v48 = vmul.f32 %v4952_v17, %v3839_v24  ;;  %v8523_v17 = vld [vmem:[#allocation46_spill] sm:$0xff] }
 0x37f   : > { %v3848_v36 = vpack.c.bf16 %v3847_v48, %v3847_v48 }
 0x381   : > { %3922 = vmatmul.bf16.vlgmr.msra.gmra.mxu2 %v3848_v36 }
 0x404   : > { %v3923_v42 = vpop.f32.mrf.mxu2 }
 0x405   : > { %v3924_v8 = vadd.f32 %v3923_v42, %v3865_v26 }
 0x407   : > { %v3927_v46 = vsub.f32 0.0, %v3924_v8 }
 0x409   : > { %v3928_v27 = vmul.f32 1.442695, %v3927_v46 }
 0x40b   : > { %4953 = vpow2.f32 %v3928_v27 }
 0x40c   : > { %v3925_v34 = vpop.f32.mrf.mxu2 }
 0x411   : > { %v4954_v29 = vpop.eup %4953 }
 0x412   : > { %v3930_v23 = vadd.f32 1.0, %v4954_v29 }
 0x414   : > { %4955 = vrcp.f32 %v3930_v23 }
 0x41a   : > { %v4956_v49 = vpop.eup %4955 }
 0x41b   : > { %v7879_v9 = vperm.slane %v4956_v49, 0 }
 0x41d   : > { %v3933_v11 = vmul.f32 %v7879_v9, %v8520_v28  ;;  %v3934_v57 = vmul.f32 %v7879_v9, %v8521_v54  ;;  %v3949_v13 = vmul.f32 %v7879_v9, %v7759_v33  ;;  %v3950_v19 = vmul.f32 %v7879_v9, %v7765_v2 }
 0x41e   : > { %v3935_v4 = vmul.f32 %v7879_v9, %v8522_v63  ;;  %v3936_v33 = vmul.f32 %v7879_v9, %v8523_v17  ;;  %v3951_v2 = vmul.f32 %v7879_v9, %v7768_v52  ;;  %v3952_v48 = vmul.f32 %v7879_v9, %v7773_v37 }
 0x41f   : > { %v3965_v44 = vpack.c.bf16 %v3933_v11, %v3933_v11  ;;  %v3966_v51 = vpack.c.bf16 %v3934_v57, %v3934_v57  ;;  %v3981_v24 = vpack.c.bf16 %v3949_v13, %v3949_v13  ;;  %v3982_v56 = vpack.c.bf16 %v3950_v19, %v3950_v19 }
 0x420   : > { %v3967_v36 = vpack.c.bf16 %v3935_v4, %v3935_v4  ;;  %v3968_v60 = vpack.c.bf16 %v3936_v33, %v3936_v33  ;;  %v3983_v7 = vpack.c.bf16 %v3951_v2, %v3951_v2  ;;  %v3984_v5 = vpack.c.bf16 %v3952_v48, %v3952_v48 }
 0x421   : > { %v4049_v6 = vunpack.c.l.b16 %v3965_v44  ;;  %v4050_v58 = vunpack.c.l.b16 %v3966_v51  ;;  %v4065_v32 = vunpack.c.l.b16 %v3981_v24  ;;  %v4066_v12 = vunpack.c.l.b16 %v3982_v56  ;;  %v8526_v44 = vld [vmem:[#allocation53_spill] sm:$0xff] }
 0x422   : > { %v4051_v26 = vunpack.c.l.b16 %v3967_v36  ;;  %v4052_v42 = vunpack.c.l.b16 %v3968_v60  ;;  %v4067_v8 = vunpack.c.l.b16 %v3983_v7  ;;  %v4068_v1 = vunpack.c.l.b16 %v3984_v5 }
 0x423   : > { %v4081_v45 = vpack.c.b16 %v4050_v58, %v4049_v6  ;;  %v4089_v25 = vpack.c.b16 %v4066_v12, %v4065_v32  ;;  %v3937_v34 = vmul.f32 %v7879_v9, %v8524_v30  ;;  %v3938_v52 = vmul.f32 %v7879_v9, %v8525_v22 }
 0x424   : > { %v4082_v46 = vpack.c.b16 %v4052_v42, %v4051_v26  ;;  %v4090_v27 = vpack.c.b16 %v4068_v1, %v4067_v8  ;;  %v3953_v37 = vmul.f32 %v7879_v9, %v7776_v0  ;;  %v3954_v29 = vmul.f32 %v7879_v9, %v7781_v3 }
 0x425   : > { %4169 = vmatmul.bf16.vlgmr.msra.gmra.mxu1 %v4081_v45  ;;  %4209 = vmatmul.bf16.vlgmr.msra.gmra.mxu3 %v4089_v25  ;;  %v3969_v35 = vpack.c.bf16 %v3937_v34, %v3937_v34  ;;  %v3970_v23 = vpack.c.bf16 %v3938_v52, %v3938_v52  ;;  %v3939_v51 = vmul.f32 %v7879_v9, %v8526_v44 }
 0x426   : > { %v3985_v50 = vpack.c.bf16 %v3953_v37, %v3953_v37  ;;  %v3986_v49 = vpack.c.bf16 %v3954_v29, %v3954_v29  ;;  %v3940_v0 = vmul.f32 %v7879_v9, %v8513_v47  ;;  %v3955_v3 = vmul.f32 %v7879_v9, %v7785_v15 }
 0x427   : > { %v4053_v28 = vunpack.c.l.b16 %v3969_v35  ;;  %v4054_v11 = vunpack.c.l.b16 %v3970_v23  ;;  %v3956_v24 = vmul.f32 %v7879_v9, %v7789_v41  ;;  %v3971_v56 = vpack.c.bf16 %v3939_v51, %v3939_v51 }
 0x428   : > { %v4069_v54 = vunpack.c.l.b16 %v3985_v50  ;;  %v4070_v57 = vunpack.c.l.b16 %v3986_v49  ;;  %v3972_v6 = vpack.c.bf16 %v3940_v0, %v3940_v0  ;;  %v3987_v58 = vpack.c.bf16 %v3955_v3, %v3955_v3 }
 0x429   : > { %v4083_v13 = vpack.c.b16 %v4054_v11, %v4053_v28  ;;  %v3988_v32 = vpack.c.bf16 %v3956_v24, %v3956_v24  ;;  %v4055_v12 = vunpack.c.l.b16 %v3971_v56  ;;  %v3941_v47 = vmul.f32 %v7879_v9, %v8515_v10 }
 0x42a   : > { %v4091_v19 = vpack.c.b16 %v4070_v57, %v4069_v54  ;;  %v4056_v45 = vunpack.c.l.b16 %v3972_v6  ;;  %v4071_v25 = vunpack.c.l.b16 %v3987_v58  ;;  %v3942_v15 = vmul.f32 %v7879_v9, %v7705_v40 }
 0x42b   : > { %v4072_v63 = vunpack.c.l.b16 %v3988_v32  ;;  %v3957_v41 = vmul.f32 %v7879_v9, %v7793_v18  ;;  %v3958_v33 = vmul.f32 %v7879_v9, %v7797_v59  ;;  %v3973_v2 = vpack.c.bf16 %v3941_v47, %v3941_v47 }
 0x42c   : > { %v4084_v4 = vpack.c.b16 %v4056_v45, %v4055_v12  ;;  %v3974_v48 = vpack.c.bf16 %v3942_v15, %v3942_v15  ;;  %v3943_v10 = vmul.f32 %v7879_v9, %v7709_v61  ;;  %v3944_v40 = vmul.f32 %v7879_v9, %v7731_v31  ;;  %v4251_v15 = vld [vmem:[%s5054_s24 + $0x8] sm:$0xff] }
 0x42d   : > { %v4092_v17 = vpack.c.b16 %v4072_v63, %v4071_v25  ;;  %v3989_v36 = vpack.c.bf16 %v3957_v41, %v3957_v41  ;;  %v3990_v60 = vpack.c.bf16 %v3958_v33, %v3958_v33  ;;  %v4057_v7 = vunpack.c.l.b16 %v3973_v2 }
 0x42e   : > { %v4058_v5 = vunpack.c.l.b16 %v3974_v48  ;;  %v3959_v18 = vmul.f32 %v7879_v9, %v7804_v38  ;;  %v3960_v59 = vmul.f32 %v7879_v9, %v7808_v21  ;;  %v3945_v61 = vmul.f32 %v7879_v9, %v7737_v20 }
 0x42f   : > { %v4073_v26 = vunpack.c.l.b16 %v3989_v36  ;;  %v4074_v42 = vunpack.c.l.b16 %v3990_v60  ;;  %v3946_v31 = vmul.f32 %v7879_v9, %v7743_v39  ;;  %v3961_v38 = vmul.f32 %v7879_v9, %v7812_v62  ;;  %v4267_v36 = vld [vmem:[%s5054_s24 + $0x88] sm:$0xff] }
 0x430   : > { %v4085_v8 = vpack.c.b16 %v4058_v5, %v4057_v7  ;;  %v3991_v30 = vpack.c.bf16 %v3959_v18, %v3959_v18  ;;  %v3992_v34 = vpack.c.bf16 %v3960_v59, %v3960_v59  ;;  %v3962_v21 = vmul.f32 %v7879_v9, %v7816_v14  ;;  %v4252_v5 = vld [vmem:[%s5054_s24 + $0x10] sm:$0xff]  ;;  %v4253_v59 = vld [vmem:[%s5054_s24 + $0x18] sm:$0xff] }
 0x431   : > { %v4093_v1 = vpack.c.b16 %v4074_v42, %v4073_v26  ;;  %v3977_v50 = vpack.c.bf16 %v3945_v61, %v3945_v61  ;;  %v3978_v49 = vpack.c.bf16 %v3946_v31, %v3946_v31  ;;  %v3993_v28 = vpack.c.bf16 %v3961_v38, %v3961_v38  ;;  %v4270_v38 = vld [vmem:[%s5054_s24 + $0xa0] sm:$0xff] }
 0x432   : > { %v4075_v37 = vunpack.c.l.b16 %v3991_v30  ;;  %v4076_v29 = vunpack.c.l.b16 %v3992_v34  ;;  %v3994_v11 = vpack.c.bf16 %v3962_v21, %v3962_v21  ;;  %v3947_v20 = vmul.f32 %v7879_v9, %v7746_v16 }
 0x433   : > { %v4061_v54 = vunpack.c.l.b16 %v3977_v50  ;;  %v4062_v57 = vunpack.c.l.b16 %v3978_v49  ;;  %v3948_v39 = vmul.f32 %v7879_v9, %v7756_v55  ;;  %v3963_v62 = vmul.f32 %v7879_v9, %v7820_v43  ;;  %v7948_v43 = vld [vmem:[%s8098_s10] ss:$0 sm:$0xff]  ;;  %v4255_v49 = vld [vmem:[%s5054_s24 + $0x28] sm:$0xff] }
 0x434   : > { %v4094_v23 = vpack.c.b16 %v4076_v29, %v4075_v37  ;;  %v3964_v14 = vmul.f32 %v7879_v9, %v7824_v53  ;;  %v3979_v0 = vpack.c.bf16 %v3947_v20, %v3947_v20  ;;  %v4250_v9 = vld [vmem:[%s5054_s24] sm:$0xff] }
 0x435   : > { %4174 = vmatmul.bf16.gmra.mxu1 %v4082_v46  ;;  %4214 = vmatmul.bf16.gmra.mxu3 %v4090_v27  ;;  %v3975_v46 = vpack.c.bf16 %v3943_v10, %v3943_v10  ;;  %v3976_v27 = vpack.c.bf16 %v3944_v40, %v3944_v40  ;;  %v4087_v44 = vpack.c.b16 %v4062_v57, %v4061_v54  ;;  %v4268_v10 = vld [vmem:[%s5054_s24 + $0x90] sm:$0xff]  ;;  %v4254_v29 = vld [vmem:[%s5054_s24 + $0x20] sm:$0xff] }
 0x436   : > { %v3980_v3 = vpack.c.bf16 %v3948_v39, %v3948_v39  ;;  %v3995_v24 = vpack.c.bf16 %v3963_v62, %v3963_v62  ;;  %v3996_v56 = vpack.c.bf16 %v3964_v14, %v3964_v14  ;;  %v4063_v6 = vunpack.c.l.b16 %v3979_v0  ;;  %v4272_v0 = vld [vmem:[%s5054_s24 + $0xb0] sm:$0xff] }
 0x437   : > { %v4059_v22 = vunpack.c.l.b16 %v3975_v46  ;;  %v4060_v52 = vunpack.c.l.b16 %v3976_v27 }
 0x438   : > { %v4064_v58 = vunpack.c.l.b16 %v3980_v3  ;;  %v4079_v32 = vunpack.c.l.b16 %v3995_v24  ;;  %v4080_v16 = vunpack.c.l.b16 %v3996_v56  ;;  %v4257_v56 = vld [vmem:[%s5054_s24 + $0x38] sm:$0xff] }
 0x439   : > { %v4086_v35 = vpack.c.b16 %v4060_v52, %v4059_v22  ;;  %v4269_v22 = vld [vmem:[%s5054_s24 + $0x98] sm:$0xff] }
 0x43a   : > { %v4088_v12 = vpack.c.b16 %v4064_v58, %v4063_v6  ;;  %v4096_v55 = vpack.c.b16 %v4080_v16, %v4079_v32 }
 0x445   : > { %4179 = vmatmul.bf16.gmra.mxu1 %v4083_v13  ;;  %4219 = vmatmul.bf16.gmra.mxu3 %v4091_v19  ;;  %v4077_v13 = vunpack.c.l.b16 %v3993_v28  ;;  %v4078_v19 = vunpack.c.l.b16 %v3994_v11 }
 0x447   : > { %v4095_v51 = vpack.c.b16 %v4078_v19, %v4077_v13  ;;  %v4271_v13 = vld [vmem:[%s5054_s24 + $0xa8] sm:$0xff] }
 0x455   : > { %4184 = vmatmul.bf16.gmra.mxu1 %v4084_v4  ;;  %4224 = vmatmul.bf16.gmra.mxu3 %v4092_v17  ;;  %v4266_v4 = vld [vmem:[%s5054_s24 + $0x80] sm:$0xff] }
 0x465   : > { %4189 = vmatmul.bf16.gmra.mxu1 %v4085_v8  ;;  %4229 = vmatmul.bf16.gmra.mxu3 %v4093_v1 }
 0x475   : > { %4194 = vmatmul.bf16.gmra.mxu1 %v4086_v35  ;;  %4234 = vmatmul.bf16.gmra.mxu3 %v4094_v23 }
 0x485   : > { %4199 = vmatmul.bf16.gmra.mxu1 %v4087_v44  ;;  %4239 = vmatmul.bf16.gmra.mxu3 %v4095_v51  ;;  %v4256_v51 = vld [vmem:[%s5054_s24 + $0x30] sm:$0xff] }
 0x495   : > { %4204 = vmatmul.bf16.gmra.mxu1 %v4088_v12  ;;  %4244 = vmatmul.bf16.gmra.mxu3 %v4096_v55  ;;  %v4273_v12 = vld [vmem:[%s5054_s24 + $0xb8] sm:$0xff] }
 0x4a2   : > { %v4170_v53 = vpop.f32.mrf.mxu1 }
 0x4a3   : > { %v4171_v45 = vadd.f32 %v7948_v43, %v4170_v53 }
 0x4a5   : > { %v4282_v25 = vadd.f32 %v4250_v9, %v4171_v45  ;;  %v4258_v9 = vld [vmem:[%s5054_s24 + $0x40] sm:$0xff] }
 0x4a7   : > { %4314 = vst.msk [vmem:[%s7957_s28] sm:$0xff] %vm537_vm1, %v4282_v25 }
 0x4a8   : > { %v4210_v63 = vpop.f32.mrf.mxu3 }
 0x4a9   : > { %v4211_v17 = vadd.f32 %v7948_v43, %v4210_v63 }
 0x4aa   : > { %v4172_v47 = vpop.f32.mrf.mxu1 }
 0x4ab   : > { %v4298_v41 = vadd.f32 %v4266_v4, %v4211_v17  ;;  %v4173_v33 = vadd.f32 %v7948_v43, %v4172_v47  ;;  %v4274_v17 = vld [vmem:[%s5054_s24 + $0xc0] sm:$0xff] }
 0x4ad   : > { %4330 = vst.msk [vmem:[%s7957_s28 + $0x80] sm:$0xff] %vm537_vm1, %v4298_v41  ;;  %v4283_v2 = vadd.f32 %v4251_v15, %v4173_v33  ;;  %v4259_v41 = vld [vmem:[%s5054_s24 + $0x48] sm:$0xff] }
 0x4af   : > { %4315 = vst.msk [vmem:[%s7957_s28 + $0x8] sm:$0xff] %vm537_vm1, %v4283_v2 }
 0x4b0   : > { %v4212_v48 = vpop.f32.mrf.mxu3 }
 0x4b1   : > { %v4213_v60 = vadd.f32 %v7948_v43, %v4212_v48 }
 0x4b2   : > { %v4175_v7 = vpop.f32.mrf.mxu1 }
 0x4b3   : > { %v4299_v26 = vadd.f32 %v4267_v36, %v4213_v60  ;;  %v4176_v42 = vadd.f32 %v7948_v43, %v4175_v7  ;;  %v4275_v60 = vld [vmem:[%s5054_s24 + $0xc8] sm:$0xff] }
 0x4b5   : > { %4331 = vst.msk [vmem:[%s7957_s28 + $0x88] sm:$0xff] %vm537_vm1, %v4299_v26  ;;  %v4284_v8 = vadd.f32 %v4252_v5, %v4176_v42  ;;  %v4260_v26 = vld [vmem:[%s5054_s24 + $0x50] sm:$0xff] }
 0x4b7   : > { %4316 = vst.msk [vmem:[%s7957_s28 + $0x10] sm:$0xff] %vm537_vm1, %v4284_v8 }
 0x4b8   : > { %v4215_v1 = vpop.f32.mrf.mxu3 }
 0x4b9   : > { %v4216_v40 = vadd.f32 %v7948_v43, %v4215_v1 }
 0x4ba   : > { %v4177_v18 = vpop.f32.mrf.mxu1 }
 0x4bb   : > { %v4300_v46 = vadd.f32 %v4268_v10, %v4216_v40  ;;  %v4178_v27 = vadd.f32 %v7948_v43, %v4177_v18  ;;  %v4276_v40 = vld [vmem:[%s5054_s24 + $0xd0] sm:$0xff] }
 0x4bd   : > { %4332 = vst.msk [vmem:[%s7957_s28 + $0x90] sm:$0xff] %vm537_vm1, %v4300_v46  ;;  %v4285_v30 = vadd.f32 %v4253_v59, %v4178_v27  ;;  %v4261_v46 = vld [vmem:[%s5054_s24 + $0x58] sm:$0xff] }
 0x4bf   : > { %4317 = vst.msk [vmem:[%s7957_s28 + $0x18] sm:$0xff] %vm537_vm1, %v4285_v30 }
 0x4c0   : > { %v4217_v34 = vpop.f32.mrf.mxu3 }
 0x4c1   : > { %v4218_v52 = vadd.f32 %v7948_v43, %v4217_v34 }
 0x4c2   : > { %v4180_v37 = vpop.f32.mrf.mxu1 }
 0x4c3   : > { %v4301_v35 = vadd.f32 %v4269_v22, %v4218_v52  ;;  %v4181_v23 = vadd.f32 %v7948_v43, %v4180_v37  ;;  %v4277_v52 = vld [vmem:[%s5054_s24 + $0xd8] sm:$0xff] }
 0x4c5   : > { %4333 = vst.msk [vmem:[%s7957_s28 + $0x98] sm:$0xff] %vm537_vm1, %v4301_v35  ;;  %v4286_v61 = vadd.f32 %v4254_v29, %v4181_v23  ;;  %v4262_v35 = vld [vmem:[%s5054_s24 + $0x60] sm:$0xff] }
 0x4c7   : > { %4318 = vst.msk [vmem:[%s7957_s28 + $0x20] sm:$0xff] %vm537_vm1, %v4286_v61 }
 0x4c8   : > { %v4220_v31 = vpop.f32.mrf.mxu3 }
 0x4c9   : > { %v4221_v21 = vadd.f32 %v7948_v43, %v4220_v31 }
 0x4ca   : > { %v4182_v50 = vpop.f32.mrf.mxu1 }
 0x4cb   : > { %v4302_v28 = vadd.f32 %v4270_v38, %v4221_v21  ;;  %v4183_v11 = vadd.f32 %v7948_v43, %v4182_v50  ;;  %v4278_v21 = vld [vmem:[%s5054_s24 + $0xe0] sm:$0xff] }
 0x4cd   : > { %4334 = vst.msk [vmem:[%s7957_s28 + $0xa0] sm:$0xff] %vm537_vm1, %v4302_v28  ;;  %v4287_v54 = vadd.f32 %v4255_v49, %v4183_v11  ;;  %v4263_v28 = vld [vmem:[%s5054_s24 + $0x68] sm:$0xff] }
 0x4cf   : > { %4319 = vst.msk [vmem:[%s7957_s28 + $0x28] sm:$0xff] %vm537_vm1, %v4287_v54 }
 0x4d0   : > { %v4222_v57 = vpop.f32.mrf.mxu3 }
 0x4d1   : > { %v4223_v19 = vadd.f32 %v7948_v43, %v4222_v57 }
 0x4d2   : > { %v4185_v44 = vpop.f32.mrf.mxu1 }
 0x4d3   : > { %v4303_v20 = vadd.f32 %v4271_v13, %v4223_v19  ;;  %v4186_v39 = vadd.f32 %v7948_v43, %v4185_v44  ;;  %v4279_v19 = vld [vmem:[%s5054_s24 + $0xe8] sm:$0xff] }
 0x4d5   : > { %4335 = vst.msk [vmem:[%s7957_s28 + $0xa8] sm:$0xff] %vm537_vm1, %v4303_v20  ;;  %v4288_v62 = vadd.f32 %v4256_v51, %v4186_v39  ;;  %v4264_v20 = vld [vmem:[%s5054_s24 + $0x70] sm:$0xff] }
 0x4d7   : > { %4320 = vst.msk [vmem:[%s7957_s28 + $0x30] sm:$0xff] %vm537_vm1, %v4288_v62 }
 0x4d8   : > { %v4225_v14 = vpop.f32.mrf.mxu3 }
 0x4d9   : > { %v4226_v3 = vadd.f32 %v7948_v43, %v4225_v14 }
 0x4da   : > { %v4187_v24 = vpop.f32.mrf.mxu1 }
 0x4db   : > { %v4304_v6 = vadd.f32 %v4272_v0, %v4226_v3  ;;  %v4188_v58 = vadd.f32 %v7948_v43, %v4187_v24  ;;  %v4280_v3 = vld [vmem:[%s5054_s24 + $0xf0] sm:$0xff] }
 0x4dd   : > { %4336 = vst.msk [vmem:[%s7957_s28 + $0xb0] sm:$0xff] %vm537_vm1, %v4304_v6  ;;  %v4289_v32 = vadd.f32 %v4257_v56, %v4188_v58  ;;  %v4265_v6 = vld [vmem:[%s5054_s24 + $0x78] sm:$0xff] }
 0x4df   : > { %4321 = vst.msk [vmem:[%s7957_s28 + $0x38] sm:$0xff] %vm537_vm1, %v4289_v32 }
 0x4e0   : > { %v4227_v16 = vpop.f32.mrf.mxu3 }
 0x4e1   : > { %v4228_v55 = vadd.f32 %v7948_v43, %v4227_v16 }
 0x4e2   : > { %v4190_v53 = vpop.f32.mrf.mxu1 }
 0x4e3   : > { %v4305_v45 = vadd.f32 %v4273_v12, %v4228_v55  ;;  %v4191_v25 = vadd.f32 %v7948_v43, %v4190_v53  ;;  %v4281_v55 = vld [vmem:[%s5054_s24 + $0xf8] sm:$0xff] }
 0x4e5   : > { %4337 = vst.msk [vmem:[%s7957_s28 + $0xb8] sm:$0xff] %vm537_vm1, %v4305_v45  ;;  %v4290_v63 = vadd.f32 %v4258_v9, %v4191_v25 }
 0x4e7   : > { %4322 = vst.msk [vmem:[%s7957_s28 + $0x40] sm:$0xff] %vm537_vm1, %v4290_v63 }
 0x4e8   : > { %v4230_v4 = vpop.f32.mrf.mxu3 }
 0x4e9   : > { %v4231_v47 = vadd.f32 %v7948_v43, %v4230_v4 }
 0x4ea   : > { %v4192_v15 = vpop.f32.mrf.mxu1 }
 0x4eb   : > { %v4306_v33 = vadd.f32 %v4274_v17, %v4231_v47  ;;  %v4193_v2 = vadd.f32 %v7948_v43, %v4192_v15 }
 0x4ed   : > { %4338 = vst.msk [vmem:[%s7957_s28 + $0xc0] sm:$0xff] %vm537_vm1, %v4306_v33  ;;  %v4291_v48 = vadd.f32 %v4259_v41, %v4193_v2 }
 0x4ef   : > { %4323 = vst.msk [vmem:[%s7957_s28 + $0x48] sm:$0xff] %vm537_vm1, %v4291_v48 }
 0x4f0   : > { %v4232_v36 = vpop.f32.mrf.mxu3 }
 0x4f1   : > { %v4233_v7 = vadd.f32 %v7948_v43, %v4232_v36 }
 0x4f2   : > { %v4195_v5 = vpop.f32.mrf.mxu1 }
 0x4f3   : > { %v4307_v42 = vadd.f32 %v4275_v60, %v4233_v7  ;;  %v4196_v8 = vadd.f32 %v7948_v43, %v4195_v5 }
 0x4f5   : > { %4339 = vst.msk [vmem:[%s7957_s28 + $0xc8] sm:$0xff] %vm537_vm1, %v4307_v42  ;;  %v4292_v1 = vadd.f32 %v4260_v26, %v4196_v8 }
 0x4f7   : > { %4324 = vst.msk [vmem:[%s7957_s28 + $0x50] sm:$0xff] %vm537_vm1, %v4292_v1 }
 0x4f8   : > { %v4235_v10 = vpop.f32.mrf.mxu3 }
 0x4f9   : > { %v4236_v18 = vadd.f32 %v7948_v43, %v4235_v10 }
 0x4fa   : > { %v4197_v59 = vpop.f32.mrf.mxu1 }
 0x4fb   : > { %v4308_v27 = vadd.f32 %v4276_v40, %v4236_v18  ;;  %v4198_v30 = vadd.f32 %v7948_v43, %v4197_v59 }
 0x4fd   : > { %4340 = vst.msk [vmem:[%s7957_s28 + $0xd0] sm:$0xff] %vm537_vm1, %v4308_v27  ;;  %v4293_v34 = vadd.f32 %v4261_v46, %v4198_v30 }
 0x4ff   : > { %4325 = vst.msk [vmem:[%s7957_s28 + $0x58] sm:$0xff] %vm537_vm1, %v4293_v34 }
 0x500   : > { %v4237_v22 = vpop.f32.mrf.mxu3 }
 0x501   : > { %v4238_v37 = vadd.f32 %v7948_v43, %v4237_v22 }
 0x502   : > { %v4200_v29 = vpop.f32.mrf.mxu1 }
 0x503   : > { %v4309_v23 = vadd.f32 %v4277_v52, %v4238_v37  ;;  %v4201_v61 = vadd.f32 %v7948_v43, %v4200_v29 }
 0x505   : > { %4341 = vst.msk [vmem:[%s7957_s28 + $0xd8] sm:$0xff] %vm537_vm1, %v4309_v23  ;;  %v4294_v31 = vadd.f32 %v4262_v35, %v4201_v61 }
 0x507   : > { %4326 = vst.msk [vmem:[%s7957_s28 + $0x60] sm:$0xff] %vm537_vm1, %v4294_v31 }
 0x508   : > { %v4240_v38 = vpop.f32.mrf.mxu3 }
 0x509   : > { %v4241_v50 = vadd.f32 %v7948_v43, %v4240_v38 }
 0x50a   : > { %v4202_v49 = vpop.f32.mrf.mxu1 }
 0x50b   : > { %v4310_v11 = vadd.f32 %v4278_v21, %v4241_v50  ;;  %v4203_v54 = vadd.f32 %v7948_v43, %v4202_v49 }
 0x50d   : > { %4342 = vst.msk [vmem:[%s7957_s28 + $0xe0] sm:$0xff] %vm537_vm1, %v4310_v11  ;;  %v4295_v57 = vadd.f32 %v4263_v28, %v4203_v54 }
 0x50f   : > { %4327 = vst.msk [vmem:[%s7957_s28 + $0x68] sm:$0xff] %vm537_vm1, %v4295_v57 }
 0x510   : > { %v4242_v13 = vpop.f32.mrf.mxu3 }
 0x511   : > { %v4243_v44 = vadd.f32 %v7948_v43, %v4242_v13 }
 0x512   : > { %v4205_v51 = vpop.f32.mrf.mxu1 }
 0x513   : > { %v4311_v39 = vadd.f32 %v4279_v19, %v4243_v44  ;;  %v4206_v62 = vadd.f32 %v7948_v43, %v4205_v51 }
 0x515   : > { %4343 = vst.msk [vmem:[%s7957_s28 + $0xe8] sm:$0xff] %vm537_vm1, %v4311_v39  ;;  %v4296_v14 = vadd.f32 %v4264_v20, %v4206_v62 }
 0x517   : > { %4328 = vst.msk [vmem:[%s7957_s28 + $0x70] sm:$0xff] %vm537_vm1, %v4296_v14 }
 0x518   : > { %v4245_v0 = vpop.f32.mrf.mxu3 }
 0x519   : > { %v4246_v24 = vadd.f32 %v7948_v43, %v4245_v0 }
 0x51a   : > { %v4207_v56 = vpop.f32.mrf.mxu1 }
 0x51b   : > { %v4312_v58 = vadd.f32 %v4280_v3, %v4246_v24  ;;  %v4208_v32 = vadd.f32 %v7948_v43, %v4207_v56 }
 0x51d   : > { %4344 = vst.msk [vmem:[%s7957_s28 + $0xf0] sm:$0xff] %vm537_vm1, %v4312_v58  ;;  %v4297_v16 = vadd.f32 %v4265_v6, %v4208_v32 }
 0x51f   : > { %4329 = vst.msk [vmem:[%s7957_s28 + $0x78] sm:$0xff] %vm537_vm1, %v4297_v16 }
 0x520   : > { %v4247_v12 = vpop.f32.mrf.mxu3 }
 0x521   : > { %v4248_v53 = vadd.f32 %v7948_v43, %v4247_v12 }
 0x523   : > { %v4313_v9 = vadd.f32 %v4281_v55, %v4248_v53 }
 0x525   : > { %4345 = vst.msk [vmem:[%s7957_s28 + $0xf8] sm:$0xff] %vm537_vm1, %v4313_v9 }
 0x526 PF: > { %s21_s17 = sadd.s32 1, %s4970_s17  }
 0x527   : > { %p18_p4 = scmp.ge.s32.totalorder %s21_s17, 4  }
 0x529   :  { %20 = sbr.rel (!%p18_p4) target bundleno = 1 (0x1), region = 97 }

// kernel: tpu_custom_call.1
= control target key start
LH: loop header
LB: loop body
LE: loop exit
PB: predicated region body
PF: predicated region fallthrough
CT: control target
= control target key end

     0   :  { %s5034_s17 = smov 0   ;;  %s8088_s0 = inlined_call_operand.vmem [shape: f32[2,16,16,8], index: 0, kind: input, shape index: {}]   ;;  %s8089_s1 = inlined_call_operand.vmem [shape: bf16[8,128], index: 1, kind: input, shape index: {}]   ;;  %s8090_s2 = inlined_call_operand.vmem [shape: f32[1,128], index: 2, kind: input, shape index: {}]   ;;  %s8091_s3 = inlined_call_operand.vmem [shape: f32[9,128], index: 3, kind: input, shape index: {}]   ;;  %s8092_s4 = inlined_call_operand.vmem [shape: f32[1,128], index: 4, kind: input, shape index: {}]   ;;  %s8093_s5 = inlined_call_operand.vmem [shape: bf16[128,128], index: 5, kind: input, shape index: {}]   ;;  %s8094_s6 = inlined_call_operand.vmem [shape: f32[1,128], index: 6, kind: input, shape index: {}]   ;;  %s8095_s7 = inlined_call_operand.vmem [shape: bf16[128,128], index: 7, kind: input, shape index: {}]   ;;  %s8096_s8 = inlined_call_operand.vmem [shape: f32[1,128], index: 8, kind: input, shape index: {}]   ;;  %s8097_s9 = inlined_call_operand.vmem [shape: bf16[128,8], index: 9, kind: input, shape index: {}]   ;;  %s8098_s10 = inlined_call_operand.vmem [shape: f32[1,8], index: 10, kind: input, shape index: {}]   ;;  %s8099_s11 = inlined_call_operand.vmem [shape: f32[2,16,16,8], index: 11, kind: output, shape index: {}]  }
   0x1 LB: > { %s4401_s18 = sadd.s32 4294967295, %s4970_s17   ;;  %p4405_p0 = scmp.ge.s32.totalorder %s4970_s17, 1  ;;  %s4970_s17 = sphi %s5034_s17, %s21_s17  }
   0x2   : > { %p337_p1 = scmp.lt.s32.totalorder %s4970_s17, 3 }
   0x4   : > { %p338_p2 = pnand %p4405_p0, %p337_p1 }
   0x6   : > { %341 = sbr.rel (%p338_p2) target bundleno = 1318 (0x526), region = 64 }
   0xb   : > { %v452_v0 = vld [vmem:[%s8089_s1] sm:$0xf]  ;;  %vm586_vm0 = vcmask 1043456   ;;  %p377_p3 = scmp.lt.s32.totalorder %s4401_s18, 1  ;;  %vm537_vm1 = vcmask 64512   ;;  %vm878_vm2 = vcmask 1040384  }
   0xc   : > { %v588_v1 = vsel %vm586_vm0, %v452_v0, 0  ;;  %vm879_vm3 = vsmask.f32 256  ;;  %vm935_vm5 = vsmask.f32 7938  ;;  %vm1720_vm10 = vcmask 1046528  }
   0xd   : > { %597 = vmatpush.bf16.msra.mxu0 %v588_v1  ;;  %4668 = vmatpush.bf16.msra.mxu2 %v588_v1  ;;  %s8528_s18 = smov (!%p377_p3, %s4401_s18), 1  ;;  %vm5102_vm4 = vmand %vm878_vm2, %vm879_vm3  ;;  %vm1023_vm8 = vsmask.f32 4368  ;;  %vm1994_vm11 = vcmask 1045504  }
   0xe   : > { %s4524_s21 = sshll.u32 %s8528_s18, 8  ;;  %vm5117_vm6 = vmand %vm878_vm2, %vm935_vm5 }
   0xf   : > { %s5054_s24 = scalar_lea.vmem %s8088_s0, %s4524_s21  ;;  %vm5146_vm7 = vmand %vm586_vm0, %vm935_vm5  ;;  %s7957_s28 = scalar_lea.vmem %s8099_s11, %s4524_s21 }
  0x10   : > { %v388_v2 = vld [vmem:[%s5054_s24] sm:$0xff]  ;;  %v389_v3 = vld [vmem:[%s5054_s24 + $0x8] sm:$0xff]  ;;  %v390_v16 = vld [vmem:[%s5054_s24 + $0x10] sm:$0xff] }
  0x11   : > { %v408_v4 = vld [vmem:[%s5054_s24 + $0xa0] sm:$0xff]  ;;  %v420_v5 = vpack.c.bf16 %v388_v2, %v388_v2  ;;  %v421_v6 = vpack.c.bf16 %v389_v3, %v389_v3  ;;  %v409_v7 = vld [vmem:[%s5054_s24 + $0xa8] sm:$0xff]  ;;  %v391_v17 = vld [vmem:[%s5054_s24 + $0x18] sm:$0xff]  ;;  %v422_v20 = vpack.c.bf16 %v390_v16, %v390_v16 }
  0x12   : > { %v440_v8 = vpack.c.bf16 %v408_v4, %v408_v4  ;;  %v441_v9 = vpack.c.bf16 %v409_v7, %v409_v7  ;;  %v410_v18 = vld [vmem:[%s5054_s24 + $0xb0] sm:$0xff]  ;;  %v411_v19 = vld [vmem:[%s5054_s24 + $0xb8] sm:$0xff]  ;;  %v423_v21 = vpack.c.bf16 %v391_v17, %v391_v17  ;;  %v392_v30 = vld [vmem:[%s5054_s24 + $0x20] sm:$0xff] }
  0x13   : > { %v489_v10 = vunpack.c.l.b16 %v420_v5  ;;  %v490_v11 = vunpack.c.l.b16 %v421_v6  ;;  %v442_v22 = vpack.c.bf16 %v410_v18, %v410_v18  ;;  %v443_v23 = vpack.c.bf16 %v411_v19, %v411_v19  ;;  %v393_v31 = vld [vmem:[%s5054_s24 + $0x28] sm:$0xff]  ;;  %v412_v32 = vld [vmem:[%s5054_s24 + $0xc0] sm:$0xff]  ;;  %v394_v44 = vld [vmem:[%s5054_s24 + $0x30] sm:$0xff] }
  0x14   : > { %v509_v12 = vunpack.c.l.b16 %v440_v8  ;;  %v510_v13 = vunpack.c.l.b16 %v441_v9  ;;  %v491_v24 = vunpack.c.l.b16 %v422_v20  ;;  %v492_v25 = vunpack.c.l.b16 %v423_v21  ;;  %v413_v33 = vld [vmem:[%s5054_s24 + $0xc8] sm:$0xff]  ;;  %v395_v45 = vld [vmem:[%s5054_s24 + $0x38] sm:$0xff]  ;;  %v414_v46 = vld [vmem:[%s5054_s24 + $0xd0] sm:$0xff] }
  0x15   : > { %v521_v14 = vpack.c.b16 %v490_v11, %v489_v10  ;;  %v511_v26 = vunpack.c.l.b16 %v442_v22  ;;  %v512_v27 = vunpack.c.l.b16 %v443_v23  ;;  %v424_v34 = vpack.c.bf16 %v392_v30, %v392_v30  ;;  %v415_v47 = vld [vmem:[%s5054_s24 + $0xd8] sm:$0xff]  ;;  %v396_v58 = vld [vmem:[%s5054_s24 + $0x40] sm:$0xff]  ;;  %v397_v59 = vld [vmem:[%s5054_s24 + $0x48] sm:$0xff] }
  0x16   : > { %v531_v15 = vpack.c.b16 %v510_v13, %v509_v12  ;;  %v522_v28 = vpack.c.b16 %v492_v25, %v491_v24  ;;  %v425_v35 = vpack.c.bf16 %v393_v31, %v393_v31  ;;  %v444_v36 = vpack.c.bf16 %v412_v32, %v412_v32  ;;  %v416_v60 = vld [vmem:[%s5054_s24 + $0xe0] sm:$0xff]  ;;  %v417_v61 = vld [vmem:[%s5054_s24 + $0xe8] sm:$0xff]  ;;  %v398_v8 = vld [vmem:[%s5054_s24 + $0x50] sm:$0xff] }
  0x17   : > { %4410 = vmatmul.msk.bf16.vlgmr.msra.gmra.mxu0 %vm537_vm1, %v521_v14  ;;  %v532_v29 = vpack.c.b16 %v512_v27, %v511_v26  ;;  %v445_v37 = vpack.c.bf16 %v413_v33, %v413_v33  ;;  %v493_v38 = vunpack.c.l.b16 %v424_v34  ;;  %v426_v48 = vpack.c.bf16 %v394_v44, %v394_v44  ;;  %v399_v9 = vld [vmem:[%s5054_s24 + $0x58] sm:$0xff]  ;;  %v418_v10 = vld [vmem:[%s5054_s24 + $0xf0] sm:$0xff]  ;;  %v400_v22 = vld [vmem:[%s5054_s24 + $0x60] sm:$0xff] }
  0x18   : > { %4420 = vmatmul.msk.bf16.vlgmr.msra.gmra.mxu2 %vm537_vm1, %v531_v15  ;;  %v494_v39 = vunpack.c.l.b16 %v425_v35  ;;  %v513_v40 = vunpack.c.l.b16 %v444_v36  ;;  %v427_v49 = vpack.c.bf16 %v395_v45, %v395_v45  ;;  %v446_v50 = vpack.c.bf16 %v414_v46, %v414_v46  ;;  %v419_v11 = vld [vmem:[%s5054_s24 + $0xf8] sm:$0xff]  ;;  %v401_v23 = vld [vmem:[%s5054_s24 + $0x68] sm:$0xff]  ;;  %vm5156_vm9 = vmor %vm879_vm3, %vm1023_vm8 }
  0x19   : > { %v514_v41 = vunpack.c.l.b16 %v445_v37  ;;  %v447_v51 = vpack.c.bf16 %v415_v47, %v415_v47  ;;  %v495_v52 = vunpack.c.l.b16 %v426_v48  ;;  %v428_v62 = vpack.c.bf16 %v396_v58, %v396_v58  ;;  %v403_v30 = vld [vmem:[%s5054_s24 + $0x78] sm:$0xff]  ;;  %v404_v37 = vld [vmem:[%s5054_s24 + $0x80] sm:$0xff]  ;;  %v406_v58 = vld [vmem:[%s5054_s24 + $0x90] sm:$0xff] }
  0x1a   : > { %v523_v42 = vpack.c.b16 %v494_v39, %v493_v38  ;;  %v496_v53 = vunpack.c.l.b16 %v427_v49  ;;  %v515_v54 = vunpack.c.l.b16 %v446_v50  ;;  %v429_v63 = vpack.c.bf16 %v397_v59, %v397_v59  ;;  %v405_v38 = vld [vmem:[%s5054_s24 + $0x88] sm:$0xff]  ;;  %v5113_v48 = vld [vmem:[%s8090_s2] ss:$0 sm:$0xff]  ;;  %v407_v59 = vld [vmem:[%s5054_s24 + $0x98] sm:$0xff] }
  0x1b   : > { %v533_v43 = vpack.c.b16 %v514_v41, %v513_v40  ;;  %v516_v55 = vunpack.c.l.b16 %v447_v51  ;;  %v448_v0 = vpack.c.bf16 %v416_v60, %v416_v60  ;;  %v449_v1 = vpack.c.bf16 %v417_v61, %v417_v61  ;;  %v884_v40 = vld [vmem:[#allocation2 + $0xc] sm:$0x1] }
  0x1c   : > { %v524_v56 = vpack.c.b16 %v496_v53, %v495_v52  ;;  %v497_v2 = vunpack.c.l.b16 %v428_v62  ;;  %v498_v3 = vunpack.c.l.b16 %v429_v63  ;;  %v430_v12 = vpack.c.bf16 %v398_v8, %v398_v8  ;;  %v940_v52 = vld [vmem:[#allocation2 + $0x14] sm:$0x1] }
  0x1d   : > { %v534_v57 = vpack.c.b16 %v516_v55, %v515_v54  ;;  %v517_v4 = vunpack.c.l.b16 %v448_v0  ;;  %v518_v5 = vunpack.c.l.b16 %v449_v1  ;;  %v431_v13 = vpack.c.bf16 %v399_v9, %v399_v9 }
  0x1e   : > { %v525_v6 = vpack.c.b16 %v498_v3, %v497_v2  ;;  %v450_v14 = vpack.c.bf16 %v418_v10, %v418_v10  ;;  %v451_v15 = vpack.c.bf16 %v419_v11, %v419_v11  ;;  %v499_v16 = vunpack.c.l.b16 %v430_v12  ;;  %v887_v2 = vld [vmem:[#allocation2 + $0x18] sm:$0x1] }
  0x1f   : > { %v535_v7 = vpack.c.b16 %v518_v5, %v517_v4  ;;  %v500_v17 = vunpack.c.l.b16 %v431_v13  ;;  %v432_v24 = vpack.c.bf16 %v400_v22, %v400_v22  ;;  %v433_v25 = vpack.c.bf16 %v401_v23, %v401_v23 }
  0x20   : > { %v519_v18 = vunpack.c.l.b16 %v450_v14  ;;  %v520_v19 = vunpack.c.l.b16 %v451_v15  ;;  %v435_v32 = vpack.c.bf16 %v403_v30, %v403_v30  ;;  %v4972_v36 = vmov 0   ;;  %v943_v15 = vld [vmem:[#allocation2 + $0x20] sm:$0x1] }
  0x21   : > { %v526_v20 = vpack.c.b16 %v500_v17, %v499_v16  ;;  %v501_v26 = vunpack.c.l.b16 %v432_v24  ;;  %v502_v27 = vunpack.c.l.b16 %v433_v25  ;;  %871 = vst [vmem:[#allocation2] sm:$0xf] %v4972_v36  ;;  %v436_v41 = vpack.c.bf16 %v404_v37, %v404_v37 }
  0x22   : > { %v536_v21 = vpack.c.b16 %v520_v19, %v519_v18  ;;  %v504_v34 = vunpack.c.l.b16 %v435_v32  ;;  %872 = vst [vmem:[#allocation2 + $0x4] sm:$0xf] %v4972_v36  ;;  %v941_v54 = vsel %vm5117_vm6, 0, %v940_v52  ;;  %v438_v61 = vpack.c.bf16 %v406_v58, %v406_v58 }
  0x23   : > { %873 = vst [vmem:[#allocation2 + $0x8] sm:$0x1] %v4972_v36  ;;  %v505_v46 = vunpack.c.l.b16 %v436_v41  ;;  %v439_v62 = vpack.c.bf16 %v407_v59, %v407_v59  ;;  %v888_v5 = vsel %vm5102_vm4, 0, %v887_v2  ;;  %v944_v17 = vsel %vm5117_vm6, 0, %v943_v15  ;;  %v914_v41 = vld [vmem:[#allocation2 + $0x84] sm:$0x1] }
  0x24   : > { %875 = vst [vmem:[#allocation2 + $0xcc] sm:$0xf] %v4972_v36  ;;  %v507_v3 = vunpack.c.l.b16 %v438_v61 }
  0x25   : > { %876 = vst [vmem:[#allocation2 + $0xd0] sm:$0xf] %v4972_v36  ;;  %v508_v4 = vunpack.c.l.b16 %v439_v62 }
  0x26   : > { %877 = vst [vmem:[#allocation2 + $0xd4] sm:$0x1] %v4972_v36 }
  0x27   : > { %4411 = vmatmul.msk.bf16.gmra.mxu0 %vm537_vm1, %v522_v28  ;;  %v527_v28 = vpack.c.b16 %v502_v27, %v501_v26  ;;  %942 = vst [vmem:[#allocation2 + $0x14] sm:$0x1] %v941_v54  ;;  %v530_v9 = vpack.c.b16 %v508_v4, %v507_v3 }
  0x28   : > { %4421 = vmatmul.msk.bf16.gmra.mxu2 %vm537_vm1, %v532_v29  ;;  %v402_v29 = vld [vmem:[%s5054_s24 + $0x70] sm:$0xff]  ;;  %v881_v44 = vld [vmem:[#allocation2] sm:$0x1]  ;;  %889 = vst [vmem:[#allocation2 + $0x18] sm:$0x1] %v888_v5 }
  0x29   : > { %v434_v31 = vpack.c.bf16 %v402_v29, %v402_v29  ;;  %v882_v45 = vsel %vm5102_vm4, 0, %v881_v44  ;;  %945 = vst [vmem:[#allocation2 + $0x20] sm:$0x1] %v944_v17 }
  0x2a   : > { %883 = vst [vmem:[#allocation2] sm:$0x1] %v882_v45  ;;  %v937_v55 = vld [vmem:[#allocation2 + $0x8] sm:$0x1] }
  0x2b   : > { %v503_v33 = vunpack.c.l.b16 %v434_v31 }
  0x2d   : > { %v528_v35 = vpack.c.b16 %v504_v34, %v503_v33 }
  0x37   : > { %4412 = vmatmul.msk.bf16.gmra.mxu0 %vm537_vm1, %v523_v42  ;;  %v437_v42 = vpack.c.bf16 %v405_v38, %v405_v38 }
  0x38   : > { %4422 = vmatmul.msk.bf16.gmra.mxu2 %vm537_vm1, %v533_v43  ;;  %v885_v43 = vsel %vm5102_vm4, 0, %v884_v40 }
  0x39   : > { %886 = vst [vmem:[#allocation2 + $0xc] sm:$0x1] %v885_v43  ;;  %v506_v47 = vunpack.c.l.b16 %v437_v42  ;;  %v915_v43 = vsel %vm5102_vm4, 0, %v914_v41 }
  0x3a   : > { %916 = vst [vmem:[#allocation2 + $0x84] sm:$0x1] %v915_v43 }
  0x3b   : > { %v529_v50 = vpack.c.b16 %v506_v47, %v505_v46 }
  0x47   : > { %4413 = vmatmul.msk.bf16.gmra.mxu0 %vm537_vm1, %v524_v56 }
  0x48   : > { %4423 = vmatmul.msk.bf16.gmra.mxu2 %vm537_vm1, %v534_v57  ;;  %v938_v57 = vsel %vm5117_vm6, 0, %v937_v55 }
  0x49   : > { %939 = vst [vmem:[#allocation2 + $0x8] sm:$0x1] %v938_v57  ;;  %v1352_v57 = vld [vmem:[#allocation2 + $0x14] sm:$0x1] }
  0x57   : > { %4414 = vmatmul.msk.bf16.gmra.mxu0 %vm537_vm1, %v525_v6 }
  0x58   : > { %4424 = vmatmul.msk.bf16.gmra.mxu2 %vm537_vm1, %v535_v7 }
  0x67   : > { %4415 = vmatmul.msk.bf16.gmra.mxu0 %vm537_vm1, %v526_v20 }
  0x68   : > { %4425 = vmatmul.msk.bf16.gmra.mxu2 %vm537_vm1, %v536_v21 }
  0x77   : > { %4416 = vmatmul.msk.bf16.gmra.mxu0 %vm537_vm1, %v527_v28 }
  0x87   : > { %4417 = vmatmul.msk.bf16.gmra.mxu0 %vm537_vm1, %v528_v35  ;;  %v1348_v35 = vld [vmem:[#allocation2 + $0xc] sm:$0xf] }
  0x94   : > { %v599_v51 = vpop.f32.mrf.mxu0 }
  0x95   : > { %v600_v53 = vadd.f32 %v5113_v48, %v599_v51 }
  0x97   : > { %v679_v56 = vsub.f32 0.0, %v600_v53  ;;  %4418 = vmatmul.msk.bf16.gmra.mxu0 %vm537_vm1, %v529_v50 }
  0x99   : > { %v711_v60 = vmul.f32 1.442695, %v679_v56 }
  0x9b   : > { %4691 = vpow2.f32 %v711_v60  ;;  %v649_v12 = vpop.f32.mrf.mxu2 }
  0x9c   : > { %v601_v63 = vpop.f32.mrf.mxu0  ;;  %v5134_v13 = vadd.f32 %v5113_v48, %v649_v12  ;;  %v1355_v12 = vld [vmem:[#allocation2 + $0x18] sm:$0xf] }
  0x9d   : > { %v602_v0 = vadd.f32 %v5113_v48, %v601_v63 }
  0x9e   : > { %v699_v16 = vsub.f32 0.0, %v5134_v13 }
  0x9f   : > { %v680_v1 = vsub.f32 0.0, %v602_v0 }
  0xa0   : > { %v751_v22 = vmul.f32 1.442695, %v699_v16 }
  0xa1   : > { %v4692_v6 = vpop.eup %4691  ;;  %v713_v7 = vmul.f32 1.442695, %v680_v1 }
  0xa2   : > { %v775_v8 = vadd.f32 1.0, %v4692_v6 }
  0xa3   : > { %4693 = vpow2.f32 %v713_v7  ;;  %v651_v46 = vpop.f32.mrf.mxu2 }
  0xa4   : > { %4695 = vrcp.f32 %v775_v8  ;;  %v604_v10 = vpop.f32.mrf.mxu0  ;;  %v652_v47 = vadd.f32 %v5113_v48, %v651_v46 }
  0xa5   : > { %v605_v11 = vadd.f32 %v5113_v48, %v604_v10  ;;  %v890_v10 = vld [vmem:[#allocation2 + $0x24] sm:$0x1] }
  0xa6   : > { %v700_v51 = vsub.f32 0.0, %v652_v47 }
  0xa7   : > { %v681_v14 = vsub.f32 0.0, %v605_v11  ;;  %4419 = vmatmul.msk.bf16.gmra.mxu0 %vm537_vm1, %v530_v9 }
  0xa8   : > { %v753_v59 = vmul.f32 1.442695, %v700_v51 }
  0xa9   : > { %v4694_v18 = vpop.eup %4693  ;;  %v715_v19 = vmul.f32 1.442695, %v681_v14 }
  0xaa   : > { %v4696_v20 = vpop.eup %4695  ;;  %v776_v21 = vadd.f32 1.0, %v4694_v18  ;;  %v891_v18 = vsel %vm5102_vm4, 0, %v890_v10 }
  0xab   : > { %v839_v23 = vmul.f32 %v4696_v20, %v600_v53  ;;  %4697 = vpow2.f32 %v715_v19  ;;  %892 = vst [vmem:[#allocation2 + $0x24] sm:$0x1] %v891_v18 }
  0xac   : > { %4699 = vrcp.f32 %v776_v21  ;;  %v606_v24 = vpop.f32.mrf.mxu0 }
  0xad   : > { %v991_v25 = vpack.c.bf16 %v839_v23, %v839_v23  ;;  %4701 = vpow2.f32 %v751_v22  ;;  %v5141_v26 = vadd.f32 %v5113_v48, %v606_v24  ;;  %v1418_v23 = vld [vmem:[#allocation2 + $0x84] sm:$0xf] }
  0xaf   : > { %v1026_v27 = vshrl.u32 %v991_v25, 16  ;;  %v682_v28 = vsub.f32 0.0, %v5141_v26  ;;  %v1029_v31 = vshll.u32 %v991_v25, 16 }
  0xb1   : > { %v4698_v29 = vpop.eup %4697  ;;  %v1028_v30 = vrot.slane %v1026_v27, 7  ;;  %v717_v32 = vmul.f32 1.442695, %v682_v28 }
  0xb2   : > { %v4700_v33 = vpop.eup %4699  ;;  %v777_v36 = vadd.f32 1.0, %v4698_v29 }
  0xb3   : > { %v4702_v37 = vpop.eup %4701  ;;  %v1031_v38 = vor.u32 %v1029_v31, %v1028_v30  ;;  %v840_v40 = vmul.f32 %v4700_v33, %v602_v0  ;;  %4703 = vpow2.f32 %v717_v32  ;;  %v1032_v60 = vrot.slane %v1028_v30, 4 }
  0xb4   : > { %4705 = vrcp.f32 %v777_v36  ;;  %v795_v42 = vadd.f32 1.0, %v4702_v37  ;;  %v609_v19 = vpop.f32.mrf.mxu0 }
  0xb5   : > { %v1349_v44 = vsel %vm5146_vm7, %v1031_v38, %v1348_v35  ;;  %v992_v45 = vpack.c.bf16 %v840_v40, %v840_v40  ;;  %v610_v24 = vadd.f32 %v5113_v48, %v609_v19  ;;  %v1359_v35 = vld [vmem:[#allocation2 + $0x20] sm:$0x1]  ;;  %v970_v38 = vld [vmem:[#allocation2 + $0x8c] sm:$0x1] }
  0xb6   : > { %1350 = vst [vmem:[#allocation2 + $0xc] sm:$0xf] %v1349_v44  ;;  %4707 = vrcp.f32 %v795_v42  ;;  %v971_v43 = vsel %vm5117_vm6, 0, %v970_v38 }
  0xb7   : > { %v1034_v50 = vshrl.u32 %v992_v45, 16  ;;  %v1037_v54 = vshll.u32 %v992_v45, 16  ;;  %v683_v28 = vsub.f32 0.0, %v610_v24  ;;  %972 = vst [vmem:[#allocation2 + $0x8c] sm:$0x1] %v971_v43 }
  0xb9   : > { %v4704_v52 = vpop.eup %4703  ;;  %v1036_v53 = vrot.slane %v1034_v50, 7  ;;  %v719_v33 = vmul.f32 1.442695, %v683_v28 }
  0xba   : > { %v4706_v55 = vpop.eup %4705  ;;  %v778_v58 = vadd.f32 1.0, %v4704_v52 }
  0xbb   : > { %v1039_v61 = vor.u32 %v1037_v54, %v1036_v53  ;;  %v1041_v62 = vrot.slane %v1036_v53, 4  ;;  %v841_v63 = vmul.f32 %v4706_v55, %v605_v11  ;;  %v654_v55 = vpop.f32.mrf.mxu2 }
  0xbc   : > { %v4708_v0 = vpop.eup %4707  ;;  %4709 = vrcp.f32 %v778_v58 }
  0xbd   : > { %v1040_v1 = vsel %vm5156_vm9, %v1032_v60, %v1039_v61  ;;  %v1353_v2 = vsel %vm5102_vm4, %v1041_v62, %v1352_v57  ;;  %v993_v3 = vpack.c.bf16 %v841_v63, %v841_v63  ;;  %v859_v4 = vmul.f32 %v4708_v0, %v5134_v13  ;;  %v5188_v61 = vld [vmem:[%s8091_s3] sm:$0xff] }
  0xbe   : > { %1351 = vst [vmem:[#allocation2 + $0x10] sm:$0xf] %v1040_v1  ;;  %4711 = vpow2.f32 %v753_v59  ;;  %v5182_v57 = vadd.f32 %v5113_v48, %v654_v55  ;;  %v4551_v62 = vld [vmem:[#allocation2] sm:$0xff]   ;;  %v1422_v63 = vld [vmem:[#allocation2 + $0x8c] sm:$0x1] }
  0xbf   : > { %1354 = vst [vmem:[#allocation2 + $0x14] sm:$0x1] %v1353_v2  ;;  %v1043_v5 = vshrl.u32 %v993_v3, 16  ;;  %v1011_v6 = vpack.c.bf16 %v859_v4, %v859_v4  ;;  %v1046_v8 = vshll.u32 %v993_v3, 16  ;;  %v611_v2 = vpop.f32.mrf.mxu0  ;;  %v4552_v3 = vunpack.c.l.bf16 %v4551_v62 }
  0xc0   : > { %v701_v58 = vsub.f32 0.0, %v5182_v57  ;;  %v5191_v4 = vperm.slane %v5188_v61, 1  ;;  %v5204_v19 = vadd.f32 %v5113_v48, %v611_v2 }
  0xc1   : > { %v1045_v7 = vrot.slane %v1043_v5, 7  ;;  %v1196_v9 = vshrl.u32 %v1011_v6, 16  ;;  %v1199_v17 = vshll.u32 %v1011_v6, 16  ;;  %v4553_v6 = vunpack.c.h.bf16 %v4551_v62 }
  0xc2   : > { %v4710_v11 = vpop.eup %4709  ;;  %v755_v1 = vmul.f32 1.442695, %v701_v58  ;;  %v1624_v10 = vmul.f32 %v4552_v3, %v5191_v4 }
  0xc3   : > { %v1048_v14 = vor.u32 %v1046_v8, %v1045_v7  ;;  %v1198_v16 = vrot.slane %v1196_v9, 7  ;;  %v842_v20 = vmul.f32 %v4710_v11, %v5141_v26  ;;  %v1049_v26 = vrot.slane %v1045_v7, 4  ;;  %v1865_v7 = vld [vmem:[#allocation2] sm:$0xe]  ;;  %v1591_v8 = vld [vmem:[#allocation2 + $0x8] sm:$0x1] }
  0xc4   : > { %v4712_v15 = vpop.eup %4711  ;;  %v1625_v11 = vmul.f32 %v4553_v6, %v5191_v4 }
  0xc5   : > { %v1356_v13 = vsel %vm5146_vm7, %v1048_v14, %v1355_v12  ;;  %v796_v21 = vadd.f32 1.0, %v4712_v15  ;;  %v1201_v22 = vor.u32 %v1199_v17, %v1198_v16  ;;  %v994_v25 = vpack.c.bf16 %v842_v20, %v842_v20  ;;  %v917_v17 = vld [vmem:[#allocation2 + $0x90] sm:$0x1] }
  0xc6   : > { %1357 = vst [vmem:[#allocation2 + $0x18] sm:$0xf] %v1356_v13  ;;  %v1202_v51 = vrot.slane %v1198_v16, 4  ;;  %v1881_v12 = vunpack.c.l.bf16 %v1865_v7  ;;  %v5198_v14 = vperm.slane %v5188_v61, 2  ;;  %v1607_v15 = vunpack.c.l.bf16 %v1591_v8  ;;  %v1465_v58 = vld [vmem:[#allocation2 + $0x10] sm:$0xf] }
  0xc7   : > { %4713 = vrcp.f32 %v796_v21  ;;  %v1419_v27 = vsel %vm5146_vm7, %v1201_v22, %v1418_v23  ;;  %v1051_v29 = vshrl.u32 %v994_v25, 16  ;;  %v1054_v32 = vshll.u32 %v994_v25, 16  ;;  %v614_v20 = vpop.f32.mrf.mxu0  ;;  %v1592_v2 = vld [vmem:[#allocation2 + $0x14] sm:$0x1] }
  0xc8   : > { %1420 = vst [vmem:[#allocation2 + $0x84] sm:$0xf] %v1419_v27  ;;  %4715 = vpow2.f32 %v719_v33  ;;  %v5201_v13 = vperm.slane %v5188_v61, 0  ;;  %v1721_v21 = vrot.slane %v1624_v10, 1  ;;  %v1722_v22 = vrot.slane %v1625_v11, 1 }
  0xc9   : > { %v1053_v31 = vrot.slane %v1051_v29, 7  ;;  %v1898_v23 = vmul.f32 %v5198_v14, %v1881_v12  ;;  %v1899_v25 = vmul.f32 %v4553_v6, %v5198_v14  ;;  %v918_v29 = vsel %vm5102_vm4, 0, %v917_v17 }
  0xca   : > { %919 = vst [vmem:[#allocation2 + $0x90] sm:$0x1] %v918_v29  ;;  %v1527_v38 = vmul.f32 %v4552_v3, %v5201_v13  ;;  %v1723_v43 = vsel %vm1720_vm10, %v1721_v21, %v1722_v22  ;;  %v5239_v7 = vperm.slane %v5188_v61, 4  ;;  %v5242_v8 = vperm.slane %v5188_v61, 5 }
  0xcb   : > { %v1056_v36 = vor.u32 %v1054_v32, %v1053_v31  ;;  %v1058_v37 = vrot.slane %v1053_v31, 4  ;;  %v1362_v31 = vld [vmem:[#allocation2 + $0x24] sm:$0xf]  ;;  %v1497_v11 = vunpack.c.l.bf16 %v1465_v58 }
  0xcd   : > { %v4714_v30 = vpop.eup %4713  ;;  %v1057_v41 = vsel %vm5156_vm9, %v1049_v26, %v1056_v36  ;;  %v1360_v42 = vsel %vm5102_vm4, %v1058_v37, %v1359_v35  ;;  %v5217_v35 = vadd.f32 %v5113_v48, %v614_v20  ;;  %v684_v36 = vsub.f32 0.0, %v5204_v19  ;;  %v946_v37 = vld [vmem:[#allocation2 + $0x2c] sm:$0x1] }
  0xce   : > { %v860_v40 = vmul.f32 %v4714_v30, %v652_v47  ;;  %1358 = vst [vmem:[#allocation2 + $0x1c] sm:$0xf] %v1057_v41  ;;  %v4716_v46 = vpop.eup %4715  ;;  %v656_v30 = vpop.f32.mrf.mxu2  ;;  %v1900_v41 = vmul.f32 %v5198_v14, %v1607_v15 }
  0xcf   : > { %1361 = vst [vmem:[#allocation2 + $0x20] sm:$0x1] %v1360_v42  ;;  %v779_v53 = vadd.f32 1.0, %v4716_v46  ;;  %v5214_v33 = vadd.f32 %v5113_v48, %v656_v30  ;;  %v5223_v42 = vld [vmem:[#allocation2 + $0xc] sm:$0xf]  ;;  %v5260_v30 = vmul.f32 %v5191_v4, %v1497_v11 }
  0xd0   : > { %v1012_v44 = vpack.c.bf16 %v860_v40, %v860_v40  ;;  %v2139_v46 = vld [vmem:[#allocation2 + $0xc] sm:$0xf]  ;;  %v721_v55 = vmul.f32 1.442695, %v684_v36  ;;  %v5267_v36 = vperm.slane %v5188_v61, 7 }
  0xd1   : > { %4717 = vrcp.f32 %v779_v53  ;;  %v2541_v53 = vld [vmem:[#allocation2 + $0xc] sm:$0xe] }
  0xd2   : > { %v1204_v45 = vshrl.u32 %v1012_v44, 16  ;;  %v1207_v50 = vshll.u32 %v1012_v44, 16  ;;  %4719 = vpow2.f32 %v755_v1  ;;  %v1995_v44 = vrot.slane %v1898_v23, 2  ;;  %v5252_v23 = vld [vmem:[#allocation2 + $0xc] sm:$0xe]  ;;  %8210 = vst [vmem:[#allocation4_spill] sm:$0xff] %v5267_v36 }
  0xd3   : > { %v5236_v1 = vperm.slane %v5188_v61, 3 }
  0xd4   : > { %v1206_v52 = vrot.slane %v1204_v45, 7  ;;  %v1996_v45 = vrot.slane %v1899_v25, 2 }
  0xd6   : > { %v1209_v47 = vor.u32 %v1207_v50, %v1206_v52  ;;  %v1211_v60 = vrot.slane %v1206_v52, 4  ;;  %v702_v52 = vsub.f32 0.0, %v5214_v33  ;;  %v1997_v10 = vsel %vm1994_vm11, %v1995_v44, %v1996_v45 }
  0xd7   : > { %v4718_v59 = vpop.eup %4717 }
  0xd8   : > { %v1210_v54 = vsel %vm5156_vm9, %v1202_v51, %v1209_v47  ;;  %v843_v0 = vmul.f32 %v4718_v59, %v610_v24  ;;  %v1423_v5 = vsel %vm5102_vm4, %v1211_v60, %v1422_v63  ;;  %v4720_v18 = vpop.eup %4719  ;;  %v1626_v24 = vmul.f32 %v5191_v4, %v1607_v15 }
  0xd9   : > { %1421 = vst [vmem:[#allocation2 + $0x88] sm:$0xf] %v1210_v54  ;;  %v797_v32 = vadd.f32 1.0, %v4720_v18  ;;  %v947_v51 = vsel %vm5117_vm6, 0, %v946_v37  ;;  %v685_v47 = vsub.f32 0.0, %v5217_v35  ;;  %v1528_v54 = vmul.f32 %v4553_v6, %v5201_v13 }
  0xda   : > { %1424 = vst [vmem:[#allocation2 + $0x8c] sm:$0x1] %v1423_v5  ;;  %v995_v9 = vpack.c.bf16 %v843_v0, %v843_v0  ;;  %v1724_v40 = vrot.slane %v1626_v24, 1  ;;  %v1998_v60 = vrot.slane %v1900_v41, 2  ;;  %v757_v62 = vmul.f32 1.442695, %v702_v52 }
  0xdb   : > { %4721 = vrcp.f32 %v797_v32  ;;  %948 = vst [vmem:[#allocation2 + $0x2c] sm:$0x1] %v947_v51  ;;  %v1496_v63 = vunpack.c.l.bf16 %v5223_v42  ;;  %v1833_v0 = vadd.f32 %v1723_v43, %v1527_v38  ;;  %v723_v3 = vmul.f32 1.442695, %v685_v47  ;;  %v2268_v18 = vld [vmem:[#allocation2 + $0x14] sm:$0x1]  ;;  %v659_v38 = vpop.f32.mrf.mxu2 }
  0xdc   : > { %v1060_v16 = vshrl.u32 %v995_v9, 16  ;;  %v1063_v28 = vshll.u32 %v995_v9, 16  ;;  %v1725_v59 = vsel %vm1720_vm10, %v1722_v22, %v1724_v40  ;;  %v2171_v5 = vunpack.c.l.bf16 %v2139_v46  ;;  %v2140_v9 = vld [vmem:[#allocation2 + $0x10] sm:$0xf] }
  0xdd   : > { %v2557_v6 = vunpack.c.l.bf16 %v2541_v53  ;;  %v1834_v12 = vadd.f32 %v1725_v59, %v1528_v54  ;;  %4723 = vpow2.f32 %v721_v55  ;;  %v1999_v17 = vsel %vm1994_vm11, %v1996_v45, %v1998_v60  ;;  %v973_v59 = vld [vmem:[#allocation2 + $0x98] sm:$0x1]  ;;  %v893_v60 = vld [vmem:[#allocation2 + $0x30] sm:$0x1] }
  0xde   : > { %v5209_v27 = vrot.slane %v1060_v16, 7  ;;  %v1608_v16 = vunpack.c.l.bf16 %v1592_v2  ;;  %4725 = vpow2.f32 %v757_v62  ;;  %v5249_v20 = vmul.f32 %v5191_v4, %v1496_v63 }
  0xdf   : > { %v2172_v21 = vunpack.c.l.bf16 %v2140_v9  ;;  %4727 = vpow2.f32 %v723_v3  ;;  %v2107_v24 = vadd.f32 %v1997_v10, %v1833_v0  ;;  %v2204_v25 = vmul.f32 %v5236_v1, %v2171_v5 }
  0xe0   : > { %v1065_v26 = vor.u32 %v1063_v28, %v5209_v27  ;;  %v2301_v28 = vmul.f32 %v5239_v7, %v2171_v5  ;;  %v5257_v29 = vmul.f32 %v5242_v8, %v2557_v6  ;;  %v2284_v32 = vunpack.c.l.bf16 %v2268_v18 }
  0xe1   : > { %v4722_v15 = vpop.eup %4721  ;;  %v1726_v41 = vrot.slane %v5249_v20, 1  ;;  %v1882_v43 = vunpack.c.l.bf16 %v5252_v23  ;;  %v2302_v44 = vmul.f32 %v5239_v7, %v2172_v21  ;;  %v5273_v45 = vadd.f32 %v5113_v48, %v659_v38  ;;  %v920_v38 = vld [vmem:[#allocation2 + $0x9c] sm:$0x1] }
  0xe2   : > { %v1363_v50 = vsel %vm5146_vm7, %v1065_v26, %v1362_v31  ;;  %v861_v22 = vmul.f32 %v4722_v15, %v5182_v57  ;;  %v2108_v31 = vadd.f32 %v1999_v17, %v1834_v12  ;;  %v1629_v26 = vmul.f32 %v5191_v4, %v1608_v16 }
  0xe3   : > { %1364 = vst [vmem:[#allocation2 + $0x24] sm:$0xf] %v1363_v50  ;;  %v5264_v57 = vperm.slane %v5188_v61, 6  ;;  %v4724_v40 = vpop.eup %4723  ;;  %v2236_v50 = vadd.f32 %v2204_v25, %v2107_v24  ;;  %v2397_v51 = vrot.slane %v2301_v28, 1  ;;  %v2670_v52 = vrot.slane %v5257_v29, 2  ;;  %v4646_v25 = vld [vmem:[#allocation2 + $0x18] sm:$0xff]  }
  0xe4   : > { %v1013_v37 = vpack.c.bf16 %v861_v22, %v861_v22  ;;  %v4726_v46 = vpop.eup %4725  ;;  %v5277_v61 = vmul.f32 %v5198_v14, %v1497_v11  ;;  %v1727_v53 = vrot.slane %v5260_v30, 1  ;;  %v5281_v54 = vmul.f32 %v5198_v14, %v1608_v16  ;;  %v1425_v22 = vld [vmem:[#allocation2 + $0x90] sm:$0xf]  ;;  %v616_v30 = vpop.f32.mrf.mxu0 }
  0xe5   : > { %8209 = vst [vmem:[#allocation3_spill] sm:$0xff] %v5264_v57  ;;  %v4728_v47 = vpop.eup %4727  ;;  %v2205_v55 = vmul.f32 %v5236_v1, %v2172_v21  ;;  %v2303_v58 = vmul.f32 %v5239_v7, %v2284_v32  ;;  %v1729_v62 = vrot.slane %v1629_v26, 1  ;;  %v5286_v0 = vmul.f32 %v5242_v8, %v2172_v21 }
  0xe6   : > { %v1213_v2 = vshrl.u32 %v1013_v37, 16  ;;  %v1216_v3 = vshll.u32 %v1013_v37, 16  ;;  %v2398_v5 = vrot.slane %v2302_v44, 1  ;;  %v780_v6 = vadd.f32 1.0, %v4724_v40  ;;  %v5303_v44 = vld [vmem:[#allocation2 + $0x18] sm:$0xe] }
  0xe7   : > { %v798_v9 = vadd.f32 1.0, %v4726_v46  ;;  %v703_v10 = vsub.f32 0.0, %v5273_v45  ;;  %v974_v15 = vsel %vm5117_vm6, 0, %v973_v59  ;;  %v781_v16 = vadd.f32 1.0, %v4728_v47 }
  0xe8   : > { %v5289_v12 = vrot.slane %v1213_v2, 7  ;;  %v894_v17 = vsel %vm5102_vm4, 0, %v893_v60  ;;  %v1530_v18 = vmul.f32 %v5201_v13, %v1497_v11  ;;  %v2400_v20 = vrot.slane %v2303_v58, 1  ;;  %975 = vst [vmem:[#allocation2 + $0x98] sm:$0x1] %v974_v15 }
  0xe9   : > { %v2576_v21 = vmul.f32 %v5242_v8, %v2284_v32  ;;  %4729 = vrcp.f32 %v780_v6  ;;  %v2001_v23 = vrot.slane %v5277_v61, 2  ;;  %v2237_v24 = vadd.f32 %v2205_v55, %v2108_v31  ;;  %895 = vst [vmem:[#allocation2 + $0x30] sm:$0x1] %v894_v17  ;;  %v5310_v58 = vld [vmem:[#allocation2 + $0x18] sm:$0xe] }
  0xea   : > { %v1218_v28 = vor.u32 %v1216_v3, %v5289_v12  ;;  %4731 = vrcp.f32 %v798_v9  ;;  %v1730_v26 = vsel %vm1720_vm10, %v1727_v53, %v1729_v62  ;;  %v2003_v37 = vrot.slane %v5281_v54, 2  ;;  %v5325_v2 = vld [vmem:[#allocation2 + $0x20] sm:$0x1]  ;;  %v949_v3 = vld [vmem:[#allocation2 + $0x38] sm:$0x1] }
  0xeb   : > { %4733 = vrcp.f32 %v781_v16  ;;  %v759_v11 = vmul.f32 1.442695, %v703_v10  ;;  %v2399_v32 = vsel %vm1720_vm10, %v2397_v51, %v2398_v5  ;;  %v2671_v40 = vrot.slane %v5286_v0, 2  ;;  %v5327_v6 = vld [vmem:[#allocation2 + $0x18] sm:$0xe] }
  0xec   : > { %v1426_v31 = vsel %vm5146_vm7, %v1218_v28, %v1425_v22  ;;  %v921_v46 = vsel %vm5102_vm4, 0, %v920_v38  ;;  %v2401_v47 = vsel %vm1720_vm10, %v2398_v5, %v2400_v20  ;;  %v2673_v55 = vrot.slane %v2576_v21, 2  ;;  %v5417_v61 = vld [vmem:[%s8092_s4] ss:$0 sm:$0xff] }
  0xed   : > { %v5312_v59 = vunpack.c.l.bf16 %v4646_v25  ;;  %1427 = vst [vmem:[#allocation2 + $0x90] sm:$0xf] %v1426_v31  ;;  %v5315_v51 = vadd.f32 %v5113_v48, %v616_v30  ;;  %v5318_v60 = vmul.f32 %v5198_v14, %v1882_v43  ;;  %v5321_v62 = vsel %vm1720_vm10, %v1726_v41, %v1727_v53 }
  0xee   : > { %v5323_v0 = vadd.f32 %v1730_v26, %v1530_v18  ;;  %922 = vst [vmem:[#allocation2 + $0x9c] sm:$0x1] %v921_v46  ;;  %v5329_v9 = vunpack.c.h.bf16 %v4646_v25  ;;  %v2509_v10 = vadd.f32 %v2399_v32, %v2236_v50  ;;  %4735 = vpow2.f32 %v759_v11  ;;  %v661_v32 = vpop.f32.mrf.mxu2 }
  0xef   : > { %v4730_v5 = vpop.eup %4729  ;;  %v950_v43 = vsel %vm5117_vm6, 0, %v949_v3  ;;  %v2510_v16 = vadd.f32 %v2401_v47, %v2237_v24  ;;  %v1883_v41 = vunpack.c.l.bf16 %v5303_v44  ;;  %v2558_v53 = vunpack.c.l.bf16 %v5310_v58  ;;  %v976_v44 = vld [vmem:[#allocation2 + $0xa4] sm:$0x1] }
  0xf0   : > { %v4732_v15 = vpop.eup %4731  ;;  %v844_v17 = vmul.f32 %v4730_v5, %v5204_v19  ;;  %951 = vst [vmem:[#allocation2 + $0x38] sm:$0x1] %v950_v43  ;;  %v2960_v20 = vunpack.c.l.bf16 %v5325_v2  ;;  %v2977_v21 = vmul.f32 %v5312_v59, %v5267_v36  ;;  %v686_v22 = vsub.f32 0.0, %v5315_v51 }
  0xf1   : > { %v4734_v18 = vpop.eup %4733  ;;  %v862_v50 = vmul.f32 %v4732_v15, %v5214_v33  ;;  %v3233_v25 = vunpack.c.l.bf16 %v5327_v6  ;;  %v2672_v24 = vsel %vm1994_vm11, %v2670_v52, %v2671_v40  ;;  %v2674_v30 = vsel %vm1994_vm11, %v2671_v40, %v2673_v55 }
  0xf2   : > { %v996_v28 = vpack.c.bf16 %v844_v17, %v844_v17  ;;  %v845_v19 = vmul.f32 %v4734_v18, %v5217_v35  ;;  %v2782_v26 = vadd.f32 %v2672_v24, %v2509_v10  ;;  %v2978_v11 = vmul.f32 %v5329_v9, %v5267_v36  ;;  %v1366_v17 = vld [vmem:[#allocation2 + $0x2c] sm:$0x1] }
  0xf3   : > { %v1014_v38 = vpack.c.bf16 %v862_v50, %v862_v50  ;;  %v2783_v33 = vadd.f32 %v2674_v30, %v2510_v16  ;;  %v2880_v31 = vmul.f32 %v5312_v59, %v5264_v57  ;;  %v2881_v29 = vmul.f32 %v5329_v9, %v5264_v57 }
  0xf4   : > { %v997_v46 = vpack.c.bf16 %v845_v19, %v845_v19  ;;  %v4736_v52 = vpop.eup %4735  ;;  %v2979_v47 = vmul.f32 %v5267_v36, %v2960_v20  ;;  %v3073_v35 = vrot.slane %v2977_v21, 1  ;;  %v1068_v2 = vshrl.u32 %v996_v28, 16  ;;  %v5363_v21 = vld [vmem:[%s8091_s3 + $0x8] ss:$0 sm:$0xff] }
  0xf5   : > { %v725_v40 = vmul.f32 1.442695, %v686_v22  ;;  %v1221_v55 = vshrl.u32 %v1014_v38, 16  ;;  %v1224_v3 = vshll.u32 %v1014_v38, 16  ;;  %v5355_v6 = vadd.f32 %v5113_v48, %v661_v32 }
  0xf6   : > { %v1077_v5 = vshrl.u32 %v997_v46, 16  ;;  %v3074_v10 = vrot.slane %v2978_v11, 1  ;;  %v1219_v43 = vrot.slane %v5289_v12, 4  ;;  %v1070_v15 = vrot.slane %v1068_v2, 7  ;;  %v1429_v11 = vld [vmem:[#allocation2 + $0x98] sm:$0x1] }
  0xf7   : > { %v1071_v16 = vshll.u32 %v996_v28, 16  ;;  %v1223_v18 = vrot.slane %v1221_v55, 7  ;;  %v1080_v24 = vshll.u32 %v997_v46, 16  ;;  %v799_v19 = vadd.f32 1.0, %v4736_v52  ;;  %v1369_v2 = vld [vmem:[#allocation2 + $0x30] sm:$0xf] }
  0xf8   : > { %v5358_v50 = vrot.slane %v1077_v5, 7  ;;  %v1066_v22 = vrot.slane %v5209_v27, 4  ;;  %v1075_v38 = vrot.slane %v1070_v15, 4  ;;  %4737 = vpow2.f32 %v725_v40 }
  0xf9   : > { %v1073_v30 = vor.u32 %v1071_v16, %v1070_v15  ;;  %v1226_v12 = vor.u32 %v1224_v3, %v1223_v18  ;;  %v1228_v32 = vrot.slane %v1223_v18, 4  ;;  %v704_v55 = vsub.f32 0.0, %v5355_v6  ;;  %v1484_v16 = vld [vmem:[#allocation2 + $0x84] sm:$0xf] }
  0xfa   : > { %v1082_v28 = vor.u32 %v1080_v24, %v5358_v50  ;;  %v3076_v46 = vrot.slane %v2979_v47, 1  ;;  %v3251_v52 = vmul.f32 %v5363_v21, %v5329_v9  ;;  %v1367_v27 = vsel %vm5102_vm4, %v1075_v38, %v1366_v17 }
  0xfb   : > { %v1074_v5 = vsel %vm5156_vm9, %v1066_v22, %v1073_v30  ;;  %v2912_v15 = vadd.f32 %v2880_v31, %v2782_v26  ;;  %v1227_v40 = vsel %vm5156_vm9, %v1219_v43, %v1226_v12  ;;  %v1430_v3 = vsel %vm5102_vm4, %v1228_v32, %v1429_v11  ;;  %1368 = vst [vmem:[#allocation2 + $0x2c] sm:$0x1] %v1367_v27  ;;  %v2833_v11 = vld [vmem:[#allocation2 + $0x84] sm:$0xf] }
  0xfc   : > { %1365 = vst [vmem:[#allocation2 + $0x28] sm:$0xf] %v1074_v5  ;;  %4739 = vrcp.f32 %v799_v19  ;;  %v3250_v47 = vmul.f32 %v5363_v21, %v3233_v25  ;;  %v3075_v18 = vsel %vm1720_vm10, %v3073_v35, %v3074_v10  ;;  %v3252_v24 = vmul.f32 %v5363_v21, %v2960_v20  ;;  %v1876_v25 = vld [vmem:[#allocation2 + $0x84] sm:$0xe] }
  0xfd   : > { %v1370_v17 = vsel %vm5146_vm7, %v1082_v28, %v1369_v2  ;;  %v1529_v26 = vmul.f32 %v5201_v13, %v1496_v63  ;;  %v2004_v31 = vsel %vm1994_vm11, %v2001_v23, %v2003_v37  ;;  %v2913_v43 = vadd.f32 %v2881_v29, %v2783_v33  ;;  %1428 = vst [vmem:[#allocation2 + $0x94] sm:$0xf] %v1227_v40  ;;  %v2159_v37 = vld [vmem:[#allocation2 + $0x84] sm:$0xf] }
  0xfe   : > { %v761_v35 = vmul.f32 1.442695, %v704_v55  ;;  %v4738_v19 = vpop.eup %4737  ;;  %v2000_v20 = vrot.slane %v5318_v60, 2  ;;  %v5393_v22 = vadd.f32 %v2004_v31, %v5323_v0  ;;  %v3077_v42 = vsel %vm1720_vm10, %v3074_v10, %v3076_v46  ;;  %1431 = vst [vmem:[#allocation2 + $0x98] sm:$0x1] %v1430_v3 }
  0xff   : > { %v3347_v30 = vrot.slane %v3251_v52, 2  ;;  %v5399_v63 = vmul.f32 %v5198_v14, %v1883_v41  ;;  %v5404_v54 = vmul.f32 %v5242_v8, %v2558_v53  ;;  %v2551_v33 = vld [vmem:[#allocation2 + $0x84] sm:$0xe]  ;;  %v1835_v60 = vadd.f32 %v5321_v62, %v1529_v26  ;;  %1371 = vst [vmem:[#allocation2 + $0x30] sm:$0xf] %v1370_v17 }
 0x100   : > { %v3185_v0 = vadd.f32 %v3075_v18, %v2912_v15  ;;  %v3346_v29 = vrot.slane %v3250_v47, 2  ;;  %v1516_v10 = vunpack.c.l.bf16 %v1484_v16  ;;  %v1892_v38 = vunpack.c.l.bf16 %v1876_v25  ;;  %v3226_v2 = vld [vmem:[#allocation2 + $0x84] sm:$0xe]  ;;  %v1593_v3 = vld [vmem:[#allocation2 + $0x20] sm:$0x1] }
 0x101   : > { %v3349_v12 = vrot.slane %v3252_v24, 2  ;;  %v2002_v58 = vsel %vm1994_vm11, %v2000_v20, %v2001_v23  ;;  %v3186_v41 = vadd.f32 %v3077_v42, %v2913_v43  ;;  %4741 = vpow2.f32 %v761_v35  ;;  %v5440_v35 = vld [vmem:[#allocation2 + $0x20] sm:$0x1] }
 0x102   : > { %v4740_v32 = vpop.eup %4739  ;;  %v977_v53 = vsel %vm5117_vm6, 0, %v976_v44  ;;  %v2191_v28 = vunpack.c.l.bf16 %v2159_v37  ;;  %v2567_v62 = vunpack.c.l.bf16 %v2551_v33  ;;  %v3348_v55 = vsel %vm1994_vm11, %v3346_v29, %v3347_v30 }
 0x103   : > { %v782_v46 = vadd.f32 1.0, %v4738_v19  ;;  %v2865_v5 = vunpack.c.l.bf16 %v2833_v11  ;;  %v2109_v27 = vadd.f32 %v2002_v58, %v1835_v60  ;;  %v3458_v15 = vadd.f32 %v3348_v55, %v3185_v0  ;;  %978 = vst [vmem:[#allocation2 + $0xa4] sm:$0x1] %v977_v53 }
 0x104   : > { %v5420_v23 = vmul.f32 %v5191_v4, %v1516_v10  ;;  %v5423_v40 = vmul.f32 %v5198_v14, %v1892_v38  ;;  %v3350_v47 = vsel %vm1994_vm11, %v3347_v30, %v3349_v12  ;;  %v863_v16 = vmul.f32 %v4740_v32, %v5273_v45 }
 0x105   : > { %v5429_v24 = vmul.f32 %v5201_v13, %v1516_v10  ;;  %v3242_v17 = vunpack.c.l.bf16 %v3226_v2  ;;  %v3459_v26 = vadd.f32 %v3350_v47, %v3186_v41  ;;  %v5432_v31 = vmul.f32 %v5236_v1, %v2191_v28  ;;  %v619_v41 = vpop.f32.mrf.mxu0 }
 0x106   : > { %8211 = vst [vmem:[#allocation5_spill] sm:$0xff] %v5420_v23  ;;  %v5435_v25 = vmul.f32 %v5239_v7, %v2191_v28  ;;  %v5438_v43 = vmul.f32 %v5242_v8, %v2567_v62  ;;  %4743 = vrcp.f32 %v782_v46  ;;  %v5443_v19 = vmul.f32 %v5264_v57, %v2865_v5 }
 0x107   : > { %8212 = vst [vmem:[#allocation6_spill] sm:$0xff] %v5423_v40  ;;  %v4742_v45 = vpop.eup %4741  ;;  %v5446_v20 = vmul.f32 %v5267_v36, %v2865_v5  ;;  %v1609_v42 = vunpack.c.l.bf16 %v1593_v3  ;;  %v5449_v30 = vadd.f32 %v5417_v61, %v3458_v15  ;;  %v1630_v60 = vmul.f32 %v5312_v59, %v5191_v4 }
 0x108   : > { %8213 = vst [vmem:[#allocation7_spill] sm:$0xff] %v5429_v24  ;;  %v1015_v0 = vpack.c.bf16 %v863_v16, %v863_v16  ;;  %v5456_v29 = vmul.f32 %v5363_v21, %v3242_v17  ;;  %v1631_v10 = vmul.f32 %v5329_v9, %v5191_v4  ;;  %v2285_v38 = vunpack.c.l.bf16 %v5440_v35  ;;  %v979_v24 = vld [vmem:[#allocation2 + $0xb0] sm:$0x1] }
 0x109   : > { %8214 = vst [vmem:[#allocation8_spill] sm:$0xff] %v5432_v31  ;;  %v5462_v11 = vadd.f32 %v5417_v61, %v3459_v26  ;;  %v2304_v44 = vmul.f32 %v5312_v59, %v5239_v7  ;;  %v2305_v32 = vmul.f32 %v5329_v9, %v5239_v7  ;;  %v800_v58 = vadd.f32 1.0, %v4742_v45 }
 0x10a   : > { %8215 = vst [vmem:[#allocation9_spill] sm:$0xff] %v5435_v25  ;;  %v1632_v62 = vmul.f32 %v5191_v4, %v1609_v42  ;;  %v3526_v2 = vsub.f32 0.0, %v5449_v30  ;;  %v1531_v46 = vmul.f32 %v5312_v59, %v5201_v13  ;;  %v1731_v5 = vrot.slane %v1630_v60, 1  ;;  %v5676_v25 = vld [vmem:[#allocation2 + $0x2c] sm:$0x1] }
 0x10b   : > { %8216 = vst [vmem:[#allocation10_spill] sm:$0xff] %v5438_v43  ;;  %v2206_v15 = vmul.f32 %v5312_v59, %v5236_v1  ;;  %v1230_v3 = vshrl.u32 %v1015_v0, 16  ;;  %v1732_v47 = vrot.slane %v1631_v10, 1  ;;  %v2306_v16 = vmul.f32 %v5239_v7, %v2285_v38 }
 0x10c   : > { %8217 = vst [vmem:[#allocation11_spill] sm:$0xff] %v5443_v19  ;;  %v4744_v55 = vpop.eup %4743  ;;  %v3527_v17 = vsub.f32 0.0, %v5462_v11  ;;  %v5480_v26 = vadd.f32 %v5113_v48, %v619_v41  ;;  %v5484_v35 = vmul.f32 %v5329_v9, %v5198_v14  ;;  %v2402_v45 = vrot.slane %v2304_v44, 1 }
 0x10d   : > { %8218 = vst [vmem:[#allocation12_spill] sm:$0xff] %v5446_v20  ;;  %v2403_v28 = vrot.slane %v2305_v32, 1  ;;  %4745 = vrcp.f32 %v800_v58  ;;  %v1734_v60 = vrot.slane %v1632_v62, 1  ;;  %v2207_v59 = vmul.f32 %v5329_v9, %v5236_v1 }
 0x10e   : > { %8219 = vst [vmem:[#allocation13_spill] sm:$0xff] %v5456_v29  ;;  %v3558_v53 = vmul.f32 1.442695, %v3526_v2  ;;  %v846_v10 = vmul.f32 %v4744_v55, %v5315_v51  ;;  %v2238_v12 = vadd.f32 %v2206_v15, %v2109_v27  ;;  %v5491_v33 = vmul.f32 %v5329_v9, %v5242_v8  ;;  %v2160_v15 = vld [vmem:[#allocation2 + $0x88] sm:$0xf]  ;;  %v664_v29 = vpop.f32.mrf.mxu2 }
 0x10f   : > { %v5493_v48 = vrot.slane %v1230_v3, 7  ;;  %v1233_v41 = vshll.u32 %v1015_v0, 16  ;;  %v1733_v37 = vsel %vm1720_vm10, %v1731_v5, %v1732_v47  ;;  %v2405_v44 = vrot.slane %v2306_v16, 1  ;;  %v1485_v5 = vld [vmem:[#allocation2 + $0x88] sm:$0xf] }
 0x110   : > { %v3560_v32 = vmul.f32 1.442695, %v3527_v17  ;;  %v687_v58 = vsub.f32 0.0, %v5480_v26  ;;  %v1532_v62 = vmul.f32 %v5329_v9, %v5201_v13  ;;  %v5500_v2 = vmul.f32 %v5198_v14, %v1609_v42  ;;  %v1432_v3 = vld [vmem:[#allocation2 + $0x9c] sm:$0xf] }
 0x111   : > { %v2404_v27 = vsel %vm1720_vm10, %v2402_v45, %v2403_v28  ;;  %v1735_v55 = vsel %vm1720_vm10, %v1732_v47, %v1734_v60  ;;  %v2239_v0 = vadd.f32 %v2207_v59, %v5393_v22  ;;  %4747 = vpow2.f32 %v3558_v53  ;;  %v2817_v22 = vld [vmem:[#allocation2 + $0x24] sm:$0xf] }
 0x112   : > { %v998_v16 = vpack.c.bf16 %v846_v10, %v846_v10  ;;  %v1837_v18 = vadd.f32 %v1733_v37, %v1531_v46  ;;  %v5507_v9 = vmul.f32 %v5242_v8, %v2285_v38  ;;  %v8100_v42 = vrot.slane %v5491_v33, 2 }
 0x113   : > { %v4746_v17 = vpop.eup %4745  ;;  %v1235_v52 = vor.u32 %v1233_v41, %v5493_v48  ;;  %v2406_v45 = vsel %vm1720_vm10, %v2403_v28, %v2405_v44  ;;  %v2511_v51 = vadd.f32 %v2404_v27, %v2238_v12  ;;  %4749 = vpow2.f32 %v3560_v32  ;;  %v2834_v41 = vld [vmem:[#allocation2 + $0x88] sm:$0xf] }
 0x114   : > { %v727_v47 = vmul.f32 1.442695, %v687_v58  ;;  %v1517_v53 = vunpack.c.l.bf16 %v1485_v5  ;;  %v2192_v60 = vunpack.c.l.bf16 %v2160_v15  ;;  %v5515_v37 = vadd.f32 %v1735_v55, %v1532_v62  ;;  %v1602_v55 = vld [vmem:[#allocation2 + $0x8c] sm:$0x1] }
 0x115   : > { %v1433_v59 = vsel %vm5146_vm7, %v1235_v52, %v1432_v3  ;;  %v8220_v38 = vrot.slane %v5484_v35, 2  ;;  %v8221_v46 = vrot.slane %v5399_v63, 2  ;;  %v1085_v12 = vshrl.u32 %v998_v16, 16 }
 0x116   : > { %1434 = vst [vmem:[#allocation2 + $0x9c] sm:$0xf] %v1433_v59  ;;  %v864_v28 = vmul.f32 %v4746_v17, %v5355_v6  ;;  %v5525_v32 = vadd.f32 %v2406_v45, %v2239_v0  ;;  %v8222_v52 = vrot.slane %v5404_v54, 2  ;;  %v1088_v15 = vshll.u32 %v998_v16, 16  ;;  %v896_v6 = vld [vmem:[#allocation2 + $0x3c] sm:$0x1] }
 0x117   : > { %v2007_v10 = vsel %vm1994_vm11, %v8221_v46, %v8220_v38  ;;  %v4748_v63 = vpop.eup %4747  ;;  %v1087_v5 = vrot.slane %v1085_v12, 7  ;;  %4751 = vpow2.f32 %v727_v47  ;;  %v5539_v0 = vmul.f32 %v5198_v14, %v1517_v53  ;;  %v1373_v17 = vld [vmem:[#allocation2 + $0x38] sm:$0x1] }
 0x118   : > { %v5523_v44 = vadd.f32 %v2007_v10, %v1837_v18  ;;  %v2677_v58 = vsel %vm1994_vm11, %v8222_v52, %v8100_v42  ;;  %v5536_v18 = vmul.f32 %v5191_v4, %v1517_v53  ;;  %v5542_v54 = vmul.f32 %v5239_v7, %v2192_v60 }
 0x119   : > { %v5533_v27 = vadd.f32 %v2677_v58, %v2511_v51  ;;  %8224 = vst [vmem:[#allocation15_spill] sm:$0xff] %v5539_v0  ;;  %v5544_v3 = vunpack.c.l.bf16 %v2834_v41  ;;  %v4750_v45 = vpop.eup %4749  ;;  %v2278_v51 = vld [vmem:[#allocation2 + $0x8c] sm:$0x1]  ;;  %v1083_v59 = vrot.slane %v5358_v50, 4  ;;  %v1090_v38 = vor.u32 %v1088_v15, %v1087_v5 }
 0x11a   : > { %8223 = vst [vmem:[#allocation14_spill] sm:$0xff] %v5536_v18  ;;  %v1092_v16 = vrot.slane %v1087_v5, 4  ;;  %v1016_v47 = vpack.c.bf16 %v864_v28, %v864_v28  ;;  %v3622_v46 = vadd.f32 1.0, %v4748_v63  ;;  %v5548_v10 = vmul.f32 %v5201_v13, %v1517_v53  ;;  %v5552_v58 = vld [vmem:[#allocation2 + $0x8c] sm:$0x1] }
 0x11b   : > { %8225 = vst [vmem:[#allocation16_spill] sm:$0xff] %v5542_v54  ;;  %v1618_v12 = vunpack.c.l.bf16 %v1602_v55  ;;  %v897_v52 = vsel %vm5102_vm4, 0, %v896_v6  ;;  %v1091_v41 = vsel %vm5156_vm9, %v1083_v59, %v1090_v38  ;;  %v3623_v28 = vadd.f32 1.0, %v4750_v45  ;;  %v923_v6 = vld [vmem:[#allocation2 + $0xa8] sm:$0x1] }
 0x11c   : > { %8226 = vst [vmem:[#allocation17_spill] sm:$0xff] %v5544_v3  ;;  %v1374_v42 = vsel %vm5102_vm4, %v1092_v16, %v1373_v17  ;;  %v1238_v50 = vshrl.u32 %v1016_v47, 16  ;;  %v1241_v15 = vshll.u32 %v1016_v47, 16  ;;  %v5560_v53 = vmul.f32 %v5236_v1, %v2192_v60  ;;  %v1468_v47 = vld [vmem:[#allocation2 + $0x24] sm:$0xf] }
 0x11d   : > { %8227 = vst [vmem:[#allocation18_spill] sm:$0xff] %v5548_v10  ;;  %v2294_v55 = vunpack.c.l.bf16 %v2278_v51  ;;  %v4752_v5 = vpop.eup %4751  ;;  %v1236_v59 = vrot.slane %v5493_v48, 4  ;;  %v5566_v38 = vmul.f32 %v5191_v4, %v1618_v12  ;;  %v5569_v45 = vmul.f32 %v5242_v8, %v2192_v60  ;;  %v2543_v63 = vld [vmem:[#allocation2 + $0x24] sm:$0xe] }
 0x11e   : > { %8228 = vst [vmem:[#allocation19_spill] sm:$0xff] %v5552_v58  ;;  %v1240_v17 = vrot.slane %v1238_v50, 7  ;;  %v5574_v51 = vmul.f32 %v5267_v36, %v5544_v3  ;;  %4753 = vrcp.f32 %v3622_v46  ;;  %v5577_v48 = vmul.f32 %v5198_v14, %v1618_v12  ;;  %v3218_v46 = vld [vmem:[#allocation2 + $0x24] sm:$0xe] }
 0x11f   : > { %898 = vst [vmem:[#allocation2 + $0x3c] sm:$0x1] %v897_v52  ;;  %v1868_v52 = vld [vmem:[#allocation2 + $0x24] sm:$0xe]  ;;  %4755 = vrcp.f32 %v3623_v28  ;;  %v5580_v60 = vmul.f32 %v5239_v7, %v2294_v55  ;;  %v783_v16 = vadd.f32 1.0, %v4752_v5  ;;  %v924_v20 = vsel %vm5102_vm4, 0, %v923_v6 }
 0x120   : > { %8229 = vst [vmem:[#allocation20_spill] sm:$0xff] %v5560_v53  ;;  %v1243_v50 = vor.u32 %v1241_v15, %v1240_v17  ;;  %v1245_v62 = vrot.slane %v1240_v17, 4  ;;  %v1500_v19 = vunpack.c.l.bf16 %v1468_v47  ;;  %v5591_v28 = vld [vmem:[%s8090_s2] ss:$0 sm:$0xff]  ;;  %v1884_v47 = vunpack.c.l.bf16 %v1868_v52  ;;  %v5608_v52 = vld [vmem:[#allocation2 + $0x2c] sm:$0x1] }
 0x121   : > { %1372 = vst [vmem:[#allocation2 + $0x34] sm:$0xf] %v1091_v41  ;;  %v1436_v41 = vld [vmem:[#allocation2 + $0xa4] sm:$0x1]  ;;  %v5594_v17 = vadd.f32 %v5591_v28, %v664_v29  ;;  %v2849_v43 = vunpack.c.l.bf16 %v2817_v22  ;;  %v2818_v29 = vld [vmem:[#allocation2 + $0x28] sm:$0xf]  ;;  %v3234_v6 = vunpack.c.l.bf16 %v3218_v46  ;;  %4757 = vrcp.f32 %v783_v16 }
 0x122   : > { %1375 = vst [vmem:[#allocation2 + $0x38] sm:$0x1] %v1374_v42  ;;  %v2143_v42 = vld [vmem:[#allocation2 + $0x24] sm:$0xf]  ;;  %v1244_v12 = vsel %vm5156_vm9, %v1236_v59, %v1243_v50  ;;  %v1437_v15 = vsel %vm5102_vm4, %v1245_v62, %v1436_v41  ;;  %v5599_v59 = vmul.f32 %v5242_v8, %v2294_v55  ;;  %v8236_v62 = vunpack.c.l.bf16 %v5552_v58 }
 0x123   : > { %8230 = vst [vmem:[#allocation21_spill] sm:$0xff] %v5566_v38  ;;  %v2175_v3 = vunpack.c.l.bf16 %v2143_v42  ;;  %v2559_v50 = vunpack.c.l.bf16 %v2543_v63  ;;  %v8239_v22 = vrot.slane %v5484_v35, 2  ;;  %v5621_v46 = vmul.f32 %v5198_v14, %v1884_v47 }
 0x124   : > { %8231 = vst [vmem:[#allocation22_spill] sm:$0xff] %v5569_v45  ;;  %v5604_v41 = vmul.f32 %v5267_v36, %v8236_v62  ;;  %v4754_v42 = vpop.eup %4753  ;;  %v8238_v62 = vrot.slane %v5500_v2, 2  ;;  %v2850_v55 = vunpack.c.l.bf16 %v2818_v29  ;;  %v2882_v2 = vmul.f32 %v5264_v57, %v2849_v43 }
 0x125   : > { %8232 = vst [vmem:[#allocation23_spill] sm:$0xff] %v5574_v51  ;;  %v2208_v16 = vmul.f32 %v5236_v1, %v2175_v3  ;;  %v5625_v5 = vmul.f32 %v5239_v7, %v2175_v3  ;;  %v5628_v58 = vmul.f32 %v5242_v8, %v2559_v50  ;;  %v2980_v47 = vmul.f32 %v5267_v36, %v2849_v43 }
 0x126   : > { %8233 = vst [vmem:[#allocation24_spill] sm:$0xff] %v5577_v48  ;;  %v2009_v63 = vsel %vm1994_vm11, %v8239_v22, %v8238_v62  ;;  %v2961_v62 = vunpack.c.l.bf16 %v5608_v52  ;;  %v5636_v22 = vmul.f32 %v5201_v13, %v1500_v19  ;;  %v5640_v51 = vmul.f32 %v5363_v21, %v3234_v6  ;;  %v666_v6 = vpop.f32.mrf.mxu2 }
 0x127   : > { %8234 = vst [vmem:[#allocation25_spill] sm:$0xff] %v5580_v60  ;;  %v5632_v35 = vadd.f32 %v2009_v63, %v5515_v37  ;;  %v8240_v3 = vrot.slane %v5507_v9, 2  ;;  %v8241_v50 = vrot.slane %v5491_v33, 2  ;;  %v5648_v37 = vmul.f32 %v4754_v42, %v5449_v30  ;;  %v1877_v63 = vld [vmem:[#allocation2 + $0x90] sm:$0xe] }
 0x128   : > { %925 = vst [vmem:[#allocation2 + $0xa8] sm:$0x1] %v924_v20  ;;  %v4756_v20 = vpop.eup %4755  ;;  %v5656_v9 = vadd.f32 %v2208_v16, %v5523_v44  ;;  %v2982_v42 = vmul.f32 %v5267_v36, %v2961_v62  ;;  %v3351_v44 = vrot.slane %v5640_v51, 2  ;;  %v1893_v16 = vunpack.c.l.bf16 %v1877_v63  ;;  %v1594_v33 = vld [vmem:[#allocation2 + $0x2c] sm:$0x1] }
 0x129   : > { %1435 = vst [vmem:[#allocation2 + $0xa0] sm:$0xf] %v1244_v12  ;;  %v5612_v12 = vmul.f32 %v5191_v4, %v1500_v19  ;;  %v2679_v29 = vsel %vm1994_vm11, %v8241_v50, %v8240_v3  ;;  %v5651_v52 = vmul.f32 %v4756_v20, %v5462_v11  ;;  %v4758_v45 = vpop.eup %4757  ;;  %v1469_v3 = vld [vmem:[#allocation2 + $0x28] sm:$0xf]  ;;  %v2981_v50 = vmul.f32 %v5267_v36, %v2850_v55  ;;  %v5662_v20 = vld [vmem:[#allocation2 + $0x90] sm:$0xe] }
 0x12a   : > { %8235 = vst [vmem:[#allocation26_spill] sm:$0xff] %v5599_v59  ;;  %v2914_v11 = vadd.f32 %v2882_v2, %v5533_v27  ;;  %v3078_v19 = vrot.slane %v2980_v47, 1  ;;  %v2144_v59 = vld [vmem:[#allocation2 + $0x28] sm:$0xf]  ;;  %v2785_v60 = vadd.f32 %v2679_v29, %v5525_v32  ;;  %v5674_v27 = vld [vmem:[#allocation2 + $0x90] sm:$0xe]  ;;  %v1501_v2 = vunpack.c.l.bf16 %v1469_v3 }
 0x12b   : > { %8237 = vst [vmem:[#allocation27_spill] sm:$0xff] %v5604_v41  ;;  %v621_v41 = vpop.f32.mrf.mxu0  ;;  %v5672_v30 = vadd.f32 %v5651_v52, %v5648_v37  ;;  %v2883_v51 = vmul.f32 %v5264_v57, %v2850_v55  ;;  %v3079_v63 = vrot.slane %v2981_v50, 1  ;;  %v5682_v54 = vadd.f32 %v5591_v28, %v666_v6 }
 0x12c   : > { %1438 = vst [vmem:[#allocation2 + $0xa4] sm:$0x1] %v1437_v15  ;;  %v705_v15 = vsub.f32 0.0, %v5594_v17  ;;  %v1610_v32 = vunpack.c.l.bf16 %v1594_v33  ;;  %v2176_v29 = vunpack.c.l.bf16 %v2144_v59  ;;  %v5686_v3 = vmul.f32 %v5198_v14, %v1893_v16 }
 0x12d   : > { %8242 = vst [vmem:[#allocation28_spill] sm:$0xff] %v5648_v37  ;;  %v1634_v6 = vmul.f32 %v5191_v4, %v1501_v2  ;;  %v3255_v33 = vmul.f32 %v5363_v21, %v2961_v62  ;;  %v5697_v50 = vmul.f32 %v5198_v14, %v1501_v2  ;;  %v3080_v16 = vsel %vm1720_vm10, %v3078_v19, %v3079_v63  ;;  %v952_v19 = vld [vmem:[#allocation2 + $0x44] sm:$0x1] }
 0x12e   : > { %8243 = vst [vmem:[#allocation29_spill] sm:$0xff] %v5651_v52  ;;  %v763_v43 = vmul.f32 1.442695, %v705_v15  ;;  %v5666_v15 = vadd.f32 %v5591_v28, %v621_v41  ;;  %v847_v41 = vmul.f32 %v4758_v45, %v5480_v26  ;;  %v3081_v52 = vrot.slane %v2982_v42, 1 }
 0x12f   : > { %8244 = vst [vmem:[#allocation30_spill] sm:$0xff] %v5662_v20  ;;  %v2286_v26 = vunpack.c.l.bf16 %v5676_v25  ;;  %v3254_v45 = vmul.f32 %v5363_v21, %v2850_v55  ;;  %v2915_v42 = vadd.f32 %v2883_v51, %v2785_v60  ;;  %v706_v53 = vsub.f32 0.0, %v5682_v54 }
 0x130   : > { %8245 = vst [vmem:[#allocation31_spill] sm:$0xff] %v5674_v27  ;;  %4759 = vpow2.f32 %v763_v43  ;;  %v688_v37 = vsub.f32 0.0, %v5666_v15  ;;  %v5692_v43 = vmul.f32 %v5201_v13, %v1501_v2  ;;  %v999_v59 = vpack.c.bf16 %v847_v41, %v847_v41 }
 0x131   : > { %8246 = vst [vmem:[#allocation32_spill] sm:$0xff] %v5686_v3  ;;  %v1635_v25 = vmul.f32 %v5191_v4, %v1610_v32  ;;  %v2209_v55 = vmul.f32 %v5236_v1, %v2176_v29  ;;  %v3082_v27 = vsel %vm1720_vm10, %v3079_v63, %v3081_v52  ;;  %v5705_v31 = vmul.f32 %v5198_v14, %v1610_v32 }
 0x132   : > { %v729_v20 = vmul.f32 1.442695, %v688_v37  ;;  %v5708_v62 = vmul.f32 %v5239_v7, %v2176_v29  ;;  %v2309_v60 = vmul.f32 %v5239_v7, %v2286_v26  ;;  %v3352_v2 = vrot.slane %v3254_v45, 2 }
 0x133   : > { %v1737_v41 = vrot.slane %v1634_v6, 1  ;;  %v3187_v51 = vadd.f32 %v3080_v16, %v2914_v11  ;;  %v3354_v48 = vrot.slane %v3255_v33, 2  ;;  %v1094_v40 = vshrl.u32 %v999_v59, 16  ;;  %v624_v38 = vpop.f32.mrf.mxu0  ;;  %v1376_v33 = vld [vmem:[#allocation2 + $0x3c] sm:$0xf] }
 0x134   : > { %v8124_v0 = vrot.slane %v5697_v50, 2  ;;  %v3188_v3 = vadd.f32 %v3082_v27, %v2915_v42  ;;  %v765_v52 = vmul.f32 1.442695, %v706_v53  ;;  %v1097_v63 = vshll.u32 %v999_v59, 16 }
 0x135   : > { %v5712_v37 = vrot.slane %v1094_v40, 7  ;;  %4761 = vpow2.f32 %v729_v20  ;;  %v953_v32 = vsel %vm5117_vm6, 0, %v952_v19  ;;  %v1739_v45 = vrot.slane %v1635_v25, 1 }
 0x136   : > { %v4760_v47 = vpop.eup %4759  ;;  %v2241_v6 = vadd.f32 %v2209_v55, %v5632_v35  ;;  %v3353_v11 = vsel %vm1994_vm11, %v3351_v44, %v3352_v2  ;;  %954 = vst [vmem:[#allocation2 + $0x44] sm:$0x1] %v953_v32  ;;  %v5719_v27 = vmul.f32 %v5242_v8, %v2176_v29  ;;  %v3355_v40 = vsel %vm1994_vm11, %v3352_v2, %v3354_v48  ;;  %v669_v44 = vpop.f32.mrf.mxu2  ;;  %v899_v48 = vld [vmem:[#allocation2 + $0x48] sm:$0x1] }
 0x137   : > { %v801_v10 = vadd.f32 1.0, %v4760_v47  ;;  %v3460_v53 = vadd.f32 %v3353_v11, %v3187_v51  ;;  %v1099_v20 = vor.u32 %v1097_v63, %v5712_v37  ;;  %v3461_v47 = vadd.f32 %v3355_v40, %v3188_v3 }
 0x138   : > { %v980_v59 = vsel %vm5117_vm6, 0, %v979_v24  ;;  %v5726_v35 = vadd.f32 %v5591_v28, %v624_v38  ;;  %v2410_v42 = vrot.slane %v2309_v60, 1  ;;  %v5732_v16 = vadd.f32 %v5591_v28, %v669_v44  ;;  %v4651_v24 = vld [vmem:[#allocation2 + $0x90] sm:$0xff]  }
 0x139   : > { %4763 = vrcp.f32 %v801_v10  ;;  %v2408_v10 = vrot.slane %v5708_v62, 1  ;;  %v1377_v29 = vsel %vm5146_vm7, %v1099_v20, %v1376_v33  ;;  %981 = vst [vmem:[#allocation2 + $0xb0] sm:$0x1] %v980_v59  ;;  %v1740_v3 = vsel %vm1720_vm10, %v1737_v41, %v1739_v45 }
 0x13a   : > { %4765 = vpow2.f32 %v765_v52  ;;  %v2582_v25 = vmul.f32 %v5242_v8, %v2286_v26  ;;  %1378 = vst [vmem:[#allocation2 + $0x3c] sm:$0xf] %v1377_v29  ;;  %v689_v38 = vsub.f32 0.0, %v5726_v35  ;;  %v900_v55 = vsel %vm5102_vm4, 0, %v899_v48  ;;  %v5748_v52 = vld [vmem:[#allocation2 + $0x98] sm:$0x1] }
 0x13b   : > { %v4762_v62 = vpop.eup %4761  ;;  %v8247_v60 = vrot.slane %v5612_v12, 1  ;;  %v2013_v19 = vrot.slane %v5705_v31, 2  ;;  %v5746_v51 = vadd.f32 %v5417_v61, %v3460_v53  ;;  %8248 = vst [vmem:[#allocation33_spill] sm:$0xff] %v5748_v52  ;;  %v707_v26 = vsub.f32 0.0, %v5732_v16  ;;  %v3219_v48 = vld [vmem:[#allocation2 + $0x30] sm:$0xe] }
 0x13c   : > { %901 = vst [vmem:[#allocation2 + $0x48] sm:$0x1] %v900_v55  ;;  %v2681_v32 = vrot.slane %v5719_v27, 2  ;;  %v5753_v45 = vadd.f32 %v5417_v61, %v3461_v47  ;;  %v784_v12 = vadd.f32 1.0, %v4762_v62  ;;  %v731_v11 = vmul.f32 1.442695, %v689_v38 }
 0x13d   : > { %v5742_v2 = vsel %vm1720_vm10, %v8247_v60, %v1737_v41  ;;  %v1840_v41 = vadd.f32 %v1740_v3, %v5692_v43  ;;  %v2411_v31 = vsel %vm1720_vm10, %v2408_v10, %v2410_v42  ;;  %v5757_v33 = vunpack.c.l.bf16 %v4651_v24 }
 0x13e   : > { %v2683_v20 = vrot.slane %v2582_v25, 2  ;;  %v5760_v59 = vunpack.c.h.bf16 %v4651_v24  ;;  %v8123_v44 = vunpack.c.l.bf16 %v5748_v52  ;;  %v767_v27 = vmul.f32 1.442695, %v707_v26  ;;  %v5782_v26 = vld [vmem:[#allocation2 + $0x98] sm:$0x1] }
 0x13f   : > { %v4764_v63 = vpop.eup %4763  ;;  %8249 = vst [vmem:[#allocation34_spill] sm:$0xff] %v5757_v33  ;;  %v3528_v47 = vsub.f32 0.0, %v5746_v51  ;;  %v5766_v29 = vmul.f32 %v5757_v33, %v5191_v4  ;;  %4767 = vrcp.f32 %v784_v12  ;;  %v3529_v42 = vsub.f32 0.0, %v5753_v45  ;;  %v5788_v12 = vld [vmem:[#allocation2 + $0x30] sm:$0xe] }
 0x140   : > { %v865_v40 = vmul.f32 %v4764_v63, %v5594_v17  ;;  %v4766_v53 = vpop.eup %4765  ;;  %8250 = vst [vmem:[#allocation35_spill] sm:$0xff] %v5760_v59  ;;  %v5771_v17 = vmul.f32 %v5760_v59, %v5191_v4  ;;  %4769 = vpow2.f32 %v731_v11  ;;  %v2014_v25 = vsel %vm1994_vm11, %v8124_v0, %v2013_v19 }
 0x141   : > { %8251 = vst [vmem:[#allocation36_spill] sm:$0xff] %v5766_v29  ;;  %v802_v43 = vadd.f32 1.0, %v4766_v53  ;;  %v8253_v24 = vrot.slane %v5625_v5, 1  ;;  %v2514_v55 = vadd.f32 %v2411_v31, %v2241_v6  ;;  %v5779_v62 = vadd.f32 %v2014_v25, %v1840_v41  ;;  %v4647_v41 = vld [vmem:[#allocation2 + $0x30] sm:$0xff]  }
 0x142   : > { %8252 = vst [vmem:[#allocation37_spill] sm:$0xff] %v5771_v17  ;;  %v1017_v3 = vpack.c.bf16 %v865_v40, %v865_v40  ;;  %v2684_v60 = vsel %vm1994_vm11, %v2681_v32, %v2683_v20  ;;  %v5786_v63 = vmul.f32 %v5757_v33, %v5239_v7  ;;  %v3562_v19 = vmul.f32 1.442695, %v3528_v47  ;;  %v1380_v17 = vld [vmem:[#allocation2 + $0x44] sm:$0x1] }
 0x143   : > { %v2409_v38 = vsel %vm1720_vm10, %v8253_v24, %v2408_v10  ;;  %4771 = vrcp.f32 %v802_v43  ;;  %8254 = vst [vmem:[#allocation38_spill] sm:$0xff] %v5782_v26  ;;  %v5792_v5 = vmul.f32 %v5757_v33, %v5201_v13  ;;  %v5797_v6 = vmul.f32 %v5191_v4, %v8123_v44  ;;  %v5799_v10 = vld [vmem:[#allocation2 + $0x30] sm:$0xe]  ;;  %v626_v24 = vpop.f32.mrf.mxu0 }
 0x144   : > { %8255 = vst [vmem:[#allocation39_spill] sm:$0xff] %v5786_v63  ;;  %4773 = vpow2.f32 %v767_v27  ;;  %v3235_v11 = vunpack.c.l.bf16 %v3219_v48  ;;  %v3564_v31 = vmul.f32 1.442695, %v3529_v42  ;;  %v1247_v20 = vshrl.u32 %v1017_v3, 16 }
 0x145   : > { %8256 = vst [vmem:[#allocation40_spill] sm:$0xff] %v5792_v5  ;;  %v4768_v27 = vpop.eup %4767  ;;  %v5805_v47 = vmul.f32 %v5757_v33, %v5236_v1  ;;  %v5810_v25 = vmul.f32 %v5757_v33, %v5267_v36  ;;  %v5815_v53 = vunpack.c.l.bf16 %v4647_v41  ;;  %v5817_v0 = vunpack.c.h.bf16 %v4647_v41 }
 0x146   : > { %8257 = vst [vmem:[#allocation41_spill] sm:$0xff] %v5797_v6  ;;  %v4770_v42 = vpop.eup %4769  ;;  %4775 = vpow2.f32 %v3562_v19  ;;  %v5820_v43 = vmul.f32 %v5363_v21, %v3235_v11  ;;  %v2513_v33 = vadd.f32 %v2409_v38, %v5656_v9  ;;  %v8260_v26 = vrot.slane %v5628_v58, 2  ;;  %v926_v9 = vld [vmem:[#allocation2 + $0xb4] sm:$0x1] }
 0x147   : > { %8258 = vst [vmem:[#allocation42_spill] sm:$0xff] %v5805_v47  ;;  %v2946_v47 = vld [vmem:[#allocation2 + $0x38] sm:$0x1]  ;;  %4777 = vpow2.f32 %v3564_v31  ;;  %v5826_v44 = vadd.f32 %v2684_v60, %v2514_v55  ;;  %v1249_v40 = vrot.slane %v1247_v20, 7  ;;  %v5829_v41 = vadd.f32 %v5591_v28, %v626_v24  ;;  %v1439_v55 = vld [vmem:[#allocation2 + $0xa8] sm:$0xf] }
 0x148   : > { %8259 = vst [vmem:[#allocation43_spill] sm:$0xff] %v5810_v25  ;;  %v2682_v48 = vsel %vm1994_vm11, %v8260_v26, %v2681_v32  ;;  %v1250_v63 = vshll.u32 %v1017_v3, 16  ;;  %v848_v19 = vmul.f32 %v4768_v27, %v5666_v15  ;;  %v785_v29 = vadd.f32 1.0, %v4770_v42  ;;  %v955_v3 = vld [vmem:[#allocation2 + $0x50] sm:$0x1] }
 0x149   : > { %v4772_v52 = vpop.eup %4771  ;;  %v2962_v38 = vunpack.c.l.bf16 %v2946_v47  ;;  %v2983_v58 = vmul.f32 %v5815_v53, %v5267_v36  ;;  %v5837_v32 = vmul.f32 %v5817_v0, %v5267_v36  ;;  %v927_v15 = vsel %vm5102_vm4, 0, %v926_v9 }
 0x14a   : > { %v4774_v5 = vpop.eup %4773  ;;  %v866_v11 = vmul.f32 %v4772_v52, %v5682_v54  ;;  %v1252_v26 = vor.u32 %v1250_v63, %v1249_v40  ;;  %v1000_v31 = vpack.c.bf16 %v848_v19, %v848_v19  ;;  %4779 = vrcp.f32 %v785_v29  ;;  %928 = vst [vmem:[#allocation2 + $0xb4] sm:$0x1] %v927_v15 }
 0x14b   : > { %v803_v60 = vadd.f32 1.0, %v4774_v5  ;;  %v2884_v54 = vmul.f32 %v5815_v53, %v5264_v57  ;;  %v956_v52 = vsel %vm5117_vm6, 0, %v955_v3  ;;  %v2786_v47 = vadd.f32 %v2682_v48, %v2513_v33 }
 0x14c   : > { %v1018_v20 = vpack.c.bf16 %v866_v11, %v866_v11  ;;  %v4776_v27 = vpop.eup %4775  ;;  %v1440_v5 = vsel %vm5146_vm7, %v1252_v26, %v1439_v55  ;;  %v1102_v63 = vshrl.u32 %v1000_v31, 16  ;;  %v690_v29 = vsub.f32 0.0, %v5829_v41  ;;  %957 = vst [vmem:[#allocation2 + $0x50] sm:$0x1] %v956_v52  ;;  %v671_v52 = vpop.f32.mrf.mxu2 }
 0x14d   : > { %4781 = vrcp.f32 %v803_v60  ;;  %v5848_v24 = vpop.eup %4777  ;;  %v2885_v42 = vmul.f32 %v5817_v0, %v5264_v57  ;;  %v2985_v19 = vmul.f32 %v5267_v36, %v2962_v38  ;;  %1441 = vst [vmem:[#allocation2 + $0xa8] sm:$0xf] %v1440_v5  ;;  %v3083_v60 = vrot.slane %v2983_v58, 1 }
 0x14e   : > { %v1255_v11 = vshrl.u32 %v1018_v20, 16  ;;  %v1258_v9 = vshll.u32 %v1018_v20, 16  ;;  %v3084_v33 = vrot.slane %v5837_v32, 1  ;;  %v1104_v48 = vrot.slane %v1102_v63, 7  ;;  %v1443_v20 = vld [vmem:[#allocation2 + $0xb0] sm:$0x1] }
 0x14f   : > { %v1105_v3 = vshll.u32 %v1000_v31, 16  ;;  %v2916_v55 = vadd.f32 %v2884_v54, %v2786_v47  ;;  %v5856_v26 = vmul.f32 %v5363_v21, %v5817_v0  ;;  %v1253_v15 = vrot.slane %v1249_v40, 4 }
 0x150   : > { %v1257_v59 = vrot.slane %v1255_v11, 7  ;;  %v4780_v6 = vpop.eup %4779  ;;  %v1100_v23 = vrot.slane %v5712_v37, 4  ;;  %v1109_v18 = vrot.slane %v1104_v48, 4  ;;  %v733_v58 = vmul.f32 1.442695, %v690_v29 }
 0x151   : > { %v1107_v5 = vor.u32 %v1105_v3, %v1104_v48  ;;  %v3086_v32 = vrot.slane %v2985_v19, 1  ;;  %v849_v54 = vmul.f32 %v4780_v6, %v5726_v35  ;;  %v3085_v47 = vsel %vm1720_vm10, %v3083_v60, %v3084_v33 }
 0x152   : > { %v1260_v63 = vor.u32 %v1258_v9, %v1257_v59  ;;  %v1262_v31 = vrot.slane %v1257_v59, 4  ;;  %v3258_v40 = vmul.f32 %v5363_v21, %v2962_v38  ;;  %v1381_v37 = vsel %vm5102_vm4, %v1109_v18, %v1380_v17 }
 0x153   : > { %v4782_v57 = vpop.eup %4781  ;;  %v1108_v11 = vsel %vm5156_vm9, %v1100_v23, %v1107_v5  ;;  %v1001_v19 = vpack.c.bf16 %v849_v54, %v849_v54  ;;  %v2917_v6 = vadd.f32 %v2885_v42, %v5826_v44  ;;  %v3357_v21 = vrot.slane %v5856_v26, 2  ;;  %1382 = vst [vmem:[#allocation2 + $0x44] sm:$0x1] %v1381_v37 }
 0x154   : > { %1379 = vst [vmem:[#allocation2 + $0x40] sm:$0xf] %v1108_v11  ;;  %v1261_v29 = vsel %vm5156_vm9, %v1253_v15, %v1260_v63  ;;  %v1444_v59 = vsel %vm5102_vm4, %v1262_v31, %v1443_v20  ;;  %v867_v35 = vmul.f32 %v4782_v57, %v5732_v16  ;;  %4783 = vpow2.f32 %v733_v58  ;;  %v1595_v15 = vld [vmem:[#allocation2 + $0x38] sm:$0x1] }
 0x155   : > { %v5874_v23 = vadd.f32 %v5591_v28, %v671_v52  ;;  %v8261_v18 = vunpack.c.l.bf16 %v5788_v12  ;;  %v3087_v38 = vsel %vm1720_vm10, %v3084_v33, %v3086_v32  ;;  %v3189_v9 = vadd.f32 %v3085_v47, %v2916_v55  ;;  %1442 = vst [vmem:[#allocation2 + $0xac] sm:$0xf] %v1261_v29  ;;  %v982_v55 = vld [vmem:[#allocation2 + $0xbc] sm:$0x1] }
 0x156   : > { %v1111_v60 = vshrl.u32 %v1001_v19, 16  ;;  %v3624_v57 = vadd.f32 1.0, %v4776_v27  ;;  %v8262_v16 = vunpack.c.l.bf16 %v5799_v10  ;;  %v3356_v42 = vrot.slane %v5820_v43, 2  ;;  %1445 = vst [vmem:[#allocation2 + $0xb0] sm:$0x1] %v1444_v59 }
 0x157   : > { %v5879_v17 = vmul.f32 %v5198_v14, %v8261_v18  ;;  %v1839_v48 = vadd.f32 %v5742_v2, %v5636_v22  ;;  %v3359_v12 = vrot.slane %v3258_v40, 2  ;;  %v1114_v26 = vshll.u32 %v1001_v19, 16  ;;  %v1383_v10 = vld [vmem:[#allocation2 + $0x48] sm:$0xf]  ;;  %v2271_v2 = vld [vmem:[#allocation2 + $0x38] sm:$0x1]  ;;  %v629_v19 = vpop.f32.mrf.mxu0 }
 0x158   : > { %v5885_v44 = vmul.f32 %v5242_v8, %v8262_v16  ;;  %v5890_v3 = vrot.slane %v1111_v60, 7  ;;  %v1019_v33 = vpack.c.bf16 %v867_v35, %v867_v35  ;;  %v3190_v5 = vadd.f32 %v3087_v38, %v2917_v6 }
 0x159   : > { %v3358_v27 = vsel %vm1994_vm11, %v3356_v42, %v3357_v21  ;;  %v708_v20 = vsub.f32 0.0, %v5874_v23  ;;  %v983_v43 = vsel %vm5117_vm6, 0, %v982_v55  ;;  %v3625_v58 = vadd.f32 1.0, %v5848_v24 }
 0x15a   : > { %v3462_v32 = vadd.f32 %v3358_v27, %v3189_v9  ;;  %v1116_v63 = vor.u32 %v1114_v26, %v5890_v3  ;;  %984 = vst [vmem:[#allocation2 + $0xbc] sm:$0x1] %v983_v43  ;;  %v4784_v31 = vpop.eup %4783  ;;  %4785 = vrcp.f32 %v3624_v57  ;;  %v2015_v54 = vrot.slane %v5879_v17, 2 }
 0x15b   : > { %v2685_v52 = vrot.slane %v5885_v44, 2  ;;  %v8263_v47 = vrot.slane %v5697_v50, 2  ;;  %v8264_v40 = vrot.slane %v5621_v46, 2  ;;  %v1611_v24 = vunpack.c.l.bf16 %v1595_v15  ;;  %v5989_v44 = vld [vmem:[#allocation2 + $0x3c] sm:$0xf] }
 0x15c   : > { %v3360_v37 = vsel %vm1994_vm11, %v3357_v21, %v3359_v12  ;;  %v1384_v29 = vsel %vm5146_vm7, %v1116_v63, %v1383_v10  ;;  %v1264_v59 = vshrl.u32 %v1019_v33, 16  ;;  %v2287_v6 = vunpack.c.l.bf16 %v2271_v2 }
 0x15d   : > { %v2012_v11 = vsel %vm1994_vm11, %v8264_v40, %v8263_v47  ;;  %v3463_v18 = vadd.f32 %v3360_v37, %v3190_v5  ;;  %1385 = vst [vmem:[#allocation2 + $0x48] sm:$0xf] %v1384_v29  ;;  %v769_v38 = vmul.f32 1.442695, %v708_v20  ;;  %4787 = vrcp.f32 %v3625_v58 }
 0x15e   : > { %v2113_v35 = vadd.f32 %v2012_v11, %v1839_v48  ;;  %v1636_v50 = vmul.f32 %v5815_v53, %v5191_v4  ;;  %v5912_v46 = vadd.f32 %v5417_v61, %v3462_v32  ;;  %v786_v9 = vadd.f32 1.0, %v4784_v31 }
 0x15f   : > { %v1637_v21 = vmul.f32 %v5817_v0, %v5191_v4  ;;  %v2310_v60 = vmul.f32 %v5815_v53, %v5239_v7  ;;  %v2311_v57 = vmul.f32 %v5817_v0, %v5239_v7  ;;  %v5921_v16 = vadd.f32 %v5591_v28, %v629_v19 }
 0x160   : > { %v1535_v42 = vmul.f32 %v5815_v53, %v5201_v13  ;;  %v1638_v48 = vmul.f32 %v5191_v4, %v1611_v24  ;;  %v5926_v12 = vrot.slane %v1264_v59, 7  ;;  %v1267_v26 = vshll.u32 %v1019_v33, 16  ;;  %v4786_v55 = vpop.eup %4785  ;;  %v1446_v59 = vld [vmem:[#allocation2 + $0xb4] sm:$0xf] }
 0x161   : > { %v5930_v15 = vmul.f32 %v5817_v0, %v5198_v14  ;;  %v2312_v5 = vmul.f32 %v5239_v7, %v2287_v6  ;;  %v5934_v27 = vadd.f32 %v5417_v61, %v3463_v18  ;;  %4789 = vpow2.f32 %v769_v38 }
 0x162   : > { %v1741_v10 = vrot.slane %v1636_v50, 1  ;;  %v2210_v20 = vmul.f32 %v5815_v53, %v5236_v1  ;;  %v3530_v43 = vsub.f32 0.0, %v5912_v46  ;;  %4791 = vrcp.f32 %v786_v9 }
 0x163   : > { %v1742_v58 = vrot.slane %v1637_v21, 1  ;;  %v2412_v33 = vrot.slane %v2310_v60, 1  ;;  %v2413_v2 = vrot.slane %v2311_v57, 1  ;;  %v691_v32 = vsub.f32 0.0, %v5921_v16  ;;  %v4788_v63 = vpop.eup %4787 }
 0x164   : > { %v5941_v31 = vmul.f32 %v4786_v55, %v5746_v51  ;;  %v1912_v61 = vmul.f32 %v5198_v14, %v1611_v24  ;;  %v2211_v47 = vmul.f32 %v5817_v0, %v5236_v1  ;;  %v1269_v40 = vor.u32 %v1267_v26, %v5926_v12  ;;  %v5958_v26 = vld [vmem:[#allocation2 + $0x9c] sm:$0xe] }
 0x165   : > { %v1744_v53 = vrot.slane %v1638_v48, 1  ;;  %v2415_v11 = vrot.slane %v2312_v5, 1  ;;  %v2584_v37 = vmul.f32 %v5817_v0, %v5242_v8  ;;  %v3531_v29 = vsub.f32 0.0, %v5934_v27  ;;  %8266 = vst [vmem:[#allocation45_spill] sm:$0xff] %v5958_v26 }
 0x166   : > { %8265 = vst [vmem:[#allocation44_spill] sm:$0xff] %v5941_v31  ;;  %v1536_v19 = vmul.f32 %v5817_v0, %v5201_v13  ;;  %v2016_v51 = vrot.slane %v5930_v15, 2  ;;  %v2242_v18 = vadd.f32 %v2210_v20, %v2113_v35  ;;  %v3566_v24 = vmul.f32 1.442695, %v3530_v43 }
 0x167   : > { %v4790_v38 = vpop.eup %4789  ;;  %v1743_v50 = vsel %vm1720_vm10, %v1741_v10, %v1742_v58  ;;  %v2414_v9 = vsel %vm1720_vm10, %v2412_v33, %v2413_v2  ;;  %v2585_v21 = vmul.f32 %v5242_v8, %v2287_v6  ;;  %v735_v60 = vmul.f32 1.442695, %v691_v32 }
 0x168   : > { %v4792_v57 = vpop.eup %4791  ;;  %v3719_v48 = vadd.f32 %v5672_v30, %v5941_v31  ;;  %v2018_v55 = vrot.slane %v1912_v61, 2  ;;  %v2243_v0 = vadd.f32 %v2211_v47, %v5779_v62  ;;  %v1447_v35 = vsel %vm5146_vm7, %v1269_v40, %v1446_v59  ;;  %v1489_v61 = vld [vmem:[#allocation2 + $0xa0] sm:$0xf] }
 0x169   : > { %v1745_v15 = vsel %vm1720_vm10, %v1742_v58, %v1744_v53  ;;  %v2416_v5 = vsel %vm1720_vm10, %v2413_v2, %v2415_v11  ;;  %v2686_v10 = vrot.slane %v2584_v37, 2  ;;  %v3568_v20 = vmul.f32 1.442695, %v3531_v29  ;;  %1448 = vst [vmem:[#allocation2 + $0xb4] sm:$0xf] %v1447_v35 }
 0x16a   : > { %v1841_v6 = vadd.f32 %v1743_v50, %v1535_v42  ;;  %v2515_v43 = vadd.f32 %v2414_v9, %v2242_v18  ;;  %4793 = vpow2.f32 %v3566_v24  ;;  %v804_v33 = vadd.f32 1.0, %v4790_v38  ;;  %v902_v42 = vld [vmem:[#allocation2 + $0x54] sm:$0x1]  ;;  %v1472_v11 = vld [vmem:[#allocation2 + $0x3c] sm:$0xf] }
 0x16b   : > { %v5966_v30 = vmul.f32 %v4788_v63, %v5753_v45  ;;  %v2688_v32 = vrot.slane %v2585_v21, 2  ;;  %v850_v62 = vmul.f32 %v4792_v57, %v5829_v41  ;;  %4795 = vpow2.f32 %v735_v60  ;;  %v2164_v63 = vld [vmem:[#allocation2 + $0xa0] sm:$0xf]  ;;  %v5987_v24 = vld [vmem:[#allocation2 + $0x3c] sm:$0xe] }
 0x16c   : > { %v1842_v58 = vadd.f32 %v1745_v15, %v1536_v19  ;;  %v2017_v2 = vsel %vm1994_vm11, %v2015_v54, %v2016_v51  ;;  %v2516_v40 = vadd.f32 %v2416_v5, %v2243_v0  ;;  %v2687_v45 = vsel %vm1994_vm11, %v2685_v52, %v2686_v10  ;;  %v2838_v41 = vld [vmem:[#allocation2 + $0xa0] sm:$0xf]  ;;  %v1870_v54 = vld [vmem:[#allocation2 + $0x3c] sm:$0xe]  ;;  %v6005_v5 = vld [vmem:[#allocation2 + $0x44] sm:$0x1] }
 0x16d   : > { %8267 = vst [vmem:[#allocation46_spill] sm:$0xff] %v5966_v30  ;;  %v5974_v53 = vadd.f32 %v3719_v48, %v5966_v30  ;;  %4797 = vpow2.f32 %v3568_v20  ;;  %v1002_v37 = vpack.c.bf16 %v850_v62, %v850_v62  ;;  %v5979_v29 = vadd.f32 %v2017_v2, %v1841_v6  ;;  %v5985_v19 = vld [vmem:[#allocation2 + $0x3c] sm:$0xf]  ;;  %v2822_v18 = vld [vmem:[#allocation2 + $0x40] sm:$0xf]  ;;  %v674_v62 = vpop.f32.mrf.mxu2 }
 0x16e   : > { %v5981_v59 = vadd.f32 %v2687_v45, %v2515_v43  ;;  %v5983_v17 = vunpack.c.l.bf16 %v1489_v61  ;;  %4799 = vrcp.f32 %v804_v33  ;;  %v2019_v52 = vsel %vm1994_vm11, %v2016_v51, %v2018_v55  ;;  %v5999_v48 = vld [vmem:[#allocation2 + $0x3c] sm:$0xe]  ;;  %v1387_v61 = vld [vmem:[#allocation2 + $0x50] sm:$0x1]  ;;  %v2148_v47 = vld [vmem:[#allocation2 + $0x40] sm:$0xf] }
 0x16f   : > { %v2689_v38 = vsel %vm1994_vm11, %v2686_v10, %v2688_v32  ;;  %v1119_v50 = vshrl.u32 %v1002_v37, 16  ;;  %v903_v9 = vsel %vm5102_vm4, 0, %v902_v42  ;;  %v5995_v60 = vunpack.c.l.bf16 %v2164_v63  ;;  %v631_v63 = vpop.f32.mrf.mxu0  ;;  %v2272_v30 = vld [vmem:[#allocation2 + $0x44] sm:$0x1] }
 0x170   : > { %8268 = vst [vmem:[#allocation47_spill] sm:$0xff] %v5983_v17  ;;  %v4794_v21 = vpop.eup %4793  ;;  %v5997_v57 = vunpack.c.l.bf16 %v2838_v41  ;;  %v6001_v0 = vadd.f32 %v2019_v52, %v1842_v58  ;;  %v6003_v35 = vadd.f32 %v2689_v38, %v2516_v40  ;;  %v1504_v51 = vunpack.c.l.bf16 %v1472_v11 }
 0x171   : > { %8269 = vst [vmem:[#allocation48_spill] sm:$0xff] %v5995_v60  ;;  %v4796_v15 = vpop.eup %4795  ;;  %v2854_v55 = vunpack.c.l.bf16 %v2822_v18  ;;  %v1121_v10 = vrot.slane %v1119_v50, 7  ;;  %v1122_v20 = vshll.u32 %v1002_v37, 16  ;;  %v1886_v6 = vunpack.c.l.bf16 %v1870_v54  ;;  %v929_v18 = vld [vmem:[#allocation2 + $0xc0] sm:$0x1] }
 0x172   : > { %8270 = vst [vmem:[#allocation49_spill] sm:$0xff] %v5997_v57  ;;  %v2179_v43 = vunpack.c.l.bf16 %v5985_v19  ;;  %v2561_v33 = vunpack.c.l.bf16 %v5987_v24  ;;  %v2853_v32 = vunpack.c.l.bf16 %v5989_v44  ;;  %v3236_v2 = vunpack.c.l.bf16 %v5999_v48  ;;  %v2546_v60 = vld [vmem:[#allocation2 + $0x48] sm:$0xe] }
 0x173   : > { %904 = vst [vmem:[#allocation2 + $0x54] sm:$0x1] %v903_v9  ;;  %v4798_v58 = vpop.eup %4797  ;;  %v1117_v40 = vrot.slane %v5890_v3, 4  ;;  %v1124_v42 = vor.u32 %v1122_v20, %v1121_v10  ;;  %v1126_v45 = vrot.slane %v1121_v10, 4  ;;  %v3626_v11 = vadd.f32 1.0, %v4794_v21 }
 0x174   : > { %v4800_v41 = vpop.eup %4799  ;;  %v2963_v37 = vunpack.c.l.bf16 %v6005_v5  ;;  %v787_v54 = vadd.f32 1.0, %v4796_v15  ;;  %v6014_v19 = vadd.f32 %v5591_v28, %v674_v62  ;;  %v2987_v24 = vmul.f32 %v5267_v36, %v2854_v55  ;;  %v958_v10 = vld [vmem:[#allocation2 + $0x5c] sm:$0x1] }
 0x175   : > { %v1125_v44 = vsel %vm5156_vm9, %v1117_v40, %v1124_v42  ;;  %v1388_v3 = vsel %vm5102_vm4, %v1126_v45, %v1387_v61  ;;  %v868_v52 = vmul.f32 %v4800_v41, %v5874_v23  ;;  %v6023_v38 = vmul.f32 %v5201_v13, %v1504_v51  ;;  %v8271_v41 = vld [vmem:[#allocation3_spill] sm:$0xff] }
 0x176   : > { %v6026_v50 = vmul.f32 %v5191_v4, %v1504_v51  ;;  %v2986_v9 = vmul.f32 %v5267_v36, %v2853_v32  ;;  %1386 = vst [vmem:[#allocation2 + $0x4c] sm:$0xf] %v1125_v44  ;;  %v930_v21 = vsel %vm5102_vm4, 0, %v929_v18  ;;  %v3627_v48 = vadd.f32 1.0, %v4798_v58 }
 0x177   : > { %v6032_v15 = vmul.f32 %v5198_v14, %v1886_v6  ;;  %v2212_v5 = vmul.f32 %v5236_v1, %v2179_v43  ;;  %1389 = vst [vmem:[#allocation2 + $0x50] sm:$0x1] %v1388_v3  ;;  %v1020_v23 = vpack.c.bf16 %v868_v52, %v868_v52  ;;  %v2988_v20 = vmul.f32 %v5267_v36, %v2963_v37  ;;  %v634_v22 = vpop.f32.mrf.mxu0 }
 0x178   : > { %4801 = vrcp.f32 %v787_v54  ;;  %v709_v51 = vsub.f32 0.0, %v6014_v19  ;;  %931 = vst [vmem:[#allocation2 + $0xc0] sm:$0x1] %v930_v21  ;;  %v959_v61 = vsel %vm5117_vm6, 0, %v958_v10  ;;  %v3089_v62 = vrot.slane %v2987_v24, 1 }
 0x179   : > { %v1272_v40 = vshrl.u32 %v1020_v23, 16  ;;  %v1275_v58 = vshll.u32 %v1020_v23, 16  ;;  %v6040_v6 = vadd.f32 %v5591_v28, %v631_v63  ;;  %960 = vst [vmem:[#allocation2 + $0x5c] sm:$0x1] %v959_v61  ;;  %v6043_v42 = vmul.f32 %v5239_v7, %v2179_v43  ;;  %v6053_v24 = vld [vmem:[%s8091_s3 + $0x8] ss:$0 sm:$0xff] }
 0x17a   : > { %v6046_v45 = vmul.f32 %v5242_v8, %v2561_v33  ;;  %v2886_v54 = vmul.f32 %v8271_v41, %v2853_v32  ;;  %v3088_v18 = vrot.slane %v2986_v9, 1  ;;  %v2887_v44 = vmul.f32 %v8271_v41, %v2854_v55  ;;  %v676_v32 = vpop.f32.mrf.mxu2 }
 0x17b   : > { %v3260_v63 = vmul.f32 %v6053_v24, %v2854_v55  ;;  %v1270_v3 = vrot.slane %v5926_v12, 4  ;;  %v6057_v52 = vrot.slane %v1272_v40, 7  ;;  %4803 = vrcp.f32 %v3626_v11  ;;  %v1473_v40 = vld [vmem:[#allocation2 + $0x40] sm:$0xf] }
 0x17c   : > { %v3091_v33 = vrot.slane %v2988_v20, 1  ;;  %v771_v21 = vmul.f32 1.442695, %v709_v51  ;;  %v3259_v9 = vmul.f32 %v6053_v24, %v3236_v2  ;;  %v3090_v23 = vsel %vm1720_vm10, %v3088_v18, %v3089_v62  ;;  %v1596_v51 = vld [vmem:[#allocation2 + $0x44] sm:$0x1] }
 0x17d   : > { %v1277_v10 = vor.u32 %v1275_v58, %v6057_v52  ;;  %v692_v61 = vsub.f32 0.0, %v6040_v6  ;;  %4805 = vrcp.f32 %v3627_v48  ;;  %v2918_v11 = vadd.f32 %v2886_v54, %v5981_v59 }
 0x17e   : > { %v4802_v55 = vpop.eup %4801  ;;  %v3261_v20 = vmul.f32 %v6053_v24, %v2963_v37  ;;  %v2919_v2 = vadd.f32 %v2887_v44, %v6003_v35  ;;  %v3362_v43 = vrot.slane %v3260_v63, 2  ;;  %v6071_v18 = vadd.f32 %v5591_v28, %v676_v32 }
 0x17f   : > { %v1278_v58 = vsel %vm5156_vm9, %v1270_v3, %v1277_v10  ;;  %v3092_v48 = vsel %vm1720_vm10, %v3089_v62, %v3091_v33  ;;  %v3191_v12 = vadd.f32 %v3090_v23, %v2918_v11  ;;  %4807 = vpow2.f32 %v771_v21 }
 0x180   : > { %1449 = vst [vmem:[#allocation2 + $0xb8] sm:$0xf] %v1278_v58  ;;  %v6075_v59 = vadd.f32 %v5591_v28, %v634_v22  ;;  %v3361_v37 = vrot.slane %v3259_v9, 2  ;;  %v6077_v54 = vunpack.c.l.bf16 %v1473_v40  ;;  %v851_v35 = vmul.f32 %v4802_v55, %v5921_v16 }
 0x181   : > { %v737_v44 = vmul.f32 1.442695, %v692_v61  ;;  %v4804_v63 = vpop.eup %4803  ;;  %v6081_v3 = vadd.f32 %v2212_v5, %v5979_v29  ;;  %v1612_v32 = vunpack.c.l.bf16 %v1596_v51  ;;  %v2180_v10 = vunpack.c.l.bf16 %v2148_v47 }
 0x182   : > { %v3364_v31 = vrot.slane %v3261_v20, 2  ;;  %v2288_v62 = vunpack.c.l.bf16 %v2272_v30  ;;  %v3192_v33 = vadd.f32 %v3092_v48, %v2919_v2  ;;  %v3363_v21 = vsel %vm1994_vm11, %v3361_v37, %v3362_v43  ;;  %v6111_v37 = vld [vmem:[%s8092_s4] ss:$0 sm:$0xff] }
 0x183   : > { %v710_v28 = vsub.f32 0.0, %v6071_v18  ;;  %v4806_v22 = vpop.eup %4805  ;;  %v3464_v16 = vadd.f32 %v3363_v21, %v3191_v12  ;;  %v693_v61 = vsub.f32 0.0, %v6075_v59  ;;  %v6089_v29 = vmul.f32 %v4804_v63, %v5912_v46 }
 0x184   : > { %v1640_v47 = vmul.f32 %v5191_v4, %v6077_v54  ;;  %v1003_v30 = vpack.c.bf16 %v851_v35, %v851_v35  ;;  %4809 = vpow2.f32 %v737_v44  ;;  %v1641_v55 = vmul.f32 %v5191_v4, %v1612_v32 }
 0x185   : > { %8272 = vst [vmem:[#allocation50_spill] sm:$0xff] %v6089_v29  ;;  %v4808_v5 = vpop.eup %4807  ;;  %v6096_v11 = vmul.f32 %v5198_v14, %v6077_v54  ;;  %v6099_v40 = vmul.f32 %v5198_v14, %v1612_v32  ;;  %v3365_v12 = vsel %vm1994_vm11, %v3362_v43, %v3364_v31  ;;  %v2314_v46 = vmul.f32 %v5239_v7, %v2180_v10 }
 0x186   : > { %v2315_v20 = vmul.f32 %v5239_v7, %v2288_v62  ;;  %v3465_v51 = vadd.f32 %v3365_v12, %v3192_v33  ;;  %v773_v2 = vmul.f32 1.442695, %v710_v28  ;;  %v6105_v58 = vmul.f32 %v5242_v8, %v2180_v10  ;;  %v1450_v12 = vld [vmem:[#allocation2 + $0xbc] sm:$0x1]  ;;  %v636_v28 = vpop.f32.mrf.mxu0 }
 0x187   : > { %v2588_v48 = vmul.f32 %v5242_v8, %v2288_v62  ;;  %v6114_v35 = vadd.f32 %v6111_v37, %v3464_v16  ;;  %v739_v31 = vmul.f32 1.442695, %v693_v61  ;;  %v2213_v43 = vmul.f32 %v5236_v1, %v2180_v10 }
 0x188   : > { %v1279_v44 = vrot.slane %v6057_v52, 4  ;;  %v1128_v63 = vshrl.u32 %v1003_v30, 16  ;;  %v805_v32 = vadd.f32 1.0, %v4808_v5  ;;  %v1747_v33 = vrot.slane %v1640_v47, 1 }
 0x189   : > { %v1749_v21 = vrot.slane %v1641_v55, 1  ;;  %v2418_v9 = vrot.slane %v2314_v46, 1  ;;  %v2420_v25 = vrot.slane %v2315_v20, 1  ;;  %v6121_v16 = vadd.f32 %v6111_v37, %v3465_v51 }
 0x18a   : > { %v4810_v23 = vpop.eup %4809  ;;  %4811 = vpow2.f32 %v773_v2  ;;  %v2693_v61 = vrot.slane %v2588_v48, 2  ;;  %v3532_v52 = vsub.f32 0.0, %v6114_v35  ;;  %v1451_v47 = vsel %vm5102_vm4, %v1279_v44, %v1450_v12  ;;  %v4648_v2 = vld [vmem:[#allocation2 + $0x48] sm:$0xff]   ;;  %v1390_v48 = vld [vmem:[#allocation2 + $0x54] sm:$0xf] }
 0x18b   : > { %4813 = vpow2.f32 %v739_v31  ;;  %v6127_v5 = vrot.slane %v1128_v63, 7  ;;  %v1131_v55 = vshll.u32 %v1003_v30, 16  ;;  %v6130_v46 = vmul.f32 %v4806_v22, %v5934_v27  ;;  %1452 = vst [vmem:[#allocation2 + $0xbc] sm:$0x1] %v1451_v47 }
 0x18c   : > { %4815 = vrcp.f32 %v805_v32  ;;  %v6134_v20 = vadd.f32 %v5974_v53, %v6089_v29  ;;  %v2245_v51 = vadd.f32 %v2213_v43, %v6001_v0  ;;  %v788_v31 = vadd.f32 1.0, %v4810_v23  ;;  %v6148_v0 = vld [vmem:[#allocation2 + $0x50] sm:$0x1]  ;;  %v985_v23 = vld [vmem:[#allocation2 + $0xc8] sm:$0x1] }
 0x18d   : > { %8273 = vst [vmem:[#allocation51_spill] sm:$0xff] %v6130_v46  ;;  %v1750_v44 = vsel %vm1720_vm10, %v1747_v33, %v1749_v21  ;;  %v2421_v63 = vsel %vm1720_vm10, %v2418_v9, %v2420_v25  ;;  %v3533_v30 = vsub.f32 0.0, %v6121_v16  ;;  %v1133_v32 = vor.u32 %v1131_v55, %v6127_v5  ;;  %v905_v43 = vld [vmem:[#allocation2 + $0x60] sm:$0x1] }
 0x18e   : > { %v1538_v27 = vmul.f32 %v5201_v13, %v6077_v54  ;;  %v8274_v53 = vrot.slane %v6026_v50, 1  ;;  %4817 = vrcp.f32 %v788_v31  ;;  %v6153_v25 = vld [vmem:[%s8090_s2] ss:$0 sm:$0xff]  ;;  %v8275_v54 = vrot.slane %v6043_v42, 1 }
 0x18f   : > { %v6156_v21 = vadd.f32 %v6153_v25, %v636_v28  ;;  %v6161_v47 = vunpack.c.l.bf16 %v4648_v2  ;;  %v6163_v55 = vunpack.c.h.bf16 %v4648_v2  ;;  %v1391_v31 = vsel %vm5146_vm7, %v1133_v32, %v1390_v48 }
 0x190   : > { %v6146_v22 = vsel %vm1720_vm10, %v8274_v53, %v1747_v33  ;;  %v4812_v12 = vpop.eup %4811  ;;  %v2419_v50 = vsel %vm1720_vm10, %v8275_v54, %v2418_v9  ;;  %v1871_v33 = vld [vmem:[#allocation2 + $0x48] sm:$0xe]  ;;  %v1844_v62 = vadd.f32 %v1750_v44, %v1538_v27  ;;  %v2518_v10 = vadd.f32 %v2421_v63, %v2245_v51  ;;  %1392 = vst [vmem:[#allocation2 + $0x54] sm:$0xf] %v1391_v31 }
 0x191   : > { %v4814_v53 = vpop.eup %4813  ;;  %v8276_v29 = vrot.slane %v6105_v58, 2  ;;  %v3570_v57 = vmul.f32 1.442695, %v3532_v52  ;;  %v3572_v9 = vmul.f32 1.442695, %v3533_v30  ;;  %v2964_v26 = vunpack.c.l.bf16 %v6148_v0 }
 0x192   : > { %v4816_v42 = vpop.eup %4815  ;;  %v3221_v54 = vld [vmem:[#allocation2 + $0x48] sm:$0xe]  ;;  %v986_v2 = vsel %vm5117_vm6, 0, %v985_v23  ;;  %v906_v48 = vsel %vm5102_vm4, 0, %v905_v43  ;;  %v1887_v44 = vunpack.c.l.bf16 %v1871_v33  ;;  %v806_v63 = vadd.f32 1.0, %v4812_v12 }
 0x193   : > { %v2694_v28 = vsel %vm1994_vm11, %v8276_v29, %v2693_v61  ;;  %v869_v51 = vmul.f32 %v4816_v42, %v6014_v19  ;;  %987 = vst [vmem:[#allocation2 + $0xc8] sm:$0x1] %v986_v2  ;;  %v694_v29 = vsub.f32 0.0, %v6156_v21  ;;  %v961_v61 = vld [vmem:[#allocation2 + $0x68] sm:$0x1]  ;;  %v2989_v52 = vmul.f32 %v6161_v47, %v5267_v36 }
 0x194   : > { %v2990_v30 = vmul.f32 %v6163_v55, %v5267_v36  ;;  %v789_v32 = vadd.f32 1.0, %v4814_v53  ;;  %907 = vst [vmem:[#allocation2 + $0x60] sm:$0x1] %v906_v48  ;;  %v962_v27 = vsel %vm5117_vm6, 0, %v961_v61  ;;  %v4818_v0 = vpop.eup %4817  ;;  %4819 = vpow2.f32 %v3570_v57 }
 0x195   : > { %v2517_v19 = vadd.f32 %v2419_v50, %v6081_v3  ;;  %v1021_v23 = vpack.c.bf16 %v869_v51, %v869_v51  ;;  %v741_v43 = vmul.f32 1.442695, %v694_v29  ;;  %963 = vst [vmem:[#allocation2 + $0x68] sm:$0x1] %v962_v27  ;;  %4821 = vpow2.f32 %v3572_v9 }
 0x196   : > { %v2562_v12 = vunpack.c.l.bf16 %v2546_v60  ;;  %v3237_v33 = vunpack.c.l.bf16 %v3221_v54  ;;  %v2991_v31 = vmul.f32 %v5267_v36, %v2964_v26  ;;  %v8277_v42 = vrot.slane %v6105_v58, 2 }
 0x197   : > { %v8278_v53 = vrot.slane %v6046_v45, 2  ;;  %v2888_v48 = vmul.f32 %v6161_v47, %v8271_v41  ;;  %v1281_v57 = vshrl.u32 %v1021_v23, 16  ;;  %4823 = vrcp.f32 %v806_v63 }
 0x198   : > { %v3093_v3 = vrot.slane %v2989_v52, 1  ;;  %v3094_v50 = vrot.slane %v2990_v30, 1  ;;  %v852_v51 = vmul.f32 %v4818_v0, %v6040_v6  ;;  %4825 = vrcp.f32 %v789_v32 }
 0x199   : > { %v2692_v2 = vsel %vm1994_vm11, %v8278_v53, %v8277_v42  ;;  %v2889_v9 = vmul.f32 %v6163_v55, %v8271_v41  ;;  %v3263_v58 = vmul.f32 %v6053_v24, %v6163_v55  ;;  %4827 = vpow2.f32 %v741_v43 }
 0x19a   : > { %v2790_v60 = vadd.f32 %v2692_v2, %v2517_v19  ;;  %v6198_v45 = vmul.f32 %v5198_v14, %v1887_v44  ;;  %v3262_v54 = vmul.f32 %v6053_v24, %v3237_v33  ;;  %v2791_v29 = vadd.f32 %v2694_v28, %v2518_v10  ;;  %v4820_v61 = vpop.eup %4819 }
 0x19b   : > { %v3096_v63 = vrot.slane %v2991_v31, 1  ;;  %v3264_v6 = vmul.f32 %v6053_v24, %v2964_v26  ;;  %v6202_v30 = vrot.slane %v1281_v57, 7  ;;  %v1284_v32 = vshll.u32 %v1021_v23, 16  ;;  %v4822_v27 = vpop.eup %4821 }
 0x19c   : > { %v2920_v52 = vadd.f32 %v2888_v48, %v2790_v60  ;;  %v6206_v0 = vadd.f32 %v6134_v20, %v6130_v46  ;;  %v8279_v19 = vrot.slane %v6099_v40, 2  ;;  %v8280_v44 = vrot.slane %v6096_v11, 2  ;;  %v1597_v11 = vld [vmem:[#allocation2 + $0x50] sm:$0x1] }
 0x19d   : > { %v3095_v10 = vsel %vm1720_vm10, %v3093_v3, %v3094_v50  ;;  %v1004_v28 = vpack.c.bf16 %v852_v51, %v852_v51  ;;  %v4824_v33 = vpop.eup %4823  ;;  %v6217_v26 = vmul.f32 %v5242_v8, %v2562_v12  ;;  %v2921_v23 = vadd.f32 %v2889_v9, %v2791_v29  ;;  %v1453_v12 = vld [vmem:[#allocation2 + $0xc0] sm:$0xf] }
 0x19e   : > { %v2024_v43 = vsel %vm1994_vm11, %v8280_v44, %v8279_v19  ;;  %v3367_v42 = vrot.slane %v3263_v58, 2  ;;  %v4826_v53 = vpop.eup %4825  ;;  %v2025_v20 = vrot.slane %v6198_v45, 2  ;;  %v6222_v40 = vadd.f32 %v6146_v22, %v6023_v38 }
 0x19f   : > { %v6214_v31 = vadd.f32 %v2024_v43, %v1844_v62  ;;  %v8281_v2 = vmov %v8280_v44  ;;  %v8282_v48 = vrot.slane %v6032_v15, 2  ;;  %v3097_v62 = vsel %vm1720_vm10, %v3094_v50, %v3096_v63  ;;  %v4828_v3 = vpop.eup %4827 }
 0x1a0   : > { %v3366_v51 = vrot.slane %v3262_v54, 2  ;;  %v3193_v60 = vadd.f32 %v3095_v10, %v2920_v52  ;;  %v3369_v9 = vrot.slane %v3264_v6, 2  ;;  %v1286_v58 = vor.u32 %v1284_v32, %v6202_v30 }
 0x1a1   : > { %v6229_v57 = vsel %vm1994_vm11, %v8282_v48, %v8281_v2  ;;  %v3628_v29 = vadd.f32 1.0, %v4820_v61  ;;  %v3629_v19 = vadd.f32 1.0, %v4822_v27  ;;  %v1136_v38 = vshrl.u32 %v1004_v28, 16 }
 0x1a2   : > { %v870_v22 = vmul.f32 %v4824_v33, %v6071_v18  ;;  %v3194_v44 = vadd.f32 %v3097_v62, %v2921_v23  ;;  %v3368_v15 = vsel %vm1994_vm11, %v3366_v51, %v3367_v42  ;;  %v1454_v43 = vsel %vm5146_vm7, %v1286_v58, %v1453_v12  ;;  %v1394_v18 = vld [vmem:[#allocation2 + $0x5c] sm:$0x1]  ;;  %v6240_v12 = vld [vmem:[#allocation2 + $0x50] sm:$0x1] }
 0x1a3   : > { %v853_v50 = vmul.f32 %v4826_v53, %v6075_v59  ;;  %1455 = vst [vmem:[#allocation2 + $0xc0] sm:$0xf] %v1454_v43  ;;  %v1138_v54 = vrot.slane %v1136_v38, 7  ;;  %v1139_v63 = vshll.u32 %v1004_v28, 16  ;;  %v790_v6 = vadd.f32 1.0, %v4828_v3 }
 0x1a4   : > { %v1022_v52 = vpack.c.bf16 %v870_v22, %v870_v22  ;;  %v3370_v61 = vsel %vm1994_vm11, %v3367_v42, %v3369_v9  ;;  %v3466_v32 = vadd.f32 %v3368_v15, %v3193_v60  ;;  %v1134_v27 = vrot.slane %v6127_v5, 4  ;;  %v1457_v60 = vld [vmem:[#allocation2 + $0xc8] sm:$0x1] }
 0x1a5   : > { %v1005_v10 = vpack.c.bf16 %v853_v50, %v853_v50  ;;  %v1141_v33 = vor.u32 %v1139_v63, %v1138_v54  ;;  %v1143_v23 = vrot.slane %v1138_v54, 4  ;;  %v1613_v62 = vunpack.c.l.bf16 %v1597_v11 }
 0x1a6   : > { %v1289_v2 = vshrl.u32 %v1022_v52, 16  ;;  %v1292_v48 = vshll.u32 %v1022_v52, 16  ;;  %v3467_v59 = vadd.f32 %v3370_v61, %v3194_v44  ;;  %v1287_v53 = vrot.slane %v6202_v30, 4  ;;  %v1397_v44 = vld [vmem:[#allocation2 + $0x60] sm:$0xf] }
 0x1a7   : > { %v1145_v28 = vshrl.u32 %v1005_v10, 16  ;;  %v1142_v3 = vsel %vm5156_vm9, %v1134_v27, %v1141_v33  ;;  %v1395_v42 = vsel %vm5102_vm4, %v1143_v23, %v1394_v18  ;;  %4829 = vrcp.f32 %v790_v6  ;;  %v908_v18 = vld [vmem:[#allocation2 + $0x6c] sm:$0x1] }
 0x1a8   : > { %v1291_v5 = vrot.slane %v1289_v2, 7  ;;  %4831 = vrcp.f32 %v3628_v29  ;;  %v6248_v51 = vadd.f32 %v6111_v37, %v3466_v32  ;;  %1393 = vst [vmem:[#allocation2 + $0x58] sm:$0xf] %v1142_v3  ;;  %v1148_v58 = vshll.u32 %v1005_v10, 16 }
 0x1a9   : > { %v6250_v9 = vrot.slane %v1145_v28, 7  ;;  %v1642_v30 = vmul.f32 %v6161_v47, %v5191_v4  ;;  %v2289_v38 = vunpack.c.l.bf16 %v6240_v12  ;;  %1396 = vst [vmem:[#allocation2 + $0x5c] sm:$0x1] %v1395_v42  ;;  %v1643_v29 = vmul.f32 %v6163_v55, %v5191_v4 }
 0x1aa   : > { %v1294_v22 = vor.u32 %v1292_v48, %v1291_v5  ;;  %v1296_v11 = vrot.slane %v1291_v5, 4  ;;  %v2316_v15 = vmul.f32 %v6161_v47, %v5239_v7  ;;  %v2317_v43 = vmul.f32 %v6163_v55, %v5239_v7 }
 0x1ab   : > { %v1150_v50 = vor.u32 %v1148_v58, %v6250_v9  ;;  %v1644_v54 = vmul.f32 %v5191_v4, %v1613_v62  ;;  %v6264_v63 = vadd.f32 %v6111_v37, %v3467_v59  ;;  %4833 = vrcp.f32 %v3629_v19 }
 0x1ac   : > { %v1295_v52 = vsel %vm5156_vm9, %v1287_v53, %v1294_v22  ;;  %v1458_v6 = vsel %vm5102_vm4, %v1296_v11, %v1457_v60  ;;  %v6272_v61 = vmul.f32 %v6163_v55, %v5198_v14  ;;  %v3534_v32 = vsub.f32 0.0, %v6248_v51  ;;  %v639_v11 = vpop.f32.mrf.mxu0 }
 0x1ad   : > { %8283 = vst [vmem:[#allocation52_spill] sm:$0xff] %v6264_v63  ;;  %v1398_v27 = vsel %vm5146_vm7, %v1150_v50, %v1397_v44  ;;  %v4830_v10 = vpop.eup %4829  ;;  %v1751_v33 = vrot.slane %v1642_v30, 1  ;;  %v6278_v23 = vmul.f32 %v5198_v14, %v1613_v62  ;;  %v2214_v2 = vmul.f32 %v6161_v47, %v5236_v1 }
 0x1ae   : > { %1456 = vst [vmem:[#allocation2 + $0xc4] sm:$0xf] %v1295_v52  ;;  %v2318_v19 = vmul.f32 %v5239_v7, %v2289_v38  ;;  %v4832_v48 = vpop.eup %4831  ;;  %v1752_v12 = vrot.slane %v1643_v29, 1  ;;  %v2422_v59 = vrot.slane %v2316_v15, 1  ;;  %v2423_v53 = vrot.slane %v2317_v43, 1 }
 0x1af   : > { %1459 = vst [vmem:[#allocation2 + $0xc8] sm:$0x1] %v1458_v6  ;;  %v909_v28 = vsel %vm5102_vm4, 0, %v908_v18  ;;  %v2695_v3 = vrot.slane %v6217_v26, 2  ;;  %v1754_v42 = vrot.slane %v1644_v54, 1  ;;  %v2117_v62 = vadd.f32 %v6229_v57, %v6222_v40 }
 0x1b0   : > { %1399 = vst [vmem:[#allocation2 + $0x60] sm:$0xf] %v1398_v27  ;;  %v3535_v5 = vsub.f32 0.0, %v6264_v63  ;;  %v2215_v60 = vmul.f32 %v6163_v55, %v5236_v1  ;;  %v2590_v58 = vmul.f32 %v6163_v55, %v5242_v8  ;;  %v3574_v30 = vmul.f32 1.442695, %v3534_v32 }
 0x1b1   : > { %v854_v22 = vmul.f32 %v4830_v10, %v6156_v21  ;;  %v1539_v44 = vmul.f32 %v6161_v47, %v5201_v13  ;;  %v1540_v26 = vmul.f32 %v6163_v55, %v5201_v13  ;;  %v2246_v29 = vadd.f32 %v2214_v2, %v2117_v62  ;;  %910 = vst [vmem:[#allocation2 + $0x6c] sm:$0x1] %v909_v28  ;;  %v4834_v57 = vpop.eup %4833  ;;  %v6304_v6 = vld [vmem:[#allocation2 + $0x54] sm:$0xf]  ;;  %v2826_v62 = vld [vmem:[#allocation2 + $0x58] sm:$0xf] }
 0x1b2   : > { %v2425_v40 = vrot.slane %v2318_v19, 1  ;;  %v1753_v15 = vsel %vm1720_vm10, %v1751_v33, %v1752_v12  ;;  %v2026_v43 = vrot.slane %v6272_v61, 2  ;;  %v2028_v50 = vrot.slane %v6278_v23, 2  ;;  %v1872_v18 = vld [vmem:[#allocation2 + $0x54] sm:$0xe] }
 0x1b3   : > { %v2424_v54 = vsel %vm1720_vm10, %v2422_v59, %v2423_v53  ;;  %v1755_v21 = vsel %vm1720_vm10, %v1752_v12, %v1754_v42  ;;  %v2591_v52 = vmul.f32 %v5242_v8, %v2289_v38  ;;  %v3576_v47 = vmul.f32 1.442695, %v3535_v5  ;;  %v2151_v2 = vld [vmem:[#allocation2 + $0x54] sm:$0xf] }
 0x1b4   : > { %v6307_v55 = vadd.f32 %v6153_v25, %v639_v11  ;;  %v2247_v32 = vadd.f32 %v2215_v60, %v6214_v31  ;;  %v2696_v27 = vrot.slane %v2590_v58, 2  ;;  %4835 = vpow2.f32 %v3574_v30  ;;  %v2547_v28 = vld [vmem:[#allocation2 + $0x54] sm:$0xe] }
 0x1b5   : > { %v6310_v61 = vpack.c.bf16 %v854_v22, %v854_v22  ;;  %v6313_v10 = vmul.f32 %v4832_v48, %v6114_v35  ;;  %v1845_v33 = vadd.f32 %v1753_v15, %v1539_v44  ;;  %v2426_v23 = vsel %vm1720_vm10, %v2423_v53, %v2425_v40  ;;  %v2825_v48 = vld [vmem:[#allocation2 + $0x54] sm:$0xf] }
 0x1b6   : > { %v2519_v38 = vadd.f32 %v2424_v54, %v2246_v29  ;;  %v6317_v19 = vmul.f32 %v4834_v57, %v6121_v16  ;;  %v1846_v12 = vadd.f32 %v1755_v21, %v1540_v26  ;;  %v2027_v31 = vsel %vm1994_vm11, %v2025_v20, %v2026_v43  ;;  %v3222_v22 = vld [vmem:[#allocation2 + $0x54] sm:$0xe] }
 0x1b7   : > { %8284 = vst [vmem:[#allocation53_spill] sm:$0xff] %v6313_v10  ;;  %v1508_v59 = vunpack.c.l.bf16 %v6304_v6  ;;  %v2698_v42 = vrot.slane %v2591_v52, 2  ;;  %4837 = vpow2.f32 %v3576_v47  ;;  %v1888_v35 = vunpack.c.l.bf16 %v1872_v18  ;;  %v641_v47 = vpop.f32.mrf.mxu0 }
 0x1b8   : > { %8285 = vst [vmem:[#allocation54_spill] sm:$0xff] %v6317_v19  ;;  %v695_v53 = vsub.f32 0.0, %v6307_v55  ;;  %v2520_v5 = vadd.f32 %v2426_v23, %v2247_v32  ;;  %v2697_v60 = vsel %vm1994_vm11, %v2695_v3, %v2696_v27  ;;  %v2183_v16 = vunpack.c.l.bf16 %v2151_v2 }
 0x1b9   : > { %v1153_v58 = vshrl.u32 %v6310_v61, 16  ;;  %v6328_v45 = vadd.f32 %v6206_v0, %v6313_v10  ;;  %v2119_v20 = vadd.f32 %v2027_v31, %v1845_v33  ;;  %v2792_v30 = vadd.f32 %v2697_v60, %v2519_v38  ;;  %v8287_v33 = vld [vmem:[#allocation14_spill] sm:$0xff]  ;;  %v8289_v38 = vld [vmem:[#allocation5_spill] sm:$0xff]  ;;  %v8301_v60 = vld [vmem:[#allocation36_spill] sm:$0xff] }
 0x1ba   : > { %v2029_v11 = vsel %vm1994_vm11, %v2026_v43, %v2028_v50  ;;  %v4836_v44 = vpop.eup %4835  ;;  %v6332_v26 = vmul.f32 %v5191_v4, %v1508_v59  ;;  %v2563_v29 = vunpack.c.l.bf16 %v2547_v28  ;;  %v2857_v40 = vunpack.c.l.bf16 %v2825_v48  ;;  %v8305_v10 = vld [vmem:[#allocation18_spill] sm:$0xff] }
 0x1bb   : > { %8286 = vst [vmem:[#allocation55_spill] sm:$0xff] %v6328_v45  ;;  %v6334_v57 = vunpack.c.l.bf16 %v2826_v62  ;;  %v6337_v3 = vmul.f32 %v5198_v14, %v1888_v35  ;;  %v6339_v15 = vadd.f32 %v2029_v11, %v1846_v12  ;;  %v2699_v0 = vsel %vm1994_vm11, %v2696_v27, %v2698_v42  ;;  %v8291_v27 = vld [vmem:[#allocation21_spill] sm:$0xff] }
 0x1bc   : > { %v743_v54 = vmul.f32 1.442695, %v695_v53  ;;  %v6343_v21 = vmul.f32 %v5239_v7, %v2183_v16  ;;  %v3238_v43 = vunpack.c.l.bf16 %v3222_v22  ;;  %v6345_v50 = vadd.f32 %v2699_v0, %v2520_v5  ;;  %v1401_v5 = vld [vmem:[#allocation2 + $0x68] sm:$0x1]  ;;  %v1477_v0 = vld [vmem:[#allocation2 + $0x58] sm:$0xf] }
 0x1bd   : > { %v1155_v52 = vrot.slane %v1153_v58, 7  ;;  %v4838_v6 = vpop.eup %4837  ;;  %v3630_v32 = vadd.f32 1.0, %v4836_v44  ;;  %v2216_v18 = vmul.f32 %v5236_v1, %v2183_v16  ;;  %v8288_v23 = vrot.slane %v8287_v33, 1  ;;  %v6374_v33 = vld [vmem:[#allocation2 + $0x5c] sm:$0x1] }
 0x1be   : > { %v8290_v2 = vrot.slane %v8289_v38, 1  ;;  %v8292_v31 = vrot.slane %v8291_v27, 1  ;;  %v6360_v48 = vmul.f32 %v5242_v8, %v2563_v29  ;;  %v2992_v62 = vmul.f32 %v5267_v36, %v2857_v40 }
 0x1bf   : > { %v8293_v28 = vmov %v8288_v23  ;;  %v6365_v53 = vmul.f32 %v5267_v36, %v6334_v57  ;;  %v1156_v16 = vshll.u32 %v6310_v61, 16  ;;  %v1160_v58 = vrot.slane %v1155_v52, 4 }
 0x1c0   : > { %v1778_v12 = vsel %vm1720_vm10, %v8290_v2, %v8288_v23  ;;  %v1780_v42 = vsel %vm1720_vm10, %v8293_v28, %v8292_v31  ;;  %4839 = vpow2.f32 %v743_v54  ;;  %v3631_v22 = vadd.f32 1.0, %v4838_v6  ;;  %v6385_v2 = vld [vmem:[#allocation2 + $0x5c] sm:$0x1]  ;;  %v964_v28 = vld [vmem:[#allocation2 + $0x74] sm:$0x1] }
 0x1c1   : > { %v2890_v44 = vmul.f32 %v8271_v41, %v2857_v40  ;;  %v6372_v29 = vmul.f32 %v6053_v24, %v3238_v43  ;;  %4841 = vrcp.f32 %v3630_v32  ;;  %v1151_v23 = vrot.slane %v6250_v9, 4 }
 0x1c2   : > { %v1158_v38 = vor.u32 %v1156_v16, %v1155_v52  ;;  %v1402_v61 = vsel %vm5102_vm4, %v1160_v58, %v1401_v5  ;;  %v6380_v54 = vmul.f32 %v5201_v13, %v1508_v59  ;;  %v6382_v6 = vadd.f32 %v2216_v18, %v2119_v20  ;;  %v2152_v52 = vld [vmem:[#allocation2 + $0x58] sm:$0xf]  ;;  %v2274_v5 = vld [vmem:[#allocation2 + $0x5c] sm:$0x1]  ;;  %v8294_v16 = vld [vmem:[#allocation41_spill] sm:$0xff] }
 0x1c3   : > { %v8147_v43 = vrot.slane %v6365_v53, 1  ;;  %1403 = vst [vmem:[#allocation2 + $0x68] sm:$0x1] %v1402_v61  ;;  %v3098_v27 = vrot.slane %v2992_v62, 1  ;;  %v1509_v32 = vunpack.c.l.bf16 %v1477_v0  ;;  %v1614_v9 = vunpack.c.l.bf16 %v6374_v33  ;;  %v8295_v61 = vld [vmem:[#allocation35_spill] sm:$0xff] }
 0x1c4   : > { %v1159_v31 = vsel %vm5156_vm9, %v1151_v23, %v1158_v38  ;;  %v2922_v59 = vadd.f32 %v2890_v44, %v2792_v30  ;;  %v6393_v20 = vmul.f32 %v6053_v24, %v6334_v57  ;;  %v965_v18 = vsel %vm5117_vm6, 0, %v964_v28  ;;  %v644_v38 = vpop.f32.mrf.mxu0  ;;  %v8297_v28 = vld [vmem:[#allocation7_spill] sm:$0xff] }
 0x1c5   : > { %1400 = vst [vmem:[#allocation2 + $0x64] sm:$0xf] %v1159_v31  ;;  %v1784_v62 = vrot.slane %v8294_v16, 1  ;;  %4843 = vrcp.f32 %v3631_v22  ;;  %v3371_v0 = vrot.slane %v6372_v29, 2  ;;  %v2965_v33 = vunpack.c.l.bf16 %v6385_v2 }
 0x1c6   : > { %v4840_v58 = vpop.eup %4839  ;;  %v6401_v23 = vadd.f32 %v6153_v25, %v641_v47  ;;  %966 = vst [vmem:[#allocation2 + $0x74] sm:$0x1] %v965_v18  ;;  %v2184_v30 = vunpack.c.l.bf16 %v2152_v52  ;;  %v3100_v44 = vsel %vm1720_vm10, %v3098_v27, %v8147_v43  ;;  %v6408_v31 = vmul.f32 %v8295_v61, %v5201_v13  ;;  %v6415_v18 = vld [vmem:[#allocation2 + $0xa8] sm:$0xff]  }
 0x1c7   : > { %v6411_v22 = vadd.f32 %v1778_v12, %v8297_v28  ;;  %v4842_v29 = vpop.eup %4841  ;;  %v1646_v2 = vmul.f32 %v5191_v4, %v1509_v32  ;;  %v1647_v47 = vmul.f32 %v5191_v4, %v1614_v9  ;;  %v2290_v16 = vunpack.c.l.bf16 %v2274_v5  ;;  %v8299_v52 = vld [vmem:[#allocation37_spill] sm:$0xff] }
 0x1c8   : > { %8296 = vst [vmem:[#allocation14_spill] sm:$0xff] %v6408_v31  ;;  %v8300_v40 = vrot.slane %v8299_v52, 1  ;;  %v8302_v27 = vrot.slane %v8301_v60, 1  ;;  %v8153_v35 = vrot.slane %v6393_v20, 2  ;;  %v791_v43 = vadd.f32 1.0, %v4840_v58 }
 0x1c9   : > { %8298 = vst [vmem:[#allocation5_spill] sm:$0xff] %v6411_v22  ;;  %v6431_v46 = vadd.f32 %v1780_v42, %v8305_v10  ;;  %v2994_v5 = vmul.f32 %v5267_v36, %v2965_v33  ;;  %v3195_v63 = vadd.f32 %v3100_v44, %v2922_v59  ;;  %v696_v45 = vsub.f32 0.0, %v6401_v23 }
 0x1ca   : > { %v6422_v11 = vsel %vm1720_vm10, %v8302_v27, %v8300_v40  ;;  %v8303_v12 = vmov %v8300_v40  ;;  %v6436_v60 = vadd.f32 %v6153_v25, %v644_v38  ;;  %v6439_v40 = vmul.f32 %v4842_v29, %v6248_v51 }
 0x1cb   : > { %v6428_v28 = vsel %vm1720_vm10, %v8303_v12, %v1784_v62  ;;  %8306 = vst [vmem:[#allocation41_spill] sm:$0xff] %v6431_v46  ;;  %v6442_v58 = vmul.f32 %v5198_v14, %v1509_v32  ;;  %v2320_v62 = vmul.f32 %v5239_v7, %v2184_v30  ;;  %v6446_v52 = vunpack.c.l.bf16 %v6415_v18  ;;  %v6448_v10 = vpop.eup %4843  ;;  %v1873_v12 = vld [vmem:[#allocation2 + $0x60] sm:$0xe] }
 0x1cc   : > { %8304 = vst [vmem:[#allocation21_spill] sm:$0xff] %v6428_v28  ;;  %v1542_v42 = vmul.f32 %v5201_v13, %v1509_v32  ;;  %v1757_v59 = vrot.slane %v1646_v2, 1  ;;  %v1759_v44 = vrot.slane %v1647_v47, 1  ;;  %v2321_v38 = vmul.f32 %v5239_v7, %v2290_v16  ;;  %v3223_v46 = vld [vmem:[#allocation2 + $0x60] sm:$0xe] }
 0x1cd   : > { %8307 = vst [vmem:[#allocation7_spill] sm:$0xff] %v6439_v40  ;;  %v2217_v27 = vmul.f32 %v5236_v1, %v2184_v30  ;;  %v2891_v51 = vmul.f32 %v8271_v41, %v6334_v57  ;;  %v3373_v29 = vsel %vm1994_vm11, %v3371_v0, %v8153_v35  ;;  %v2548_v40 = vld [vmem:[#allocation2 + $0x60] sm:$0xe]  ;;  %4845 = vrcp.f32 %v791_v43 }
 0x1ce   : > { %8308 = vst [vmem:[#allocation37_spill] sm:$0xff] %v6446_v52  ;;  %v3101_v19 = vrot.slane %v2994_v5, 1  ;;  %v745_v32 = vmul.f32 1.442695, %v696_v45  ;;  %v697_v2 = vsub.f32 0.0, %v6436_v60  ;;  %v1921_v47 = vmul.f32 %v5198_v14, %v1614_v9 }
 0x1cf   : > { %8309 = vst [vmem:[#allocation36_spill] sm:$0xff] %v6448_v10  ;;  %v3468_v10 = vadd.f32 %v3373_v29, %v3195_v63  ;;  %v2031_v22 = vrot.slane %v6442_v58, 2  ;;  %v2428_v61 = vrot.slane %v2320_v62, 1  ;;  %v2593_v57 = vmul.f32 %v5242_v8, %v2184_v30 }
 0x1d0   : > { %v1760_v28 = vsel %vm1720_vm10, %v1757_v59, %v1759_v44  ;;  %v2430_v31 = vrot.slane %v2321_v38, 1  ;;  %v2594_v0 = vmul.f32 %v5242_v8, %v2290_v16  ;;  %v3267_v43 = vmul.f32 %v6053_v24, %v2965_v33 }
 0x1d1   : > { %v2923_v63 = vadd.f32 %v2891_v51, %v6345_v50  ;;  %v1889_v5 = vunpack.c.l.bf16 %v1873_v12  ;;  %v2564_v45 = vunpack.c.l.bf16 %v2548_v40  ;;  %v3239_v29 = vunpack.c.l.bf16 %v3223_v46 }
 0x1d2   : > { %v8310_v35 = vrot.slane %v6365_v53, 1  ;;  %v6470_v58 = vadd.f32 %v6111_v37, %v3468_v10  ;;  %4847 = vpow2.f32 %v745_v32  ;;  %v747_v30 = vmul.f32 1.442695, %v697_v2 }
 0x1d3   : > { %v4846_v62 = vpop.eup %4845  ;;  %v8312_v44 = vrot.slane %v6332_v26, 1  ;;  %v2033_v33 = vrot.slane %v1921_v47, 2  ;;  %v2249_v50 = vadd.f32 %v2217_v27, %v6339_v15  ;;  %v2701_v38 = vrot.slane %v2593_v57, 2 }
 0x1d4   : > { %v3102_v9 = vsel %vm1720_vm10, %v8310_v35, %v3101_v19  ;;  %8311 = vst [vmem:[#allocation18_spill] sm:$0xff] %v6470_v58  ;;  %v1848_v40 = vadd.f32 %v1760_v28, %v1542_v42  ;;  %v8313_v46 = vrot.slane %v6343_v21, 1  ;;  %v2431_v19 = vsel %vm1720_vm10, %v2428_v61, %v2430_v31  ;;  %v646_v35 = vpop.f32.mrf.mxu0 }
 0x1d5   : > { %v1758_v16 = vsel %vm1720_vm10, %v8312_v44, %v1757_v59  ;;  %v3374_v37 = vrot.slane %v3267_v43, 2  ;;  %v2703_v10 = vrot.slane %v2594_v0, 2  ;;  %v3196_v51 = vadd.f32 %v3102_v9, %v2923_v63 }
 0x1d6   : > { %v2429_v53 = vsel %vm1720_vm10, %v8313_v46, %v2428_v61  ;;  %v6481_v12 = vmul.f32 %v5198_v14, %v1889_v5  ;;  %v6484_v26 = vmul.f32 %v5242_v8, %v2564_v45  ;;  %v3536_v15 = vsub.f32 0.0, %v6470_v58  ;;  %v911_v46 = vld [vmem:[#allocation2 + $0x78] sm:$0x1] }
 0x1d7   : > { %v6488_v28 = vmul.f32 %v6053_v24, %v3239_v29  ;;  %v855_v21 = vmul.f32 %v4846_v62, %v6307_v55  ;;  %4849 = vpow2.f32 %v747_v30  ;;  %v2034_v61 = vsel %vm1994_vm11, %v2031_v22, %v2033_v33  ;;  %v6514_v29 = vld [vmem:[#allocation2 + $0xa4] sm:$0x1] }
 0x1d8   : > { %v1847_v31 = vadd.f32 %v1758_v16, %v6380_v54  ;;  %v6494_v42 = vadd.f32 %v6153_v25, %v646_v35  ;;  %v6497_v59 = vunpack.c.h.bf16 %v6415_v18  ;;  %v4848_v27 = vpop.eup %4847  ;;  %v6499_v32 = vadd.f32 %v2034_v61, %v1848_v40  ;;  %v1488_v18 = vld [vmem:[#allocation2 + $0x9c] sm:$0xf]  ;;  %8318 = vst [vmem:[#allocation58_spill] sm:$0xff] %v6514_v29  ;;  %v6522_v16 = vld [vmem:[#allocation2 + $0xb0] sm:$0x1] }
 0x1d9   : > { %v2522_v2 = vadd.f32 %v2431_v19, %v2249_v50  ;;  %v8315_v24 = vrot.slane %v6393_v20, 2  ;;  %v2521_v55 = vadd.f32 %v2429_v53, %v6382_v6  ;;  %v2704_v57 = vsel %vm1994_vm11, %v2701_v38, %v2703_v10  ;;  %8320 = vst [vmem:[#allocation59_spill] sm:$0xff] %v6522_v16  ;;  %v6524_v50 = vld [vmem:[#allocation2 + $0x68] sm:$0x1]  ;;  %v4649_v19 = vld [vmem:[#allocation2 + $0x60] sm:$0xff]  }
 0x1da   : > { %8314 = vst [vmem:[#allocation56_spill] sm:$0xff] %v6497_v59  ;;  %v3578_v43 = vmul.f32 1.442695, %v3536_v15  ;;  %v8317_v5 = vrot.slane %v6337_v3, 2  ;;  %v1007_v45 = vpack.c.bf16 %v855_v21, %v855_v21  ;;  %v8319_v9 = vrot.slane %v6360_v48, 2 }
 0x1db   : > { %v3375_v47 = vsel %vm1994_vm11, %v8315_v24, %v3374_v37  ;;  %v792_v62 = vadd.f32 1.0, %v4848_v27  ;;  %v698_v44 = vsub.f32 0.0, %v6494_v42  ;;  %v1520_v53 = vunpack.c.l.bf16 %v1488_v18  ;;  %v932_v48 = vld [vmem:[#allocation2 + $0xcc] sm:$0x1]  ;;  %v988_v21 = vld [vmem:[#allocation2 + $0xd4] sm:$0x1] }
 0x1dc   : > { %v6506_v0 = vadd.f32 %v3375_v47, %v3196_v51  ;;  %v2032_v20 = vsel %vm1994_vm11, %v8317_v5, %v2031_v22  ;;  %v2702_v30 = vsel %vm1994_vm11, %v8319_v9, %v2701_v38  ;;  %v6528_v22 = vadd.f32 %v2704_v57, %v2522_v2  ;;  %v1404_v15 = vld [vmem:[#allocation2 + $0x6c] sm:$0xf]  ;;  %v2275_v27 = vld [vmem:[#allocation2 + $0x68] sm:$0x1] }
 0x1dd   : > { %v6516_v6 = vadd.f32 %v2032_v20, %v1847_v31  ;;  %v4850_v33 = vpop.eup %4849  ;;  %v6526_v3 = vadd.f32 %v2702_v30, %v2521_v55  ;;  %v1162_v40 = vshrl.u32 %v1007_v45, 16  ;;  %4851 = vrcp.f32 %v792_v62  ;;  %v2950_v30 = vld [vmem:[#allocation2 + $0x68] sm:$0x1] }
 0x1de   : > { %8316 = vst [vmem:[#allocation57_spill] sm:$0xff] %v6506_v0  ;;  %v6532_v38 = vmul.f32 %v5201_v13, %v5983_v17  ;;  %v6536_v37 = vmul.f32 %v6446_v52, %v5201_v13  ;;  %v8155_v35 = vunpack.c.l.bf16 %v6514_v29  ;;  %4853 = vpow2.f32 %v3578_v43  ;;  %v967_v43 = vld [vmem:[#allocation2 + $0x80] sm:$0x1] }
 0x1df   : > { %v6539_v10 = vrot.slane %v1162_v40, 7  ;;  %v1165_v51 = vshll.u32 %v1007_v45, 16  ;;  %v8154_v61 = vunpack.c.l.bf16 %v6522_v16  ;;  %v1615_v31 = vunpack.c.l.bf16 %v6524_v50 }
 0x1e0   : > { %v793_v2 = vadd.f32 1.0, %v4850_v33  ;;  %v912_v24 = vsel %vm5102_vm4, 0, %v911_v46  ;;  %v749_v47 = vmul.f32 1.442695, %v698_v44  ;;  %v6545_v55 = vunpack.c.l.bf16 %v4649_v19 }
 0x1e1   : > { %v6547_v57 = vunpack.c.h.bf16 %v4649_v19  ;;  %v1167_v18 = vor.u32 %v1165_v51, %v6539_v10  ;;  %913 = vst [vmem:[#allocation2 + $0x78] sm:$0x1] %v912_v24  ;;  %v933_v5 = vsel %vm5102_vm4, 0, %v932_v48  ;;  %v968_v20 = vsel %vm5117_vm6, 0, %v967_v43 }
 0x1e2   : > { %4855 = vrcp.f32 %v793_v2  ;;  %934 = vst [vmem:[#allocation2 + $0xcc] sm:$0x1] %v933_v5  ;;  %v989_v45 = vsel %vm5117_vm6, 0, %v988_v21  ;;  %v6557_v9 = vmul.f32 %v5191_v4, %v1520_v53  ;;  %v6563_v44 = vmul.f32 %v5191_v4, %v5983_v17 }
 0x1e3   : > { %v1405_v62 = vsel %vm5146_vm7, %v1167_v18, %v1404_v15  ;;  %4857 = vpow2.f32 %v749_v47  ;;  %969 = vst [vmem:[#allocation2 + $0x80] sm:$0x1] %v968_v20  ;;  %v6568_v33 = vmul.f32 %v5191_v4, %v8155_v35  ;;  %v4852_v49 = vpop.eup %4851  ;;  %v2291_v50 = vunpack.c.l.bf16 %v2275_v27  ;;  %v8322_v47 = vld [vmem:[#allocation40_spill] sm:$0xff] }
 0x1e4   : > { %1406 = vst [vmem:[#allocation2 + $0x6c] sm:$0xf] %v1405_v62  ;;  %v6571_v40 = vmul.f32 %v5201_v13, %v1520_v53  ;;  %v6575_v46 = vmul.f32 %v6497_v59, %v5201_v13  ;;  %v6579_v19 = vmul.f32 %v6446_v52, %v5191_v4  ;;  %v4854_v48 = vpop.eup %4853  ;;  %v1648_v51 = vmul.f32 %v6545_v55, %v5191_v4 }
 0x1e5   : > { %v1649_v15 = vmul.f32 %v6547_v57, %v5191_v4  ;;  %v1650_v21 = vmul.f32 %v5191_v4, %v1615_v31  ;;  %v856_v53 = vmul.f32 %v4852_v49, %v6401_v23  ;;  %990 = vst [vmem:[#allocation2 + $0xd4] sm:$0x1] %v989_v45  ;;  %v2966_v27 = vunpack.c.l.bf16 %v2950_v30 }
 0x1e6   : > { %8321 = vst [vmem:[#allocation60_spill] sm:$0xff] %v6575_v46  ;;  %v6589_v2 = vmul.f32 %v6497_v59, %v5191_v4  ;;  %v6594_v24 = vmul.f32 %v5191_v4, %v8154_v61  ;;  %v6598_v18 = vadd.f32 %v6422_v11, %v8322_v47  ;;  %v6605_v30 = vmul.f32 %v6547_v57, %v5198_v14 }
 0x1e7   : > { %v1008_v43 = vpack.c.bf16 %v856_v53, %v856_v53  ;;  %v6608_v62 = vmul.f32 %v5198_v14, %v1615_v31  ;;  %v2324_v49 = vmul.f32 %v5239_v7, %v2291_v50  ;;  %v6612_v11 = vmul.f32 %v5242_v8, %v2291_v50 }
 0x1e8   : > { %8323 = vst [vmem:[#allocation40_spill] sm:$0xff] %v6598_v18  ;;  %v4856_v45 = vpop.eup %4855  ;;  %v3632_v47 = vadd.f32 1.0, %v4854_v48  ;;  %v1761_v61 = vrot.slane %v1648_v51, 1  ;;  %v1762_v35 = vrot.slane %v1649_v15, 1  ;;  %v1764_v5 = vrot.slane %v1650_v21, 1 }
 0x1e9   : > { %v4858_v53 = vpop.eup %4857  ;;  %v2218_v20 = vmul.f32 %v6545_v55, %v5236_v1  ;;  %v1170_v23 = vshrl.u32 %v1008_v43, 16  ;;  %v857_v63 = vmul.f32 %v4856_v45, %v6436_v60  ;;  %v2219_v31 = vmul.f32 %v6547_v57, %v5236_v1  ;;  %v6632_v60 = vld [vmem:[%s8091_s3 + $0x8] ss:$0 sm:$0xff] }
 0x1ea   : > { %v794_v54 = vadd.f32 1.0, %v4858_v53  ;;  %v2322_v25 = vmul.f32 %v6545_v55, %v5239_v7  ;;  %v2323_v50 = vmul.f32 %v6547_v57, %v5239_v7  ;;  %v6624_v48 = vmul.f32 %v5267_v36, %v2966_v27 }
 0x1eb   : > { %v1543_v51 = vmul.f32 %v6545_v55, %v5201_v13  ;;  %v6635_v21 = vmul.f32 %v6632_v60, %v2966_v27  ;;  %v1544_v45 = vmul.f32 %v6547_v57, %v5201_v13  ;;  %v1763_v53 = vsel %vm1720_vm10, %v1761_v61, %v1762_v35  ;;  %v3224_v39 = vld [vmem:[#allocation2 + $0x6c] sm:$0xe] }
 0x1ec   : > { %4859 = vrcp.f32 %v794_v54  ;;  %v1765_v58 = vsel %vm1720_vm10, %v1762_v35, %v1764_v5  ;;  %v2038_v0 = vrot.slane %v6608_v62, 2  ;;  %v2250_v15 = vadd.f32 %v2218_v20, %v6516_v6  ;;  %v2549_v62 = vld [vmem:[#allocation2 + $0x6c] sm:$0xe] }
 0x1ed   : > { %4861 = vrcp.f32 %v3632_v47  ;;  %v1172_v52 = vrot.slane %v1170_v23, 7  ;;  %v1009_v18 = vpack.c.bf16 %v857_v63, %v857_v63  ;;  %v2251_v16 = vadd.f32 %v2219_v31, %v6499_v32 }
 0x1ee   : > { %v2432_v59 = vrot.slane %v2322_v25, 1  ;;  %v2433_v27 = vrot.slane %v2323_v50, 1  ;;  %v2435_v29 = vrot.slane %v2324_v49, 1  ;;  %v1849_v54 = vadd.f32 %v1763_v53, %v1543_v51  ;;  %v1408_v25 = vld [vmem:[#allocation2 + $0x74] sm:$0x1] }
 0x1ef   : > { %v6644_v17 = vadd.f32 %v1765_v58, %v1544_v45  ;;  %v8324_v46 = vrot.slane %v6605_v30, 2  ;;  %v8325_v61 = vrot.slane %v6481_v12, 2  ;;  %v1173_v5 = vshll.u32 %v1008_v43, 16 }
 0x1f0   : > { %v6653_v6 = vmul.f32 %v6547_v57, %v5242_v8  ;;  %v2708_v63 = vrot.slane %v6612_v11, 2  ;;  %v2995_v32 = vmul.f32 %v6545_v55, %v5267_v36  ;;  %v2996_v58 = vmul.f32 %v6547_v57, %v5267_v36 }
 0x1f1   : > { %v2037_v35 = vsel %vm1994_vm11, %v8325_v61, %v8324_v46  ;;  %v1168_v20 = vrot.slane %v6539_v10, 4  ;;  %v1175_v12 = vor.u32 %v1173_v5, %v1172_v52  ;;  %v1177_v49 = vrot.slane %v1172_v52, 4  ;;  %v6672_v61 = vld [vmem:[#allocation2 + $0xb4] sm:$0xff]  }
 0x1f2   : > { %v4860_v23 = vpop.eup %4859  ;;  %v1179_v46 = vshrl.u32 %v1009_v18, 16  ;;  %v2434_v43 = vsel %vm1720_vm10, %v2432_v59, %v2433_v27  ;;  %v2436_v47 = vsel %vm1720_vm10, %v2433_v27, %v2435_v29  ;;  %v2892_v31 = vmul.f32 %v6545_v55, %v8271_v41  ;;  %v1411_v55 = vld [vmem:[#allocation2 + $0x78] sm:$0xf] }
 0x1f3   : > { %v858_v50 = vmul.f32 %v4860_v23, %v6494_v42  ;;  %v6666_v51 = vpop.eup %4861  ;;  %v1176_v45 = vsel %vm5156_vm9, %v1168_v20, %v1175_v12  ;;  %v1409_v10 = vsel %vm5102_vm4, %v1177_v49, %v1408_v25  ;;  %v1182_v52 = vshll.u32 %v1009_v18, 16 }
 0x1f4   : > { %8326 = vst [vmem:[#allocation61_spill] sm:$0xff] %v6666_v51  ;;  %v1181_v53 = vrot.slane %v1179_v46, 7  ;;  %v2893_v59 = vmul.f32 %v6547_v57, %v8271_v41  ;;  %v3103_v29 = vrot.slane %v2995_v32, 1  ;;  %v3104_v27 = vrot.slane %v2996_v58, 1  ;;  %v8358_v51 = vld [vmem:[#allocation24_spill] sm:$0xff] }
 0x1f5   : > { %1407 = vst [vmem:[#allocation2 + $0x70] sm:$0xf] %v1176_v45  ;;  %v1010_v42 = vpack.c.bf16 %v858_v50, %v858_v50  ;;  %v2706_v5 = vrot.slane %v6653_v6, 2  ;;  %v3106_v23 = vrot.slane %v6624_v48, 1  ;;  %v3269_v20 = vmul.f32 %v6632_v60, %v6547_v57  ;;  %v6689_v48 = vld [vmem:[#allocation2 + $0xbc] sm:$0x1] }
 0x1f6   : > { %1410 = vst [vmem:[#allocation2 + $0x74] sm:$0x1] %v1409_v10  ;;  %v1184_v25 = vor.u32 %v1182_v52, %v1181_v53  ;;  %v6680_v18 = vadd.f32 %v2037_v35, %v1849_v54  ;;  %v2523_v12 = vadd.f32 %v2434_v43, %v2250_v15  ;;  %v2524_v49 = vadd.f32 %v2436_v47, %v2251_v16  ;;  %v1415_v52 = vld [vmem:[#allocation2 + $0x80] sm:$0x1] }
 0x1f7   : > { %v1187_v46 = vshrl.u32 %v1010_v42, 16  ;;  %v2924_v32 = vadd.f32 %v2892_v31, %v6526_v3  ;;  %v1524_v50 = vunpack.c.l.bf16 %v6672_v61  ;;  %v6687_v6 = vunpack.c.h.bf16 %v6672_v61  ;;  %v4533_v3 = vld [vmem:[%s8093_s5 + $0x38] sm:$0xff] }
 0x1f8   : > { %v1412_v58 = vsel %vm5146_vm7, %v1184_v25, %v1411_v55  ;;  %v2925_v57 = vadd.f32 %v2893_v59, %v6528_v22  ;;  %v3105_v54 = vsel %vm1720_vm10, %v3103_v29, %v3104_v27  ;;  %v1190_v16 = vshll.u32 %v1010_v42, 16  ;;  %3829 = vmatpush.bf16.msrb.mxu2 %v4533_v3 }
 0x1f9   : > { %1413 = vst [vmem:[#allocation2 + $0x78] sm:$0xf] %v1412_v58  ;;  %v1189_v15 = vrot.slane %v1187_v46, 7  ;;  %v8327_v34 = vrot.slane %v6484_v26, 2  ;;  %v3107_v43 = vsel %vm1720_vm10, %v3104_v27, %v3106_v23  ;;  %v3377_v47 = vrot.slane %v3269_v20, 2  ;;  %v4532_v26 = vld [vmem:[%s8093_s5 + $0x30] sm:$0xff] }
 0x1fa   : > { %v3379_v31 = vrot.slane %v6635_v21, 2  ;;  %v1185_v45 = vrot.slane %v1181_v53, 4  ;;  %v8164_v61 = vunpack.c.l.bf16 %v6689_v48  ;;  %v3197_v29 = vadd.f32 %v3105_v54, %v2924_v32  ;;  %v6710_v21 = vld [vmem:[#allocation2 + $0x6c] sm:$0xf] }
 0x1fb   : > { %v2707_v35 = vsel %vm1994_vm11, %v8327_v34, %v2706_v5  ;;  %v1192_v22 = vor.u32 %v1190_v16, %v1189_v15  ;;  %v1194_v10 = vrot.slane %v1189_v15, 4  ;;  %v1669_v55 = vmul.f32 %v5191_v4, %v1524_v50  ;;  %v1874_v46 = vld [vmem:[#allocation2 + $0x6c] sm:$0xe] }
 0x1fc   : > { %v6702_v59 = vadd.f32 %v2707_v35, %v2523_v12  ;;  %v1670_v27 = vmul.f32 %v5191_v4, %v6687_v6  ;;  %v8328_v53 = vrot.slane %v6605_v30, 2  ;;  %v1791_v20 = vrot.slane %v6579_v19, 1  ;;  %v2155_v32 = vld [vmem:[#allocation2 + $0x6c] sm:$0xf]  ;;  %3830 = vmatpush.bf16.msrb.mxu2 %v4532_v26 }
 0x1fd   : > { %v1193_v23 = vsel %vm5156_vm9, %v1185_v45, %v1192_v22  ;;  %v1792_v25 = vrot.slane %v6589_v2, 1  ;;  %v6721_v12 = vadd.f32 %v3107_v43, %v2925_v57  ;;  %v2709_v30 = vsel %vm1994_vm11, %v2706_v5, %v2708_v63  ;;  %v2829_v57 = vld [vmem:[#allocation2 + $0x6c] sm:$0xf] }
 0x1fe   : > { %v2039_v42 = vsel %vm1994_vm11, %v8328_v53, %v2038_v0  ;;  %1414 = vst [vmem:[#allocation2 + $0x7c] sm:$0xf] %v1193_v23  ;;  %v1416_v56 = vsel %vm5102_vm4, %v1194_v10, %v1415_v52  ;;  %v8330_v0 = vrot.slane %v6488_v28, 2  ;;  %v6735_v2 = vsel %vm1994_vm11, %v3377_v47, %v3379_v31  ;;  %v4531_v28 = vld [vmem:[%s8093_s5 + $0x28] sm:$0xff] }
 0x1ff   : > { %8329 = vst [vmem:[#allocation62_spill] sm:$0xff] %v6721_v12  ;;  %v6724_v58 = vadd.f32 %v2039_v42, %v6644_v17  ;;  %v6737_v54 = vadd.f32 %v2709_v30, %v2524_v49  ;;  %v1671_v17 = vmul.f32 %v5191_v4, %v8164_v61  ;;  %v1794_v63 = vrot.slane %v6594_v24, 1  ;;  %v1879_v30 = vld [vmem:[#allocation2 + $0xa8] sm:$0xe] }
 0x200   : > { %v3378_v19 = vsel %vm1994_vm11, %v8330_v0, %v3377_v47  ;;  %8331 = vst [vmem:[#allocation63_spill] sm:$0xff] %v6735_v2  ;;  %v1796_v5 = vrot.slane %v1669_v55, 1  ;;  %v1797_v15 = vrot.slane %v1670_v27, 1  ;;  %v1512_v49 = vunpack.c.l.bf16 %v6710_v21  ;;  %v8337_v55 = vld [vmem:[#allocation14_spill] sm:$0xff]  ;;  %3831 = vmatpush.bf16.msrb.mxu2 %v4531_v28 }
 0x201   : > { %1417 = vst [vmem:[#allocation2 + $0x80] sm:$0x1] %v1416_v56  ;;  %v6742_v11 = vadd.f32 %v3378_v19, %v3197_v29  ;;  %v1890_v16 = vunpack.c.l.bf16 %v1874_v46  ;;  %v2187_v3 = vunpack.c.l.bf16 %v2155_v32  ;;  %v8333_v34 = vrot.slane %v6563_v44, 1  ;;  %v1600_v28 = vld [vmem:[#allocation2 + $0x74] sm:$0x1] }
 0x202   : > { %v8334_v35 = vrot.slane %v6557_v9, 1  ;;  %v2565_v47 = vunpack.c.l.bf16 %v2549_v62  ;;  %v2861_v31 = vunpack.c.l.bf16 %v2829_v57  ;;  %v6755_v45 = vmul.f32 %v5201_v13, %v1524_v50  ;;  %v8338_v9 = vld [vmem:[#allocation21_spill] sm:$0xff]  ;;  %v4530_v50 = vld [vmem:[%s8093_s5 + $0x20] sm:$0xff] }
 0x203   : > { %8332 = vst [vmem:[#allocation64_spill] sm:$0xff] %v6742_v11  ;;  %v8335_v22 = vrot.slane %v6568_v33, 1  ;;  %v8336_v24 = vmov %v8333_v34  ;;  %v3240_v52 = vunpack.c.l.bf16 %v3224_v39  ;;  %v1558_v29 = vmul.f32 %v5201_v13, %v6687_v6  ;;  %v8340_v62 = vld [vmem:[#allocation60_spill] sm:$0xff]  ;;  %v1481_v39 = vld [vmem:[#allocation2 + $0x70] sm:$0xf] }
 0x204   : > { %v1788_v43 = vsel %vm1720_vm10, %v8334_v35, %v8333_v34  ;;  %v1799_v26 = vrot.slane %v1671_v17, 1  ;;  %v6766_v27 = vadd.f32 %v8338_v9, %v8337_v55  ;;  %v1793_v33 = vsel %vm1720_vm10, %v1791_v20, %v1792_v25  ;;  %v1880_v17 = vld [vmem:[#allocation2 + $0xb4] sm:$0xe]  ;;  %3832 = vmatpush.bf16.msrb.mxu2 %v4530_v50  ;;  %v8342_v34 = vld [vmem:[#allocation33_spill] sm:$0xff]  ;;  %v8353_v50 = vld [vmem:[#allocation32_spill] sm:$0xff] }
 0x205   : > { %v1790_v10 = vsel %vm1720_vm10, %v8336_v24, %v8335_v22  ;;  %v1795_v44 = vsel %vm1720_vm10, %v1792_v25, %v1794_v63  ;;  %v1798_v21 = vsel %vm1720_vm10, %v1796_v5, %v1797_v15  ;;  %v6775_v53 = vadd.f32 %v1788_v43, %v6571_v40  ;;  %v4529_v63 = vld [vmem:[%s8093_s5 + $0x18] sm:$0xff]  ;;  %v8344_v35 = vld [vmem:[#allocation45_spill] sm:$0xff] }
 0x206   : > { %v6778_v42 = vmul.f32 %v5191_v4, %v1512_v49  ;;  %v6781_v23 = vmul.f32 %v5198_v14, %v1890_v16  ;;  %v2220_v46 = vmul.f32 %v5236_v1, %v2187_v3  ;;  %v6785_v32 = vadd.f32 %v1790_v10, %v6532_v38  ;;  %v8341_v16 = vld [vmem:[#allocation35_spill] sm:$0xff] }
 0x207   : > { %v6788_v20 = vmul.f32 %v5239_v7, %v2187_v3  ;;  %v6791_v25 = vmul.f32 %v5242_v8, %v2565_v47  ;;  %v2894_v40 = vmul.f32 %v8271_v41, %v2861_v31  ;;  %v6795_v56 = vmul.f32 %v5267_v36, %v2861_v31  ;;  %v8354_v9 = vld [vmem:[#allocation15_spill] sm:$0xff] }
 0x208   : > { %v6798_v0 = vmul.f32 %v6632_v60, %v3240_v52  ;;  %v1800_v19 = vsel %vm1720_vm10, %v1797_v15, %v1799_v26  ;;  %v6802_v38 = vadd.f32 %v1793_v33, %v6536_v37  ;;  %v6805_v57 = vadd.f32 %v1795_v44, %v8340_v62  ;;  %v2156_v44 = vld [vmem:[#allocation2 + $0x70] sm:$0xf]  ;;  %3833 = vmatpush.bf16.msrb.mxu2 %v4529_v63  ;;  %v8351_v63 = vld [vmem:[#allocation59_spill] sm:$0xff] }
 0x209   : > { %v1895_v5 = vunpack.c.l.bf16 %v1879_v30  ;;  %v1935_v3 = vmul.f32 %v8341_v16, %v5198_v14  ;;  %v8343_v15 = vunpack.c.l.bf16 %v8342_v34  ;;  %v8345_v43 = vunpack.c.l.bf16 %v8344_v35  ;;  %v6833_v30 = vld [vmem:[#allocation2 + $0x74] sm:$0x1] }
 0x20a   : > { %8339 = vst [vmem:[#allocation14_spill] sm:$0xff] %v6798_v0  ;;  %v6819_v31 = vmul.f32 %v5201_v13, %v1512_v49  ;;  %v6824_v10 = vadd.f32 %v2220_v46, %v6680_v18  ;;  %v6829_v55 = vadd.f32 %v2894_v40, %v6702_v59  ;;  %v1513_v49 = vunpack.c.l.bf16 %v1481_v39  ;;  %v4528_v18 = vld [vmem:[%s8093_s5 + $0x10] sm:$0xff]  ;;  %v8347_v46 = vld [vmem:[#allocation47_spill] sm:$0xff]  ;;  %v8364_v0 = vld [vmem:[#allocation5_spill] sm:$0xff] }
 0x20b   : > { %v1936_v37 = vmul.f32 %v5198_v14, %v8343_v15  ;;  %v1937_v47 = vmul.f32 %v5198_v14, %v8345_v43  ;;  %v1616_v33 = vunpack.c.l.bf16 %v1600_v28  ;;  %v1896_v62 = vunpack.c.l.bf16 %v1880_v17  ;;  %v8348_v59 = vld [vmem:[#allocation58_spill] sm:$0xff]  ;;  %v8350_v28 = vld [vmem:[#allocation56_spill] sm:$0xff] }
 0x20c   : > { %8346 = vst [vmem:[#allocation21_spill] sm:$0xff] %v6829_v55  ;;  %v6840_v34 = vmul.f32 %v5198_v14, %v8347_v46  ;;  %v8349_v40 = vunpack.c.l.bf16 %v8348_v59  ;;  %v6848_v39 = vmul.f32 %v5198_v14, %v1895_v5  ;;  %v6852_v17 = vmul.f32 %v8350_v28, %v5198_v14  ;;  %v8356_v5 = vld [vmem:[#allocation6_spill] sm:$0xff]  ;;  %3834 = vmatpush.bf16.msrb.mxu2 %v4528_v18  ;;  %v4650_v18 = vld [vmem:[#allocation2 + $0x78] sm:$0xff]   ;;  %v1601_v55 = vld [vmem:[#allocation2 + $0x80] sm:$0x1] }
 0x20d   : > { %v8352_v35 = vunpack.c.l.bf16 %v8351_v63  ;;  %v2055_v46 = vrot.slane %v8353_v50, 2  ;;  %v2056_v26 = vrot.slane %v1935_v3, 2  ;;  %v2058_v24 = vrot.slane %v1936_v37, 2  ;;  %v8368_v28 = vld [vmem:[#allocation40_spill] sm:$0xff] }
 0x20e   : > { %v6845_v15 = vmul.f32 %v5198_v14, %v8349_v40  ;;  %v2188_v59 = vunpack.c.l.bf16 %v2156_v44  ;;  %v2292_v40 = vunpack.c.l.bf16 %v6833_v30  ;;  %v8355_v52 = vrot.slane %v8354_v9, 2  ;;  %v2830_v44 = vld [vmem:[#allocation2 + $0x70] sm:$0xf]  ;;  %v4526_v30 = vld [vmem:[%s8093_s5] sm:$0xff] }
 0x20f   : > { %v6857_v43 = vmul.f32 %v5198_v14, %v8352_v35  ;;  %v8357_v22 = vrot.slane %v8356_v5, 2  ;;  %v8359_v11 = vrot.slane %v8358_v51, 2  ;;  %v1652_v2 = vmul.f32 %v5191_v4, %v1513_v49 }
 0x210   : > { %v8360_v63 = vmov %v8355_v52  ;;  %v1653_v3 = vmul.f32 %v5191_v4, %v1616_v33  ;;  %v6874_v37 = vadd.f32 %v1798_v21, %v6755_v45  ;;  %v6876_v50 = vadd.f32 %v1800_v19, %v1558_v29 }
 0x211   : > { %v2052_v61 = vsel %vm1994_vm11, %v8357_v22, %v8355_v52  ;;  %v2054_v35 = vsel %vm1994_vm11, %v8360_v63, %v8359_v11  ;;  %v4527_v22 = vld [vmem:[%s8093_s5 + $0x8] sm:$0xff]  ;;  %v6882_v51 = vmul.f32 %v5198_v14, %v1896_v62  ;;  %v6886_v11 = vmul.f32 %v5198_v14, %v6687_v6 }
 0x212   : > { %8361 = vst [vmem:[#allocation60_spill] sm:$0xff] %v6874_v37  ;;  %v2060_v52 = vrot.slane %v1937_v47, 2  ;;  %v8166_v9 = vrot.slane %v6840_v34, 2  ;;  %v8363_v45 = vunpack.c.l.bf16 %v6689_v48  ;;  %v2057_v21 = vsel %vm1994_vm11, %v2055_v46, %v2056_v26  ;;  %3835 = vmatpush.bf16.msrb.mxu2 %v4527_v22 }
 0x213   : > { %8362 = vst [vmem:[#allocation33_spill] sm:$0xff] %v6876_v50  ;;  %v6896_v19 = vsel %vm1994_vm11, %v2056_v26, %v2058_v24  ;;  %v6900_v62 = vmul.f32 %v5198_v14, %v1513_v49  ;;  %v2326_v6 = vmul.f32 %v5239_v7, %v2188_v59  ;;  %v2327_v47 = vmul.f32 %v5239_v7, %v2292_v40  ;;  %v2951_v24 = vld [vmem:[#allocation2 + $0x74] sm:$0x1] }
 0x214   : > { %v6892_v29 = vmul.f32 %v5198_v14, %v8363_v45  ;;  %v1767_v5 = vrot.slane %v1652_v2, 1  ;;  %v1769_v63 = vrot.slane %v1653_v3, 1  ;;  %v1927_v45 = vmul.f32 %v5198_v14, %v1616_v33  ;;  %v8366_v2 = vld [vmem:[#allocation41_spill] sm:$0xff] }
 0x215   : > { %v2221_v46 = vmul.f32 %v5236_v1, %v2188_v59  ;;  %v2862_v26 = vunpack.c.l.bf16 %v2830_v44  ;;  %v6913_v12 = vsel %vm1994_vm11, %v2060_v52, %v8166_v9  ;;  %v6916_v48 = vadd.f32 %v2052_v61, %v8364_v0  ;;  %v1875_v0 = vld [vmem:[#allocation2 + $0x78] sm:$0xe] }
 0x216   : > { %v6919_v3 = vadd.f32 %v2054_v35, %v8366_v2  ;;  %v6922_v33 = vmul.f32 %v5242_v8, %v2188_v59  ;;  %v6924_v44 = vunpack.c.l.bf16 %v4650_v18  ;;  %v6926_v22 = vunpack.c.h.bf16 %v4650_v18  ;;  %3836 = vmatpush.bf16.msrb.mxu2 %v4526_v30 }
 0x217   : > { %8365 = vst [vmem:[#allocation45_spill] sm:$0xff] %v6916_v48  ;;  %v6929_v50 = vadd.f32 %v2057_v21, %v8368_v28  ;;  %v1546_v52 = vmul.f32 %v5201_v13, %v1513_v49  ;;  %v2438_v9 = vrot.slane %v2326_v6, 1  ;;  %v2440_v16 = vrot.slane %v2327_v47, 1  ;;  %v2550_v48 = vld [vmem:[#allocation2 + $0x78] sm:$0xe] }
 0x218   : > { %8367 = vst [vmem:[#allocation47_spill] sm:$0xff] %v6919_v3  ;;  %v2967_v61 = vunpack.c.l.bf16 %v2951_v24  ;;  %v1770_v35 = vsel %vm1720_vm10, %v1767_v5, %v1769_v63  ;;  %v2041_v2 = vrot.slane %v6900_v62, 2  ;;  %v2043_v59 = vrot.slane %v1927_v45, 2  ;;  %v3225_v21 = vld [vmem:[#allocation2 + $0x78] sm:$0xe] }
 0x219   : > { %8369 = vst [vmem:[#allocation58_spill] sm:$0xff] %v6929_v50  ;;  %v2253_v3 = vadd.f32 %v2221_v46, %v6724_v58  ;;  %v8370_v18 = vrot.slane %v6778_v42, 1  ;;  %v6939_v28 = vmul.f32 %v5242_v8, %v2292_v40  ;;  %v6942_v49 = vmul.f32 %v5267_v36, %v2862_v26 }
 0x21a   : > { %v1617_v6 = vunpack.c.l.bf16 %v1601_v55  ;;  %v1891_v62 = vunpack.c.l.bf16 %v1875_v0  ;;  %v1654_v58 = vmul.f32 %v6924_v44, %v5191_v4  ;;  %v1655_v42 = vmul.f32 %v6926_v22, %v5191_v4 }
 0x21b   : > { %v1768_v37 = vsel %vm1720_vm10, %v8370_v18, %v1767_v5  ;;  %8371 = vst [vmem:[#allocation59_spill] sm:$0xff] %v6942_v49  ;;  %v1852_v63 = vadd.f32 %v1770_v35, %v1546_v52  ;;  %v2441_v5 = vsel %vm1720_vm10, %v2438_v9, %v2440_v16  ;;  %v2895_v40 = vmul.f32 %v8271_v41, %v2862_v26 }
 0x21c   : > { %v2566_v45 = vunpack.c.l.bf16 %v2550_v48  ;;  %v2044_v46 = vsel %vm1994_vm11, %v2041_v2, %v2043_v59  ;;  %v6953_v55 = vmul.f32 %v5267_v36, %v2967_v61  ;;  %v6956_v30 = vmul.f32 %v6632_v60, %v2862_v26 }
 0x21d   : > { %v3241_v24 = vunpack.c.l.bf16 %v3225_v21  ;;  %v8374_v0 = vrot.slane %v6788_v20, 1  ;;  %v8167_v52 = vrot.slane %v6942_v49, 1  ;;  %v6963_v16 = vmul.f32 %v6632_v60, %v2967_v61 }
 0x21e   : > { %8372 = vst [vmem:[#allocation32_spill] sm:$0xff] %v6953_v55  ;;  %v1656_v48 = vmul.f32 %v5191_v4, %v1617_v6  ;;  %v6966_v35 = vadd.f32 %v2441_v5, %v2253_v3  ;;  %v1928_v59 = vmul.f32 %v5198_v14, %v1891_v62  ;;  %v1771_v47 = vrot.slane %v1654_v58, 1 }
 0x21f   : > { %8373 = vst [vmem:[#allocation15_spill] sm:$0xff] %v6956_v30  ;;  %v2439_v18 = vsel %vm1720_vm10, %v8374_v0, %v2438_v9  ;;  %v1772_v50 = vrot.slane %v1655_v42, 1  ;;  %v2126_v26 = vadd.f32 %v2044_v46, %v1852_v63  ;;  %v6971_v20 = vadd.f32 %v2895_v40, %v6737_v54  ;;  %v2277_v0 = vld [vmem:[#allocation2 + $0x80] sm:$0x1] }
 0x220   : > { %8375 = vst [vmem:[#allocation6_spill] sm:$0xff] %v6963_v16  ;;  %v6974_v9 = vmul.f32 %v5242_v8, %v2566_v45  ;;  %v6979_v3 = vmul.f32 %v6632_v60, %v3241_v24  ;;  %v6983_v62 = vmul.f32 %v6926_v22, %v5198_v14  ;;  %v8379_v54 = vrot.slane %v6795_v56, 1 }
 0x221   : > { %8376 = vst [vmem:[#allocation24_spill] sm:$0xff] %v6966_v35  ;;  %v1774_v63 = vrot.slane %v1656_v48, 1  ;;  %v1851_v5 = vadd.f32 %v1768_v37, %v6819_v31  ;;  %v2045_v40 = vrot.slane %v1928_v59, 2  ;;  %v1773_v45 = vsel %vm1720_vm10, %v1771_v47, %v1772_v50  ;;  %v2952_v47 = vld [vmem:[#allocation2 + $0x80] sm:$0x1] }
 0x222   : > { %8377 = vst [vmem:[#allocation5_spill] sm:$0xff] %v6971_v20  ;;  %v6990_v58 = vsel %vm1720_vm10, %v8379_v54, %v8167_v52  ;;  %v1930_v46 = vmul.f32 %v5198_v14, %v1617_v6  ;;  %v2293_v24 = vunpack.c.l.bf16 %v2277_v0  ;;  %v1547_v61 = vmul.f32 %v6924_v44, %v5201_v13 }
 0x223   : > { %8378 = vst [vmem:[#allocation41_spill] sm:$0xff] %v6979_v3  ;;  %v2328_v56 = vmul.f32 %v6924_v44, %v5239_v7  ;;  %v7003_v54 = vmul.f32 %v6926_v22, %v5239_v7  ;;  %v2046_v37 = vrot.slane %v6983_v62, 2  ;;  %v2222_v14 = vmul.f32 %v6924_v44, %v5236_v1 }
 0x224   : > { %8380 = vst [vmem:[#allocation40_spill] sm:$0xff] %v6990_v58  ;;  %v2223_v6 = vmul.f32 %v6926_v22, %v5236_v1  ;;  %v1548_v48 = vmul.f32 %v6926_v22, %v5201_v13  ;;  %v1775_v59 = vsel %vm1720_vm10, %v1772_v50, %v1774_v63  ;;  %v1853_v0 = vadd.f32 %v1773_v45, %v1547_v61  ;;  %v8408_v58 = vld [vmem:[#allocation58_spill] sm:$0xff] }
 0x225   : > { %v8381_v42 = vrot.slane %v6781_v23, 2  ;;  %v2048_v31 = vrot.slane %v1930_v46, 2  ;;  %v7018_v62 = vmul.f32 %v5239_v7, %v2293_v24  ;;  %v2525_v21 = vadd.f32 %v2439_v18, %v6824_v10  ;;  %v8406_v46 = vld [vmem:[#allocation42_spill] sm:$0xff] }
 0x226   : > { %v2442_v3 = vrot.slane %v2328_v56, 1  ;;  %v8170_v16 = vrot.slane %v7003_v54, 1  ;;  %v7024_v13 = vmul.f32 %v6926_v22, %v5242_v8  ;;  %v2968_v50 = vunpack.c.l.bf16 %v2952_v47 }
 0x227   : > { %v2042_v52 = vsel %vm1994_vm11, %v8381_v42, %v2041_v2  ;;  %v1854_v61 = vadd.f32 %v1775_v59, %v1548_v48  ;;  %v2047_v23 = vsel %vm1994_vm11, %v2045_v40, %v2046_v37  ;;  %v7027_v2 = vadd.f32 %v2223_v6, %v2126_v26  ;;  %v8404_v48 = vld [vmem:[#allocation20_spill] sm:$0xff] }
 0x228   : > { %v2125_v4 = vadd.f32 %v2042_v52, %v1851_v5  ;;  %v2127_v52 = vadd.f32 %v2047_v23, %v1853_v0  ;;  %v7030_v42 = vmul.f32 %v5242_v8, %v2293_v24  ;;  %v8382_v10 = vrot.slane %v6922_v33, 2  ;;  %v2163_v23 = vld [vmem:[#allocation2 + $0x9c] sm:$0xf] }
 0x229   : > { %v8383_v18 = vrot.slane %v6791_v25, 2  ;;  %v2896_v45 = vmul.f32 %v6924_v44, %v8271_v41  ;;  %v7042_v26 = vmul.f32 %v6924_v44, %v5267_v36  ;;  %v2444_v25 = vsel %vm1720_vm10, %v2442_v3, %v8170_v16  ;;  %v8405_v16 = vld [vmem:[#allocation45_spill] sm:$0xff] }
 0x22a   : > { %v2254_v63 = vadd.f32 %v2222_v14, %v2125_v4  ;;  %v7046_v4 = vmul.f32 %v6926_v22, %v5267_v36  ;;  %v7053_v24 = vmul.f32 %v5267_v36, %v2968_v50  ;;  %v2066_v44 = vrot.slane %v6852_v17, 2  ;;  %v4660_v17 = vld [vmem:[#allocation2 + $0xc0] sm:$0xff]  }
 0x22b   : > { %v2712_v5 = vsel %vm1994_vm11, %v8383_v18, %v8382_v10  ;;  %8384 = vst [vmem:[#allocation65_spill] sm:$0xff] %v7042_v26  ;;  %v2068_v14 = vrot.slane %v6857_v43, 2  ;;  %v2070_v6 = vrot.slane %v6882_v51, 2  ;;  %v2071_v47 = vrot.slane %v6886_v11, 2  ;;  %v2167_v11 = vld [vmem:[#allocation2 + $0xb4] sm:$0xff]  }
 0x22c   : > { %v2798_v56 = vadd.f32 %v2712_v5, %v2525_v21  ;;  %8385 = vst [vmem:[#allocation66_spill] sm:$0xff] %v7046_v4  ;;  %v7057_v21 = vmul.f32 %v6632_v60, %v6926_v22  ;;  %v7066_v3 = vmul.f32 %v6926_v22, %v8271_v41  ;;  %v7071_v0 = vmul.f32 %v6632_v60, %v2968_v50  ;;  %v7131_v22 = vld [vmem:[#allocation2 + $0xc8] sm:$0x1] }
 0x22d   : > { %8386 = vst [vmem:[#allocation67_spill] sm:$0xff] %v7053_v24  ;;  %v7073_v10 = vadd.f32 %v2444_v25, %v2254_v63  ;;  %v2073_v51 = vrot.slane %v6892_v29, 2  ;;  %v2049_v5 = vsel %vm1994_vm11, %v2046_v37, %v2048_v31  ;;  %v8393_v60 = vrot.slane %v6840_v34, 2 }
 0x22e   : > { %8387 = vst [vmem:[#allocation68_spill] sm:$0xff] %v7057_v21  ;;  %v7068_v59 = vadd.f32 %v2896_v45, %v2798_v56  ;;  %v8392_v45 = vrot.slane %v6845_v15, 2  ;;  %v8394_v63 = vrot.slane %v6848_v39, 2  ;;  %v2069_v25 = vsel %vm1994_vm11, %v2066_v44, %v2068_v14 }
 0x22f   : > { %8388 = vst [vmem:[#allocation69_spill] sm:$0xff] %v7066_v3  ;;  %v2072_v29 = vsel %vm1994_vm11, %v2070_v6, %v2071_v47  ;;  %v2195_v18 = vunpack.c.l.bf16 %v2163_v23  ;;  %v2128_v43 = vadd.f32 %v2049_v5, %v1854_v61  ;;  %v2132_v15 = vadd.f32 %v6896_v19, %v6766_v27  ;;  %v8395_v6 = vld [vmem:[#allocation60_spill] sm:$0xff]  ;;  %v8398_v27 = vld [vmem:[#allocation35_spill] sm:$0xff] }
 0x230   : > { %8389 = vst [vmem:[#allocation70_spill] sm:$0xff] %v7068_v59  ;;  %v2064_v50 = vsel %vm1994_vm11, %v8393_v60, %v8392_v45  ;;  %v2067_v56 = vsel %vm1994_vm11, %v8394_v63, %v2066_v44  ;;  %v2199_v31 = vunpack.c.l.bf16 %v2167_v11  ;;  %v2074_v34 = vsel %vm1994_vm11, %v2071_v47, %v2073_v51  ;;  %v7114_v51 = vld [vmem:[#allocation2 + $0xb0] sm:$0x1]  ;;  %v8407_v59 = vld [vmem:[#allocation47_spill] sm:$0xff] }
 0x231   : > { %8390 = vst [vmem:[#allocation71_spill] sm:$0xff] %v7071_v0  ;;  %v2133_v39 = vadd.f32 %v6913_v12, %v6775_v53  ;;  %v2134_v37 = vadd.f32 %v2064_v50, %v6785_v32  ;;  %v7098_v45 = vunpack.c.h.bf16 %v2167_v11  ;;  %v2135_v44 = vadd.f32 %v2067_v56, %v6802_v38  ;;  %v8399_v12 = vld [vmem:[#allocation48_spill] sm:$0xff]  ;;  %v8400_v38 = vld [vmem:[#allocation33_spill] sm:$0xff]  ;;  %v7122_v56 = vld [vmem:[#allocation2 + $0xbc] sm:$0x1] }
 0x232   : > { %8391 = vst [vmem:[#allocation72_spill] sm:$0xff] %v7073_v10  ;;  %v2136_v14 = vadd.f32 %v2069_v25, %v6805_v57  ;;  %v2137_v23 = vadd.f32 %v2072_v29, %v8395_v6  ;;  %v7103_v61 = vunpack.c.l.bf16 %v4660_v17  ;;  %v7105_v5 = vunpack.c.h.bf16 %v4660_v17  ;;  %v7112_v32 = vld [vmem:[#allocation2 + $0xa4] sm:$0x1]  ;;  %v8401_v11 = vld [vmem:[#allocation37_spill] sm:$0xff] }
 0x233   : > { %v2227_v19 = vmul.f32 %v8398_v27, %v5236_v1  ;;  %v2228_v47 = vmul.f32 %v5236_v1, %v2195_v18  ;;  %v2229_v53 = vmul.f32 %v5236_v1, %v8399_v12  ;;  %v2138_v57 = vadd.f32 %v2074_v34, %v8400_v38  ;;  %v8402_v17 = vld [vmem:[#allocation56_spill] sm:$0xff] }
 0x234   : > { %8396 = vst [vmem:[#allocation60_spill] sm:$0xff] %v7103_v61  ;;  %v2230_v60 = vmul.f32 %v8401_v11, %v5236_v1  ;;  %v2231_v50 = vmul.f32 %v8402_v17, %v5236_v1  ;;  %v2232_v63 = vmul.f32 %v5236_v1, %v2199_v31  ;;  %v2233_v25 = vmul.f32 %v5236_v1, %v7098_v45  ;;  %v8403_v34 = vld [vmem:[#allocation8_spill] sm:$0xff] }
 0x235   : > { %8397 = vst [vmem:[#allocation73_spill] sm:$0xff] %v7105_v5  ;;  %v2234_v29 = vmul.f32 %v7103_v61, %v5236_v1  ;;  %v2235_v6 = vmul.f32 %v7105_v5, %v5236_v1  ;;  %v2256_v38 = vadd.f32 %v8403_v34, %v2127_v52  ;;  %v2257_v40 = vadd.f32 %v8404_v48, %v2128_v43 }
 0x236   : > { %v2258_v0 = vadd.f32 %v8406_v46, %v8405_v16  ;;  %v8181_v21 = vunpack.c.l.bf16 %v7112_v32  ;;  %v2259_v20 = vadd.f32 %v2227_v19, %v8407_v59  ;;  %v2260_v24 = vadd.f32 %v2228_v47, %v8408_v58  ;;  %v8409_v16 = vld [vmem:[#allocation38_spill] sm:$0xff] }
 0x237   : > { %v2261_v26 = vadd.f32 %v2229_v53, %v2132_v15  ;;  %v8185_v1 = vunpack.c.l.bf16 %v7122_v56  ;;  %v2262_v4 = vadd.f32 %v2230_v60, %v2133_v39  ;;  %v2263_v52 = vadd.f32 %v2231_v50, %v2134_v37 }
 0x238   : > { %v2264_v34 = vadd.f32 %v2232_v63, %v2135_v44  ;;  %v2299_v49 = vunpack.c.l.bf16 %v7131_v22  ;;  %v2335_v48 = vmul.f32 %v8398_v27, %v5239_v7  ;;  %v8410_v46 = vunpack.c.l.bf16 %v8409_v16 }
 0x239   : > { %v2337_v30 = vmul.f32 %v5239_v7, %v2195_v18  ;;  %v2338_v58 = vmul.f32 %v5239_v7, %v8399_v12  ;;  %v2339_v59 = vmul.f32 %v5239_v7, %v8181_v21  ;;  %v2340_v15 = vmul.f32 %v8401_v11, %v5239_v7 }
 0x23a   : > { %v2336_v43 = vmul.f32 %v5239_v7, %v8410_v46  ;;  %v2341_v39 = vmul.f32 %v8402_v17, %v5239_v7  ;;  %v8411_v37 = vunpack.c.l.bf16 %v7114_v51  ;;  %v2265_v19 = vadd.f32 %v2233_v25, %v2136_v14 }
 0x23b   : > { %v2343_v18 = vmul.f32 %v5239_v7, %v2199_v31  ;;  %v2344_v47 = vmul.f32 %v5239_v7, %v7098_v45  ;;  %v2345_v53 = vmul.f32 %v5239_v7, %v8185_v1  ;;  %v2266_v60 = vadd.f32 %v2234_v29, %v2137_v23 }
 0x23c   : > { %v2342_v44 = vmul.f32 %v5239_v7, %v8411_v37  ;;  %v2346_v50 = vmul.f32 %v7103_v61, %v5239_v7  ;;  %v2347_v63 = vmul.f32 %v7105_v5, %v5239_v7  ;;  %v2348_v14 = vmul.f32 %v5239_v7, %v2299_v49 }
 0x23d   : > { %v2453_v25 = vrot.slane %v2335_v48, 1  ;;  %v2455_v31 = vrot.slane %v2336_v43, 1  ;;  %v2457_v46 = vrot.slane %v2337_v30, 1  ;;  %v2458_v37 = vrot.slane %v2338_v58, 1  ;;  %v8414_v43 = vld [vmem:[#allocation16_spill] sm:$0xff]  ;;  %v8416_v58 = vld [vmem:[#allocation9_spill] sm:$0xff] }
 0x23e   : > { %v2460_v21 = vrot.slane %v2339_v59, 1  ;;  %v2462_v55 = vrot.slane %v2340_v15, 1  ;;  %v2463_v36 = vrot.slane %v2341_v39, 1  ;;  %v2465_v3 = vrot.slane %v2342_v44, 1  ;;  %v8418_v39 = vld [vmem:[#allocation25_spill] sm:$0xff] }
 0x23f   : > { %v2267_v1 = vadd.f32 %v2235_v6, %v2138_v57  ;;  %v2467_v23 = vrot.slane %v2343_v18, 1  ;;  %v2468_v29 = vrot.slane %v2344_v47, 1  ;;  %v2470_v11 = vrot.slane %v2345_v53, 1 }
 0x240   : > { %v8412_v61 = vrot.slane %v7018_v62, 1  ;;  %v8413_v41 = vrot.slane %v7003_v54, 1  ;;  %v2472_v35 = vrot.slane %v2346_v50, 1  ;;  %v2473_v7 = vrot.slane %v2347_v63, 1  ;;  %v8421_v62 = vld [vmem:[#allocation39_spill] sm:$0xff] }
 0x241   : > { %v2475_v48 = vrot.slane %v2348_v14, 1  ;;  %v8415_v30 = vrot.slane %v8414_v43, 1  ;;  %v8417_v59 = vrot.slane %v8416_v58, 1  ;;  %v8419_v57 = vrot.slane %v8418_v39, 1  ;;  %v2553_v63 = vld [vmem:[#allocation2 + $0x9c] sm:$0xe] }
 0x242   : > { %v2446_v10 = vsel %vm1720_vm10, %v8413_v41, %v8412_v61  ;;  %v8422_v18 = vrot.slane %v8421_v62, 1  ;;  %v2456_v41 = vsel %vm1720_vm10, %v2453_v25, %v2455_v31  ;;  %v2459_v61 = vsel %vm1720_vm10, %v2457_v46, %v2458_v37  ;;  %v2554_v14 = vld [vmem:[#allocation2 + $0xa8] sm:$0xe] }
 0x243   : > { %v2449_v15 = vsel %vm1720_vm10, %v8417_v59, %v8415_v30  ;;  %v8420_v6 = vmov %v8415_v30  ;;  %v2461_v47 = vsel %vm1720_vm10, %v2458_v37, %v2460_v21  ;;  %v2464_v53 = vsel %vm1720_vm10, %v2462_v55, %v2463_v36 }
 0x244   : > { %v2451_v44 = vsel %vm1720_vm10, %v8420_v6, %v8419_v57  ;;  %v2454_v54 = vsel %vm1720_vm10, %v8422_v18, %v2453_v25  ;;  %v2466_v50 = vsel %vm1720_vm10, %v2463_v36, %v2465_v3  ;;  %v2469_v43 = vsel %vm1720_vm10, %v2467_v23, %v2468_v29  ;;  %v2555_v25 = vld [vmem:[#allocation2 + $0xb4] sm:$0xe]  ;;  %v2556_v36 = vld [vmem:[#allocation2 + $0xc0] sm:$0xe] }
 0x245   : > { %v2471_v30 = vsel %vm1720_vm10, %v2468_v29, %v2470_v11  ;;  %v7199_v58 = vadd.f32 %v2446_v10, %v7027_v2  ;;  %v7201_v59 = vadd.f32 %v2449_v15, %v2256_v38  ;;  %v2474_v31 = vsel %vm1720_vm10, %v2472_v35, %v2473_v7 }
 0x246   : > { %v2476_v21 = vsel %vm1720_vm10, %v2473_v7, %v2475_v48  ;;  %v7205_v46 = vadd.f32 %v2451_v44, %v2257_v40  ;;  %v7207_v55 = vadd.f32 %v2454_v54, %v2258_v0  ;;  %v7209_v3 = vadd.f32 %v2456_v41, %v2259_v20  ;;  %v8429_v41 = vld [vmem:[#allocation26_spill] sm:$0xff] }
 0x247   : > { %v7211_v37 = vadd.f32 %v2459_v61, %v2260_v24  ;;  %v2569_v11 = vunpack.c.l.bf16 %v2553_v63  ;;  %v2570_v23 = vunpack.c.l.bf16 %v2554_v14  ;;  %v7213_v2 = vadd.f32 %v2461_v47, %v2261_v26  ;;  %v8423_v24 = vld [vmem:[#allocation30_spill] sm:$0xff] }
 0x248   : > { %v7215_v10 = vadd.f32 %v2464_v53, %v2262_v4  ;;  %v7217_v38 = vadd.f32 %v2466_v50, %v2263_v52  ;;  %v2571_v35 = vunpack.c.l.bf16 %v2555_v25  ;;  %v7219_v29 = vadd.f32 %v2469_v43, %v2264_v34 }
 0x249   : > { %v7221_v40 = vadd.f32 %v2471_v30, %v2265_v19  ;;  %v7223_v0 = vadd.f32 %v2474_v31, %v2266_v60  ;;  %v2572_v7 = vunpack.c.l.bf16 %v2556_v36  ;;  %v7225_v20 = vadd.f32 %v2476_v21, %v2267_v1 }
 0x24a   : > { %v8424_v48 = vunpack.c.l.bf16 %v8423_v24  ;;  %v2608_v26 = vmul.f32 %v8398_v27, %v5242_v8  ;;  %v8425_v4 = vunpack.c.l.bf16 %v8409_v16  ;;  %v2610_v34 = vmul.f32 %v5242_v8, %v2569_v11 }
 0x24b   : > { %v2611_v19 = vmul.f32 %v5242_v8, %v8399_v12  ;;  %v8426_v60 = vunpack.c.l.bf16 %v7112_v32  ;;  %v2613_v39 = vmul.f32 %v5242_v8, %v2570_v23  ;;  %v2614_v57 = vmul.f32 %v8402_v17, %v5242_v8 }
 0x24c   : > { %v2607_v15 = vmul.f32 %v5242_v8, %v8424_v48  ;;  %v2609_v52 = vmul.f32 %v5242_v8, %v8425_v4  ;;  %v8427_v6 = vunpack.c.l.bf16 %v7114_v51  ;;  %v2616_v44 = vmul.f32 %v5242_v8, %v2571_v35  ;;  %v8436_v48 = vld [vmem:[#allocation22_spill] sm:$0xff] }
 0x24d   : > { %v2612_v1 = vmul.f32 %v5242_v8, %v8426_v60  ;;  %v2617_v62 = vmul.f32 %v5242_v8, %v7098_v45  ;;  %v8428_v12 = vunpack.c.l.bf16 %v7122_v56  ;;  %v2619_v18 = vmul.f32 %v5242_v8, %v2572_v7 }
 0x24e   : > { %v2615_v16 = vmul.f32 %v5242_v8, %v8427_v6  ;;  %v2620_v54 = vmul.f32 %v7105_v5, %v5242_v8  ;;  %v2621_v51 = vmul.f32 %v5242_v8, %v2299_v49  ;;  %v2723_v61 = vrot.slane %v8429_v41, 2 }
 0x24f   : > { %v2618_v32 = vmul.f32 %v5242_v8, %v8428_v12  ;;  %v2725_v47 = vrot.slane %v2607_v15, 2  ;;  %v2726_v53 = vrot.slane %v2608_v26, 2  ;;  %v2728_v50 = vrot.slane %v2609_v52, 2 }
 0x250   : > { %v2730_v63 = vrot.slane %v2610_v34, 2  ;;  %v2731_v45 = vrot.slane %v2611_v19, 2  ;;  %v2733_v14 = vrot.slane %v2612_v1, 2  ;;  %v2735_v56 = vrot.slane %v2613_v39, 2 }
 0x251   : > { %v2736_v43 = vrot.slane %v2614_v57, 2  ;;  %v2738_v30 = vrot.slane %v2615_v16, 2  ;;  %v2740_v25 = vrot.slane %v2616_v44, 2  ;;  %v2741_v31 = vrot.slane %v2617_v62, 2  ;;  %v7290_v16 = vld [vmem:[#allocation2 + $0x9c] sm:$0xf] }
 0x252   : > { %v8430_v21 = vrot.slane %v6939_v28, 2  ;;  %v8431_v36 = vrot.slane %v6922_v33, 2  ;;  %v8432_v8 = vrot.slane %v7024_v13, 2  ;;  %v8433_v49 = vrot.slane %v6974_v9, 2  ;;  %v8438_v28 = vld [vmem:[#allocation10_spill] sm:$0xff]  ;;  %v8441_v62 = vld [vmem:[#allocation24_spill] sm:$0xff] }
 0x253   : > { %v8434_v23 = vrot.slane %v7030_v42, 2  ;;  %v2743_v24 = vrot.slane %v2618_v32, 2  ;;  %v8437_v15 = vrot.slane %v8436_v48, 2  ;;  %v8439_v26 = vrot.slane %v8438_v28, 2  ;;  %v8442_v32 = vld [vmem:[#allocation72_spill] sm:$0xff] }
 0x254   : > { %v2714_v22 = vsel %vm1994_vm11, %v8431_v36, %v8430_v21  ;;  %v2717_v11 = vsel %vm1994_vm11, %v8433_v49, %v8432_v8  ;;  %v8435_v35 = vmov %v8432_v8  ;;  %v2745_v4 = vrot.slane %v2619_v18, 2  ;;  %v8445_v21 = vld [vmem:[#allocation3_spill] sm:$0xff]  ;;  %v8447_v49 = vld [vmem:[#allocation49_spill] sm:$0xff] }
 0x255   : > { %v2719_v7 = vsel %vm1994_vm11, %v8435_v35, %v8434_v23  ;;  %v2722_v33 = vsel %vm1994_vm11, %v8439_v26, %v8437_v15  ;;  %v2746_v52 = vrot.slane %v2620_v54, 2  ;;  %v2748_v34 = vrot.slane %v2621_v51, 2  ;;  %v7296_v51 = vld [vmem:[#allocation2 + $0xb4] sm:$0xff]  }
 0x256   : > { %v8440_v9 = vmov %v8437_v15  ;;  %v2727_v42 = vsel %vm1994_vm11, %v2725_v47, %v2726_v53  ;;  %v2729_v13 = vsel %vm1994_vm11, %v2726_v53, %v2728_v50  ;;  %v2732_v60 = vsel %vm1994_vm11, %v2730_v63, %v2731_v45  ;;  %v7302_v50 = vld [vmem:[#allocation2 + $0xcc] sm:$0xff]  }
 0x257   : > { %v2724_v19 = vsel %vm1994_vm11, %v8440_v9, %v2723_v61  ;;  %v2734_v1 = vsel %vm1994_vm11, %v2731_v45, %v2733_v14  ;;  %v2737_v39 = vsel %vm1994_vm11, %v2735_v56, %v2736_v43  ;;  %v2739_v57 = vsel %vm1994_vm11, %v2736_v43, %v2738_v30 }
 0x258   : > { %v2742_v6 = vsel %vm1994_vm11, %v2740_v25, %v2741_v31  ;;  %v2744_v44 = vsel %vm1994_vm11, %v2741_v31, %v2743_v24  ;;  %v2799_v12 = vadd.f32 %v2714_v22, %v8441_v62  ;;  %v2800_v18 = vadd.f32 %v2717_v11, %v8442_v32  ;;  %v8444_v31 = vld [vmem:[#allocation17_spill] sm:$0xff]  ;;  %v8446_v22 = vld [vmem:[#allocation34_spill] sm:$0xff]  ;;  %v8449_v24 = vld [vmem:[#allocation60_spill] sm:$0xff] }
 0x259   : > { %v2801_v54 = vadd.f32 %v2719_v7, %v7199_v58  ;;  %v2747_v41 = vsel %vm1994_vm11, %v2745_v4, %v2746_v52  ;;  %v2749_v61 = vsel %vm1994_vm11, %v2746_v52, %v2748_v34  ;;  %v2802_v47 = vadd.f32 %v2722_v33, %v7201_v59  ;;  %v7339_v7 = vld [vmem:[#allocation2 + $0x98] sm:$0x1]  ;;  %v7348_v33 = vld [vmem:[#allocation2 + $0xa4] sm:$0x1]  ;;  %v8450_v4 = vld [vmem:[#allocation69_spill] sm:$0xff] }
 0x25a   : > { %v2803_v53 = vadd.f32 %v2724_v19, %v7205_v46  ;;  %v2804_v63 = vadd.f32 %v2727_v42, %v7207_v55  ;;  %v2805_v45 = vadd.f32 %v2729_v13, %v7209_v3  ;;  %v2806_v14 = vadd.f32 %v2732_v60, %v7211_v37  ;;  %v8451_v34 = vld [vmem:[#allocation11_spill] sm:$0xff]  ;;  %v7360_v13 = vld [vmem:[#allocation2 + $0xb0] sm:$0x1]  ;;  %v7379_v32 = vld [vmem:[#allocation2 + $0xd4] sm:$0x1] }
 0x25b   : > { %v2869_v58 = vunpack.c.l.bf16 %v7290_v16  ;;  %v2807_v56 = vadd.f32 %v2734_v1, %v7213_v2  ;;  %v2808_v43 = vadd.f32 %v2737_v39, %v7215_v10  ;;  %v2873_v30 = vunpack.c.l.bf16 %v7296_v51  ;;  %v7362_v60 = vld [vmem:[#allocation2 + $0xbc] sm:$0x1]  ;;  %8454 = vst [vmem:[#allocation56_spill] sm:$0xff] %v7379_v32 }
 0x25c   : > { %v7312_v59 = vunpack.c.h.bf16 %v7296_v51  ;;  %v2809_v46 = vadd.f32 %v2739_v57, %v7217_v38  ;;  %v2810_v25 = vadd.f32 %v2742_v6, %v7219_v29  ;;  %v2877_v55 = vunpack.c.l.bf16 %v7302_v50  ;;  %8452 = vst [vmem:[#allocation48_spill] sm:$0xff] %v7362_v60  ;;  %v7370_v6 = vld [vmem:[#allocation2 + $0xc8] sm:$0x1] }
 0x25d   : > { %v7318_v3 = vunpack.c.h.bf16 %v7302_v50  ;;  %v2811_v37 = vadd.f32 %v2744_v44, %v7221_v40  ;;  %v2812_v2 = vadd.f32 %v2747_v41, %v7223_v0  ;;  %v2813_v10 = vadd.f32 %v2749_v61, %v7225_v20  ;;  %v8448_v40 = vld [vmem:[#allocation37_spill] sm:$0xff]  ;;  %8453 = vst [vmem:[#allocation33_spill] sm:$0xff] %v7370_v6 }
 0x25e   : > { %v2899_v36 = vmul.f32 %v8445_v21, %v8444_v31  ;;  %v2900_v8 = vmul.f32 %v8446_v22, %v8445_v21  ;;  %v2901_v38 = vmul.f32 %v8398_v27, %v8445_v21  ;;  %v2902_v29 = vmul.f32 %v8445_v21, %v2869_v58 }
 0x25f   : > { %8443 = vst [vmem:[#allocation35_spill] sm:$0xff] %v7318_v3  ;;  %v2903_v11 = vmul.f32 %v8445_v21, %v8447_v49  ;;  %v2904_v23 = vmul.f32 %v8448_v40, %v8445_v21  ;;  %v2905_v0 = vmul.f32 %v8402_v17, %v8445_v21  ;;  %v2906_v20 = vmul.f32 %v8445_v21, %v2873_v30 }
 0x260   : > { %v2907_v35 = vmul.f32 %v8445_v21, %v7312_v59  ;;  %v2908_v48 = vmul.f32 %v8449_v24, %v8445_v21  ;;  %v2909_v15 = vmul.f32 %v7105_v5, %v8445_v21  ;;  %v2910_v28 = vmul.f32 %v8445_v21, %v2877_v55 }
 0x261   : > { %v2911_v26 = vmul.f32 %v8445_v21, %v7318_v3  ;;  %v7351_v52 = vadd.f32 %v8450_v4, %v2799_v12  ;;  %v7354_v9 = vadd.f32 %v8451_v34, %v2800_v18  ;;  %v7356_v19 = vadd.f32 %v2899_v36, %v2801_v54 }
 0x262   : > { %v7358_v42 = vadd.f32 %v2900_v8, %v2802_v47  ;;  %v7364_v1 = vadd.f32 %v2901_v38, %v2803_v53  ;;  %v7366_v39 = vadd.f32 %v2902_v29, %v2804_v63  ;;  %v7368_v57 = vadd.f32 %v2903_v11, %v2805_v45 }
 0x263   : > { %v8195_v16 = vunpack.c.l.bf16 %v7339_v7  ;;  %v7373_v44 = vadd.f32 %v2904_v23, %v2806_v14  ;;  %v7375_v62 = vadd.f32 %v2905_v0, %v2807_v56  ;;  %v7377_v12 = vadd.f32 %v2906_v20, %v2808_v43  ;;  %v8455_v14 = vld [vmem:[#allocation4_spill] sm:$0xff]  ;;  %v8458_v20 = vld [vmem:[#allocation59_spill] sm:$0xff] }
 0x264   : > { %v8194_v18 = vunpack.c.l.bf16 %v7348_v33  ;;  %v7382_v54 = vadd.f32 %v2907_v35, %v2809_v46  ;;  %v7384_v51 = vadd.f32 %v2908_v48, %v2810_v25  ;;  %v8192_v41 = vunpack.c.l.bf16 %v7360_v13  ;;  %v8456_v23 = vld [vmem:[#allocation32_spill] sm:$0xff]  ;;  %v8460_v48 = vld [vmem:[#allocation66_spill] sm:$0xff] }
 0x265   : > { %v8191_v61 = vunpack.c.l.bf16 %v7362_v60  ;;  %v7388_v47 = vadd.f32 %v2909_v15, %v2811_v37  ;;  %v7390_v53 = vadd.f32 %v2910_v28, %v2812_v2  ;;  %v7392_v50 = vadd.f32 %v2911_v26, %v2813_v10  ;;  %v8462_v28 = vld [vmem:[#allocation65_spill] sm:$0xff]  ;;  %v8470_v60 = vld [vmem:[#allocation12_spill] sm:$0xff] }
 0x266   : > { %v8190_v63 = vunpack.c.l.bf16 %v7370_v6  ;;  %v8193_v45 = vunpack.c.l.bf16 %v7379_v32  ;;  %v3008_v56 = vmul.f32 %v8398_v27, %v8455_v14  ;;  %v3009_v43 = vmul.f32 %v8455_v14, %v8195_v16 }
 0x267   : > { %v3010_v46 = vmul.f32 %v8455_v14, %v2869_v58  ;;  %v3011_v25 = vmul.f32 %v8455_v14, %v8447_v49  ;;  %v3012_v37 = vmul.f32 %v8455_v14, %v8194_v18  ;;  %v3013_v2 = vmul.f32 %v8448_v40, %v8455_v14 }
 0x268   : > { %v3014_v10 = vmul.f32 %v8402_v17, %v8455_v14  ;;  %v3015_v21 = vmul.f32 %v8455_v14, %v8192_v41  ;;  %v3016_v36 = vmul.f32 %v8455_v14, %v2873_v30  ;;  %v3017_v58 = vmul.f32 %v8455_v14, %v7312_v59  ;;  %v8467_v41 = vld [vmem:[#allocation27_spill] sm:$0xff] }
 0x269   : > { %v3018_v22 = vmul.f32 %v8455_v14, %v8191_v61  ;;  %v3019_v8 = vmul.f32 %v8449_v24, %v8455_v14  ;;  %v3020_v38 = vmul.f32 %v7105_v5, %v8455_v14  ;;  %v3021_v29 = vmul.f32 %v8455_v14, %v8190_v63  ;;  %v8468_v5 = vld [vmem:[#allocation23_spill] sm:$0xff] }
 0x26a   : > { %v3022_v11 = vmul.f32 %v8455_v14, %v2877_v55  ;;  %v3023_v30 = vmul.f32 %v8455_v14, %v7318_v3  ;;  %v3024_v40 = vmul.f32 %v8455_v14, %v8193_v45  ;;  %v8457_v0 = vrot.slane %v8456_v23, 1  ;;  %v8464_v55 = vld [vmem:[#allocation67_spill] sm:$0xff] }
 0x26b   : > { %v8459_v35 = vrot.slane %v8458_v20, 1  ;;  %v8461_v15 = vrot.slane %v8460_v48, 1  ;;  %v8463_v26 = vrot.slane %v8462_v28, 1  ;;  %v8465_v34 = vrot.slane %v8464_v55, 1 }
 0x26c   : > { %v3121_v14 = vrot.slane %v8467_v41, 1  ;;  %v3124_v45 = vrot.slane %v3008_v56, 1  ;;  %v3126_v23 = vrot.slane %v3009_v43, 1  ;;  %v3128_v18 = vrot.slane %v3010_v46, 1 }
 0x26d   : > { %v3112_v24 = vsel %vm1720_vm10, %v8459_v35, %v8457_v0  ;;  %v3115_v4 = vsel %vm1720_vm10, %v8463_v26, %v8461_v15  ;;  %v8466_v63 = vmov %v8461_v15  ;;  %v3129_v20 = vrot.slane %v3011_v25, 1 }
 0x26e   : > { %v3117_v61 = vsel %vm1720_vm10, %v8466_v63, %v8465_v34  ;;  %v3131_v16 = vrot.slane %v3012_v37, 1  ;;  %v3133_v0 = vrot.slane %v3013_v2, 1  ;;  %v3134_v35 = vrot.slane %v3014_v10, 1  ;;  %v8473_v2 = vld [vmem:[#allocation43_spill] sm:$0xff] }
 0x26f   : > { %v3136_v32 = vrot.slane %v3015_v21, 1  ;;  %v3138_v3 = vrot.slane %v3016_v36, 1  ;;  %v3139_v28 = vrot.slane %v3017_v58, 1  ;;  %v3141_v6 = vrot.slane %v3018_v22, 1 }
 0x270   : > { %v3143_v15 = vrot.slane %v3019_v8, 1  ;;  %v3144_v26 = vrot.slane %v3020_v38, 1  ;;  %v3146_v55 = vrot.slane %v3021_v29, 1  ;;  %v8469_v48 = vrot.slane %v8468_v5, 1 }
 0x271   : > { %v8471_v63 = vrot.slane %v8470_v60, 1  ;;  %v3148_v56 = vrot.slane %v3022_v11, 1  ;;  %v3149_v43 = vrot.slane %v3023_v30, 1  ;;  %v3151_v46 = vrot.slane %v3024_v40, 1  ;;  %v8475_v30 = vld [vmem:[#allocation21_spill] sm:$0xff]  ;;  %v8476_v40 = vld [vmem:[#allocation40_spill] sm:$0xff] }
 0x272   : > { %v8472_v25 = vmov %v8469_v48  ;;  %v8474_v10 = vrot.slane %v8473_v2, 1  ;;  %v3127_v36 = vsel %vm1720_vm10, %v3124_v45, %v3126_v23  ;;  %v3130_v58 = vsel %vm1720_vm10, %v3128_v18, %v3129_v20  ;;  %v8478_v23 = vld [vmem:[#allocation70_spill] sm:$0xff] }
 0x273   : > { %v3120_v41 = vsel %vm1720_vm10, %v8471_v63, %v8469_v48  ;;  %v3122_v37 = vsel %vm1720_vm10, %v8472_v25, %v3121_v14  ;;  %v3132_v22 = vsel %vm1720_vm10, %v3129_v20, %v3131_v16  ;;  %v3135_v60 = vsel %vm1720_vm10, %v3133_v0, %v3134_v35  ;;  %v8477_v16 = vld [vmem:[#allocation5_spill] sm:$0xff] }
 0x274   : > { %v3125_v21 = vsel %vm1720_vm10, %v8474_v10, %v3124_v45  ;;  %v3137_v8 = vsel %vm1720_vm10, %v3134_v35, %v3136_v32  ;;  %v3140_v38 = vsel %vm1720_vm10, %v3138_v3, %v3139_v28  ;;  %v3142_v5 = vsel %vm1720_vm10, %v3139_v28, %v3141_v6  ;;  %v3228_v3 = vld [vmem:[#allocation2 + $0x9c] sm:$0xe]  ;;  %v3229_v28 = vld [vmem:[#allocation2 + $0xa8] sm:$0xe] }
 0x275   : > { %v3145_v29 = vsel %vm1720_vm10, %v3143_v15, %v3144_v26  ;;  %v3147_v11 = vsel %vm1720_vm10, %v3144_v26, %v3146_v55  ;;  %v3199_v34 = vadd.f32 %v8476_v40, %v8475_v30  ;;  %v3150_v45 = vsel %vm1720_vm10, %v3148_v56, %v3149_v43  ;;  %v3230_v15 = vld [vmem:[#allocation2 + $0xb4] sm:$0xe]  ;;  %v8479_v56 = vld [vmem:[#allocation19_spill] sm:$0xff] }
 0x276   : > { %v3152_v18 = vsel %vm1720_vm10, %v3149_v43, %v3151_v46  ;;  %v7474_v14 = vadd.f32 %v3112_v24, %v8477_v16  ;;  %v7477_v32 = vadd.f32 %v3115_v4, %v8478_v23  ;;  %v7480_v6 = vadd.f32 %v3117_v61, %v7351_v52  ;;  %v3231_v61 = vld [vmem:[#allocation2 + $0xc0] sm:$0xe]  ;;  %v8481_v46 = vld [vmem:[#allocation31_spill] sm:$0xff]  ;;  %v8494_v23 = vld [vmem:[#allocation14_spill] sm:$0xff] }
 0x277   : > { %v7483_v20 = vadd.f32 %v3120_v41, %v7354_v9  ;;  %v7486_v0 = vadd.f32 %v3122_v37, %v7356_v19  ;;  %v7489_v35 = vadd.f32 %v3125_v21, %v7358_v42  ;;  %v7492_v24 = vadd.f32 %v3127_v36, %v7364_v1  ;;  %v3232_v19 = vld [vmem:[#allocation2 + $0xcc] sm:$0xe] }
 0x278   : > { %v7495_v4 = vadd.f32 %v3130_v58, %v7366_v39  ;;  %v7498_v52 = vadd.f32 %v3132_v22, %v7368_v57  ;;  %v7501_v9 = vadd.f32 %v3135_v60, %v7373_v44  ;;  %v7504_v26 = vadd.f32 %v3137_v8, %v7375_v62 }
 0x279   : > { %v7507_v42 = vadd.f32 %v3140_v38, %v7377_v12  ;;  %v7510_v1 = vadd.f32 %v3142_v5, %v7382_v54  ;;  %v3244_v55 = vunpack.c.l.bf16 %v3228_v3  ;;  %v7513_v39 = vadd.f32 %v3145_v29, %v7384_v51  ;;  %v4962_v54 = vld [vmem:[%s8091_s3 + $0x8] ss:$0 sm:$0xff] }
 0x27a   : > { %v7516_v57 = vadd.f32 %v3147_v11, %v7388_v47  ;;  %v3245_v44 = vunpack.c.l.bf16 %v3229_v28  ;;  %v3246_v48 = vunpack.c.l.bf16 %v3230_v15  ;;  %v7519_v63 = vadd.f32 %v3150_v45, %v7390_v53  ;;  %v8491_v45 = vld [vmem:[#allocation35_spill] sm:$0xff]  ;;  %v8496_v15 = vld [vmem:[#allocation6_spill] sm:$0xff] }
 0x27b   : > { %v7522_v62 = vadd.f32 %v3152_v18, %v7392_v50  ;;  %v3247_v12 = vunpack.c.l.bf16 %v3231_v61  ;;  %v3248_v41 = vunpack.c.l.bf16 %v3232_v19  ;;  %v3278_v51 = vmul.f32 %v4962_v54, %v8444_v31 }
 0x27c   : > { %v8480_v43 = vunpack.c.l.bf16 %v8479_v56  ;;  %v8482_v25 = vunpack.c.l.bf16 %v8481_v46  ;;  %v3281_v53 = vmul.f32 %v4962_v54, %v8398_v27  ;;  %v8483_v2 = vunpack.c.l.bf16 %v7339_v7  ;;  %v8486_v7 = vld [vmem:[#allocation48_spill] sm:$0xff]  ;;  %v8501_v56 = vld [vmem:[#allocation63_spill] sm:$0xff] }
 0x27d   : > { %v3283_v10 = vmul.f32 %v4962_v54, %v3244_v55  ;;  %v3284_v21 = vmul.f32 %v4962_v54, %v8447_v49  ;;  %v8484_v36 = vunpack.c.l.bf16 %v7348_v33  ;;  %v3286_v22 = vmul.f32 %v4962_v54, %v3245_v44  ;;  %v8488_v33 = vld [vmem:[#allocation73_spill] sm:$0xff] }
 0x27e   : > { %v3279_v47 = vmul.f32 %v4962_v54, %v8480_v43  ;;  %v3280_v37 = vmul.f32 %v4962_v54, %v8482_v25  ;;  %v3282_v50 = vmul.f32 %v4962_v54, %v8483_v2  ;;  %v7539_v31 = vmul.f32 %v4962_v54, %v8402_v17  ;;  %v8489_v17 = vld [vmem:[#allocation33_spill] sm:$0xff] }
 0x27f   : > { %v3285_v58 = vmul.f32 %v4962_v54, %v8484_v36  ;;  %v8485_v60 = vunpack.c.l.bf16 %v7360_v13  ;;  %v7545_v38 = vmul.f32 %v4962_v54, %v3246_v48  ;;  %v7548_v27 = vmul.f32 %v4962_v54, %v7312_v59  ;;  %v8492_v59 = vld [vmem:[#allocation15_spill] sm:$0xff]  ;;  %v8499_v44 = vld [vmem:[#allocation13_spill] sm:$0xff] }
 0x280   : > { %v8487_v5 = vunpack.c.l.bf16 %v8486_v7  ;;  %v7554_v49 = vmul.f32 %v4962_v54, %v3247_v12  ;;  %v7557_v11 = vmul.f32 %v4962_v54, %v8488_v33  ;;  %v8490_v30 = vunpack.c.l.bf16 %v8489_v17  ;;  %v7584_v33 = vld [vmem:[%s8092_s4] ss:$0 sm:$0xff]  ;;  %v8502_v17 = vld [vmem:[#allocation57_spill] sm:$0xff] }
 0x281   : > { %v7543_v8 = vmul.f32 %v4962_v54, %v8485_v60  ;;  %v7563_v13 = vmul.f32 %v4962_v54, %v3248_v41  ;;  %v7566_v18 = vmul.f32 %v4962_v54, %v8491_v45  ;;  %v8493_v16 = vrot.slane %v8492_v59, 2  ;;  %v8500_v41 = vld [vmem:[#allocation62_spill] sm:$0xff] }
 0x282   : > { %v7552_v29 = vmul.f32 %v4962_v54, %v8487_v5  ;;  %v7561_v40 = vmul.f32 %v4962_v54, %v8490_v30  ;;  %v8495_v3 = vrot.slane %v8494_v23, 2  ;;  %v8497_v61 = vrot.slane %v8496_v15, 2  ;;  %v8510_v23 = vld [vmem:[#allocation71_spill] sm:$0xff] }
 0x283   : > { %v8498_v19 = vmov %v8493_v16  ;;  %v3391_v48 = vrot.slane %v8499_v44, 2  ;;  %v3392_v12 = vrot.slane %v3278_v51, 2  ;;  %v3471_v43 = vadd.f32 %v8501_v56, %v8500_v41  ;;  %v8503_v51 = vld [vmem:[#allocation56_spill] sm:$0xff] }
 0x284   : > { %v3383_v28 = vsel %vm1994_vm11, %v8495_v3, %v8493_v16  ;;  %v3385_v55 = vsel %vm1994_vm11, %v8498_v19, %v8497_v61  ;;  %v3394_v46 = vrot.slane %v3279_v47, 2  ;;  %v3396_v25 = vrot.slane %v3280_v37, 2  ;;  %v8505_v47 = vld [vmem:[#allocation68_spill] sm:$0xff] }
 0x285   : > { %v3397_v2 = vrot.slane %v3281_v53, 2  ;;  %v3472_v36 = vadd.f32 %v3383_v28, %v3199_v34  ;;  %v3399_v60 = vrot.slane %v3282_v50, 2  ;;  %v3401_v7 = vrot.slane %v3283_v10, 2  ;;  %v8507_v53 = vld [vmem:[#allocation41_spill] sm:$0xff] }
 0x286   : > { %v3402_v5 = vrot.slane %v3284_v21, 2  ;;  %v7588_v30 = vadd.f32 %v7584_v33, %v8502_v17  ;;  %v8504_v45 = vunpack.c.l.bf16 %v8503_v51  ;;  %v8506_v37 = vrot.slane %v8505_v47, 2  ;;  %v8509_v21 = vld [vmem:[#allocation64_spill] sm:$0xff] }
 0x287   : > { %v8508_v34 = vrot.slane %v8507_v53, 2  ;;  %v3473_v10 = vadd.f32 %v3385_v55, %v7474_v14  ;;  %v7602_v16 = vadd.f32 %v7584_v33, %v8509_v21  ;;  %v8511_v3 = vrot.slane %v8510_v23, 2 }
 0x288   : > { %v7592_v59 = vmul.f32 %v4962_v54, %v8504_v45  ;;  %v8512_v28 = vmov %v8506_v37  ;;  %v3404_v54 = vrot.slane %v3285_v58, 2  ;;  %v7611_v19 = vadd.f32 %v7584_v33, %v3471_v43 }
 0x289   : > { %v3388_v50 = vsel %vm1994_vm11, %v8508_v34, %v8506_v37  ;;  %v3390_v15 = vsel %vm1994_vm11, %v8512_v28, %v8511_v3  ;;  %v3393_v44 = vsel %vm1994_vm11, %v3391_v48, %v3392_v12  ;;  %v3395_v14 = vsel %vm1994_vm11, %v3392_v12, %v3394_v46 }
 0x28a   : > { %v3474_v61 = vadd.f32 %v3388_v50, %v7477_v32  ;;  %v3398_v55 = vsel %vm1994_vm11, %v3396_v25, %v3397_v2  ;;  %v7617_v41 = vadd.f32 %v7584_v33, %v3472_v36  ;;  %v3400_v56 = vsel %vm1994_vm11, %v3397_v2, %v3399_v60 }
 0x28b   : > { %v3403_v17 = vsel %vm1994_vm11, %v3401_v7, %v3402_v5  ;;  %v3406_v51 = vrot.slane %v3286_v22, 2  ;;  %v3537_v58 = vsub.f32 0.0, %v7588_v30  ;;  %v3407_v32 = vrot.slane %v7539_v31, 2 }
 0x28c   : > { %v3475_v43 = vadd.f32 %v3390_v15, %v7480_v6  ;;  %v7625_v48 = vadd.f32 %v7584_v33, %v3473_v10  ;;  %v3538_v12 = vsub.f32 0.0, %v7602_v16  ;;  %v3405_v46 = vsel %vm1994_vm11, %v3402_v5, %v3404_v54 }
 0x28d   : > { %v3476_v25 = vadd.f32 %v3393_v44, %v7483_v20  ;;  %v7631_v2 = vadd.f32 %v7584_v33, %v3474_v61  ;;  %v3539_v22 = vsub.f32 0.0, %v7611_v19  ;;  %v3409_v36 = vrot.slane %v7543_v8, 2 }
 0x28e   : > { %v3411_v31 = vrot.slane %v7545_v38, 2  ;;  %v3477_v6 = vadd.f32 %v3395_v14, %v7486_v0  ;;  %v3540_v60 = vsub.f32 0.0, %v7617_v41  ;;  %v3412_v7 = vrot.slane %v7548_v27, 2 }
 0x28f   : > { %v3414_v45 = vrot.slane %v7552_v29, 2  ;;  %v3478_v5 = vadd.f32 %v3398_v55, %v7489_v35  ;;  %v3580_v20 = vmul.f32 1.442695, %v3537_v58  ;;  %v3408_v47 = vsel %vm1994_vm11, %v3406_v51, %v3407_v32 }
 0x290   : > { %v7643_v37 = vadd.f32 %v7584_v33, %v3475_v43  ;;  %v3541_v8 = vsub.f32 0.0, %v7625_v48  ;;  %v3582_v53 = vmul.f32 1.442695, %v3538_v12  ;;  %v3416_v38 = vrot.slane %v7554_v49, 2 }
 0x291   : > { %v7648_v0 = vadd.f32 %v7584_v33, %v3476_v25  ;;  %v3542_v27 = vsub.f32 0.0, %v7631_v2  ;;  %v3584_v34 = vmul.f32 1.442695, %v3539_v22  ;;  %v3417_v29 = vrot.slane %v7557_v11, 2 }
 0x292   : > { %v3419_v35 = vrot.slane %v7561_v40, 2  ;;  %v7654_v50 = vadd.f32 %v7584_v33, %v3477_v6  ;;  %v3586_v10 = vmul.f32 1.442695, %v3540_v60  ;;  %v3410_v21 = vsel %vm1994_vm11, %v3407_v32, %v3409_v36 }
 0x293   : > { %v3421_v23 = vrot.slane %v7563_v13, 2  ;;  %v7659_v49 = vadd.f32 %v7584_v33, %v3478_v5  ;;  %4863 = vpow2.f32 %v3580_v20  ;;  %v3479_v3 = vadd.f32 %v3400_v56, %v7492_v24 }
 0x294   : > { %v3543_v28 = vsub.f32 0.0, %v7643_v37  ;;  %4865 = vpow2.f32 %v3582_v53  ;;  %v3588_v11 = vmul.f32 1.442695, %v3541_v8  ;;  %v3422_v40 = vrot.slane %v7566_v18, 2 }
 0x295   : > { %v3544_v15 = vsub.f32 0.0, %v7648_v0  ;;  %4867 = vpow2.f32 %v3584_v34  ;;  %v3590_v54 = vmul.f32 1.442695, %v3542_v27  ;;  %v3413_v61 = vsel %vm1994_vm11, %v3411_v31, %v3412_v7 }
 0x296   : > { %v3424_v13 = vrot.slane %v7592_v59, 2  ;;  %v3545_v44 = vsub.f32 0.0, %v7654_v50  ;;  %4869 = vpow2.f32 %v3586_v10  ;;  %v3415_v14 = vsel %vm1994_vm11, %v3412_v7, %v3414_v45  ;;  %v8515_v10 = vld [vmem:[#allocation7_spill] sm:$0xff] }
 0x297   : > { %v3418_v24 = vsel %vm1994_vm11, %v3416_v38, %v3417_v29  ;;  %v3480_v55 = vadd.f32 %v3403_v17, %v7495_v4  ;;  %v3546_v56 = vsub.f32 0.0, %v7659_v49  ;;  %v3481_v18 = vadd.f32 %v3405_v46, %v7498_v52 }
 0x298   : > { %v7674_v51 = vadd.f32 %v7584_v33, %v3479_v3  ;;  %4871 = vpow2.f32 %v3588_v11  ;;  %v3592_v58 = vmul.f32 1.442695, %v3543_v28  ;;  %v3420_v59 = vsel %vm1994_vm11, %v3417_v29, %v3419_v35  ;;  %v8516_v28 = vld [vmem:[#allocation52_spill] sm:$0xff] }
 0x299   : > { %v4864_v32 = vpop.eup %4863  ;;  %v3423_v43 = vsel %vm1994_vm11, %v3421_v23, %v3422_v40  ;;  %4873 = vpow2.f32 %v3590_v54  ;;  %v3594_v12 = vmul.f32 1.442695, %v3544_v15  ;;  %v3425_v22 = vsel %vm1994_vm11, %v3422_v40, %v3424_v13  ;;  %v8517_v11 = vld [vmem:[#allocation36_spill] sm:$0xff]  ;;  %v8518_v15 = vld [vmem:[#allocation18_spill] sm:$0xff]  ;;  %v8519_v54 = vld [vmem:[#allocation61_spill] sm:$0xff] }
 0x29a   : > { %v4866_v25 = vpop.eup %4865  ;;  %v3482_v4 = vadd.f32 %v3408_v47, %v7501_v9  ;;  %v3483_v17 = vadd.f32 %v3410_v21, %v7504_v26  ;;  %v3596_v52 = vmul.f32 1.442695, %v3545_v44  ;;  %v3484_v36 = vadd.f32 %v3413_v61, %v7507_v42  ;;  %v8513_v47 = vld [vmem:[#allocation54_spill] sm:$0xff]  ;;  %v8514_v42 = vld [vmem:[#allocation55_spill] sm:$0xff] }
 0x29b   : > { %v4868_v46 = vpop.eup %4867  ;;  %v3485_v31 = vadd.f32 %v3415_v14, %v7510_v1  ;;  %v7684_v6 = vadd.f32 %v7584_v33, %v3480_v55  ;;  %v3598_v60 = vmul.f32 1.442695, %v3546_v56  ;;  %v7687_v45 = vadd.f32 %v7584_v33, %v3481_v18 }
 0x29c   : > { %v4870_v7 = vpop.eup %4869  ;;  %v3547_v5 = vsub.f32 0.0, %v7674_v51  ;;  %4875 = vpow2.f32 %v3592_v58  ;;  %v3633_v9 = vadd.f32 1.0, %v4864_v32  ;;  %v3486_v26 = vadd.f32 %v3418_v24, %v7513_v39 }
 0x29d   : > { %4877 = vpow2.f32 %v3594_v12  ;;  %v3634_v20 = vadd.f32 1.0, %v4866_v25  ;;  %v3724_v8 = vadd.f32 %v8514_v42, %v8513_v47  ;;  %v3487_v53 = vadd.f32 %v3420_v59, %v7516_v57 }
 0x29e   : > { %v4872_v1 = vpop.eup %4871  ;;  %v7695_v38 = vadd.f32 %v7584_v33, %v3482_v4  ;;  %4879 = vpow2.f32 %v3596_v52  ;;  %v3635_v27 = vadd.f32 1.0, %v4868_v46  ;;  %v3548_v29 = vsub.f32 0.0, %v7684_v6 }
 0x29f   : > { %v4874_v34 = vpop.eup %4873  ;;  %4881 = vpow2.f32 %v3598_v60  ;;  %v3636_v35 = vadd.f32 1.0, %v4870_v7  ;;  %v3725_v39 = vadd.f32 %v3724_v8, %v8515_v10  ;;  %v7700_v21 = vadd.f32 %v7584_v33, %v3483_v17 }
 0x2a0   : > { %v3549_v23 = vsub.f32 0.0, %v7687_v45  ;;  %v3600_v3 = vmul.f32 1.442695, %v3547_v5  ;;  %4883 = vrcp.f32 %v3633_v9  ;;  %v3637_v57 = vadd.f32 1.0, %v4872_v1 }
 0x2a1   : > { %4885 = vrcp.f32 %v3634_v20  ;;  %v7705_v40 = vmul.f32 %v8517_v11, %v8516_v28  ;;  %v7709_v61 = vmul.f32 %v8519_v54, %v8518_v15  ;;  %v3488_v44 = vadd.f32 %v3423_v43, %v7519_v63 }
 0x2a2   : > { %v4876_v13 = vpop.eup %4875  ;;  %v7713_v14 = vadd.f32 %v7584_v33, %v3484_v36  ;;  %v3638_v24 = vadd.f32 1.0, %v4874_v34  ;;  %4887 = vrcp.f32 %v3635_v27  ;;  %v3550_v56 = vsub.f32 0.0, %v7695_v38 }
 0x2a3   : > { %v4878_v55 = vpop.eup %4877  ;;  %v3602_v18 = vmul.f32 1.442695, %v3548_v29  ;;  %4889 = vrcp.f32 %v3636_v35  ;;  %v3726_v58 = vadd.f32 %v3725_v39, %v7705_v40  ;;  %v3489_v59 = vadd.f32 %v3425_v22, %v7522_v62 }
 0x2a4   : > { %v4880_v32 = vpop.eup %4879  ;;  %v3551_v12 = vsub.f32 0.0, %v7700_v21  ;;  %4891 = vpow2.f32 %v3600_v3  ;;  %v3604_v25 = vmul.f32 1.442695, %v3549_v23  ;;  %v7720_v43 = vadd.f32 %v7584_v33, %v3485_v31 }
 0x2a5   : > { %v4882_v63 = vpop.eup %4881  ;;  %v3639_v4 = vadd.f32 1.0, %v4876_v13  ;;  %4893 = vrcp.f32 %v3637_v57  ;;  %v3727_v17 = vadd.f32 %v3726_v58, %v7709_v61  ;;  %v7724_v46 = vadd.f32 %v7584_v33, %v3486_v26 }
 0x2a6   : > { %v4884_v52 = vpop.eup %4883  ;;  %v3552_v36 = vsub.f32 0.0, %v7713_v14  ;;  %v3640_v60 = vadd.f32 1.0, %v4878_v55  ;;  %4895 = vrcp.f32 %v3638_v24  ;;  %v7728_v22 = vadd.f32 %v7584_v33, %v3487_v53 }
 0x2a7   : > { %v4886_v62 = vpop.eup %4885  ;;  %4897 = vpow2.f32 %v3602_v18  ;;  %v3606_v7 = vmul.f32 1.442695, %v3550_v56  ;;  %v7731_v31 = vmul.f32 %v4884_v52, %v7588_v30  ;;  %v7734_v9 = vadd.f32 %v7584_v33, %v3488_v44 }
 0x2a8   : > { %v4888_v5 = vpop.eup %4887  ;;  %4899 = vpow2.f32 %v3604_v25  ;;  %v3608_v26 = vmul.f32 1.442695, %v3551_v12  ;;  %v7737_v20 = vmul.f32 %v4886_v62, %v7602_v16  ;;  %v3553_v8 = vsub.f32 0.0, %v7720_v43 }
 0x2a9   : > { %v4890_v42 = vpop.eup %4889  ;;  %v3641_v1 = vadd.f32 1.0, %v4880_v32  ;;  %4901 = vrcp.f32 %v3639_v4  ;;  %v3728_v53 = vadd.f32 %v3727_v17, %v7731_v31  ;;  %v3554_v30 = vsub.f32 0.0, %v7724_v46 }
 0x2aa   : > { %v4892_v27 = vpop.eup %4891  ;;  %v3610_v34 = vmul.f32 1.442695, %v3552_v36  ;;  %v3642_v29 = vadd.f32 1.0, %v4882_v63  ;;  %4903 = vrcp.f32 %v3640_v60  ;;  %v7743_v39 = vmul.f32 %v4888_v5, %v7611_v19 }
 0x2ab   : > { %v4894_v35 = vpop.eup %4893  ;;  %4905 = vpow2.f32 %v3606_v7  ;;  %v7746_v16 = vmul.f32 %v4890_v42, %v7617_v41  ;;  %v3729_v23 = vadd.f32 %v3728_v53, %v7737_v20  ;;  %v7750_v57 = vadd.f32 %v7584_v33, %v3489_v59 }
 0x2ac   : > { %v4896_v3 = vpop.eup %4895  ;;  %4907 = vpow2.f32 %v3608_v26  ;;  %v3555_v11 = vsub.f32 0.0, %v7728_v22  ;;  %v3612_v15 = vmul.f32 1.442695, %v3553_v8  ;;  %v3556_v19 = vsub.f32 0.0, %v7734_v9 }
 0x2ad   : > { %v4898_v28 = vpop.eup %4897  ;;  %4909 = vrcp.f32 %v3641_v1  ;;  %v3730_v54 = vadd.f32 %v3729_v23, %v7743_v39  ;;  %v3614_v44 = vmul.f32 1.442695, %v3554_v30  ;;  %v3643_v41 = vadd.f32 1.0, %v4892_v27 }
 0x2ae   : > { %v4900_v13 = vpop.eup %4899  ;;  %4911 = vrcp.f32 %v3642_v29  ;;  %v7756_v55 = vmul.f32 %v4894_v35, %v7625_v48  ;;  %v7759_v33 = vmul.f32 %v4896_v3, %v7631_v2  ;;  %v3644_v58 = vadd.f32 1.0, %v4898_v28 }
 0x2af   : > { %v4902_v24 = vpop.eup %4901  ;;  %4913 = vpow2.f32 %v3610_v34  ;;  %v3731_v56 = vadd.f32 %v3730_v54, %v7746_v16  ;;  %v3557_v59 = vsub.f32 0.0, %v7750_v57  ;;  %v3616_v12 = vmul.f32 1.442695, %v3555_v11 }
 0x2b0   : > { %v4904_v18 = vpop.eup %4903  ;;  %4915 = vpow2.f32 %v3612_v15  ;;  %v3618_v4 = vmul.f32 1.442695, %v3556_v19  ;;  %v3645_v17 = vadd.f32 1.0, %v4900_v13  ;;  %v7765_v2 = vmul.f32 %v4902_v24, %v7643_v37 }
 0x2b1   : > { %v4906_v32 = vpop.eup %4905  ;;  %v3732_v25 = vadd.f32 %v3731_v56, %v7756_v55  ;;  %4917 = vrcp.f32 %v3643_v41  ;;  %v7768_v52 = vmul.f32 %v4904_v18, %v7648_v0  ;;  %v3620_v5 = vmul.f32 1.442695, %v3557_v59 }
 0x2b2   : > { %v4908_v63 = vpop.eup %4907  ;;  %4919 = vpow2.f32 %v3614_v44  ;;  %v3646_v62 = vadd.f32 1.0, %v4906_v32 }
 0x2b3   : > { %v4910_v48 = vpop.eup %4909  ;;  %v3733_v36 = vadd.f32 %v3732_v25, %v7759_v33  ;;  %4921 = vrcp.f32 %v3644_v58  ;;  %v3647_v42 = vadd.f32 1.0, %v4908_v63  ;;  %v4541_v25 = vld [vmem:[%s8095_s7 + $0x38] sm:$0xff] }
 0x2b4   : > { %v4912_v60 = vpop.eup %4911  ;;  %4923 = vpow2.f32 %v3616_v12  ;;  %v7773_v37 = vmul.f32 %v4910_v48, %v7654_v50  ;;  %3914 = vmatpush.bf16.msra.mxu2 %v4541_v25 }
 0x2b5   : > { %v4914_v7 = vpop.eup %4913  ;;  %v3734_v26 = vadd.f32 %v3733_v36, %v7765_v2  ;;  %4925 = vrcp.f32 %v3645_v17  ;;  %v7776_v0 = vmul.f32 %v4912_v60, %v7659_v49 }
 0x2b6   : > { %v4916_v8 = vpop.eup %4915  ;;  %4927 = vpow2.f32 %v3618_v4  ;;  %v3648_v27 = vadd.f32 1.0, %v4914_v7 }
 0x2b7   : > { %v3735_v1 = vadd.f32 %v3734_v26, %v7768_v52  ;;  %v4918_v53 = vpop.eup %4917  ;;  %4929 = vrcp.f32 %v3646_v62  ;;  %v3649_v35 = vadd.f32 1.0, %v4916_v8 }
 0x2b8   : > { %v4920_v30 = vpop.eup %4919  ;;  %4931 = vpow2.f32 %v3620_v5  ;;  %v7781_v3 = vmul.f32 %v4918_v53, %v7674_v51 }
 0x2b9   : > { %v3736_v34 = vadd.f32 %v3735_v1, %v7773_v37  ;;  %v4922_v29 = vpop.eup %4921  ;;  %4933 = vrcp.f32 %v3647_v42  ;;  %v3650_v28 = vadd.f32 1.0, %v4920_v30 }
 0x2ba   : > { %v4924_v23 = vpop.eup %4923  ;;  %4935 = vrcp.f32 %v3648_v27  ;;  %v7785_v15 = vmul.f32 %v4922_v29, %v7684_v6 }
 0x2bb   : > { %v3737_v50 = vadd.f32 %v3736_v34, %v7776_v0  ;;  %v4926_v49 = vpop.eup %4925  ;;  %v3651_v19 = vadd.f32 1.0, %v4924_v23  ;;  %4937 = vrcp.f32 %v3649_v35 }
 0x2bc   : > { %v4928_v11 = vpop.eup %4927  ;;  %v7789_v41 = vmul.f32 %v4926_v49, %v7687_v45  ;;  %4939 = vrcp.f32 %v3650_v28  ;;  %v4973_v45 = vmov 256.0  }
 0x2bd   : > { %v3738_v54 = vadd.f32 %v3737_v50, %v7781_v3  ;;  %v4930_v13 = vpop.eup %4929  ;;  %v3652_v56 = vadd.f32 1.0, %v4928_v11  ;;  %4941 = vrcp.f32 %v3651_v19  ;;  %v3780_v19 = vld [vmem:[%s8094_s6] sm:$0x1] }
 0x2be   : > { %v4932_v44 = vpop.eup %4931  ;;  %v7793_v18 = vmul.f32 %v4930_v13, %v7695_v38  ;;  %4943 = vrcp.f32 %v4973_v45  ;;  %v4539_v13 = vld [vmem:[%s8095_s7 + $0x28] sm:$0xff] }
 0x2bf   : > { %v3739_v51 = vadd.f32 %v3738_v54, %v7785_v15  ;;  %v4934_v24 = vpop.eup %4933  ;;  %v3653_v32 = vadd.f32 1.0, %v4932_v44  ;;  %4945 = vrcp.f32 %v3652_v56  ;;  %v4538_v44 = vld [vmem:[%s8095_s7 + $0x20] sm:$0xff]  ;;  %v4535_v45 = vld [vmem:[%s8095_s7 + $0x8] sm:$0xff] }
 0x2c0   : > { %v4936_v58 = vpop.eup %4935  ;;  %v7797_v59 = vmul.f32 %v4934_v24, %v7700_v21 }
 0x2c1   : > { %v3740_v6 = vadd.f32 %v3739_v51, %v7789_v41  ;;  %v4938_v63 = vpop.eup %4937  ;;  %v7804_v38 = vmul.f32 %v4936_v58, %v7713_v14  ;;  %4947 = vrcp.f32 %v3653_v32  ;;  %v4536_v32 = vld [vmem:[%s8095_s7 + $0x10] sm:$0xff] }
 0x2c2   : > { %v4940_v17 = vpop.eup %4939  ;;  %v7808_v21 = vmul.f32 %v4938_v63, %v7720_v43 }
 0x2c3   : > { %v3741_v12 = vadd.f32 %v3740_v6, %v7793_v18  ;;  %v4942_v36 = vpop.eup %4941  ;;  %v7812_v62 = vmul.f32 %v4940_v17, %v7724_v46  ;;  %v4537_v6 = vld [vmem:[%s8095_s7 + $0x18] sm:$0xff] }
 0x2c4   : > { %v4944_v60 = vpop.eup %4943  ;;  %v7816_v14 = vmul.f32 %v4942_v36, %v7728_v22 }
 0x2c5   : > { %v3742_v4 = vadd.f32 %v3741_v12, %v7797_v59  ;;  %v4946_v5 = vpop.eup %4945  ;;  %v3756_v8 = vmul.f32 256.0, %v4944_v60  ;;  %vm3760_vm12 = vweird.f32 %v4944_v60 }
 0x2c6   : > { %v7820_v43 = vmul.f32 %v4946_v5, %v7734_v9  ;;  %v4547_v5 = vld [vmem:[%s8097_s9 + $0x28] sm:$0xff] }
 0x2c7   : > { %v3743_v48 = vadd.f32 %v3742_v4, %v7804_v38  ;;  %v4948_v42 = vpop.eup %4947  ;;  %v3757_v27 = vsub.f32 1.0, %v3756_v8  ;;  %v4534_v4 = vld [vmem:[%s8095_s7] sm:$0xff] }
 0x2c8   : > { %v7824_v53 = vmul.f32 %v4948_v42, %v7750_v57  ;;  %v4540_v57 = vld [vmem:[%s8095_s7 + $0x30] sm:$0xff] }
 0x2c9   : > { %v3744_v7 = vadd.f32 %v3743_v48, %v7808_v21  ;;  %v3758_v22 = vmul.f32 %v4944_v60, %v3757_v27  ;;  %3915 = vmatpush.bf16.msra.mxu2 %v4540_v57 }
 0x2cb   : > { %v3745_v26 = vadd.f32 %v3744_v7, %v7812_v62  ;;  %v3759_v23 = vadd.f32 %v4944_v60, %v3758_v22  ;;  %v4548_v7 = vld [vmem:[%s8097_s9 + $0x30] sm:$0xff] }
 0x2cc   : > { %v4544_v22 = vld [vmem:[%s8097_s9 + $0x10] sm:$0xff] }
 0x2cd   : > { %v3746_v1 = vadd.f32 %v3745_v26, %v7816_v14  ;;  %v3761_v9 = vsel %vm3760_vm12, %v4944_v60, %v3759_v23  ;;  %3916 = vmatpush.bf16.msra.mxu2 %v4539_v13  ;;  %v4549_v60 = vld [vmem:[%s8097_s9 + $0x38] sm:$0xff]  ;;  %v3865_v26 = vld [vmem:[%s8096_s8] sm:$0x1] }
 0x2ce   : > { %4161 = vmatpush.bf16.msra.mxu1 %v4549_v60  ;;  %4669 = vmatpush.bf16.msra.mxu3 %v4549_v60 }
 0x2cf   : > { %v3747_v46 = vadd.f32 %v3746_v1, %v7820_v43  ;;  %v4546_v1 = vld [vmem:[%s8097_s9 + $0x20] sm:$0xff] }
 0x2d1   : > { %v3748_v30 = vadd.f32 %v3747_v46, %v7824_v53  ;;  %3917 = vmatpush.bf16.msra.mxu2 %v4538_v44 }
 0x2d2   : > { %4162 = vmatpush.bf16.msra.mxu1 %v4548_v7  ;;  %4670 = vmatpush.bf16.msra.mxu3 %v4548_v7 }
 0x2d3   : > { %v3749_v34 = vrot.slane %v3748_v30, 4 }
 0x2d5   : > { %v3750_v29 = vadd.f32 %v3749_v34, %v3748_v30  ;;  %3918 = vmatpush.bf16.msra.mxu2 %v4537_v6  ;;  %v4545_v30 = vld [vmem:[%s8097_s9 + $0x18] sm:$0xff] }
 0x2d6   : > { %4163 = vmatpush.bf16.msra.mxu1 %v4547_v5  ;;  %4671 = vmatpush.bf16.msra.mxu3 %v4547_v5 }
 0x2d7   : > { %v3751_v35 = vrot.slane %v3750_v29, 2 }
 0x2d9   : > { %v3752_v50 = vadd.f32 %v3751_v35, %v3750_v29  ;;  %3919 = vmatpush.bf16.msra.mxu2 %v4536_v32  ;;  %v4543_v35 = vld [vmem:[%s8097_s9 + $0x8] sm:$0xff] }
 0x2da   : > { %4164 = vmatpush.bf16.msra.mxu1 %v4546_v1  ;;  %4672 = vmatpush.bf16.msra.mxu3 %v4546_v1 }
 0x2db   : > { %v3753_v49 = vrot.slane %v3752_v50, 1 }
 0x2dd   : > { %v3754_v28 = vadd.f32 %v3753_v49, %v3752_v50  ;;  %3920 = vmatpush.bf16.msra.mxu2 %v4535_v45  ;;  %v4542_v50 = vld [vmem:[%s8097_s9] sm:$0xff] }
 0x2de   : > { %4165 = vmatpush.bf16.msra.mxu1 %v4545_v30  ;;  %4673 = vmatpush.bf16.msra.mxu3 %v4545_v30  ;;  %v8524_v30 = vld [vmem:[#allocation50_spill] sm:$0xff] }
 0x2df   : > { %v3762_v11 = vmul.f32 %v3761_v9, %v3754_v28  ;;  %v8520_v28 = vld [vmem:[#allocation28_spill] sm:$0xff] }
 0x2e1   : > { %v3763_v54 = vpack.c.bf16 %v3762_v11, %v3762_v11  ;;  %3921 = vmatpush.bf16.msra.mxu2 %v4534_v4 }
 0x2e2   : > { %4166 = vmatpush.bf16.msra.mxu1 %v4544_v22  ;;  %4674 = vmatpush.bf16.msra.mxu3 %v4544_v22  ;;  %v8525_v22 = vld [vmem:[#allocation51_spill] sm:$0xff] }
 0x2e3   : > { %3837 = vmatmul.bf16.vlgmr.msrb.gmra.mxu2 %v3763_v54  ;;  %v8521_v54 = vld [vmem:[#allocation29_spill] sm:$0xff] }
 0x2e6   : > { %4167 = vmatpush.bf16.msra.mxu1 %v4543_v35  ;;  %4675 = vmatpush.bf16.msra.mxu3 %v4543_v35 }
 0x2ea   : > { %4168 = vmatpush.bf16.msra.mxu1 %v4542_v50  ;;  %4676 = vmatpush.bf16.msra.mxu3 %v4542_v50 }
 0x366   : > { %v3838_v51 = vpop.f32.mrf.mxu2 }
 0x367   : > { %v3839_v24 = vadd.f32 %v3838_v51, %v3780_v19 }
 0x369   : > { %v3842_v56 = vsub.f32 0.0, %v3839_v24 }
 0x36b   : > { %v3843_v58 = vmul.f32 1.442695, %v3842_v56 }
 0x36d   : > { %4949 = vpow2.f32 %v3843_v58 }
 0x36e   : > { %v3840_v12 = vpop.f32.mrf.mxu2 }
 0x373   : > { %v4950_v25 = vpop.eup %4949 }
 0x374   : > { %v3845_v63 = vadd.f32 1.0, %v4950_v25 }
 0x376   : > { %4951 = vrcp.f32 %v3845_v63  ;;  %v8522_v63 = vld [vmem:[#allocation44_spill] sm:$0xff] }
 0x37c   : > { %v4952_v17 = vpop.eup %4951 }
 0x37d   : > { %v3847_v48 = vmul.f32 %v4952_v17, %v3839_v24  ;;  %v8523_v17 = vld [vmem:[#allocation46_spill] sm:$0xff] }
 0x37f   : > { %v3848_v36 = vpack.c.bf16 %v3847_v48, %v3847_v48 }
 0x381   : > { %3922 = vmatmul.bf16.vlgmr.msra.gmra.mxu2 %v3848_v36 }
 0x404   : > { %v3923_v42 = vpop.f32.mrf.mxu2 }
 0x405   : > { %v3924_v8 = vadd.f32 %v3923_v42, %v3865_v26 }
 0x407   : > { %v3927_v46 = vsub.f32 0.0, %v3924_v8 }
 0x409   : > { %v3928_v27 = vmul.f32 1.442695, %v3927_v46 }
 0x40b   : > { %4953 = vpow2.f32 %v3928_v27 }
 0x40c   : > { %v3925_v34 = vpop.f32.mrf.mxu2 }
 0x411   : > { %v4954_v29 = vpop.eup %4953 }
 0x412   : > { %v3930_v23 = vadd.f32 1.0, %v4954_v29 }
 0x414   : > { %4955 = vrcp.f32 %v3930_v23 }
 0x41a   : > { %v4956_v49 = vpop.eup %4955 }
 0x41b   : > { %v7879_v9 = vperm.slane %v4956_v49, 0 }
 0x41d   : > { %v3933_v11 = vmul.f32 %v7879_v9, %v8520_v28  ;;  %v3934_v57 = vmul.f32 %v7879_v9, %v8521_v54  ;;  %v3949_v13 = vmul.f32 %v7879_v9, %v7759_v33  ;;  %v3950_v19 = vmul.f32 %v7879_v9, %v7765_v2 }
 0x41e   : > { %v3935_v4 = vmul.f32 %v7879_v9, %v8522_v63  ;;  %v3936_v33 = vmul.f32 %v7879_v9, %v8523_v17  ;;  %v3951_v2 = vmul.f32 %v7879_v9, %v7768_v52  ;;  %v3952_v48 = vmul.f32 %v7879_v9, %v7773_v37 }
 0x41f   : > { %v3965_v44 = vpack.c.bf16 %v3933_v11, %v3933_v11  ;;  %v3966_v51 = vpack.c.bf16 %v3934_v57, %v3934_v57  ;;  %v3981_v24 = vpack.c.bf16 %v3949_v13, %v3949_v13  ;;  %v3982_v56 = vpack.c.bf16 %v3950_v19, %v3950_v19 }
 0x420   : > { %v3967_v36 = vpack.c.bf16 %v3935_v4, %v3935_v4  ;;  %v3968_v60 = vpack.c.bf16 %v3936_v33, %v3936_v33  ;;  %v3983_v7 = vpack.c.bf16 %v3951_v2, %v3951_v2  ;;  %v3984_v5 = vpack.c.bf16 %v3952_v48, %v3952_v48 }
 0x421   : > { %v4049_v6 = vunpack.c.l.b16 %v3965_v44  ;;  %v4050_v58 = vunpack.c.l.b16 %v3966_v51  ;;  %v4065_v32 = vunpack.c.l.b16 %v3981_v24  ;;  %v4066_v12 = vunpack.c.l.b16 %v3982_v56  ;;  %v8526_v44 = vld [vmem:[#allocation53_spill] sm:$0xff] }
 0x422   : > { %v4051_v26 = vunpack.c.l.b16 %v3967_v36  ;;  %v4052_v42 = vunpack.c.l.b16 %v3968_v60  ;;  %v4067_v8 = vunpack.c.l.b16 %v3983_v7  ;;  %v4068_v1 = vunpack.c.l.b16 %v3984_v5 }
 0x423   : > { %v4081_v45 = vpack.c.b16 %v4050_v58, %v4049_v6  ;;  %v4089_v25 = vpack.c.b16 %v4066_v12, %v4065_v32  ;;  %v3937_v34 = vmul.f32 %v7879_v9, %v8524_v30  ;;  %v3938_v52 = vmul.f32 %v7879_v9, %v8525_v22 }
 0x424   : > { %v4082_v46 = vpack.c.b16 %v4052_v42, %v4051_v26  ;;  %v4090_v27 = vpack.c.b16 %v4068_v1, %v4067_v8  ;;  %v3953_v37 = vmul.f32 %v7879_v9, %v7776_v0  ;;  %v3954_v29 = vmul.f32 %v7879_v9, %v7781_v3 }
 0x425   : > { %4169 = vmatmul.bf16.vlgmr.msra.gmra.mxu1 %v4081_v45  ;;  %4209 = vmatmul.bf16.vlgmr.msra.gmra.mxu3 %v4089_v25  ;;  %v3969_v35 = vpack.c.bf16 %v3937_v34, %v3937_v34  ;;  %v3970_v23 = vpack.c.bf16 %v3938_v52, %v3938_v52  ;;  %v3939_v51 = vmul.f32 %v7879_v9, %v8526_v44 }
 0x426   : > { %v3985_v50 = vpack.c.bf16 %v3953_v37, %v3953_v37  ;;  %v3986_v49 = vpack.c.bf16 %v3954_v29, %v3954_v29  ;;  %v3940_v0 = vmul.f32 %v7879_v9, %v8513_v47  ;;  %v3955_v3 = vmul.f32 %v7879_v9, %v7785_v15 }
 0x427   : > { %v4053_v28 = vunpack.c.l.b16 %v3969_v35  ;;  %v4054_v11 = vunpack.c.l.b16 %v3970_v23  ;;  %v3956_v24 = vmul.f32 %v7879_v9, %v7789_v41  ;;  %v3971_v56 = vpack.c.bf16 %v3939_v51, %v3939_v51 }
 0x428   : > { %v4069_v54 = vunpack.c.l.b16 %v3985_v50  ;;  %v4070_v57 = vunpack.c.l.b16 %v3986_v49  ;;  %v3972_v6 = vpack.c.bf16 %v3940_v0, %v3940_v0  ;;  %v3987_v58 = vpack.c.bf16 %v3955_v3, %v3955_v3 }
 0x429   : > { %v4083_v13 = vpack.c.b16 %v4054_v11, %v4053_v28  ;;  %v3988_v32 = vpack.c.bf16 %v3956_v24, %v3956_v24  ;;  %v4055_v12 = vunpack.c.l.b16 %v3971_v56  ;;  %v3941_v47 = vmul.f32 %v7879_v9, %v8515_v10 }
 0x42a   : > { %v4091_v19 = vpack.c.b16 %v4070_v57, %v4069_v54  ;;  %v4056_v45 = vunpack.c.l.b16 %v3972_v6  ;;  %v4071_v25 = vunpack.c.l.b16 %v3987_v58  ;;  %v3942_v15 = vmul.f32 %v7879_v9, %v7705_v40 }
 0x42b   : > { %v4072_v63 = vunpack.c.l.b16 %v3988_v32  ;;  %v3957_v41 = vmul.f32 %v7879_v9, %v7793_v18  ;;  %v3958_v33 = vmul.f32 %v7879_v9, %v7797_v59  ;;  %v3973_v2 = vpack.c.bf16 %v3941_v47, %v3941_v47 }
 0x42c   : > { %v4084_v4 = vpack.c.b16 %v4056_v45, %v4055_v12  ;;  %v3974_v48 = vpack.c.bf16 %v3942_v15, %v3942_v15  ;;  %v3943_v10 = vmul.f32 %v7879_v9, %v7709_v61  ;;  %v3944_v40 = vmul.f32 %v7879_v9, %v7731_v31  ;;  %v4251_v15 = vld [vmem:[%s5054_s24 + $0x8] sm:$0xff] }
 0x42d   : > { %v4092_v17 = vpack.c.b16 %v4072_v63, %v4071_v25  ;;  %v3989_v36 = vpack.c.bf16 %v3957_v41, %v3957_v41  ;;  %v3990_v60 = vpack.c.bf16 %v3958_v33, %v3958_v33  ;;  %v4057_v7 = vunpack.c.l.b16 %v3973_v2 }
 0x42e   : > { %v4058_v5 = vunpack.c.l.b16 %v3974_v48  ;;  %v3959_v18 = vmul.f32 %v7879_v9, %v7804_v38  ;;  %v3960_v59 = vmul.f32 %v7879_v9, %v7808_v21  ;;  %v3945_v61 = vmul.f32 %v7879_v9, %v7737_v20 }
 0x42f   : > { %v4073_v26 = vunpack.c.l.b16 %v3989_v36  ;;  %v4074_v42 = vunpack.c.l.b16 %v3990_v60  ;;  %v3946_v31 = vmul.f32 %v7879_v9, %v7743_v39  ;;  %v3961_v38 = vmul.f32 %v7879_v9, %v7812_v62  ;;  %v4267_v36 = vld [vmem:[%s5054_s24 + $0x88] sm:$0xff] }
 0x430   : > { %v4085_v8 = vpack.c.b16 %v4058_v5, %v4057_v7  ;;  %v3991_v30 = vpack.c.bf16 %v3959_v18, %v3959_v18  ;;  %v3992_v34 = vpack.c.bf16 %v3960_v59, %v3960_v59  ;;  %v3962_v21 = vmul.f32 %v7879_v9, %v7816_v14  ;;  %v4252_v5 = vld [vmem:[%s5054_s24 + $0x10] sm:$0xff]  ;;  %v4253_v59 = vld [vmem:[%s5054_s24 + $0x18] sm:$0xff] }
 0x431   : > { %v4093_v1 = vpack.c.b16 %v4074_v42, %v4073_v26  ;;  %v3977_v50 = vpack.c.bf16 %v3945_v61, %v3945_v61  ;;  %v3978_v49 = vpack.c.bf16 %v3946_v31, %v3946_v31  ;;  %v3993_v28 = vpack.c.bf16 %v3961_v38, %v3961_v38  ;;  %v4270_v38 = vld [vmem:[%s5054_s24 + $0xa0] sm:$0xff] }
 0x432   : > { %v4075_v37 = vunpack.c.l.b16 %v3991_v30  ;;  %v4076_v29 = vunpack.c.l.b16 %v3992_v34  ;;  %v3994_v11 = vpack.c.bf16 %v3962_v21, %v3962_v21  ;;  %v3947_v20 = vmul.f32 %v7879_v9, %v7746_v16 }
 0x433   : > { %v4061_v54 = vunpack.c.l.b16 %v3977_v50  ;;  %v4062_v57 = vunpack.c.l.b16 %v3978_v49  ;;  %v3948_v39 = vmul.f32 %v7879_v9, %v7756_v55  ;;  %v3963_v62 = vmul.f32 %v7879_v9, %v7820_v43  ;;  %v7948_v43 = vld [vmem:[%s8098_s10] ss:$0 sm:$0xff]  ;;  %v4255_v49 = vld [vmem:[%s5054_s24 + $0x28] sm:$0xff] }
 0x434   : > { %v4094_v23 = vpack.c.b16 %v4076_v29, %v4075_v37  ;;  %v3964_v14 = vmul.f32 %v7879_v9, %v7824_v53  ;;  %v3979_v0 = vpack.c.bf16 %v3947_v20, %v3947_v20  ;;  %v4250_v9 = vld [vmem:[%s5054_s24] sm:$0xff] }
 0x435   : > { %4174 = vmatmul.bf16.gmra.mxu1 %v4082_v46  ;;  %4214 = vmatmul.bf16.gmra.mxu3 %v4090_v27  ;;  %v3975_v46 = vpack.c.bf16 %v3943_v10, %v3943_v10  ;;  %v3976_v27 = vpack.c.bf16 %v3944_v40, %v3944_v40  ;;  %v4087_v44 = vpack.c.b16 %v4062_v57, %v4061_v54  ;;  %v4268_v10 = vld [vmem:[%s5054_s24 + $0x90] sm:$0xff]  ;;  %v4254_v29 = vld [vmem:[%s5054_s24 + $0x20] sm:$0xff] }
 0x436   : > { %v3980_v3 = vpack.c.bf16 %v3948_v39, %v3948_v39  ;;  %v3995_v24 = vpack.c.bf16 %v3963_v62, %v3963_v62  ;;  %v3996_v56 = vpack.c.bf16 %v3964_v14, %v3964_v14  ;;  %v4063_v6 = vunpack.c.l.b16 %v3979_v0  ;;  %v4272_v0 = vld [vmem:[%s5054_s24 + $0xb0] sm:$0xff] }
 0x437   : > { %v4059_v22 = vunpack.c.l.b16 %v3975_v46  ;;  %v4060_v52 = vunpack.c.l.b16 %v3976_v27 }
 0x438   : > { %v4064_v58 = vunpack.c.l.b16 %v3980_v3  ;;  %v4079_v32 = vunpack.c.l.b16 %v3995_v24  ;;  %v4080_v16 = vunpack.c.l.b16 %v3996_v56  ;;  %v4257_v56 = vld [vmem:[%s5054_s24 + $0x38] sm:$0xff] }
 0x439   : > { %v4086_v35 = vpack.c.b16 %v4060_v52, %v4059_v22  ;;  %v4269_v22 = vld [vmem:[%s5054_s24 + $0x98] sm:$0xff] }
 0x43a   : > { %v4088_v12 = vpack.c.b16 %v4064_v58, %v4063_v6  ;;  %v4096_v55 = vpack.c.b16 %v4080_v16, %v4079_v32 }
 0x445   : > { %4179 = vmatmul.bf16.gmra.mxu1 %v4083_v13  ;;  %4219 = vmatmul.bf16.gmra.mxu3 %v4091_v19  ;;  %v4077_v13 = vunpack.c.l.b16 %v3993_v28  ;;  %v4078_v19 = vunpack.c.l.b16 %v3994_v11 }
 0x447   : > { %v4095_v51 = vpack.c.b16 %v4078_v19, %v4077_v13  ;;  %v4271_v13 = vld [vmem:[%s5054_s24 + $0xa8] sm:$0xff] }
 0x455   : > { %4184 = vmatmul.bf16.gmra.mxu1 %v4084_v4  ;;  %4224 = vmatmul.bf16.gmra.mxu3 %v4092_v17  ;;  %v4266_v4 = vld [vmem:[%s5054_s24 + $0x80] sm:$0xff] }
 0x465   : > { %4189 = vmatmul.bf16.gmra.mxu1 %v4085_v8  ;;  %4229 = vmatmul.bf16.gmra.mxu3 %v4093_v1 }
 0x475   : > { %4194 = vmatmul.bf16.gmra.mxu1 %v4086_v35  ;;  %4234 = vmatmul.bf16.gmra.mxu3 %v4094_v23 }
 0x485   : > { %4199 = vmatmul.bf16.gmra.mxu1 %v4087_v44  ;;  %4239 = vmatmul.bf16.gmra.mxu3 %v4095_v51  ;;  %v4256_v51 = vld [vmem:[%s5054_s24 + $0x30] sm:$0xff] }
 0x495   : > { %4204 = vmatmul.bf16.gmra.mxu1 %v4088_v12  ;;  %4244 = vmatmul.bf16.gmra.mxu3 %v4096_v55  ;;  %v4273_v12 = vld [vmem:[%s5054_s24 + $0xb8] sm:$0xff] }
 0x4a2   : > { %v4170_v53 = vpop.f32.mrf.mxu1 }
 0x4a3   : > { %v4171_v45 = vadd.f32 %v7948_v43, %v4170_v53 }
 0x4a5   : > { %v4282_v25 = vadd.f32 %v4250_v9, %v4171_v45  ;;  %v4258_v9 = vld [vmem:[%s5054_s24 + $0x40] sm:$0xff] }
 0x4a7   : > { %4314 = vst.msk [vmem:[%s7957_s28] sm:$0xff] %vm537_vm1, %v4282_v25 }
 0x4a8   : > { %v4210_v63 = vpop.f32.mrf.mxu3 }
 0x4a9   : > { %v4211_v17 = vadd.f32 %v7948_v43, %v4210_v63 }
 0x4aa   : > { %v4172_v47 = vpop.f32.mrf.mxu1 }
 0x4ab   : > { %v4298_v41 = vadd.f32 %v4266_v4, %v4211_v17  ;;  %v4173_v33 = vadd.f32 %v7948_v43, %v4172_v47  ;;  %v4274_v17 = vld [vmem:[%s5054_s24 + $0xc0] sm:$0xff] }
 0x4ad   : > { %4330 = vst.msk [vmem:[%s7957_s28 + $0x80] sm:$0xff] %vm537_vm1, %v4298_v41  ;;  %v4283_v2 = vadd.f32 %v4251_v15, %v4173_v33  ;;  %v4259_v41 = vld [vmem:[%s5054_s24 + $0x48] sm:$0xff] }
 0x4af   : > { %4315 = vst.msk [vmem:[%s7957_s28 + $0x8] sm:$0xff] %vm537_vm1, %v4283_v2 }
 0x4b0   : > { %v4212_v48 = vpop.f32.mrf.mxu3 }
 0x4b1   : > { %v4213_v60 = vadd.f32 %v7948_v43, %v4212_v48 }
 0x4b2   : > { %v4175_v7 = vpop.f32.mrf.mxu1 }
 0x4b3   : > { %v4299_v26 = vadd.f32 %v4267_v36, %v4213_v60  ;;  %v4176_v42 = vadd.f32 %v7948_v43, %v4175_v7  ;;  %v4275_v60 = vld [vmem:[%s5054_s24 + $0xc8] sm:$0xff] }
 0x4b5   : > { %4331 = vst.msk [vmem:[%s7957_s28 + $0x88] sm:$0xff] %vm537_vm1, %v4299_v26  ;;  %v4284_v8 = vadd.f32 %v4252_v5, %v4176_v42  ;;  %v4260_v26 = vld [vmem:[%s5054_s24 + $0x50] sm:$0xff] }
 0x4b7   : > { %4316 = vst.msk [vmem:[%s7957_s28 + $0x10] sm:$0xff] %vm537_vm1, %v4284_v8 }
 0x4b8   : > { %v4215_v1 = vpop.f32.mrf.mxu3 }
 0x4b9   : > { %v4216_v40 = vadd.f32 %v7948_v43, %v4215_v1 }
 0x4ba   : > { %v4177_v18 = vpop.f32.mrf.mxu1 }
 0x4bb   : > { %v4300_v46 = vadd.f32 %v4268_v10, %v4216_v40  ;;  %v4178_v27 = vadd.f32 %v7948_v43, %v4177_v18  ;;  %v4276_v40 = vld [vmem:[%s5054_s24 + $0xd0] sm:$0xff] }
 0x4bd   : > { %4332 = vst.msk [vmem:[%s7957_s28 + $0x90] sm:$0xff] %vm537_vm1, %v4300_v46  ;;  %v4285_v30 = vadd.f32 %v4253_v59, %v4178_v27  ;;  %v4261_v46 = vld [vmem:[%s5054_s24 + $0x58] sm:$0xff] }
 0x4bf   : > { %4317 = vst.msk [vmem:[%s7957_s28 + $0x18] sm:$0xff] %vm537_vm1, %v4285_v30 }
 0x4c0   : > { %v4217_v34 = vpop.f32.mrf.mxu3 }
 0x4c1   : > { %v4218_v52 = vadd.f32 %v7948_v43, %v4217_v34 }
 0x4c2   : > { %v4180_v37 = vpop.f32.mrf.mxu1 }
 0x4c3   : > { %v4301_v35 = vadd.f32 %v4269_v22, %v4218_v52  ;;  %v4181_v23 = vadd.f32 %v7948_v43, %v4180_v37  ;;  %v4277_v52 = vld [vmem:[%s5054_s24 + $0xd8] sm:$0xff] }
 0x4c5   : > { %4333 = vst.msk [vmem:[%s7957_s28 + $0x98] sm:$0xff] %vm537_vm1, %v4301_v35  ;;  %v4286_v61 = vadd.f32 %v4254_v29, %v4181_v23  ;;  %v4262_v35 = vld [vmem:[%s5054_s24 + $0x60] sm:$0xff] }
 0x4c7   : > { %4318 = vst.msk [vmem:[%s7957_s28 + $0x20] sm:$0xff] %vm537_vm1, %v4286_v61 }
 0x4c8   : > { %v4220_v31 = vpop.f32.mrf.mxu3 }
 0x4c9   : > { %v4221_v21 = vadd.f32 %v7948_v43, %v4220_v31 }
 0x4ca   : > { %v4182_v50 = vpop.f32.mrf.mxu1 }
 0x4cb   : > { %v4302_v28 = vadd.f32 %v4270_v38, %v4221_v21  ;;  %v4183_v11 = vadd.f32 %v7948_v43, %v4182_v50  ;;  %v4278_v21 = vld [vmem:[%s5054_s24 + $0xe0] sm:$0xff] }
 0x4cd   : > { %4334 = vst.msk [vmem:[%s7957_s28 + $0xa0] sm:$0xff] %vm537_vm1, %v4302_v28  ;;  %v4287_v54 = vadd.f32 %v4255_v49, %v4183_v11  ;;  %v4263_v28 = vld [vmem:[%s5054_s24 + $0x68] sm:$0xff] }
 0x4cf   : > { %4319 = vst.msk [vmem:[%s7957_s28 + $0x28] sm:$0xff] %vm537_vm1, %v4287_v54 }
 0x4d0   : > { %v4222_v57 = vpop.f32.mrf.mxu3 }
 0x4d1   : > { %v4223_v19 = vadd.f32 %v7948_v43, %v4222_v57 }
 0x4d2   : > { %v4185_v44 = vpop.f32.mrf.mxu1 }
 0x4d3   : > { %v4303_v20 = vadd.f32 %v4271_v13, %v4223_v19  ;;  %v4186_v39 = vadd.f32 %v7948_v43, %v4185_v44  ;;  %v4279_v19 = vld [vmem:[%s5054_s24 + $0xe8] sm:$0xff] }
 0x4d5   : > { %4335 = vst.msk [vmem:[%s7957_s28 + $0xa8] sm:$0xff] %vm537_vm1, %v4303_v20  ;;  %v4288_v62 = vadd.f32 %v4256_v51, %v4186_v39  ;;  %v4264_v20 = vld [vmem:[%s5054_s24 + $0x70] sm:$0xff] }
 0x4d7   : > { %4320 = vst.msk [vmem:[%s7957_s28 + $0x30] sm:$0xff] %vm537_vm1, %v4288_v62 }
 0x4d8   : > { %v4225_v14 = vpop.f32.mrf.mxu3 }
 0x4d9   : > { %v4226_v3 = vadd.f32 %v7948_v43, %v4225_v14 }
 0x4da   : > { %v4187_v24 = vpop.f32.mrf.mxu1 }
 0x4db   : > { %v4304_v6 = vadd.f32 %v4272_v0, %v4226_v3  ;;  %v4188_v58 = vadd.f32 %v7948_v43, %v4187_v24  ;;  %v4280_v3 = vld [vmem:[%s5054_s24 + $0xf0] sm:$0xff] }
 0x4dd   : > { %4336 = vst.msk [vmem:[%s7957_s28 + $0xb0] sm:$0xff] %vm537_vm1, %v4304_v6  ;;  %v4289_v32 = vadd.f32 %v4257_v56, %v4188_v58  ;;  %v4265_v6 = vld [vmem:[%s5054_s24 + $0x78] sm:$0xff] }
 0x4df   : > { %4321 = vst.msk [vmem:[%s7957_s28 + $0x38] sm:$0xff] %vm537_vm1, %v4289_v32 }
 0x4e0   : > { %v4227_v16 = vpop.f32.mrf.mxu3 }
 0x4e1   : > { %v4228_v55 = vadd.f32 %v7948_v43, %v4227_v16 }
 0x4e2   : > { %v4190_v53 = vpop.f32.mrf.mxu1 }
 0x4e3   : > { %v4305_v45 = vadd.f32 %v4273_v12, %v4228_v55  ;;  %v4191_v25 = vadd.f32 %v7948_v43, %v4190_v53  ;;  %v4281_v55 = vld [vmem:[%s5054_s24 + $0xf8] sm:$0xff] }
 0x4e5   : > { %4337 = vst.msk [vmem:[%s7957_s28 + $0xb8] sm:$0xff] %vm537_vm1, %v4305_v45  ;;  %v4290_v63 = vadd.f32 %v4258_v9, %v4191_v25 }
 0x4e7   : > { %4322 = vst.msk [vmem:[%s7957_s28 + $0x40] sm:$0xff] %vm537_vm1, %v4290_v63 }
 0x4e8   : > { %v4230_v4 = vpop.f32.mrf.mxu3 }
 0x4e9   : > { %v4231_v47 = vadd.f32 %v7948_v43, %v4230_v4 }
 0x4ea   : > { %v4192_v15 = vpop.f32.mrf.mxu1 }
 0x4eb   : > { %v4306_v33 = vadd.f32 %v4274_v17, %v4231_v47  ;;  %v4193_v2 = vadd.f32 %v7948_v43, %v4192_v15 }
 0x4ed   : > { %4338 = vst.msk [vmem:[%s7957_s28 + $0xc0] sm:$0xff] %vm537_vm1, %v4306_v33  ;;  %v4291_v48 = vadd.f32 %v4259_v41, %v4193_v2 }
 0x4ef   : > { %4323 = vst.msk [vmem:[%s7957_s28 + $0x48] sm:$0xff] %vm537_vm1, %v4291_v48 }
 0x4f0   : > { %v4232_v36 = vpop.f32.mrf.mxu3 }
 0x4f1   : > { %v4233_v7 = vadd.f32 %v7948_v43, %v4232_v36 }
 0x4f2   : > { %v4195_v5 = vpop.f32.mrf.mxu1 }
 0x4f3   : > { %v4307_v42 = vadd.f32 %v4275_v60, %v4233_v7  ;;  %v4196_v8 = vadd.f32 %v7948_v43, %v4195_v5 }
 0x4f5   : > { %4339 = vst.msk [vmem:[%s7957_s28 + $0xc8] sm:$0xff] %vm537_vm1, %v4307_v42  ;;  %v4292_v1 = vadd.f32 %v4260_v26, %v4196_v8 }
 0x4f7   : > { %4324 = vst.msk [vmem:[%s7957_s28 + $0x50] sm:$0xff] %vm537_vm1, %v4292_v1 }
 0x4f8   : > { %v4235_v10 = vpop.f32.mrf.mxu3 }
 0x4f9   : > { %v4236_v18 = vadd.f32 %v7948_v43, %v4235_v10 }
 0x4fa   : > { %v4197_v59 = vpop.f32.mrf.mxu1 }
 0x4fb   : > { %v4308_v27 = vadd.f32 %v4276_v40, %v4236_v18  ;;  %v4198_v30 = vadd.f32 %v7948_v43, %v4197_v59 }
 0x4fd   : > { %4340 = vst.msk [vmem:[%s7957_s28 + $0xd0] sm:$0xff] %vm537_vm1, %v4308_v27  ;;  %v4293_v34 = vadd.f32 %v4261_v46, %v4198_v30 }
 0x4ff   : > { %4325 = vst.msk [vmem:[%s7957_s28 + $0x58] sm:$0xff] %vm537_vm1, %v4293_v34 }
 0x500   : > { %v4237_v22 = vpop.f32.mrf.mxu3 }
 0x501   : > { %v4238_v37 = vadd.f32 %v7948_v43, %v4237_v22 }
 0x502   : > { %v4200_v29 = vpop.f32.mrf.mxu1 }
 0x503   : > { %v4309_v23 = vadd.f32 %v4277_v52, %v4238_v37  ;;  %v4201_v61 = vadd.f32 %v7948_v43, %v4200_v29 }
 0x505   : > { %4341 = vst.msk [vmem:[%s7957_s28 + $0xd8] sm:$0xff] %vm537_vm1, %v4309_v23  ;;  %v4294_v31 = vadd.f32 %v4262_v35, %v4201_v61 }
 0x507   : > { %4326 = vst.msk [vmem:[%s7957_s28 + $0x60] sm:$0xff] %vm537_vm1, %v4294_v31 }
 0x508   : > { %v4240_v38 = vpop.f32.mrf.mxu3 }
 0x509   : > { %v4241_v50 = vadd.f32 %v7948_v43, %v4240_v38 }
 0x50a   : > { %v4202_v49 = vpop.f32.mrf.mxu1 }
 0x50b   : > { %v4310_v11 = vadd.f32 %v4278_v21, %v4241_v50  ;;  %v4203_v54 = vadd.f32 %v7948_v43, %v4202_v49 }
 0x50d   : > { %4342 = vst.msk [vmem:[%s7957_s28 + $0xe0] sm:$0xff] %vm537_vm1, %v4310_v11  ;;  %v4295_v57 = vadd.f32 %v4263_v28, %v4203_v54 }
 0x50f   : > { %4327 = vst.msk [vmem:[%s7957_s28 + $0x68] sm:$0xff] %vm537_vm1, %v4295_v57 }
 0x510   : > { %v4242_v13 = vpop.f32.mrf.mxu3 }
 0x511   : > { %v4243_v44 = vadd.f32 %v7948_v43, %v4242_v13 }
 0x512   : > { %v4205_v51 = vpop.f32.mrf.mxu1 }
 0x513   : > { %v4311_v39 = vadd.f32 %v4279_v19, %v4243_v44  ;;  %v4206_v62 = vadd.f32 %v7948_v43, %v4205_v51 }
 0x515   : > { %4343 = vst.msk [vmem:[%s7957_s28 + $0xe8] sm:$0xff] %vm537_vm1, %v4311_v39  ;;  %v4296_v14 = vadd.f32 %v4264_v20, %v4206_v62 }
 0x517   : > { %4328 = vst.msk [vmem:[%s7957_s28 + $0x70] sm:$0xff] %vm537_vm1, %v4296_v14 }
 0x518   : > { %v4245_v0 = vpop.f32.mrf.mxu3 }
 0x519   : > { %v4246_v24 = vadd.f32 %v7948_v43, %v4245_v0 }
 0x51a   : > { %v4207_v56 = vpop.f32.mrf.mxu1 }
 0x51b   : > { %v4312_v58 = vadd.f32 %v4280_v3, %v4246_v24  ;;  %v4208_v32 = vadd.f32 %v7948_v43, %v4207_v56 }
 0x51d   : > { %4344 = vst.msk [vmem:[%s7957_s28 + $0xf0] sm:$0xff] %vm537_vm1, %v4312_v58  ;;  %v4297_v16 = vadd.f32 %v4265_v6, %v4208_v32 }
 0x51f   : > { %4329 = vst.msk [vmem:[%s7957_s28 + $0x78] sm:$0xff] %vm537_vm1, %v4297_v16 }
 0x520   : > { %v4247_v12 = vpop.f32.mrf.mxu3 }
 0x521   : > { %v4248_v53 = vadd.f32 %v7948_v43, %v4247_v12 }
 0x523   : > { %v4313_v9 = vadd.f32 %v4281_v55, %v4248_v53 }
 0x525   : > { %4345 = vst.msk [vmem:[%s7957_s28 + $0xf8] sm:$0xff] %vm537_vm1, %v4313_v9 }
 0x526 PF: > { %s21_s17 = sadd.s32 1, %s4970_s17  }
 0x527   : > { %p18_p4 = scmp.ge.s32.totalorder %s21_s17, 4  }
 0x529   :  { %20 = sbr.rel (!%p18_p4) target bundleno = 1 (0x1), region = 97 }

</bundles_post_ra>
